<compile_context>
chip_gen: v7x
topology: tpu7x:2x2x1
jax: 0.10.0
libtpu: 0.0.40
codegen_flags: <defaults>
</compile_context>

<pallas_src>
import functools
import numpy as np
import jax
import jax.numpy as jnp
from jax.experimental import pallas as pl
from jax.experimental.pallas import tpu as pltpu


# ----------------------------------------------------------------------------
# Pallas GEMM kernel: o = act(a @ b + bias [+ residual])
# ----------------------------------------------------------------------------

def _gemm_kernel(*refs, act, has_res, multi_k):
    if multi_k:
        if has_res:
            a_ref, b_ref, bias_ref, res_ref, o_ref, acc_ref = refs
        else:
            a_ref, b_ref, bias_ref, o_ref, acc_ref = refs
            res_ref = None

        @pl.when(pl.program_id(2) == 0)
        def _():
            acc_ref[...] = jnp.zeros_like(acc_ref)

        acc_ref[...] += jnp.dot(a_ref[...], b_ref[...],
                                preferred_element_type=jnp.float32)

        @pl.when(pl.program_id(2) == pl.num_programs(2) - 1)
        def _():
            out = acc_ref[...] + bias_ref[...]
            if has_res:
                out = out + res_ref[...]
            if act == "relu":
                out = jnp.maximum(out, 0.0)
            o_ref[...] = out.astype(o_ref.dtype)
    else:
        # Single K step: no accumulator scratch, no pl.when.
        if has_res:
            a_ref, b_ref, bias_ref, res_ref, o_ref = refs
        else:
            a_ref, b_ref, bias_ref, o_ref = refs
            res_ref = None
        out = jnp.dot(a_ref[...], b_ref[...],
                      preferred_element_type=jnp.float32) + bias_ref[...]
        if has_res:
            out = out + res_ref[...]
        if act == "relu":
            out = jnp.maximum(out, 0.0)
        o_ref[...] = out.astype(o_ref.dtype)


def _round_up(x, m):
    return ((x + m - 1) // m) * m


def matmul_bias_act(a, b, bias, act="none", residual=None):
    """o = act(a @ b + bias [+ residual]).  a:(M,K)  b:(K,N)  bias:(N,).

    A/B run through the MXU in bf16 with f32 accumulation; bias / residual /
    output stay f32.
    """
    M, K = a.shape
    K2, N = b.shape
    assert K == K2, (a.shape, b.shape)

    tn = 128
    tk = min(512, _round_up(K, 128))
    tm = min(512, _round_up(M, 8))
    Np = _round_up(N, tn)
    # Keep at least two parallel grid blocks when possible (v7x: 2 TCs/chip).
    if (pl.cdiv(M, tm) * (Np // tn)) < 2 and M > 8:
        tm = _round_up((M + 1) // 2, 8)
    Mp = _round_up(M, tm)
    Kp = _round_up(K, tk)

    a_p = a.astype(jnp.bfloat16)
    if (Mp, Kp) != (M, K):
        a_p = jnp.pad(a_p, ((0, Mp - M), (0, Kp - K)))
    b_p = b.astype(jnp.bfloat16)
    if (Kp, Np) != (K, N):
        b_p = jnp.pad(b_p, ((0, Kp - K), (0, Np - N)))
    bias_p = bias.astype(jnp.float32).reshape(1, -1)
    if Np != N:
        bias_p = jnp.pad(bias_p, ((0, 0), (0, Np - N)))

    has_res = residual is not None
    if has_res:
        Mr, Nr = residual.shape
        res_p = residual.astype(jnp.float32)
        if (Mp, Np) != (Mr, Nr):
            res_p = jnp.pad(res_p, ((0, Mp - Mr), (0, Np - Nr)))

    kgrid = Kp // tk
    if kgrid == 1:
        grid = (Mp // tm, Np // tn)
        in_specs = [
            pl.BlockSpec((tm, Kp), lambda i, j: (i, 0)),
            pl.BlockSpec((Kp, tn), lambda i, j: (0, j)),
            pl.BlockSpec((1, tn), lambda i, j: (0, j)),
        ]
        if has_res:
            in_specs.append(pl.BlockSpec((tm, tn), lambda i, j: (i, j)))
        out_specs = pl.BlockSpec((tm, tn), lambda i, j: (i, j))
        scratch = []
        sem = ("parallel", "parallel")
        kern = functools.partial(_gemm_kernel, act=act, has_res=has_res,
                                 multi_k=False)
    else:
        grid = (Mp // tm, Np // tn, kgrid)
        in_specs = [
            pl.BlockSpec((tm, tk), lambda i, j, k: (i, k)),
            pl.BlockSpec((tk, tn), lambda i, j, k: (k, j)),
            pl.BlockSpec((1, tn), lambda i, j, k: (0, j)),
        ]
        if has_res:
            in_specs.append(pl.BlockSpec((tm, tn), lambda i, j, k: (i, j)))
        out_specs = pl.BlockSpec((tm, tn), lambda i, j, k: (i, j))
        scratch = [pltpu.VMEM((tm, tn), jnp.float32)]
        sem = ("parallel", "parallel", "arbitrary")
        kern = functools.partial(_gemm_kernel, act=act, has_res=has_res,
                                 multi_k=True)

    args = (a_p, b_p, bias_p) + ((res_p,) if has_res else ())
    out = pl.pallas_call(
        kern,
        out_shape=jax.ShapeDtypeStruct((Mp, Np), jnp.float32),
        grid_spec=pltpu.PrefetchScalarGridSpec(
            num_scalar_prefetch=0,
            grid=grid,
            in_specs=in_specs,
            out_specs=out_specs,
            scratch_shapes=scratch,
        ),
        compiler_params=pltpu.CompilerParams(dimension_semantics=sem),
    )(*args)
    return out[:M, :N]


# ----------------------------------------------------------------------------
# Convolutions on top of the Pallas GEMM (channels-last NDHWC)
# ----------------------------------------------------------------------------

def conv1x1(x, w, b, act="none", residual=None):
    """1x1x1 conv: pure GEMM over the contiguous channel axis."""
    N, D, H, W, C = x.shape
    out = matmul_bias_act(x.reshape(-1, C), w, b, act=act, residual=residual)
    return out.reshape(N, D, H, W, -1)


def conv3x3_same(x, w, b, act="none", residual=None):
    """3x3x3 'same' conv. w is pre-packed (27*Cin, Cout), tap-major."""
    # TODO(synk): im2col is still materialized (channels-last, no transposes);
    # element-indexed BlockSpecs would move taps onto the GEMM K grid axis.
    N, D, H, W, C = x.shape
    xp = jnp.pad(x.astype(jnp.bfloat16),
                 ((0, 0), (1, 1), (1, 1), (1, 1), (0, 0)))
    cols = []
    for kd in range(3):
        for kh in range(3):
            for kw in range(3):
                cols.append(xp[:, kd:kd + D, kh:kh + H, kw:kw + W, :])
    a = jnp.stack(cols, axis=4).reshape(N * D * H * W, 27 * C)
    out = matmul_bias_act(a, w, b, act=act, residual=residual)
    return out.reshape(N, D, H, W, -1)


# Per output-parity taps for ConvTranspose(k=3, s=2, p=1, op=1):
#   even output (p=0): kernel tap 1, input shift 0
#   odd  output (p=1): kernel tap 2 @ shift 0  +  kernel tap 0 @ shift +1
_AXIS_TAPS = ([(1, 0)], [(2, 0), (0, 1)])


def _pack_convt_phases(w):
    """ConvTranspose3d weight (Cin, Cout, 3,3,3) -> 8 per-phase (T*Cin, Cout)
    bf16 GEMM weights; tap order matches conv_transpose3d_x2's slices."""
    phases = []
    for pd in range(2):
        for ph in range(2):
            for pw in range(2):
                mats = []
                for td, _ in _AXIS_TAPS[pd]:
                    for th, _ in _AXIS_TAPS[ph]:
                        for tw, _ in _AXIS_TAPS[pw]:
                            mats.append(w[:, :, td, th, tw])
                phases.append(jnp.concatenate(mats, axis=0).astype(jnp.bfloat16))
    return phases


def conv_transpose3d_x2(x, phase_ws, b):
    """ConvTranspose3d(kernel=3, stride=2, padding=1, output_padding=1) via the
    sub-pixel phase decomposition: 8 small convs on the original-resolution
    input, interleaved into the 2x-upsampled output. No zero-dilated input."""
    N, D, H, W, C = x.shape
    Cout = phase_ws[0].shape[1]
    xq = jnp.pad(x.astype(jnp.bfloat16),
                 ((0, 0), (0, 1), (0, 1), (0, 1), (0, 0)))
    outs = []
    i = 0
    for pd in range(2):
        for ph in range(2):
            for pw in range(2):
                cols = []
                for _, sd in _AXIS_TAPS[pd]:
                    for _, sh in _AXIS_TAPS[ph]:
                        for _, sw in _AXIS_TAPS[pw]:
                            cols.append(xq[:, sd:sd + D, sh:sh + H, sw:sw + W, :])
                if len(cols) == 1:
                    a = cols[0].reshape(N * D * H * W, C)
                else:
                    a = jnp.stack(cols, axis=4).reshape(N * D * H * W,
                                                        len(cols) * C)
                po = matmul_bias_act(a, phase_ws[i], b)
                outs.append(po.reshape(N, D, H, W, Cout))
                i += 1
    full = jnp.stack(outs, axis=0).reshape(2, 2, 2, N, D, H, W, Cout)
    full = full.transpose(3, 4, 0, 5, 1, 6, 2, 7)
    return full.reshape(N, 2 * D, 2 * H, 2 * W, Cout)


# ----------------------------------------------------------------------------
# Model: parameters + forward
# ----------------------------------------------------------------------------

class _KeyGen:
    def __init__(self, key):
        self._key = key
        self._i = 0

    def __call__(self):
        self._i += 1
        return jax.random.fold_in(self._key, self._i)


def _init(key, shape, scale):
    return jax.random.normal(key, shape, jnp.float32) * scale


def _make_vrn(kg, cin, cout):
    ch = cout // 2
    p = dict(
        wa=_init(kg(), (ch, cin, 3, 3, 3), 1.0 / np.sqrt(cin * 27)),
        ba=_init(kg(), (ch,), 0.01),
        wb1=_init(kg(), (ch, cin, 1, 1, 1), 1.0 / np.sqrt(cin)),
        bb1=_init(kg(), (ch,), 0.01),
        wb2=_init(kg(), (ch, ch, 3, 3, 3), 1.0 / np.sqrt(ch * 27)),
        bb2=_init(kg(), (ch,), 0.01),
    )
    if cin != cout:
        p["ws"] = _init(kg(), (cout, cin, 1, 1, 1), 1.0 / np.sqrt(cin))
        p["bs"] = _init(kg(), (cout,), 0.01)
    return p


def _pack_conv3_weight(w):
    """(Cout, Cin, 3,3,3) -> (27*Cin, Cout) bf16, K tap-major / channel-minor."""
    cout = w.shape[0]
    return jnp.asarray(w).transpose(2, 3, 4, 1, 0).reshape(-1, cout).astype(
        jnp.bfloat16)


def _pack_conv1_weight(w):
    """(Cout, Cin, 1,1,1) -> (Cin, Cout) bf16."""
    return jnp.asarray(w).reshape(w.shape[0], w.shape[1]).T.astype(jnp.bfloat16)


def _pack_vrn(p):
    q = dict(wa=_pack_conv3_weight(p["wa"]), ba=p["ba"],
             wb1=_pack_conv1_weight(p["wb1"]), bb1=p["bb1"],
             wb2=_pack_conv3_weight(p["wb2"]), bb2=p["bb2"])
    if "ws" in p:
        q["ws"] = _pack_conv1_weight(p["ws"])
        q["bs"] = p["bs"]
    return q


def build_params(key, f_dim, e_dim, grid_size, vrn_dim,
                 n_conv_t_decoder_layers, vrn_depth):
    max_levels = int(np.log2(grid_size))
    assert 2 ** max_levels == grid_size
    assert n_conv_t_decoder_layers >= 1
    assert max_levels >= n_conv_t_decoder_layers

    kg = _KeyGen(key)
    L = n_conv_t_decoder_layers
    r = grid_size // 2 ** L
    c0 = vrn_dim * 2 ** L
    input_out_size = c0 * r ** 3

    # fc_input + bn_input (eval-mode BN folded into the linear layer).
    fc_w = _init(kg(), (e_dim, input_out_size), 1.0 / np.sqrt(e_dim))
    fc_b = _init(kg(), (input_out_size,), 0.01)
    bn_gamma = 1.0 + 0.1 * jax.random.normal(kg(), (input_out_size,), jnp.float32)
    bn_beta = 0.1 * jax.random.normal(kg(), (input_out_size,), jnp.float32)
    bn_mean = 0.05 * jax.random.normal(kg(), (input_out_size,), jnp.float32)
    bn_var = 0.9 + 0.2 * jnp.abs(jax.random.normal(kg(), (input_out_size,),
                                                   jnp.float32))
    eps = 1e-5
    scale = bn_gamma / jnp.sqrt(bn_var + eps)
    fc_w_folded = fc_w * scale[None, :]
    fc_b_folded = (fc_b - bn_mean) * scale + bn_beta

    # Fold the NCDHW->NDHWC layout change of `.view(B, C, r, r, r)` into a
    # column permutation of the fc weights (zero runtime cost).
    perm = np.arange(input_out_size).reshape(c0, r, r, r).transpose(
        1, 2, 3, 0).reshape(-1)
    fc_w_folded = fc_w_folded[:, perm].astype(jnp.bfloat16)
    fc_b_folded = fc_b_folded[perm]

    stages = []
    for i in range(L):
        in_dim = 2 ** (L - i) * vrn_dim
        out_dim = 2 ** (L - i - 1) * vrn_dim
        vrns = [_pack_vrn(_make_vrn(kg, in_dim, out_dim))]
        for _ in range(vrn_depth - 1):
            vrns.append(_pack_vrn(_make_vrn(kg, out_dim, out_dim)))
        ct_out = out_dim if i < L - 1 else f_dim
        ct_w = _init(kg(), (out_dim, ct_out, 3, 3, 3),
                     1.0 / np.sqrt(out_dim * 27))
        ct_b = _init(kg(), (ct_out,), 0.01)
        stages.append(dict(vrns=vrns,
                           ct_w_phases=_pack_convt_phases(ct_w),
                           ct_b=ct_b))

    cfg = dict(f_dim=f_dim, e_dim=e_dim, grid_size=grid_size,
               input_resolution=r)
    params = dict(fc_w=fc_w_folded, fc_b=fc_b_folded, stages=stages)
    return params, cfg


def vrn_forward(x, p):
    """Stand-in Voxception-ResNet block (channels-last).

    y = relu(concat([conv3(x, wa), conv3(relu(conv1(x, wb1)), wb2)], C) + skip)
    with skip = 1x1x1-projected x when Cin != Cout else x.  The residual add +
    ReLU is fused into the GEMM epilogues of the two 3x3x3 branch convs.
    """
    N, D, H, W, Cin = x.shape
    ch = p["ba"].shape[0]
    if "ws" in p:
        skip = conv1x1(x, p["ws"], p["bs"])
    else:
        skip = x
    skip2 = skip.reshape(N * D * H * W, 2 * ch)
    h = conv1x1(x, p["wb1"], p["bb1"], act="relu")
    a = conv3x3_same(x, p["wa"], p["ba"], act="relu",
                     residual=skip2[:, :ch])
    bb = conv3x3_same(h, p["wb2"], p["bb2"], act="relu",
                      residual=skip2[:, ch:])
    return jnp.concatenate([a, bb], axis=-1)


def robot_conv_decoder_forward(params, cfg, embedding):
    batch = embedding.shape[0]
    r = cfg["input_resolution"]
    # fc_input + folded eval-mode bn_input (Pallas GEMM).
    feat = matmul_bias_act(embedding, params["fc_w"], params["fc_b"])
    c0 = feat.shape[1] // r ** 3
    x = feat.reshape(batch, r, r, r, c0)     # channels-last (perm in fc_w)
    for stage in params["stages"]:
        for vrn in stage["vrns"]:
            x = vrn_forward(x, vrn)
        x = conv_transpose3d_x2(x, stage["ct_w_phases"], stage["ct_b"])
    # Back to the PyTorch NCDHW output layout (single final transpose).
    return x.transpose(0, 4, 1, 2, 3)


# ----------------------------------------------------------------------------
# Driver
# ----------------------------------------------------------------------------

if __name__ == "__main__":
    f_dim = 4
    e_dim = 32
    grid_size = 16
    vrn_dim = 8
    n_conv_t_decoder_layers = 3
    vrn_depth = 2
    batch = 2

    key = jax.random.PRNGKey(0)
    params, cfg = build_params(key, f_dim, e_dim, grid_size, vrn_dim,
                               n_conv_t_decoder_layers, vrn_depth)

    embedding = jax.random.normal(jax.random.fold_in(key, 12345),
                                  (batch, e_dim), jnp.float32)

    fwd = jax.jit(lambda p, e: robot_conv_decoder_forward(p, cfg, e))
    out = jax.block_until_ready(fwd(params, embedding))

    assert out.shape == (batch, f_dim, grid_size, grid_size, grid_size), out.shape
    assert out.dtype == jnp.float32
    assert bool(jnp.all(jnp.isfinite(out)))
    print("KERNEL_OK")
</pallas_src>

<mosaic_0001>
module attributes {stable_mosaic.version = 11 : i64} {
  func.func @_gemm_kernel(%arg0: i32, %arg1: i32, %arg2: memref<8x128xbf16, #tpu.memory_space<vmem>>, %arg3: memref<128x128xbf16, #tpu.memory_space<vmem>>, %arg4: memref<1x128xf32, #tpu.memory_space<vmem>>, %arg5: memref<8x128xf32, #tpu.memory_space<vmem>>) attributes {dimension_semantics = [#tpu.dimension_semantics<parallel>, #tpu.dimension_semantics<parallel>], iteration_bounds = array<i64: 1, 4>, scalar_prefetch = 0 : i64, scratch_operands = 0 : i64, tpu.core_type = #tpu.core_type<tc>, window_params = [{transform_indices = @transform_0, window_bounds = array<i64: 8, 128>}, {transform_indices = @transform_1, window_bounds = array<i64: 128, 128>}, {transform_indices = @transform_2, window_bounds = array<i64: 1, 128>}, {transform_indices = @transform_3, window_bounds = array<i64: 8, 128>}]} {
    %c0 = arith.constant 0 : index
    %c0_0 = arith.constant 0 : index
    %0 = vector.load %arg2[%c0, %c0_0] : memref<8x128xbf16, #tpu.memory_space<vmem>>, vector<8x128xbf16>
    %c0_1 = arith.constant 0 : index
    %c0_2 = arith.constant 0 : index
    %1 = vector.load %arg3[%c0_1, %c0_2] : memref<128x128xbf16, #tpu.memory_space<vmem>>, vector<128x128xbf16>
    %cst = arith.constant dense<0.000000e+00> : vector<8x128xf32>
    %2 = tpu.matmul %0, %1, %cst {dimension_numbers = #tpu.dot_dimension_numbers<[1], [0], [0], [1], [0, 0, 1, 1], [], []>} : vector<8x128xbf16>, vector<128x128xbf16>, vector<8x128xf32> -> vector<8x128xf32>
    %c0_3 = arith.constant 0 : index
    %c0_4 = arith.constant 0 : index
    %3 = vector.load %arg4[%c0_3, %c0_4] : memref<1x128xf32, #tpu.memory_space<vmem>>, vector<1x128xf32>
    %4 = vector.broadcast %3 : vector<1x128xf32> to vector<8x128xf32>
    %5 = arith.addf %2, %4 : vector<8x128xf32>
    %c0_5 = arith.constant 0 : index
    %c0_6 = arith.constant 0 : index
    %6 = vector.load %arg5[%c0_5, %c0_6] : memref<8x128xf32, #tpu.memory_space<vmem>>, vector<8x128xf32>
    tpu.vector_store %arg5[%c0_5, %c0_6], %5 {strides = array<i32>} : memref<8x128xf32, #tpu.memory_space<vmem>>, vector<8x128xf32>,
    return
  }
  func.func @transform_0(%arg0: i32, %arg1: i32) -> (i32, i32) {
    %c0_i32 = arith.constant 0 : i32
    %c0_i32_0 = arith.constant 0 : i32
    return %arg0, %c0_i32 : i32, i32
  }
  func.func @transform_1(%arg0: i32, %arg1: i32) -> (i32, i32) {
    %c0_i32 = arith.constant 0 : i32
    %c0_i32_0 = arith.constant 0 : i32
    return %c0_i32, %arg1 : i32, i32
  }
  func.func @transform_2(%arg0: i32, %arg1: i32) -> (i32, i32) {
    %c0_i32 = arith.constant 0 : i32
    %c0_i32_0 = arith.constant 0 : i32
    return %c0_i32, %arg1 : i32, i32
  }
  func.func @transform_3(%arg0: i32, %arg1: i32) -> (i32, i32) {
    %c0_i32 = arith.constant 0 : i32
    return %arg0, %arg1 : i32, i32
  }
}

module attributes {stable_mosaic.version = 11 : i64} {
  func.func @_gemm_kernel(%arg0: i32, %arg1: i32, %arg2: memref<8x128xbf16, #tpu.memory_space<vmem>>, %arg3: memref<128x128xbf16, #tpu.memory_space<vmem>>, %arg4: memref<1x128xf32, #tpu.memory_space<vmem>>, %arg5: memref<8x128xf32, #tpu.memory_space<vmem>>) attributes {dimension_semantics = [#tpu.dimension_semantics<parallel>, #tpu.dimension_semantics<parallel>], iteration_bounds = array<i64: 2, 1>, scalar_prefetch = 0 : i64, scratch_operands = 0 : i64, tpu.core_type = #tpu.core_type<tc>, window_params = [{transform_indices = @transform_0, window_bounds = array<i64: 8, 128>}, {transform_indices = @transform_1, window_bounds = array<i64: 128, 128>}, {transform_indices = @transform_2, window_bounds = array<i64: 1, 128>}, {transform_indices = @transform_3, window_bounds = array<i64: 8, 128>}]} {
    %c0 = arith.constant 0 : index
    %c0_0 = arith.constant 0 : index
    %0 = vector.load %arg2[%c0, %c0_0] : memref<8x128xbf16, #tpu.memory_space<vmem>>, vector<8x128xbf16>
    %c0_1 = arith.constant 0 : index
    %c0_2 = arith.constant 0 : index
    %1 = vector.load %arg3[%c0_1, %c0_2] : memref<128x128xbf16, #tpu.memory_space<vmem>>, vector<128x128xbf16>
    %cst = arith.constant dense<0.000000e+00> : vector<8x128xf32>
    %2 = tpu.matmul %0, %1, %cst {dimension_numbers = #tpu.dot_dimension_numbers<[1], [0], [0], [1], [0, 0, 1, 1], [], []>} : vector<8x128xbf16>, vector<128x128xbf16>, vector<8x128xf32> -> vector<8x128xf32>
    %c0_3 = arith.constant 0 : index
    %c0_4 = arith.constant 0 : index
    %3 = vector.load %arg4[%c0_3, %c0_4] : memref<1x128xf32, #tpu.memory_space<vmem>>, vector<1x128xf32>
    %4 = vector.broadcast %3 : vector<1x128xf32> to vector<8x128xf32>
    %5 = arith.addf %2, %4 : vector<8x128xf32>
    %cst_5 = arith.constant 0.000000e+00 : f32
    %6 = vector.broadcast %cst_5 : f32 to vector<8x128xf32>
    %7 = arith.maximumf %5, %6 : vector<8x128xf32>
    %c0_6 = arith.constant 0 : index
    %c0_7 = arith.constant 0 : index
    %8 = vector.load %arg5[%c0_6, %c0_7] : memref<8x128xf32, #tpu.memory_space<vmem>>, vector<8x128xf32>
    tpu.vector_store %arg5[%c0_6, %c0_7], %7 {strides = array<i32>} : memref<8x128xf32, #tpu.memory_space<vmem>>, vector<8x128xf32>,
    return
  }
  func.func @transform_0(%arg0: i32, %arg1: i32) -> (i32, i32) {
    %c0_i32 = arith.constant 0 : i32
    %c0_i32_0 = arith.constant 0 : i32
    return %arg0, %c0_i32 : i32, i32
  }
  func.func @transform_1(%arg0: i32, %arg1: i32) -> (i32, i32) {
    %c0_i32 = arith.constant 0 : i32
    %c0_i32_0 = arith.constant 0 : i32
    return %c0_i32, %arg1 : i32, i32
  }
  func.func @transform_2(%arg0: i32, %arg1: i32) -> (i32, i32) {
    %c0_i32 = arith.constant 0 : i32
    %c0_i32_0 = arith.constant 0 : i32
    return %c0_i32, %arg1 : i32, i32
  }
  func.func @transform_3(%arg0: i32, %arg1: i32) -> (i32, i32) {
    %c0_i32 = arith.constant 0 : i32
    return %arg0, %arg1 : i32, i32
  }
}

module attributes {stable_mosaic.version = 11 : i64} {
  func.func @_gemm_kernel(%arg0: i32, %arg1: i32, %arg2: memref<8x128xbf16, #tpu.memory_space<vmem>>, %arg3: memref<128x128xbf16, #tpu.memory_space<vmem>>, %arg4: memref<1x128xf32, #tpu.memory_space<vmem>>, %arg5: memref<8x128xf32, #tpu.memory_space<vmem>>) attributes {dimension_semantics = [#tpu.dimension_semantics<parallel>, #tpu.dimension_semantics<parallel>], iteration_bounds = array<i64: 2, 1>, scalar_prefetch = 0 : i64, scratch_operands = 0 : i64, tpu.core_type = #tpu.core_type<tc>, window_params = [{transform_indices = @transform_0, window_bounds = array<i64: 8, 128>}, {transform_indices = @transform_1, window_bounds = array<i64: 128, 128>}, {transform_indices = @transform_2, window_bounds = array<i64: 1, 128>}, {transform_indices = @transform_3, window_bounds = array<i64: 8, 128>}]} {
    %c0 = arith.constant 0 : index
    %c0_0 = arith.constant 0 : index
    %0 = vector.load %arg2[%c0, %c0_0] : memref<8x128xbf16, #tpu.memory_space<vmem>>, vector<8x128xbf16>
    %c0_1 = arith.constant 0 : index
    %c0_2 = arith.constant 0 : index
    %1 = vector.load %arg3[%c0_1, %c0_2] : memref<128x128xbf16, #tpu.memory_space<vmem>>, vector<128x128xbf16>
    %cst = arith.constant dense<0.000000e+00> : vector<8x128xf32>
    %2 = tpu.matmul %0, %1, %cst {dimension_numbers = #tpu.dot_dimension_numbers<[1], [0], [0], [1], [0, 0, 1, 1], [], []>} : vector<8x128xbf16>, vector<128x128xbf16>, vector<8x128xf32> -> vector<8x128xf32>
    %c0_3 = arith.constant 0 : index
    %c0_4 = arith.constant 0 : index
    %3 = vector.load %arg4[%c0_3, %c0_4] : memref<1x128xf32, #tpu.memory_space<vmem>>, vector<1x128xf32>
    %4 = vector.broadcast %3 : vector<1x128xf32> to vector<8x128xf32>
    %5 = arith.addf %2, %4 : vector<8x128xf32>
    %c0_5 = arith.constant 0 : index
    %c0_6 = arith.constant 0 : index
    %6 = vector.load %arg5[%c0_5, %c0_6] : memref<8x128xf32, #tpu.memory_space<vmem>>, vector<8x128xf32>
    tpu.vector_store %arg5[%c0_5, %c0_6], %5 {strides = array<i32>} : memref<8x128xf32, #tpu.memory_space<vmem>>, vector<8x128xf32>,
    return
  }
  func.func @transform_0(%arg0: i32, %arg1: i32) -> (i32, i32) {
    %c0_i32 = arith.constant 0 : i32
    %c0_i32_0 = arith.constant 0 : i32
    return %arg0, %c0_i32 : i32, i32
  }
  func.func @transform_1(%arg0: i32, %arg1: i32) -> (i32, i32) {
    %c0_i32 = arith.constant 0 : i32
    %c0_i32_0 = arith.constant 0 : i32
    return %c0_i32, %arg1 : i32, i32
  }
  func.func @transform_2(%arg0: i32, %arg1: i32) -> (i32, i32) {
    %c0_i32 = arith.constant 0 : i32
    %c0_i32_0 = arith.constant 0 : i32
    return %c0_i32, %arg1 : i32, i32
  }
  func.func @transform_3(%arg0: i32, %arg1: i32) -> (i32, i32) {
    %c0_i32 = arith.constant 0 : i32
    return %arg0, %arg1 : i32, i32
  }
}

module attributes {stable_mosaic.version = 11 : i64} {
  func.func @_gemm_kernel(%arg0: i32, %arg1: i32, %arg2: memref<8x512xbf16, #tpu.memory_space<vmem>>, %arg3: memref<512x128xbf16, #tpu.memory_space<vmem>>, %arg4: memref<1x128xf32, #tpu.memory_space<vmem>>, %arg5: memref<8x128xf32, #tpu.memory_space<vmem>>, %arg6: memref<8x128xf32, #tpu.memory_space<vmem>>) attributes {dimension_semantics = [#tpu.dimension_semantics<parallel>, #tpu.dimension_semantics<parallel>], iteration_bounds = array<i64: 2, 1>, scalar_prefetch = 0 : i64, scratch_operands = 0 : i64, tpu.core_type = #tpu.core_type<tc>, window_params = [{transform_indices = @transform_0, window_bounds = array<i64: 8, 512>}, {transform_indices = @transform_1, window_bounds = array<i64: 512, 128>}, {transform_indices = @transform_2, window_bounds = array<i64: 1, 128>}, {transform_indices = @transform_3, window_bounds = array<i64: 8, 128>}, {transform_indices = @transform_4, window_bounds = array<i64: 8, 128>}]} {
    %c0 = arith.constant 0 : index
    %c0_0 = arith.constant 0 : index
    %0 = vector.load %arg2[%c0, %c0_0] : memref<8x512xbf16, #tpu.memory_space<vmem>>, vector<8x512xbf16>
    %c0_1 = arith.constant 0 : index
    %c0_2 = arith.constant 0 : index
    %1 = vector.load %arg3[%c0_1, %c0_2] : memref<512x128xbf16, #tpu.memory_space<vmem>>, vector<512x128xbf16>
    %cst = arith.constant dense<0.000000e+00> : vector<8x128xf32>
    %2 = tpu.matmul %0, %1, %cst {dimension_numbers = #tpu.dot_dimension_numbers<[1], [0], [0], [1], [0, 0, 1, 1], [], []>} : vector<8x512xbf16>, vector<512x128xbf16>, vector<8x128xf32> -> vector<8x128xf32>
    %c0_3 = arith.constant 0 : index
    %c0_4 = arith.constant 0 : index
    %3 = vector.load %arg4[%c0_3, %c0_4] : memref<1x128xf32, #tpu.memory_space<vmem>>, vector<1x128xf32>
    %4 = vector.broadcast %3 : vector<1x128xf32> to vector<8x128xf32>
    %5 = arith.addf %2, %4 : vector<8x128xf32>
    %c0_5 = arith.constant 0 : index
    %c0_6 = arith.constant 0 : index
    %6 = vector.load %arg5[%c0_5, %c0_6] : memref<8x128xf32, #tpu.memory_space<vmem>>, vector<8x128xf32>
    %7 = arith.addf %5, %6 : vector<8x128xf32>
    %cst_7 = arith.constant 0.000000e+00 : f32
    %8 = vector.broadcast %cst_7 : f32 to vector<8x128xf32>
    %9 = arith.maximumf %7, %8 : vector<8x128xf32>
    %c0_8 = arith.constant 0 : index
    %c0_9 = arith.constant 0 : index
    %10 = vector.load %arg6[%c0_8, %c0_9] : memref<8x128xf32, #tpu.memory_space<vmem>>, vector<8x128xf32>
    tpu.vector_store %arg6[%c0_8, %c0_9], %9 {strides = array<i32>} : memref<8x128xf32, #tpu.memory_space<vmem>>, vector<8x128xf32>,
    return
  }
  func.func @transform_0(%arg0: i32, %arg1: i32) -> (i32, i32) {
    %c0_i32 = arith.constant 0 : i32
    %c0_i32_0 = arith.constant 0 : i32
    return %arg0, %c0_i32 : i32, i32
  }
  func.func @transform_1(%arg0: i32, %arg1: i32) -> (i32, i32) {
    %c0_i32 = arith.constant 0 : i32
    %c0_i32_0 = arith.constant 0 : i32
    return %c0_i32, %arg1 : i32, i32
  }
  func.func @transform_2(%arg0: i32, %arg1: i32) -> (i32, i32) {
    %c0_i32 = arith.constant 0 : i32
    %c0_i32_0 = arith.constant 0 : i32
    return %c0_i32, %arg1 : i32, i32
  }
  func.func @transform_3(%arg0: i32, %arg1: i32) -> (i32, i32) {
    %c0_i32 = arith.constant 0 : i32
    return %arg0, %arg1 : i32, i32
  }
  func.func @transform_4(%arg0: i32, %arg1: i32) -> (i32, i32) {
    %c0_i32 = arith.constant 0 : i32
    return %arg0, %arg1 : i32, i32
  }
}

module attributes {stable_mosaic.version = 11 : i64} {
  func.func @_gemm_kernel(%arg0: i32, %arg1: i32, %arg2: i32, %arg3: memref<8x512xbf16, #tpu.memory_space<vmem>>, %arg4: memref<512x128xbf16, #tpu.memory_space<vmem>>, %arg5: memref<1x128xf32, #tpu.memory_space<vmem>>, %arg6: memref<8x128xf32, #tpu.memory_space<vmem>>, %arg7: memref<8x128xf32, #tpu.memory_space<vmem>>, %arg8: memref<8x128xf32, #tpu.memory_space<vmem>>) attributes {dimension_semantics = [#tpu.dimension_semantics<parallel>, #tpu.dimension_semantics<parallel>, #tpu.dimension_semantics<arbitrary>], iteration_bounds = array<i64: 2, 1, 4>, scalar_prefetch = 0 : i64, scratch_operands = 1 : i64, tpu.core_type = #tpu.core_type<tc>, window_params = [{transform_indices = @transform_0, window_bounds = array<i64: 8, 512>}, {transform_indices = @transform_1, window_bounds = array<i64: 512, 128>}, {transform_indices = @transform_2, window_bounds = array<i64: 1, 128>}, {transform_indices = @transform_3, window_bounds = array<i64: 8, 128>}, {transform_indices = @transform_4, window_bounds = array<i64: 8, 128>}]} {
    %c0_i32 = arith.constant 0 : i32
    %0 = arith.cmpi eq, %arg2, %c0_i32 : i32
    %1 = arith.extui %0 : i1 to i32
    %c0_i32_0 = arith.constant 0 : i32
    %2 = arith.cmpi ne, %1, %c0_i32_0 : i32
    scf.if %2 {
      %cst_9 = arith.constant 0.000000e+00 : f32
      %12 = vector.broadcast %cst_9 : f32 to vector<8x128xf32>
      %c0_10 = arith.constant 0 : index
      %c0_11 = arith.constant 0 : index
      %13 = vector.load %arg8[%c0_10, %c0_11] : memref<8x128xf32, #tpu.memory_space<vmem>>, vector<8x128xf32>
      tpu.vector_store %arg8[%c0_10, %c0_11], %12 {strides = array<i32>} : memref<8x128xf32, #tpu.memory_space<vmem>>, vector<8x128xf32>,
    } else {
    }
    %c0 = arith.constant 0 : index
    %c0_1 = arith.constant 0 : index
    %3 = vector.load %arg8[%c0, %c0_1] : memref<8x128xf32, #tpu.memory_space<vmem>>, vector<8x128xf32>
    %c0_2 = arith.constant 0 : index
    %c0_3 = arith.constant 0 : index
    %4 = vector.load %arg3[%c0_2, %c0_3] : memref<8x512xbf16, #tpu.memory_space<vmem>>, vector<8x512xbf16>
    %c0_4 = arith.constant 0 : index
    %c0_5 = arith.constant 0 : index
    %5 = vector.load %arg4[%c0_4, %c0_5] : memref<512x128xbf16, #tpu.memory_space<vmem>>, vector<512x128xbf16>
    %cst = arith.constant dense<0.000000e+00> : vector<8x128xf32>
    %6 = tpu.matmul %4, %5, %cst {dimension_numbers = #tpu.dot_dimension_numbers<[1], [0], [0], [1], [0, 0, 1, 1], [], []>} : vector<8x512xbf16>, vector<512x128xbf16>, vector<8x128xf32> -> vector<8x128xf32>
    %7 = arith.addf %3, %6 : vector<8x128xf32>
    %c0_6 = arith.constant 0 : index
    %c0_7 = arith.constant 0 : index
    %8 = vector.load %arg8[%c0_6, %c0_7] : memref<8x128xf32, #tpu.memory_space<vmem>>, vector<8x128xf32>
    tpu.vector_store %arg8[%c0_6, %c0_7], %7 {strides = array<i32>} : memref<8x128xf32, #tpu.memory_space<vmem>>, vector<8x128xf32>,
    %c3_i32 = arith.constant 3 : i32
    %9 = arith.cmpi eq, %arg2, %c3_i32 : i32
    %10 = arith.extui %9 : i1 to i32
    %c0_i32_8 = arith.constant 0 : i32
    %11 = arith.cmpi ne, %10, %c0_i32_8 : i32
    scf.if %11 {
      %c0_9 = arith.constant 0 : index
      %c0_10 = arith.constant 0 : index
      %12 = vector.load %arg8[%c0_9, %c0_10] : memref<8x128xf32, #tpu.memory_space<vmem>>, vector<8x128xf32>
      %c0_11 = arith.constant 0 : index
      %c0_12 = arith.constant 0 : index
      %13 = vector.load %arg5[%c0_11, %c0_12] : memref<1x128xf32, #tpu.memory_space<vmem>>, vector<1x128xf32>
      %14 = vector.broadcast %13 : vector<1x128xf32> to vector<8x128xf32>
      %15 = arith.addf %12, %14 : vector<8x128xf32>
      %c0_13 = arith.constant 0 : index
      %c0_14 = arith.constant 0 : index
      %16 = vector.load %arg6[%c0_13, %c0_14] : memref<8x128xf32, #tpu.memory_space<vmem>>, vector<8x128xf32>
      %17 = arith.addf %15, %16 : vector<8x128xf32>
      %cst_15 = arith.constant 0.000000e+00 : f32
      %18 = vector.broadcast %cst_15 : f32 to vector<8x128xf32>
      %19 = arith.maximumf %17, %18 : vector<8x128xf32>
      %c0_16 = arith.constant 0 : index
      %c0_17 = arith.constant 0 : index
      %20 = vector.load %arg7[%c0_16, %c0_17] : memref<8x128xf32, #tpu.memory_space<vmem>>, vector<8x128xf32>
      tpu.vector_store %arg7[%c0_16, %c0_17], %19 {strides = array<i32>} : memref<8x128xf32, #tpu.memory_space<vmem>>, vector<8x128xf32>,
    } else {
    }
    return
  }
  func.func @transform_0(%arg0: i32, %arg1: i32, %arg2: i32) -> (i32, i32) {
    %c0_i32 = arith.constant 0 : i32
    return %arg0, %arg2 : i32, i32
  }
  func.func @transform_1(%arg0: i32, %arg1: i32, %arg2: i32) -> (i32, i32) {
    %c0_i32 = arith.constant 0 : i32
    return %arg2, %arg1 : i32, i32
  }
  func.func @transform_2(%arg0: i32, %arg1: i32, %arg2: i32) -> (i32, i32) {
    %c0_i32 = arith.constant 0 : i32
    %c0_i32_0 = arith.constant 0 : i32
    return %c0_i32, %arg1 : i32, i32
  }
  func.func @transform_3(%arg0: i32, %arg1: i32, %arg2: i32) -> (i32, i32) {
    %c0_i32 = arith.constant 0 : i32
    return %arg0, %arg1 : i32, i32
  }
  func.func @transform_4(%arg0: i32, %arg1: i32, %arg2: i32) -> (i32, i32) {
    %c0_i32 = arith.constant 0 : i32
    return %arg0, %arg1 : i32, i32
  }
}

module attributes {stable_mosaic.version = 11 : i64} {
  func.func @_gemm_kernel(%arg0: i32, %arg1: i32, %arg2: i32, %arg3: memref<8x512xbf16, #tpu.memory_space<vmem>>, %arg4: memref<512x128xbf16, #tpu.memory_space<vmem>>, %arg5: memref<1x128xf32, #tpu.memory_space<vmem>>, %arg6: memref<8x128xf32, #tpu.memory_space<vmem>>, %arg7: memref<8x128xf32, #tpu.memory_space<vmem>>, %arg8: memref<8x128xf32, #tpu.memory_space<vmem>>) attributes {dimension_semantics = [#tpu.dimension_semantics<parallel>, #tpu.dimension_semantics<parallel>, #tpu.dimension_semantics<arbitrary>], iteration_bounds = array<i64: 2, 1, 2>, scalar_prefetch = 0 : i64, scratch_operands = 1 : i64, tpu.core_type = #tpu.core_type<tc>, window_params = [{transform_indices = @transform_0, window_bounds = array<i64: 8, 512>}, {transform_indices = @transform_1, window_bounds = array<i64: 512, 128>}, {transform_indices = @transform_2, window_bounds = array<i64: 1, 128>}, {transform_indices = @transform_3, window_bounds = array<i64: 8, 128>}, {transform_indices = @transform_4, window_bounds = array<i64: 8, 128>}]} {
    %c0_i32 = arith.constant 0 : i32
    %0 = arith.cmpi eq, %arg2, %c0_i32 : i32
    %1 = arith.extui %0 : i1 to i32
    %c0_i32_0 = arith.constant 0 : i32
    %2 = arith.cmpi ne, %1, %c0_i32_0 : i32
    scf.if %2 {
      %cst_9 = arith.constant 0.000000e+00 : f32
      %12 = vector.broadcast %cst_9 : f32 to vector<8x128xf32>
      %c0_10 = arith.constant 0 : index
      %c0_11 = arith.constant 0 : index
      %13 = vector.load %arg8[%c0_10, %c0_11] : memref<8x128xf32, #tpu.memory_space<vmem>>, vector<8x128xf32>
      tpu.vector_store %arg8[%c0_10, %c0_11], %12 {strides = array<i32>} : memref<8x128xf32, #tpu.memory_space<vmem>>, vector<8x128xf32>,
    } else {
    }
    %c0 = arith.constant 0 : index
    %c0_1 = arith.constant 0 : index
    %3 = vector.load %arg8[%c0, %c0_1] : memref<8x128xf32, #tpu.memory_space<vmem>>, vector<8x128xf32>
    %c0_2 = arith.constant 0 : index
    %c0_3 = arith.constant 0 : index
    %4 = vector.load %arg3[%c0_2, %c0_3] : memref<8x512xbf16, #tpu.memory_space<vmem>>, vector<8x512xbf16>
    %c0_4 = arith.constant 0 : index
    %c0_5 = arith.constant 0 : index
    %5 = vector.load %arg4[%c0_4, %c0_5] : memref<512x128xbf16, #tpu.memory_space<vmem>>, vector<512x128xbf16>
    %cst = arith.constant dense<0.000000e+00> : vector<8x128xf32>
    %6 = tpu.matmul %4, %5, %cst {dimension_numbers = #tpu.dot_dimension_numbers<[1], [0], [0], [1], [0, 0, 1, 1], [], []>} : vector<8x512xbf16>, vector<512x128xbf16>, vector<8x128xf32> -> vector<8x128xf32>
    %7 = arith.addf %3, %6 : vector<8x128xf32>
    %c0_6 = arith.constant 0 : index
    %c0_7 = arith.constant 0 : index
    %8 = vector.load %arg8[%c0_6, %c0_7] : memref<8x128xf32, #tpu.memory_space<vmem>>, vector<8x128xf32>
    tpu.vector_store %arg8[%c0_6, %c0_7], %7 {strides = array<i32>} : memref<8x128xf32, #tpu.memory_space<vmem>>, vector<8x128xf32>,
    %c1_i32 = arith.constant 1 : i32
    %9 = arith.cmpi eq, %arg2, %c1_i32 : i32
    %10 = arith.extui %9 : i1 to i32
    %c0_i32_8 = arith.constant 0 : i32
    %11 = arith.cmpi ne, %10, %c0_i32_8 : i32
    scf.if %11 {
      %c0_9 = arith.constant 0 : index
      %c0_10 = arith.constant 0 : index
      %12 = vector.load %arg8[%c0_9, %c0_10] : memref<8x128xf32, #tpu.memory_space<vmem>>, vector<8x128xf32>
      %c0_11 = arith.constant 0 : index
      %c0_12 = arith.constant 0 : index
      %13 = vector.load %arg5[%c0_11, %c0_12] : memref<1x128xf32, #tpu.memory_space<vmem>>, vector<1x128xf32>
      %14 = vector.broadcast %13 : vector<1x128xf32> to vector<8x128xf32>
      %15 = arith.addf %12, %14 : vector<8x128xf32>
      %c0_13 = arith.constant 0 : index
      %c0_14 = arith.constant 0 : index
      %16 = vector.load %arg6[%c0_13, %c0_14] : memref<8x128xf32, #tpu.memory_space<vmem>>, vector<8x128xf32>
      %17 = arith.addf %15, %16 : vector<8x128xf32>
      %cst_15 = arith.constant 0.000000e+00 : f32
      %18 = vector.broadcast %cst_15 : f32 to vector<8x128xf32>
      %19 = arith.maximumf %17, %18 : vector<8x128xf32>
      %c0_16 = arith.constant 0 : index
      %c0_17 = arith.constant 0 : index
      %20 = vector.load %arg7[%c0_16, %c0_17] : memref<8x128xf32, #tpu.memory_space<vmem>>, vector<8x128xf32>
      tpu.vector_store %arg7[%c0_16, %c0_17], %19 {strides = array<i32>} : memref<8x128xf32, #tpu.memory_space<vmem>>, vector<8x128xf32>,
    } else {
    }
    return
  }
  func.func @transform_0(%arg0: i32, %arg1: i32, %arg2: i32) -> (i32, i32) {
    %c0_i32 = arith.constant 0 : i32
    return %arg0, %arg2 : i32, i32
  }
  func.func @transform_1(%arg0: i32, %arg1: i32, %arg2: i32) -> (i32, i32) {
    %c0_i32 = arith.constant 0 : i32
    return %arg2, %arg1 : i32, i32
  }
  func.func @transform_2(%arg0: i32, %arg1: i32, %arg2: i32) -> (i32, i32) {
    %c0_i32 = arith.constant 0 : i32
    %c0_i32_0 = arith.constant 0 : i32
    return %c0_i32, %arg1 : i32, i32
  }
  func.func @transform_3(%arg0: i32, %arg1: i32, %arg2: i32) -> (i32, i32) {
    %c0_i32 = arith.constant 0 : i32
    return %arg0, %arg1 : i32, i32
  }
  func.func @transform_4(%arg0: i32, %arg1: i32, %arg2: i32) -> (i32, i32) {
    %c0_i32 = arith.constant 0 : i32
    return %arg0, %arg1 : i32, i32
  }
}

module attributes {stable_mosaic.version = 11 : i64} {
  func.func @_gemm_kernel(%arg0: i32, %arg1: i32, %arg2: memref<8x256xbf16, #tpu.memory_space<vmem>>, %arg3: memref<256x128xbf16, #tpu.memory_space<vmem>>, %arg4: memref<1x128xf32, #tpu.memory_space<vmem>>, %arg5: memref<8x128xf32, #tpu.memory_space<vmem>>) attributes {dimension_semantics = [#tpu.dimension_semantics<parallel>, #tpu.dimension_semantics<parallel>], iteration_bounds = array<i64: 2, 1>, scalar_prefetch = 0 : i64, scratch_operands = 0 : i64, tpu.core_type = #tpu.core_type<tc>, window_params = [{transform_indices = @transform_0, window_bounds = array<i64: 8, 256>}, {transform_indices = @transform_1, window_bounds = array<i64: 256, 128>}, {transform_indices = @transform_2, window_bounds = array<i64: 1, 128>}, {transform_indices = @transform_3, window_bounds = array<i64: 8, 128>}]} {
    %c0 = arith.constant 0 : index
    %c0_0 = arith.constant 0 : index
    %0 = vector.load %arg2[%c0, %c0_0] : memref<8x256xbf16, #tpu.memory_space<vmem>>, vector<8x256xbf16>
    %c0_1 = arith.constant 0 : index
    %c0_2 = arith.constant 0 : index
    %1 = vector.load %arg3[%c0_1, %c0_2] : memref<256x128xbf16, #tpu.memory_space<vmem>>, vector<256x128xbf16>
    %cst = arith.constant dense<0.000000e+00> : vector<8x128xf32>
    %2 = tpu.matmul %0, %1, %cst {dimension_numbers = #tpu.dot_dimension_numbers<[1], [0], [0], [1], [0, 0, 1, 1], [], []>} : vector<8x256xbf16>, vector<256x128xbf16>, vector<8x128xf32> -> vector<8x128xf32>
    %c0_3 = arith.constant 0 : index
    %c0_4 = arith.constant 0 : index
    %3 = vector.load %arg4[%c0_3, %c0_4] : memref<1x128xf32, #tpu.memory_space<vmem>>, vector<1x128xf32>
    %4 = vector.broadcast %3 : vector<1x128xf32> to vector<8x128xf32>
    %5 = arith.addf %2, %4 : vector<8x128xf32>
    %c0_5 = arith.constant 0 : index
    %c0_6 = arith.constant 0 : index
    %6 = vector.load %arg5[%c0_5, %c0_6] : memref<8x128xf32, #tpu.memory_space<vmem>>, vector<8x128xf32>
    tpu.vector_store %arg5[%c0_5, %c0_6], %5 {strides = array<i32>} : memref<8x128xf32, #tpu.memory_space<vmem>>, vector<8x128xf32>,
    return
  }
  func.func @transform_0(%arg0: i32, %arg1: i32) -> (i32, i32) {
    %c0_i32 = arith.constant 0 : i32
    %c0_i32_0 = arith.constant 0 : i32
    return %arg0, %c0_i32 : i32, i32
  }
  func.func @transform_1(%arg0: i32, %arg1: i32) -> (i32, i32) {
    %c0_i32 = arith.constant 0 : i32
    %c0_i32_0 = arith.constant 0 : i32
    return %c0_i32, %arg1 : i32, i32
  }
  func.func @transform_2(%arg0: i32, %arg1: i32) -> (i32, i32) {
    %c0_i32 = arith.constant 0 : i32
    %c0_i32_0 = arith.constant 0 : i32
    return %c0_i32, %arg1 : i32, i32
  }
  func.func @transform_3(%arg0: i32, %arg1: i32) -> (i32, i32) {
    %c0_i32 = arith.constant 0 : i32
    return %arg0, %arg1 : i32, i32
  }
}

module attributes {stable_mosaic.version = 11 : i64} {
  func.func @_gemm_kernel(%arg0: i32, %arg1: i32, %arg2: memref<64x128xbf16, #tpu.memory_space<vmem>>, %arg3: memref<128x128xbf16, #tpu.memory_space<vmem>>, %arg4: memref<1x128xf32, #tpu.memory_space<vmem>>, %arg5: memref<64x128xf32, #tpu.memory_space<vmem>>) attributes {dimension_semantics = [#tpu.dimension_semantics<parallel>, #tpu.dimension_semantics<parallel>], iteration_bounds = array<i64: 2, 1>, scalar_prefetch = 0 : i64, scratch_operands = 0 : i64, tpu.core_type = #tpu.core_type<tc>, window_params = [{transform_indices = @transform_0, window_bounds = array<i64: 64, 128>}, {transform_indices = @transform_1, window_bounds = array<i64: 128, 128>}, {transform_indices = @transform_2, window_bounds = array<i64: 1, 128>}, {transform_indices = @transform_3, window_bounds = array<i64: 64, 128>}]} {
    %c0 = arith.constant 0 : index
    %c0_0 = arith.constant 0 : index
    %0 = vector.load %arg2[%c0, %c0_0] : memref<64x128xbf16, #tpu.memory_space<vmem>>, vector<64x128xbf16>
    %c0_1 = arith.constant 0 : index
    %c0_2 = arith.constant 0 : index
    %1 = vector.load %arg3[%c0_1, %c0_2] : memref<128x128xbf16, #tpu.memory_space<vmem>>, vector<128x128xbf16>
    %cst = arith.constant dense<0.000000e+00> : vector<64x128xf32>
    %2 = tpu.matmul %0, %1, %cst {dimension_numbers = #tpu.dot_dimension_numbers<[1], [0], [0], [1], [0, 0, 1, 1], [], []>} : vector<64x128xbf16>, vector<128x128xbf16>, vector<64x128xf32> -> vector<64x128xf32>
    %c0_3 = arith.constant 0 : index
    %c0_4 = arith.constant 0 : index
    %3 = vector.load %arg4[%c0_3, %c0_4] : memref<1x128xf32, #tpu.memory_space<vmem>>, vector<1x128xf32>
    %4 = vector.broadcast %3 : vector<1x128xf32> to vector<64x128xf32>
    %5 = arith.addf %2, %4 : vector<64x128xf32>
    %cst_5 = arith.constant 0.000000e+00 : f32
    %6 = vector.broadcast %cst_5 : f32 to vector<64x128xf32>
    %7 = arith.maximumf %5, %6 : vector<64x128xf32>
    %c0_6 = arith.constant 0 : index
    %c0_7 = arith.constant 0 : index
    %8 = vector.load %arg5[%c0_6, %c0_7] : memref<64x128xf32, #tpu.memory_space<vmem>>, vector<64x128xf32>
    tpu.vector_store %arg5[%c0_6, %c0_7], %7 {strides = array<i32>} : memref<64x128xf32, #tpu.memory_space<vmem>>, vector<64x128xf32>,
    return
  }
  func.func @transform_0(%arg0: i32, %arg1: i32) -> (i32, i32) {
    %c0_i32 = arith.constant 0 : i32
    %c0_i32_0 = arith.constant 0 : i32
    return %arg0, %c0_i32 : i32, i32
  }
  func.func @transform_1(%arg0: i32, %arg1: i32) -> (i32, i32) {
    %c0_i32 = arith.constant 0 : i32
    %c0_i32_0 = arith.constant 0 : i32
    return %c0_i32, %arg1 : i32, i32
  }
  func.func @transform_2(%arg0: i32, %arg1: i32) -> (i32, i32) {
    %c0_i32 = arith.constant 0 : i32
    %c0_i32_0 = arith.constant 0 : i32
    return %c0_i32, %arg1 : i32, i32
  }
  func.func @transform_3(%arg0: i32, %arg1: i32) -> (i32, i32) {
    %c0_i32 = arith.constant 0 : i32
    return %arg0, %arg1 : i32, i32
  }
}

module attributes {stable_mosaic.version = 11 : i64} {
  func.func @_gemm_kernel(%arg0: i32, %arg1: i32, %arg2: memref<64x128xbf16, #tpu.memory_space<vmem>>, %arg3: memref<128x128xbf16, #tpu.memory_space<vmem>>, %arg4: memref<1x128xf32, #tpu.memory_space<vmem>>, %arg5: memref<64x128xf32, #tpu.memory_space<vmem>>) attributes {dimension_semantics = [#tpu.dimension_semantics<parallel>, #tpu.dimension_semantics<parallel>], iteration_bounds = array<i64: 2, 1>, scalar_prefetch = 0 : i64, scratch_operands = 0 : i64, tpu.core_type = #tpu.core_type<tc>, window_params = [{transform_indices = @transform_0, window_bounds = array<i64: 64, 128>}, {transform_indices = @transform_1, window_bounds = array<i64: 128, 128>}, {transform_indices = @transform_2, window_bounds = array<i64: 1, 128>}, {transform_indices = @transform_3, window_bounds = array<i64: 64, 128>}]} {
    %c0 = arith.constant 0 : index
    %c0_0 = arith.constant 0 : index
    %0 = vector.load %arg2[%c0, %c0_0] : memref<64x128xbf16, #tpu.memory_space<vmem>>, vector<64x128xbf16>
    %c0_1 = arith.constant 0 : index
    %c0_2 = arith.constant 0 : index
    %1 = vector.load %arg3[%c0_1, %c0_2] : memref<128x128xbf16, #tpu.memory_space<vmem>>, vector<128x128xbf16>
    %cst = arith.constant dense<0.000000e+00> : vector<64x128xf32>
    %2 = tpu.matmul %0, %1, %cst {dimension_numbers = #tpu.dot_dimension_numbers<[1], [0], [0], [1], [0, 0, 1, 1], [], []>} : vector<64x128xbf16>, vector<128x128xbf16>, vector<64x128xf32> -> vector<64x128xf32>
    %c0_3 = arith.constant 0 : index
    %c0_4 = arith.constant 0 : index
    %3 = vector.load %arg4[%c0_3, %c0_4] : memref<1x128xf32, #tpu.memory_space<vmem>>, vector<1x128xf32>
    %4 = vector.broadcast %3 : vector<1x128xf32> to vector<64x128xf32>
    %5 = arith.addf %2, %4 : vector<64x128xf32>
    %c0_5 = arith.constant 0 : index
    %c0_6 = arith.constant 0 : index
    %6 = vector.load %arg5[%c0_5, %c0_6] : memref<64x128xf32, #tpu.memory_space<vmem>>, vector<64x128xf32>
    tpu.vector_store %arg5[%c0_5, %c0_6], %5 {strides = array<i32>} : memref<64x128xf32, #tpu.memory_space<vmem>>, vector<64x128xf32>,
    return
  }
  func.func @transform_0(%arg0: i32, %arg1: i32) -> (i32, i32) {
    %c0_i32 = arith.constant 0 : i32
    %c0_i32_0 = arith.constant 0 : i32
    return %arg0, %c0_i32 : i32, i32
  }
  func.func @transform_1(%arg0: i32, %arg1: i32) -> (i32, i32) {
    %c0_i32 = arith.constant 0 : i32
    %c0_i32_0 = arith.constant 0 : i32
    return %c0_i32, %arg1 : i32, i32
  }
  func.func @transform_2(%arg0: i32, %arg1: i32) -> (i32, i32) {
    %c0_i32 = arith.constant 0 : i32
    %c0_i32_0 = arith.constant 0 : i32
    return %c0_i32, %arg1 : i32, i32
  }
  func.func @transform_3(%arg0: i32, %arg1: i32) -> (i32, i32) {
    %c0_i32 = arith.constant 0 : i32
    return %arg0, %arg1 : i32, i32
  }
}

module attributes {stable_mosaic.version = 11 : i64} {
  func.func @_gemm_kernel(%arg0: i32, %arg1: i32, %arg2: memref<64x256xbf16, #tpu.memory_space<vmem>>, %arg3: memref<256x128xbf16, #tpu.memory_space<vmem>>, %arg4: memref<1x128xf32, #tpu.memory_space<vmem>>, %arg5: memref<64x128xf32, #tpu.memory_space<vmem>>, %arg6: memref<64x128xf32, #tpu.memory_space<vmem>>) attributes {dimension_semantics = [#tpu.dimension_semantics<parallel>, #tpu.dimension_semantics<parallel>], iteration_bounds = array<i64: 2, 1>, scalar_prefetch = 0 : i64, scratch_operands = 0 : i64, tpu.core_type = #tpu.core_type<tc>, window_params = [{transform_indices = @transform_0, window_bounds = array<i64: 64, 256>}, {transform_indices = @transform_1, window_bounds = array<i64: 256, 128>}, {transform_indices = @transform_2, window_bounds = array<i64: 1, 128>}, {transform_indices = @transform_3, window_bounds = array<i64: 64, 128>}, {transform_indices = @transform_4, window_bounds = array<i64: 64, 128>}]} {
    %c0 = arith.constant 0 : index
    %c0_0 = arith.constant 0 : index
    %0 = vector.load %arg2[%c0, %c0_0] : memref<64x256xbf16, #tpu.memory_space<vmem>>, vector<64x256xbf16>
    %c0_1 = arith.constant 0 : index
    %c0_2 = arith.constant 0 : index
    %1 = vector.load %arg3[%c0_1, %c0_2] : memref<256x128xbf16, #tpu.memory_space<vmem>>, vector<256x128xbf16>
    %cst = arith.constant dense<0.000000e+00> : vector<64x128xf32>
    %2 = tpu.matmul %0, %1, %cst {dimension_numbers = #tpu.dot_dimension_numbers<[1], [0], [0], [1], [0, 0, 1, 1], [], []>} : vector<64x256xbf16>, vector<256x128xbf16>, vector<64x128xf32> -> vector<64x128xf32>
    %c0_3 = arith.constant 0 : index
    %c0_4 = arith.constant 0 : index
    %3 = vector.load %arg4[%c0_3, %c0_4] : memref<1x128xf32, #tpu.memory_space<vmem>>, vector<1x128xf32>
    %4 = vector.broadcast %3 : vector<1x128xf32> to vector<64x128xf32>
    %5 = arith.addf %2, %4 : vector<64x128xf32>
    %c0_5 = arith.constant 0 : index
    %c0_6 = arith.constant 0 : index
    %6 = vector.load %arg5[%c0_5, %c0_6] : memref<64x128xf32, #tpu.memory_space<vmem>>, vector<64x128xf32>
    %7 = arith.addf %5, %6 : vector<64x128xf32>
    %cst_7 = arith.constant 0.000000e+00 : f32
    %8 = vector.broadcast %cst_7 : f32 to vector<64x128xf32>
    %9 = arith.maximumf %7, %8 : vector<64x128xf32>
    %c0_8 = arith.constant 0 : index
    %c0_9 = arith.constant 0 : index
    %10 = vector.load %arg6[%c0_8, %c0_9] : memref<64x128xf32, #tpu.memory_space<vmem>>, vector<64x128xf32>
    tpu.vector_store %arg6[%c0_8, %c0_9], %9 {strides = array<i32>} : memref<64x128xf32, #tpu.memory_space<vmem>>, vector<64x128xf32>,
    return
  }
  func.func @transform_0(%arg0: i32, %arg1: i32) -> (i32, i32) {
    %c0_i32 = arith.constant 0 : i32
    %c0_i32_0 = arith.constant 0 : i32
    return %arg0, %c0_i32 : i32, i32
  }
  func.func @transform_1(%arg0: i32, %arg1: i32) -> (i32, i32) {
    %c0_i32 = arith.constant 0 : i32
    %c0_i32_0 = arith.constant 0 : i32
    return %c0_i32, %arg1 : i32, i32
  }
  func.func @transform_2(%arg0: i32, %arg1: i32) -> (i32, i32) {
    %c0_i32 = arith.constant 0 : i32
    %c0_i32_0 = arith.constant 0 : i32
    return %c0_i32, %arg1 : i32, i32
  }
  func.func @transform_3(%arg0: i32, %arg1: i32) -> (i32, i32) {
    %c0_i32 = arith.constant 0 : i32
    return %arg0, %arg1 : i32, i32
  }
  func.func @transform_4(%arg0: i32, %arg1: i32) -> (i32, i32) {
    %c0_i32 = arith.constant 0 : i32
    return %arg0, %arg1 : i32, i32
  }
}

module attributes {stable_mosaic.version = 11 : i64} {
  func.func @_gemm_kernel(%arg0: i32, %arg1: i32, %arg2: i32, %arg3: memref<64x512xbf16, #tpu.memory_space<vmem>>, %arg4: memref<512x128xbf16, #tpu.memory_space<vmem>>, %arg5: memref<1x128xf32, #tpu.memory_space<vmem>>, %arg6: memref<64x128xf32, #tpu.memory_space<vmem>>, %arg7: memref<64x128xf32, #tpu.memory_space<vmem>>, %arg8: memref<64x128xf32, #tpu.memory_space<vmem>>) attributes {dimension_semantics = [#tpu.dimension_semantics<parallel>, #tpu.dimension_semantics<parallel>, #tpu.dimension_semantics<arbitrary>], iteration_bounds = array<i64: 2, 1, 2>, scalar_prefetch = 0 : i64, scratch_operands = 1 : i64, tpu.core_type = #tpu.core_type<tc>, window_params = [{transform_indices = @transform_0, window_bounds = array<i64: 64, 512>}, {transform_indices = @transform_1, window_bounds = array<i64: 512, 128>}, {transform_indices = @transform_2, window_bounds = array<i64: 1, 128>}, {transform_indices = @transform_3, window_bounds = array<i64: 64, 128>}, {transform_indices = @transform_4, window_bounds = array<i64: 64, 128>}]} {
    %c0_i32 = arith.constant 0 : i32
    %0 = arith.cmpi eq, %arg2, %c0_i32 : i32
    %1 = arith.extui %0 : i1 to i32
    %c0_i32_0 = arith.constant 0 : i32
    %2 = arith.cmpi ne, %1, %c0_i32_0 : i32
    scf.if %2 {
      %cst_9 = arith.constant 0.000000e+00 : f32
      %12 = vector.broadcast %cst_9 : f32 to vector<64x128xf32>
      %c0_10 = arith.constant 0 : index
      %c0_11 = arith.constant 0 : index
      %13 = vector.load %arg8[%c0_10, %c0_11] : memref<64x128xf32, #tpu.memory_space<vmem>>, vector<64x128xf32>
      tpu.vector_store %arg8[%c0_10, %c0_11], %12 {strides = array<i32>} : memref<64x128xf32, #tpu.memory_space<vmem>>, vector<64x128xf32>,
    } else {
    }
    %c0 = arith.constant 0 : index
    %c0_1 = arith.constant 0 : index
    %3 = vector.load %arg8[%c0, %c0_1] : memref<64x128xf32, #tpu.memory_space<vmem>>, vector<64x128xf32>
    %c0_2 = arith.constant 0 : index
    %c0_3 = arith.constant 0 : index
    %4 = vector.load %arg3[%c0_2, %c0_3] : memref<64x512xbf16, #tpu.memory_space<vmem>>, vector<64x512xbf16>
    %c0_4 = arith.constant 0 : index
    %c0_5 = arith.constant 0 : index
    %5 = vector.load %arg4[%c0_4, %c0_5] : memref<512x128xbf16, #tpu.memory_space<vmem>>, vector<512x128xbf16>
    %cst = arith.constant dense<0.000000e+00> : vector<64x128xf32>
    %6 = tpu.matmul %4, %5, %cst {dimension_numbers = #tpu.dot_dimension_numbers<[1], [0], [0], [1], [0, 0, 1, 1], [], []>} : vector<64x512xbf16>, vector<512x128xbf16>, vector<64x128xf32> -> vector<64x128xf32>
    %7 = arith.addf %3, %6 : vector<64x128xf32>
    %c0_6 = arith.constant 0 : index
    %c0_7 = arith.constant 0 : index
    %8 = vector.load %arg8[%c0_6, %c0_7] : memref<64x128xf32, #tpu.memory_space<vmem>>, vector<64x128xf32>
    tpu.vector_store %arg8[%c0_6, %c0_7], %7 {strides = array<i32>} : memref<64x128xf32, #tpu.memory_space<vmem>>, vector<64x128xf32>,
    %c1_i32 = arith.constant 1 : i32
    %9 = arith.cmpi eq, %arg2, %c1_i32 : i32
    %10 = arith.extui %9 : i1 to i32
    %c0_i32_8 = arith.constant 0 : i32
    %11 = arith.cmpi ne, %10, %c0_i32_8 : i32
    scf.if %11 {
      %c0_9 = arith.constant 0 : index
      %c0_10 = arith.constant 0 : index
      %12 = vector.load %arg8[%c0_9, %c0_10] : memref<64x128xf32, #tpu.memory_space<vmem>>, vector<64x128xf32>
      %c0_11 = arith.constant 0 : index
      %c0_12 = arith.constant 0 : index
      %13 = vector.load %arg5[%c0_11, %c0_12] : memref<1x128xf32, #tpu.memory_space<vmem>>, vector<1x128xf32>
      %14 = vector.broadcast %13 : vector<1x128xf32> to vector<64x128xf32>
      %15 = arith.addf %12, %14 : vector<64x128xf32>
      %c0_13 = arith.constant 0 : index
      %c0_14 = arith.constant 0 : index
      %16 = vector.load %arg6[%c0_13, %c0_14] : memref<64x128xf32, #tpu.memory_space<vmem>>, vector<64x128xf32>
      %17 = arith.addf %15, %16 : vector<64x128xf32>
      %cst_15 = arith.constant 0.000000e+00 : f32
      %18 = vector.broadcast %cst_15 : f32 to vector<64x128xf32>
      %19 = arith.maximumf %17, %18 : vector<64x128xf32>
      %c0_16 = arith.constant 0 : index
      %c0_17 = arith.constant 0 : index
      %20 = vector.load %arg7[%c0_16, %c0_17] : memref<64x128xf32, #tpu.memory_space<vmem>>, vector<64x128xf32>
      tpu.vector_store %arg7[%c0_16, %c0_17], %19 {strides = array<i32>} : memref<64x128xf32, #tpu.memory_space<vmem>>, vector<64x128xf32>,
    } else {
    }
    return
  }
  func.func @transform_0(%arg0: i32, %arg1: i32, %arg2: i32) -> (i32, i32) {
    %c0_i32 = arith.constant 0 : i32
    return %arg0, %arg2 : i32, i32
  }
  func.func @transform_1(%arg0: i32, %arg1: i32, %arg2: i32) -> (i32, i32) {
    %c0_i32 = arith.constant 0 : i32
    return %arg2, %arg1 : i32, i32
  }
  func.func @transform_2(%arg0: i32, %arg1: i32, %arg2: i32) -> (i32, i32) {
    %c0_i32 = arith.constant 0 : i32
    %c0_i32_0 = arith.constant 0 : i32
    return %c0_i32, %arg1 : i32, i32
  }
  func.func @transform_3(%arg0: i32, %arg1: i32, %arg2: i32) -> (i32, i32) {
    %c0_i32 = arith.constant 0 : i32
    return %arg0, %arg1 : i32, i32
  }
  func.func @transform_4(%arg0: i32, %arg1: i32, %arg2: i32) -> (i32, i32) {
    %c0_i32 = arith.constant 0 : i32
    return %arg0, %arg1 : i32, i32
  }
}

module attributes {stable_mosaic.version = 11 : i64} {
  func.func @_gemm_kernel(%arg0: i32, %arg1: i32, %arg2: memref<64x512xbf16, #tpu.memory_space<vmem>>, %arg3: memref<512x128xbf16, #tpu.memory_space<vmem>>, %arg4: memref<1x128xf32, #tpu.memory_space<vmem>>, %arg5: memref<64x128xf32, #tpu.memory_space<vmem>>, %arg6: memref<64x128xf32, #tpu.memory_space<vmem>>) attributes {dimension_semantics = [#tpu.dimension_semantics<parallel>, #tpu.dimension_semantics<parallel>], iteration_bounds = array<i64: 2, 1>, scalar_prefetch = 0 : i64, scratch_operands = 0 : i64, tpu.core_type = #tpu.core_type<tc>, window_params = [{transform_indices = @transform_0, window_bounds = array<i64: 64, 512>}, {transform_indices = @transform_1, window_bounds = array<i64: 512, 128>}, {transform_indices = @transform_2, window_bounds = array<i64: 1, 128>}, {transform_indices = @transform_3, window_bounds = array<i64: 64, 128>}, {transform_indices = @transform_4, window_bounds = array<i64: 64, 128>}]} {
    %c0 = arith.constant 0 : index
    %c0_0 = arith.constant 0 : index
    %0 = vector.load %arg2[%c0, %c0_0] : memref<64x512xbf16, #tpu.memory_space<vmem>>, vector<64x512xbf16>
    %c0_1 = arith.constant 0 : index
    %c0_2 = arith.constant 0 : index
    %1 = vector.load %arg3[%c0_1, %c0_2] : memref<512x128xbf16, #tpu.memory_space<vmem>>, vector<512x128xbf16>
    %cst = arith.constant dense<0.000000e+00> : vector<64x128xf32>
    %2 = tpu.matmul %0, %1, %cst {dimension_numbers = #tpu.dot_dimension_numbers<[1], [0], [0], [1], [0, 0, 1, 1], [], []>} : vector<64x512xbf16>, vector<512x128xbf16>, vector<64x128xf32> -> vector<64x128xf32>
    %c0_3 = arith.constant 0 : index
    %c0_4 = arith.constant 0 : index
    %3 = vector.load %arg4[%c0_3, %c0_4] : memref<1x128xf32, #tpu.memory_space<vmem>>, vector<1x128xf32>
    %4 = vector.broadcast %3 : vector<1x128xf32> to vector<64x128xf32>
    %5 = arith.addf %2, %4 : vector<64x128xf32>
    %c0_5 = arith.constant 0 : index
    %c0_6 = arith.constant 0 : index
    %6 = vector.load %arg5[%c0_5, %c0_6] : memref<64x128xf32, #tpu.memory_space<vmem>>, vector<64x128xf32>
    %7 = arith.addf %5, %6 : vector<64x128xf32>
    %cst_7 = arith.constant 0.000000e+00 : f32
    %8 = vector.broadcast %cst_7 : f32 to vector<64x128xf32>
    %9 = arith.maximumf %7, %8 : vector<64x128xf32>
    %c0_8 = arith.constant 0 : index
    %c0_9 = arith.constant 0 : index
    %10 = vector.load %arg6[%c0_8, %c0_9] : memref<64x128xf32, #tpu.memory_space<vmem>>, vector<64x128xf32>
    tpu.vector_store %arg6[%c0_8, %c0_9], %9 {strides = array<i32>} : memref<64x128xf32, #tpu.memory_space<vmem>>, vector<64x128xf32>,
    return
  }
  func.func @transform_0(%arg0: i32, %arg1: i32) -> (i32, i32) {
    %c0_i32 = arith.constant 0 : i32
    %c0_i32_0 = arith.constant 0 : i32
    return %arg0, %c0_i32 : i32, i32
  }
  func.func @transform_1(%arg0: i32, %arg1: i32) -> (i32, i32) {
    %c0_i32 = arith.constant 0 : i32
    %c0_i32_0 = arith.constant 0 : i32
    return %c0_i32, %arg1 : i32, i32
  }
  func.func @transform_2(%arg0: i32, %arg1: i32) -> (i32, i32) {
    %c0_i32 = arith.constant 0 : i32
    %c0_i32_0 = arith.constant 0 : i32
    return %c0_i32, %arg1 : i32, i32
  }
  func.func @transform_3(%arg0: i32, %arg1: i32) -> (i32, i32) {
    %c0_i32 = arith.constant 0 : i32
    return %arg0, %arg1 : i32, i32
  }
  func.func @transform_4(%arg0: i32, %arg1: i32) -> (i32, i32) {
    %c0_i32 = arith.constant 0 : i32
    return %arg0, %arg1 : i32, i32
  }
}

module attributes {stable_mosaic.version = 11 : i64} {
  func.func @_gemm_kernel(%arg0: i32, %arg1: i32, %arg2: memref<512x128xbf16, #tpu.memory_space<vmem>>, %arg3: memref<128x128xbf16, #tpu.memory_space<vmem>>, %arg4: memref<1x128xf32, #tpu.memory_space<vmem>>, %arg5: memref<512x128xf32, #tpu.memory_space<vmem>>) attributes {dimension_semantics = [#tpu.dimension_semantics<parallel>, #tpu.dimension_semantics<parallel>], iteration_bounds = array<i64: 2, 1>, scalar_prefetch = 0 : i64, scratch_operands = 0 : i64, tpu.core_type = #tpu.core_type<tc>, window_params = [{transform_indices = @transform_0, window_bounds = array<i64: 512, 128>}, {transform_indices = @transform_1, window_bounds = array<i64: 128, 128>}, {transform_indices = @transform_2, window_bounds = array<i64: 1, 128>}, {transform_indices = @transform_3, window_bounds = array<i64: 512, 128>}]} {
    %c0 = arith.constant 0 : index
    %c0_0 = arith.constant 0 : index
    %0 = vector.load %arg2[%c0, %c0_0] : memref<512x128xbf16, #tpu.memory_space<vmem>>, vector<512x128xbf16>
    %c0_1 = arith.constant 0 : index
    %c0_2 = arith.constant 0 : index
    %1 = vector.load %arg3[%c0_1, %c0_2] : memref<128x128xbf16, #tpu.memory_space<vmem>>, vector<128x128xbf16>
    %cst = arith.constant dense<0.000000e+00> : vector<512x128xf32>
    %2 = tpu.matmul %0, %1, %cst {dimension_numbers = #tpu.dot_dimension_numbers<[1], [0], [0], [1], [0, 0, 1, 1], [], []>} : vector<512x128xbf16>, vector<128x128xbf16>, vector<512x128xf32> -> vector<512x128xf32>
    %c0_3 = arith.constant 0 : index
    %c0_4 = arith.constant 0 : index
    %3 = vector.load %arg4[%c0_3, %c0_4] : memref<1x128xf32, #tpu.memory_space<vmem>>, vector<1x128xf32>
    %4 = vector.broadcast %3 : vector<1x128xf32> to vector<512x128xf32>
    %5 = arith.addf %2, %4 : vector<512x128xf32>
    %cst_5 = arith.constant 0.000000e+00 : f32
    %6 = vector.broadcast %cst_5 : f32 to vector<512x128xf32>
    %7 = arith.maximumf %5, %6 : vector<512x128xf32>
    %c0_6 = arith.constant 0 : index
    %c0_7 = arith.constant 0 : index
    %8 = vector.load %arg5[%c0_6, %c0_7] : memref<512x128xf32, #tpu.memory_space<vmem>>, vector<512x128xf32>
    tpu.vector_store %arg5[%c0_6, %c0_7], %7 {strides = array<i32>} : memref<512x128xf32, #tpu.memory_space<vmem>>, vector<512x128xf32>,
    return
  }
  func.func @transform_0(%arg0: i32, %arg1: i32) -> (i32, i32) {
    %c0_i32 = arith.constant 0 : i32
    %c0_i32_0 = arith.constant 0 : i32
    return %arg0, %c0_i32 : i32, i32
  }
  func.func @transform_1(%arg0: i32, %arg1: i32) -> (i32, i32) {
    %c0_i32 = arith.constant 0 : i32
    %c0_i32_0 = arith.constant 0 : i32
    return %c0_i32, %arg1 : i32, i32
  }
  func.func @transform_2(%arg0: i32, %arg1: i32) -> (i32, i32) {
    %c0_i32 = arith.constant 0 : i32
    %c0_i32_0 = arith.constant 0 : i32
    return %c0_i32, %arg1 : i32, i32
  }
  func.func @transform_3(%arg0: i32, %arg1: i32) -> (i32, i32) {
    %c0_i32 = arith.constant 0 : i32
    return %arg0, %arg1 : i32, i32
  }
}

module attributes {stable_mosaic.version = 11 : i64} {
  func.func @_gemm_kernel(%arg0: i32, %arg1: i32, %arg2: memref<512x128xbf16, #tpu.memory_space<vmem>>, %arg3: memref<128x128xbf16, #tpu.memory_space<vmem>>, %arg4: memref<1x128xf32, #tpu.memory_space<vmem>>, %arg5: memref<512x128xf32, #tpu.memory_space<vmem>>) attributes {dimension_semantics = [#tpu.dimension_semantics<parallel>, #tpu.dimension_semantics<parallel>], iteration_bounds = array<i64: 2, 1>, scalar_prefetch = 0 : i64, scratch_operands = 0 : i64, tpu.core_type = #tpu.core_type<tc>, window_params = [{transform_indices = @transform_0, window_bounds = array<i64: 512, 128>}, {transform_indices = @transform_1, window_bounds = array<i64: 128, 128>}, {transform_indices = @transform_2, window_bounds = array<i64: 1, 128>}, {transform_indices = @transform_3, window_bounds = array<i64: 512, 128>}]} {
    %c0 = arith.constant 0 : index
    %c0_0 = arith.constant 0 : index
    %0 = vector.load %arg2[%c0, %c0_0] : memref<512x128xbf16, #tpu.memory_space<vmem>>, vector<512x128xbf16>
    %c0_1 = arith.constant 0 : index
    %c0_2 = arith.constant 0 : index
    %1 = vector.load %arg3[%c0_1, %c0_2] : memref<128x128xbf16, #tpu.memory_space<vmem>>, vector<128x128xbf16>
    %cst = arith.constant dense<0.000000e+00> : vector<512x128xf32>
    %2 = tpu.matmul %0, %1, %cst {dimension_numbers = #tpu.dot_dimension_numbers<[1], [0], [0], [1], [0, 0, 1, 1], [], []>} : vector<512x128xbf16>, vector<128x128xbf16>, vector<512x128xf32> -> vector<512x128xf32>
    %c0_3 = arith.constant 0 : index
    %c0_4 = arith.constant 0 : index
    %3 = vector.load %arg4[%c0_3, %c0_4] : memref<1x128xf32, #tpu.memory_space<vmem>>, vector<1x128xf32>
    %4 = vector.broadcast %3 : vector<1x128xf32> to vector<512x128xf32>
    %5 = arith.addf %2, %4 : vector<512x128xf32>
    %c0_5 = arith.constant 0 : index
    %c0_6 = arith.constant 0 : index
    %6 = vector.load %arg5[%c0_5, %c0_6] : memref<512x128xf32, #tpu.memory_space<vmem>>, vector<512x128xf32>
    tpu.vector_store %arg5[%c0_5, %c0_6], %5 {strides = array<i32>} : memref<512x128xf32, #tpu.memory_space<vmem>>, vector<512x128xf32>,
    return
  }
  func.func @transform_0(%arg0: i32, %arg1: i32) -> (i32, i32) {
    %c0_i32 = arith.constant 0 : i32
    %c0_i32_0 = arith.constant 0 : i32
    return %arg0, %c0_i32 : i32, i32
  }
  func.func @transform_1(%arg0: i32, %arg1: i32) -> (i32, i32) {
    %c0_i32 = arith.constant 0 : i32
    %c0_i32_0 = arith.constant 0 : i32
    return %c0_i32, %arg1 : i32, i32
  }
  func.func @transform_2(%arg0: i32, %arg1: i32) -> (i32, i32) {
    %c0_i32 = arith.constant 0 : i32
    %c0_i32_0 = arith.constant 0 : i32
    return %c0_i32, %arg1 : i32, i32
  }
  func.func @transform_3(%arg0: i32, %arg1: i32) -> (i32, i32) {
    %c0_i32 = arith.constant 0 : i32
    return %arg0, %arg1 : i32, i32
  }
}

module attributes {stable_mosaic.version = 11 : i64} {
  func.func @_gemm_kernel(%arg0: i32, %arg1: i32, %arg2: memref<512x128xbf16, #tpu.memory_space<vmem>>, %arg3: memref<128x128xbf16, #tpu.memory_space<vmem>>, %arg4: memref<1x128xf32, #tpu.memory_space<vmem>>, %arg5: memref<512x128xf32, #tpu.memory_space<vmem>>, %arg6: memref<512x128xf32, #tpu.memory_space<vmem>>) attributes {dimension_semantics = [#tpu.dimension_semantics<parallel>, #tpu.dimension_semantics<parallel>], iteration_bounds = array<i64: 2, 1>, scalar_prefetch = 0 : i64, scratch_operands = 0 : i64, tpu.core_type = #tpu.core_type<tc>, window_params = [{transform_indices = @transform_0, window_bounds = array<i64: 512, 128>}, {transform_indices = @transform_1, window_bounds = array<i64: 128, 128>}, {transform_indices = @transform_2, window_bounds = array<i64: 1, 128>}, {transform_indices = @transform_3, window_bounds = array<i64: 512, 128>}, {transform_indices = @transform_4, window_bounds = array<i64: 512, 128>}]} {
    %c0 = arith.constant 0 : index
    %c0_0 = arith.constant 0 : index
    %0 = vector.load %arg2[%c0, %c0_0] : memref<512x128xbf16, #tpu.memory_space<vmem>>, vector<512x128xbf16>
    %c0_1 = arith.constant 0 : index
    %c0_2 = arith.constant 0 : index
    %1 = vector.load %arg3[%c0_1, %c0_2] : memref<128x128xbf16, #tpu.memory_space<vmem>>, vector<128x128xbf16>
    %cst = arith.constant dense<0.000000e+00> : vector<512x128xf32>
    %2 = tpu.matmul %0, %1, %cst {dimension_numbers = #tpu.dot_dimension_numbers<[1], [0], [0], [1], [0, 0, 1, 1], [], []>} : vector<512x128xbf16>, vector<128x128xbf16>, vector<512x128xf32> -> vector<512x128xf32>
    %c0_3 = arith.constant 0 : index
    %c0_4 = arith.constant 0 : index
    %3 = vector.load %arg4[%c0_3, %c0_4] : memref<1x128xf32, #tpu.memory_space<vmem>>, vector<1x128xf32>
    %4 = vector.broadcast %3 : vector<1x128xf32> to vector<512x128xf32>
    %5 = arith.addf %2, %4 : vector<512x128xf32>
    %c0_5 = arith.constant 0 : index
    %c0_6 = arith.constant 0 : index
    %6 = vector.load %arg5[%c0_5, %c0_6] : memref<512x128xf32, #tpu.memory_space<vmem>>, vector<512x128xf32>
    %7 = arith.addf %5, %6 : vector<512x128xf32>
    %cst_7 = arith.constant 0.000000e+00 : f32
    %8 = vector.broadcast %cst_7 : f32 to vector<512x128xf32>
    %9 = arith.maximumf %7, %8 : vector<512x128xf32>
    %c0_8 = arith.constant 0 : index
    %c0_9 = arith.constant 0 : index
    %10 = vector.load %arg6[%c0_8, %c0_9] : memref<512x128xf32, #tpu.memory_space<vmem>>, vector<512x128xf32>
    tpu.vector_store %arg6[%c0_8, %c0_9], %9 {strides = array<i32>} : memref<512x128xf32, #tpu.memory_space<vmem>>, vector<512x128xf32>,
    return
  }
  func.func @transform_0(%arg0: i32, %arg1: i32) -> (i32, i32) {
    %c0_i32 = arith.constant 0 : i32
    %c0_i32_0 = arith.constant 0 : i32
    return %arg0, %c0_i32 : i32, i32
  }
  func.func @transform_1(%arg0: i32, %arg1: i32) -> (i32, i32) {
    %c0_i32 = arith.constant 0 : i32
    %c0_i32_0 = arith.constant 0 : i32
    return %c0_i32, %arg1 : i32, i32
  }
  func.func @transform_2(%arg0: i32, %arg1: i32) -> (i32, i32) {
    %c0_i32 = arith.constant 0 : i32
    %c0_i32_0 = arith.constant 0 : i32
    return %c0_i32, %arg1 : i32, i32
  }
  func.func @transform_3(%arg0: i32, %arg1: i32) -> (i32, i32) {
    %c0_i32 = arith.constant 0 : i32
    return %arg0, %arg1 : i32, i32
  }
  func.func @transform_4(%arg0: i32, %arg1: i32) -> (i32, i32) {
    %c0_i32 = arith.constant 0 : i32
    return %arg0, %arg1 : i32, i32
  }
}

module attributes {stable_mosaic.version = 11 : i64} {
  func.func @_gemm_kernel(%arg0: i32, %arg1: i32, %arg2: memref<512x512xbf16, #tpu.memory_space<vmem>>, %arg3: memref<512x128xbf16, #tpu.memory_space<vmem>>, %arg4: memref<1x128xf32, #tpu.memory_space<vmem>>, %arg5: memref<512x128xf32, #tpu.memory_space<vmem>>, %arg6: memref<512x128xf32, #tpu.memory_space<vmem>>) attributes {dimension_semantics = [#tpu.dimension_semantics<parallel>, #tpu.dimension_semantics<parallel>], iteration_bounds = array<i64: 2, 1>, scalar_prefetch = 0 : i64, scratch_operands = 0 : i64, tpu.core_type = #tpu.core_type<tc>, window_params = [{transform_indices = @transform_0, window_bounds = array<i64: 512, 512>}, {transform_indices = @transform_1, window_bounds = array<i64: 512, 128>}, {transform_indices = @transform_2, window_bounds = array<i64: 1, 128>}, {transform_indices = @transform_3, window_bounds = array<i64: 512, 128>}, {transform_indices = @transform_4, window_bounds = array<i64: 512, 128>}]} {
    %c0 = arith.constant 0 : index
    %c0_0 = arith.constant 0 : index
    %0 = vector.load %arg2[%c0, %c0_0] : memref<512x512xbf16, #tpu.memory_space<vmem>>, vector<512x512xbf16>
    %c0_1 = arith.constant 0 : index
    %c0_2 = arith.constant 0 : index
    %1 = vector.load %arg3[%c0_1, %c0_2] : memref<512x128xbf16, #tpu.memory_space<vmem>>, vector<512x128xbf16>
    %cst = arith.constant dense<0.000000e+00> : vector<512x128xf32>
    %2 = tpu.matmul %0, %1, %cst {dimension_numbers = #tpu.dot_dimension_numbers<[1], [0], [0], [1], [0, 0, 1, 1], [], []>} : vector<512x512xbf16>, vector<512x128xbf16>, vector<512x128xf32> -> vector<512x128xf32>
    %c0_3 = arith.constant 0 : index
    %c0_4 = arith.constant 0 : index
    %3 = vector.load %arg4[%c0_3, %c0_4] : memref<1x128xf32, #tpu.memory_space<vmem>>, vector<1x128xf32>
    %4 = vector.broadcast %3 : vector<1x128xf32> to vector<512x128xf32>
    %5 = arith.addf %2, %4 : vector<512x128xf32>
    %c0_5 = arith.constant 0 : index
    %c0_6 = arith.constant 0 : index
    %6 = vector.load %arg5[%c0_5, %c0_6] : memref<512x128xf32, #tpu.memory_space<vmem>>, vector<512x128xf32>
    %7 = arith.addf %5, %6 : vector<512x128xf32>
    %cst_7 = arith.constant 0.000000e+00 : f32
    %8 = vector.broadcast %cst_7 : f32 to vector<512x128xf32>
    %9 = arith.maximumf %7, %8 : vector<512x128xf32>
    %c0_8 = arith.constant 0 : index
    %c0_9 = arith.constant 0 : index
    %10 = vector.load %arg6[%c0_8, %c0_9] : memref<512x128xf32, #tpu.memory_space<vmem>>, vector<512x128xf32>
    tpu.vector_store %arg6[%c0_8, %c0_9], %9 {strides = array<i32>} : memref<512x128xf32, #tpu.memory_space<vmem>>, vector<512x128xf32>,
    return
  }
  func.func @transform_0(%arg0: i32, %arg1: i32) -> (i32, i32) {
    %c0_i32 = arith.constant 0 : i32
    %c0_i32_0 = arith.constant 0 : i32
    return %arg0, %c0_i32 : i32, i32
  }
  func.func @transform_1(%arg0: i32, %arg1: i32) -> (i32, i32) {
    %c0_i32 = arith.constant 0 : i32
    %c0_i32_0 = arith.constant 0 : i32
    return %c0_i32, %arg1 : i32, i32
  }
  func.func @transform_2(%arg0: i32, %arg1: i32) -> (i32, i32) {
    %c0_i32 = arith.constant 0 : i32
    %c0_i32_0 = arith.constant 0 : i32
    return %c0_i32, %arg1 : i32, i32
  }
  func.func @transform_3(%arg0: i32, %arg1: i32) -> (i32, i32) {
    %c0_i32 = arith.constant 0 : i32
    return %arg0, %arg1 : i32, i32
  }
  func.func @transform_4(%arg0: i32, %arg1: i32) -> (i32, i32) {
    %c0_i32 = arith.constant 0 : i32
    return %arg0, %arg1 : i32, i32
  }
}

module attributes {stable_mosaic.version = 11 : i64} {
  func.func @_gemm_kernel(%arg0: i32, %arg1: i32, %arg2: memref<512x256xbf16, #tpu.memory_space<vmem>>, %arg3: memref<256x128xbf16, #tpu.memory_space<vmem>>, %arg4: memref<1x128xf32, #tpu.memory_space<vmem>>, %arg5: memref<512x128xf32, #tpu.memory_space<vmem>>, %arg6: memref<512x128xf32, #tpu.memory_space<vmem>>) attributes {dimension_semantics = [#tpu.dimension_semantics<parallel>, #tpu.dimension_semantics<parallel>], iteration_bounds = array<i64: 2, 1>, scalar_prefetch = 0 : i64, scratch_operands = 0 : i64, tpu.core_type = #tpu.core_type<tc>, window_params = [{transform_indices = @transform_0, window_bounds = array<i64: 512, 256>}, {transform_indices = @transform_1, window_bounds = array<i64: 256, 128>}, {transform_indices = @transform_2, window_bounds = array<i64: 1, 128>}, {transform_indices = @transform_3, window_bounds = array<i64: 512, 128>}, {transform_indices = @transform_4, window_bounds = array<i64: 512, 128>}]} {
    %c0 = arith.constant 0 : index
    %c0_0 = arith.constant 0 : index
    %0 = vector.load %arg2[%c0, %c0_0] : memref<512x256xbf16, #tpu.memory_space<vmem>>, vector<512x256xbf16>
    %c0_1 = arith.constant 0 : index
    %c0_2 = arith.constant 0 : index
    %1 = vector.load %arg3[%c0_1, %c0_2] : memref<256x128xbf16, #tpu.memory_space<vmem>>, vector<256x128xbf16>
    %cst = arith.constant dense<0.000000e+00> : vector<512x128xf32>
    %2 = tpu.matmul %0, %1, %cst {dimension_numbers = #tpu.dot_dimension_numbers<[1], [0], [0], [1], [0, 0, 1, 1], [], []>} : vector<512x256xbf16>, vector<256x128xbf16>, vector<512x128xf32> -> vector<512x128xf32>
    %c0_3 = arith.constant 0 : index
    %c0_4 = arith.constant 0 : index
    %3 = vector.load %arg4[%c0_3, %c0_4] : memref<1x128xf32, #tpu.memory_space<vmem>>, vector<1x128xf32>
    %4 = vector.broadcast %3 : vector<1x128xf32> to vector<512x128xf32>
    %5 = arith.addf %2, %4 : vector<512x128xf32>
    %c0_5 = arith.constant 0 : index
    %c0_6 = arith.constant 0 : index
    %6 = vector.load %arg5[%c0_5, %c0_6] : memref<512x128xf32, #tpu.memory_space<vmem>>, vector<512x128xf32>
    %7 = arith.addf %5, %6 : vector<512x128xf32>
    %cst_7 = arith.constant 0.000000e+00 : f32
    %8 = vector.broadcast %cst_7 : f32 to vector<512x128xf32>
    %9 = arith.maximumf %7, %8 : vector<512x128xf32>
    %c0_8 = arith.constant 0 : index
    %c0_9 = arith.constant 0 : index
    %10 = vector.load %arg6[%c0_8, %c0_9] : memref<512x128xf32, #tpu.memory_space<vmem>>, vector<512x128xf32>
    tpu.vector_store %arg6[%c0_8, %c0_9], %9 {strides = array<i32>} : memref<512x128xf32, #tpu.memory_space<vmem>>, vector<512x128xf32>,
    return
  }
  func.func @transform_0(%arg0: i32, %arg1: i32) -> (i32, i32) {
    %c0_i32 = arith.constant 0 : i32
    %c0_i32_0 = arith.constant 0 : i32
    return %arg0, %c0_i32 : i32, i32
  }
  func.func @transform_1(%arg0: i32, %arg1: i32) -> (i32, i32) {
    %c0_i32 = arith.constant 0 : i32
    %c0_i32_0 = arith.constant 0 : i32
    return %c0_i32, %arg1 : i32, i32
  }
  func.func @transform_2(%arg0: i32, %arg1: i32) -> (i32, i32) {
    %c0_i32 = arith.constant 0 : i32
    %c0_i32_0 = arith.constant 0 : i32
    return %c0_i32, %arg1 : i32, i32
  }
  func.func @transform_3(%arg0: i32, %arg1: i32) -> (i32, i32) {
    %c0_i32 = arith.constant 0 : i32
    return %arg0, %arg1 : i32, i32
  }
  func.func @transform_4(%arg0: i32, %arg1: i32) -> (i32, i32) {
    %c0_i32 = arith.constant 0 : i32
    return %arg0, %arg1 : i32, i32
  }
}

</mosaic_0001>

<bundles_post_ra>
// kernel: _lambda_.46
= control target key start
LH: loop header
LB: loop body
LE: loop exit
PB: predicated region body
PF: predicated region fallthrough
CT: control target
= control target key end

     0   :  { %8 = vsyncpa [#allocation4], 0  ;;  %s930_s0 = inlined_call_operand.vmem [shape: bf16[8,128], index: 0, kind: input, shape index: {}]   ;;  %s931_s1 = inlined_call_operand.vmem [shape: bf16[128,512], index: 1, kind: input, shape index: {}]   ;;  %s932_s2 = inlined_call_operand.hbm [shape: f32[1,512], index: 2, kind: input, shape index: {}]   ;;  %s933_s3 = inlined_call_operand.vmem [shape: f32[8,512], index: 3, kind: output, shape index: {}]  }
   0x1   :  { %10 = vsyncpa [#allocation4 + $0x1], 0  ;;  %s790_s12 = smov 0   ;;  %s792_s13 = smov 0  }
   0x2   :  { %s794_s14 = smov 0   ;;  %s796_s15 = smov 0  }
   0x3   :  { %s798_s16 = smov 0   ;;  %s800_s17 = smov 0  }
   0x4 LB: > { %s576_s18 = sadd.s32 4294967295, %s765_s17   ;;  %s25_s19 = sadd.s32 1, %s761_s16  ;;  %s765_s17 = sphi %s800_s17, %s16_s17   ;;  %s761_s16 = sphi %s798_s16, %s942_s16   ;;  %s757_s15 = sphi %s796_s15, %s941_s15   ;;  %s753_s14 = sphi %s794_s14, %s940_s14   ;;  %s749_s13 = sphi %s792_s13, %s939_s13   ;;  %s745_s12 = sphi %s790_s12, %s938_s12  }
   0x5   : > { %p26_p0 = scmp.ge.s32.totalorder %s25_s19, 4  ;;  %s61_s20 = sadd.s32 1, %s753_s14 }
   0x6   : > { %p68_p1 = scmp.ne.s32.totalorder %s753_s14, %s749_s13  ;;  %p69_p2 = scmp.eq.s32.totalorder %s765_s17, 0 }
   0x7   : > { %s944_s19 = smov (%p26_p0, %s25_s19), 0  ;;  %p100_p4 = scmp.ne.s32.totalorder %s749_s13, %s745_s12 }
   0x8   : > { %p826_p3 = por %p69_p2, %p68_p1  ;;  %s58_s22 = ssub.s32 %s761_s16, %s944_s19 }
   0x9   : > { %p101_p5 = scmp.eq.s32.totalorder %s576_s18, 0  ;;  %p59_p6 = scmp.eq.s32.totalorder %s58_s22, 0 }
   0xa   : > { %p580_p8 = scmp.ge.s32.totalorder %s765_s17, 4 }
   0xb   : > { %p833_p7 = por %p101_p5, %p100_p4 }
   0xc   : > { %s838_s24 = scalar_select %p59_p6, %s753_s14, %s61_s20  }
   0xd   : > { %s936_s23 = scalar_select %p833_p7, 1, 0 }
   0xe   : > { %155 = sbr.rel (%p580_p8) target bundleno = 61 (0x3d), region = 20 }
  0x15   : > { %158 = sbr.rel (!%p826_p3) target bundleno = 36 (0x24), region = 24  ;;  %s160_s25 = sand.u32 (%p826_p3), 1, %s753_s14  }
  0x16   : > { %s582_s26 = sshll.u32 (%p826_p3), %s761_s16, 2  ;;  %s581_s27 = sshll.u32 (%p826_p3), %s160_s25, 6 }
  0x17   : > { %s848_s30 = scalar_lea.vmem (%p826_p3), %s931_s1, %s582_s26  ;;  %s162_s4 = scalar_lea.vmem (%p826_p3), [#allocation2], %s581_s27 }
  0x18   : > { %v180_v0 = vld [vmem:[%s848_s30] sm:$0xf] (%p826_p3)  ;;  %v182_v1 = vld [vmem:[%s848_s30 + $0x10] sm:$0xf] (%p826_p3) }
  0x19   : > { %181 = vst [vmem:[%s162_s4] sm:$0xf] (%p826_p3), %v180_v0  ;;  %183 = vst [vmem:[%s162_s4 + $0x4] sm:$0xf] (%p826_p3), %v182_v1  ;;  %v184_v2 = vld [vmem:[%s848_s30 + $0x20] sm:$0xf] (%p826_p3) }
  0x1a   : > { %v186_v3 = vld [vmem:[%s848_s30 + $0x30] sm:$0xf] (%p826_p3)  ;;  %v188_v4 = vld [vmem:[%s848_s30 + $0x40] sm:$0xf] (%p826_p3)  ;;  %185 = vst [vmem:[%s162_s4 + $0x8] sm:$0xf] (%p826_p3), %v184_v2 }
  0x1b   : > { %187 = vst [vmem:[%s162_s4 + $0xc] sm:$0xf] (%p826_p3), %v186_v3  ;;  %189 = vst [vmem:[%s162_s4 + $0x10] sm:$0xf] (%p826_p3), %v188_v4  ;;  %v190_v5 = vld [vmem:[%s848_s30 + $0x50] sm:$0xf] (%p826_p3) }
  0x1c   : > { %v192_v6 = vld [vmem:[%s848_s30 + $0x60] sm:$0xf]  ;;  %v194_v7 = vld [vmem:[%s848_s30 + $0x70] sm:$0xf]  ;;  %191 = vst [vmem:[%s162_s4 + $0x14] sm:$0xf] %v190_v5 }
  0x1d   : > { %193 = vst [vmem:[%s162_s4 + $0x18] sm:$0xf] %v192_v6  ;;  %195 = vst [vmem:[%s162_s4 + $0x1c] sm:$0xf] %v194_v7  ;;  %v196_v8 = vld [vmem:[%s848_s30 + $0x80] sm:$0xf] }
  0x1e   : > { %v198_v9 = vld [vmem:[%s848_s30 + $0x90] sm:$0xf]  ;;  %v200_v10 = vld [vmem:[%s848_s30 + $0xa0] sm:$0xf]  ;;  %197 = vst [vmem:[%s162_s4 + $0x20] sm:$0xf] %v196_v8 }
  0x1f   : > { %199 = vst [vmem:[%s162_s4 + $0x24] sm:$0xf] %v198_v9  ;;  %201 = vst [vmem:[%s162_s4 + $0x28] sm:$0xf] %v200_v10  ;;  %v202_v11 = vld [vmem:[%s848_s30 + $0xb0] sm:$0xf] }
  0x20   : > { %v204_v12 = vld [vmem:[%s848_s30 + $0xc0] sm:$0xf]  ;;  %v206_v13 = vld [vmem:[%s848_s30 + $0xd0] sm:$0xf]  ;;  %203 = vst [vmem:[%s162_s4 + $0x2c] sm:$0xf] %v202_v11 }
  0x21   : > { %205 = vst [vmem:[%s162_s4 + $0x30] sm:$0xf] %v204_v12  ;;  %207 = vst [vmem:[%s162_s4 + $0x34] sm:$0xf] %v206_v13  ;;  %v208_v14 = vld [vmem:[%s848_s30 + $0xe0] sm:$0xf] }
  0x22   : > { %v210_v15 = vld [vmem:[%s848_s30 + $0xf0] sm:$0xf]  ;;  %209 = vst [vmem:[%s162_s4 + $0x38] sm:$0xf] %v208_v14 }
  0x23   : > { %211 = vst [vmem:[%s162_s4 + $0x3c] sm:$0xf] %v210_v15 }
  0x24 PF: > { %s267_s5 = sand.u32 1, %s753_s14   ;;  %s583_s6 = sshll.u32 %s761_s16, 4 }
  0x25   : > { %s871_s9 = scalar_lea.hbm %s932_s2, %s583_s6  ;;  %s270_s10 = scalar_lea.vmem [#allocation3], %s267_s5 }
  0x26   : > { %s277_s11 = sshll.u32 %s270_s10, 4  ;;  %s268_s12 = scalar_lea.sflag [#allocation4], %s267_s5  ;;  %s278_s11 = int_to_ptr.vmem [resolvable:$true] %s277_s11 }
  0x27   : > { %s687_s18 = scalar_lea.hbm %s871_s9, 16  ;;  %s691_s25 = scalar_lea.hbm %s932_s2, 64 }
  0x28   : > { %p688_p9 = scmp.ne.s32.totalorder %s871_s9, %s687_s18  ;;  %p692_p12 = scmp.lt.u32.totalorder %s871_s9, %s932_s2 }
  0x29   : > { %p693_p13 = scmp.lt.u32.totalorder %s691_s25, %s687_s18  ;;  %p695_p1 = scmp.lt.u32.totalorder %s687_s18, %s871_s9 }
  0x2a   : > { %p689_p10 = pnand %p688_p9, %p826_p3 }
  0x2b   : > { %p694_p0 = por %p693_p13, %p692_p12 }
  0x2c   : > { %p690_p11 = pneg %p689_p10 }
  0x2d   : > { %p696_p2 = por %p695_p1, %p694_p0 }
  0x2f   : > { %p697_p4 = pnand %p696_p2, %p690_p11 }
  0x31   : > { %700 = shalt.err (!%p697_p4)
}
  0x32   : > { %s701_s28 = scalar_lea.vmem %s278_s11, 16  ;;  %s767_s29 = smov [#allocation3]  }
  0x33   : > { %p702_p5 = scmp.ne.s32.totalorder %s278_s11, %s701_s28  ;;  %s705_s30 = sshll.u32 %s767_s29, 4  ;;  %s706_s30 = int_to_ptr.vmem [resolvable:$false] %s705_s30 }
  0x34   : > { %s707_s4 = scalar_lea.vmem %s706_s30, 32  ;;  %p708_p9 = scmp.lt.s32.totalorder %s278_s11, %s706_s30 }
  0x35   : > { %p703_p6 = pnand %p702_p5, %p826_p3  ;;  %p709_p10 = scmp.lt.s32.totalorder %s707_s4, %s701_s28 }
  0x37   : > { %p704_p8 = pneg %p703_p6  ;;  %p710_p7 = por %p709_p10, %p708_p9 }
  0x39   : > { %p711_p12 = pnand %p710_p7, %p704_p8 }
  0x3b   : > { %714 = shalt.err (!%p711_p12)
}
  0x3c   : > { %627 = dma.hbm_to_vmem [thread:$0]  (%p826_p3), %s871_s9, 16, %s278_s11, %s268_s12  }
  0x3d PF: > { %p584_p11 = scmp.ge.s32.totalorder %s765_s17, 1  ;;  %p282_p13 = scmp.lt.s32.totalorder %s765_s17, 5 }
  0x3f   : > { %p283_p0 = pnand %p584_p11, %p282_p13 }
  0x40   : > { %s893_s5 = sand.u32 (!%p283_p0), 1, %s749_s13   ;;  %p937_p7 = scmp.ne.s32.totalorder (!%p283_p0), %s936_s23, 0 }
  0x41   : > { %286 = sbr.rel (%p283_p0) target bundleno = 321 (0x141), region = 69  ;;  %s585_s6 = sshll.u32 (!%p283_p0), %s893_s5, 6 }
  0x42   : > { %s291_s7 = scalar_lea.vmem (!%p283_p0), [#allocation2], %s585_s6  ;;  %s296_s8 = scalar_lea.sflag (!%p283_p0), [#allocation4], %s893_s5 }
  0x43   : > { %s298_s21 = scalar_lea.vmem (!%p283_p0), [#allocation3], %s893_s5 }
  0x48   : > { %740 = dma.done.wait (%p937_p7), %s296_s8, 16  }
  0x49   : > { %742 = vsyncadd (%p937_p7), %s296_s8, 4294967280  ;;  %v768_v16 = vmov 0.0   ;;  %vm769_vm0 = vmmov 0   ;;  %v679_v17 = vld [vmem:[%s291_s7] sm:$0xff]   ;;  %v680_v18 = vld [vmem:[%s291_s7 + $0x8] sm:$0xff]   ;;  %p337_p3 = scmp.lt.s32.totalorder %s757_s15, 3 }
  0x4a   : > { %607 = vmatprep.subr.bf16.mxu0 %v768_v16  ;;  %623 = vmatprep.mubr.msk.bf16.mxu0 %vm769_vm0, %v768_v16  ;;  %v681_v19 = vld [vmem:[%s291_s7 + $0x10] sm:$0xff]   ;;  %v682_v20 = vld [vmem:[%s291_s7 + $0x18] sm:$0xff]   ;;  %v683_v21 = vld [vmem:[%s291_s7 + $0x20] sm:$0xff]  }
  0x4b   : > { %608 = vmatpush3.bf16.msra.mxu0 %v679_v17  ;;  %v684_v22 = vld [vmem:[%s291_s7 + $0x28] sm:$0xff]   ;;  %v685_v23 = vld [vmem:[%s291_s7 + $0x30] sm:$0xff]   ;;  %v686_v24 = vld [vmem:[%s291_s7 + $0x38] sm:$0xff]   ;;  %s946_s15 = smov (!%p337_p3, %s757_s15), 3 }
  0x4c   : > { %609 = vmatprep.subr.bf16.mxu0 %v768_v16  ;;  %v344_v25 = vld [vmem:[%s930_s0] sm:$0xf]  ;;  %s586_s10 = sshll.u32 %s946_s15, 3 }
  0x4d   : > { %v587_v26 = vld [vmem:[%s298_s21] ss:$0 sm:$0xff]  ;;  %s342_s18 = scalar_lea.vmem %s933_s3, %s586_s10 }
  0x4f   : > { %610 = vmatpush3.bf16.msra.mxu0 %v680_v18 }
  0x50   : > { %611 = vmatprep.subr.bf16.mxu0 %v768_v16 }
  0x53   : > { %612 = vmatpush3.bf16.msra.mxu0 %v681_v19 }
  0x54   : > { %613 = vmatprep.subr.bf16.mxu0 %v768_v16 }
  0x57   : > { %614 = vmatpush3.bf16.msra.mxu0 %v682_v20 }
  0x58   : > { %615 = vmatprep.subr.bf16.mxu0 %v768_v16 }
  0x5b   : > { %616 = vmatpush3.bf16.msra.mxu0 %v683_v21 }
  0x5c   : > { %617 = vmatprep.subr.bf16.mxu0 %v768_v16 }
  0x5f   : > { %618 = vmatpush3.bf16.msra.mxu0 %v684_v22 }
  0x60   : > { %619 = vmatprep.subr.bf16.mxu0 %v768_v16 }
  0x63   : > { %620 = vmatpush3.bf16.msra.mxu0 %v685_v23 }
  0x64   : > { %621 = vmatprep.subr.bf16.mxu0 %v768_v16 }
  0x67   : > { %622 = vmatpush3.bf16.msra.mxu0 %v686_v24 }
  0x6a   : > { %624 = vmatmul.mubr.bf16.vlgmr.msra.gmra.mrb[0].mxu0 %v344_v25 }
 0x13d   : > { %v450_v27 = vpop.f32.mrb[0].mxu0 }
 0x13e   : > { %v451_v28 = vadd.f32 %v587_v26, %v450_v27  ;;  %v625_v29 = vpop.f32.mrb[1].mxu0 }
 0x13f   : > { %v453_v30 = vpop.f32.mrb[2].mxu0 }
 0x140   : > { %456 = vst [vmem:[%s342_s18] sm:$0xff] %v451_v28  ;;  %v626_v31 = vpop.f32.mrb[3].mxu0 }
 0x141 PF: > { %s16_s17 = sadd.s32 1, %s765_s17   ;;  %s938_s12 = smov %s749_s13 }
 0x142   : > { %p13_p1 = scmp.ge.s32.totalorder %s16_s17, 6   ;;  %s939_s13 = smov %s753_s14 }
 0x143   : > { %s940_s14 = smov %s838_s24  ;;  %s941_s15 = smov %s761_s16 }
 0x144   : > { %s942_s16 = smov %s944_s19  ;;  %15 = sbr.rel (!%p13_p1) target bundleno = 4 (0x4), region = 124 }
 0x14b   :  { %484 = vsyncpa [#allocation4], 1 }
 0x14c   :  { %486 = vsyncpa [#allocation4 + $0x1], 1 }

// kernel: _lambda_.48
= control target key start
LH: loop header
LB: loop body
LE: loop exit
PB: predicated region body
PF: predicated region fallthrough
CT: control target
= control target key end

     0   :  { %s560_s12 = smov 0   ;;  %s562_s13 = smov 0   ;;  %s624_s0 = inlined_call_operand.vmem [shape: bf16[16,128], index: 0, kind: input, shape index: {}]   ;;  %s625_s1 = inlined_call_operand.vmem [shape: bf16[128,128], index: 1, kind: input, shape index: {}]   ;;  %s626_s2 = inlined_call_operand.vmem [shape: f32[1,128], index: 2, kind: input, shape index: {}]   ;;  %s627_s3 = inlined_call_operand.vmem [shape: f32[16,128], index: 3, kind: output, shape index: {}]  }
   0x1   :  { %s564_s14 = smov 0  }
   0x2 LB: > { %s25_s15 = sadd.s32 1, %s532_s13  ;;  %p437_p0 = scmp.ge.s32.totalorder %s536_s14, 1  ;;  %s536_s14 = sphi %s564_s14, %s13_s14   ;;  %s532_s13 = sphi %s562_s13, %s629_s13   ;;  %s528_s12 = sphi %s560_s12, %s628_s12  }
   0x3   : > { %p27_p1 = scmp.ge.s32.totalorder %s25_s15, 2  ;;  %p167_p2 = scmp.lt.s32.totalorder %s536_s14, 3 }
   0x5   : > { %s631_s15 = smov (%p27_p1, %s25_s15), 0  ;;  %p168_p3 = pnand %p437_p0, %p167_p2 }
   0x6   : > { %v506_v0 = vld [vmem:[%s625_s1] sm:$0xff] (!%p168_p3)   ;;  %v538_v1 = vmov (!%p168_p3), 0.0   ;;  %v507_v2 = vld [vmem:[%s625_s1 + $0x8] sm:$0xff] (!%p168_p3)   ;;  %vm539_vm0 = vmmov (!%p168_p3), 0   ;;  %v508_v3 = vld [vmem:[%s625_s1 + $0x10] sm:$0xff] (!%p168_p3)   ;;  %p199_p4 = scmp.lt.s32.totalorder (!%p168_p3), %s528_s12, 1 }
   0x7   : > { %171 = sbr.rel (%p168_p3) target bundleno = 256 (0x100), region = 32  ;;  %460 = vmatprep.subr.bf16.mxu0 (!%p168_p3), %v538_v1  ;;  %476 = vmatprep.mubr.msk.bf16.mxu0 (!%p168_p3), %vm539_vm0, %v538_v1  ;;  %v509_v4 = vld [vmem:[%s625_s1 + $0x18] sm:$0xff] (!%p168_p3)   ;;  %v510_v5 = vld [vmem:[%s625_s1 + $0x20] sm:$0xff] (!%p168_p3)   ;;  %v511_v6 = vld [vmem:[%s625_s1 + $0x28] sm:$0xff] (!%p168_p3)  }
   0x8   : > { %461 = vmatpush3.bf16.msra.mxu0 (!%p168_p3), %v506_v0  ;;  %v512_v7 = vld [vmem:[%s625_s1 + $0x30] sm:$0xff] (!%p168_p3)   ;;  %v513_v8 = vld [vmem:[%s625_s1 + $0x38] sm:$0xff] (!%p168_p3)   ;;  %v440_v10 = vld [vmem:[%s626_s2] ss:$0 sm:$0xff] (!%p168_p3) }
   0x9   : > { %462 = vmatprep.subr.bf16.mxu0 (!%p168_p3), %v538_v1 }
   0xc   : > { %463 = vmatpush3.bf16.msra.mxu0 (!%p168_p3), %v507_v2 }
   0xd   : > { %464 = vmatprep.subr.bf16.mxu0 (!%p168_p3), %v538_v1 }
   0xe   : > { %s633_s12 = smov (!%p199_p4, %s528_s12), 1 }
   0xf   : > { %s438_s30 = sshll.u32 %s633_s12, 2  ;;  %s439_s11 = sshll.u32 %s633_s12, 3 }
  0x10   : > { %465 = vmatpush3.bf16.msra.mxu0 %v508_v3  ;;  %s202_s8 = scalar_lea.vmem %s624_s0, %s438_s30  ;;  %s216_s18 = scalar_lea.vmem %s627_s3, %s439_s11 }
  0x11   : > { %466 = vmatprep.subr.bf16.mxu0 %v538_v1  ;;  %v218_v9 = vld [vmem:[%s202_s8] sm:$0xf] }
  0x14   : > { %467 = vmatpush3.bf16.msra.mxu0 %v509_v4 }
  0x15   : > { %468 = vmatprep.subr.bf16.mxu0 %v538_v1 }
  0x18   : > { %469 = vmatpush3.bf16.msra.mxu0 %v510_v5 }
  0x19   : > { %470 = vmatprep.subr.bf16.mxu0 %v538_v1 }
  0x1c   : > { %471 = vmatpush3.bf16.msra.mxu0 %v511_v6 }
  0x1d   : > { %472 = vmatprep.subr.bf16.mxu0 %v538_v1 }
  0x20   : > { %473 = vmatpush3.bf16.msra.mxu0 %v512_v7 }
  0x21   : > { %474 = vmatprep.subr.bf16.mxu0 %v538_v1 }
  0x24   : > { %475 = vmatpush3.bf16.msra.mxu0 %v513_v8 }
  0x27   : > { %477 = vmatmul.mubr.bf16.vlgmr.msra.gmra.mrb[0].mxu0 %v218_v9 }
  0xfa   : > { %v324_v11 = vpop.f32.mrb[0].mxu0 }
  0xfb   : > { %v325_v12 = vadd.f32 %v440_v10, %v324_v11  ;;  %v478_v13 = vpop.f32.mrb[1].mxu0 }
  0xfc   : > { %v327_v14 = vpop.f32.mrb[2].mxu0 }
  0xfd   : > { %v330_v15 = vmax.f32 %v325_v12, 0.0  ;;  %v479_v16 = vpop.f32.mrb[3].mxu0 }
  0xff   : > { %331 = vst [vmem:[%s216_s18] sm:$0xff] %v330_v15 }
 0x100 PF: > { %s13_s14 = sadd.s32 1, %s536_s14   ;;  %s628_s12 = smov %s532_s13 }
 0x101   : > { %p10_p5 = scmp.ge.s32.totalorder %s13_s14, 4   ;;  %s629_s13 = smov %s631_s15 }
 0x103   :  { %12 = sbr.rel (!%p10_p5) target bundleno = 2 (0x2), region = 68 }

// kernel: _lambda_.47
= control target key start
LH: loop header
LB: loop body
LE: loop exit
PB: predicated region body
PF: predicated region fallthrough
CT: control target
= control target key end

     0   :  { %s559_s12 = smov 0   ;;  %s561_s13 = smov 0   ;;  %s623_s0 = inlined_call_operand.vmem [shape: bf16[16,128], index: 0, kind: input, shape index: {}]   ;;  %s624_s1 = inlined_call_operand.vmem [shape: bf16[128,128], index: 1, kind: input, shape index: {}]   ;;  %s625_s2 = inlined_call_operand.vmem [shape: f32[1,128], index: 2, kind: input, shape index: {}]   ;;  %s626_s3 = inlined_call_operand.vmem [shape: f32[16,128], index: 3, kind: output, shape index: {}]  }
   0x1   :  { %s563_s14 = smov 0  }
   0x2 LB: > { %s25_s15 = sadd.s32 1, %s531_s13  ;;  %p436_p0 = scmp.ge.s32.totalorder %s535_s14, 1  ;;  %s535_s14 = sphi %s563_s14, %s13_s14   ;;  %s531_s13 = sphi %s561_s13, %s628_s13   ;;  %s527_s12 = sphi %s559_s12, %s627_s12  }
   0x3   : > { %p27_p1 = scmp.ge.s32.totalorder %s25_s15, 2  ;;  %p167_p2 = scmp.lt.s32.totalorder %s535_s14, 3 }
   0x5   : > { %s630_s15 = smov (%p27_p1, %s25_s15), 0  ;;  %p168_p3 = pnand %p436_p0, %p167_p2 }
   0x6   : > { %v505_v0 = vld [vmem:[%s624_s1] sm:$0xff] (!%p168_p3)   ;;  %v537_v1 = vmov (!%p168_p3), 0.0   ;;  %v506_v2 = vld [vmem:[%s624_s1 + $0x8] sm:$0xff] (!%p168_p3)   ;;  %vm538_vm0 = vmmov (!%p168_p3), 0   ;;  %v507_v3 = vld [vmem:[%s624_s1 + $0x10] sm:$0xff] (!%p168_p3)   ;;  %p199_p4 = scmp.lt.s32.totalorder (!%p168_p3), %s527_s12, 1 }
   0x7   : > { %171 = sbr.rel (%p168_p3) target bundleno = 254 (0xfe), region = 32  ;;  %459 = vmatprep.subr.bf16.mxu0 (!%p168_p3), %v537_v1  ;;  %475 = vmatprep.mubr.msk.bf16.mxu0 (!%p168_p3), %vm538_vm0, %v537_v1  ;;  %v508_v4 = vld [vmem:[%s624_s1 + $0x18] sm:$0xff] (!%p168_p3)   ;;  %v509_v5 = vld [vmem:[%s624_s1 + $0x20] sm:$0xff] (!%p168_p3)   ;;  %v510_v6 = vld [vmem:[%s624_s1 + $0x28] sm:$0xff] (!%p168_p3)  }
   0x8   : > { %460 = vmatpush3.bf16.msra.mxu0 (!%p168_p3), %v505_v0  ;;  %v511_v7 = vld [vmem:[%s624_s1 + $0x30] sm:$0xff] (!%p168_p3)   ;;  %v512_v8 = vld [vmem:[%s624_s1 + $0x38] sm:$0xff] (!%p168_p3)   ;;  %v439_v10 = vld [vmem:[%s625_s2] ss:$0 sm:$0xff] (!%p168_p3) }
   0x9   : > { %461 = vmatprep.subr.bf16.mxu0 (!%p168_p3), %v537_v1 }
   0xc   : > { %462 = vmatpush3.bf16.msra.mxu0 (!%p168_p3), %v506_v2 }
   0xd   : > { %463 = vmatprep.subr.bf16.mxu0 (!%p168_p3), %v537_v1 }
   0xe   : > { %s632_s12 = smov (!%p199_p4, %s527_s12), 1 }
   0xf   : > { %s437_s30 = sshll.u32 %s632_s12, 2  ;;  %s438_s9 = sshll.u32 %s632_s12, 3 }
  0x10   : > { %464 = vmatpush3.bf16.msra.mxu0 %v507_v3  ;;  %s202_s8 = scalar_lea.vmem %s623_s0, %s437_s30  ;;  %s216_s18 = scalar_lea.vmem %s626_s3, %s438_s9 }
  0x11   : > { %465 = vmatprep.subr.bf16.mxu0 %v537_v1  ;;  %v218_v9 = vld [vmem:[%s202_s8] sm:$0xf] }
  0x14   : > { %466 = vmatpush3.bf16.msra.mxu0 %v508_v4 }
  0x15   : > { %467 = vmatprep.subr.bf16.mxu0 %v537_v1 }
  0x18   : > { %468 = vmatpush3.bf16.msra.mxu0 %v509_v5 }
  0x19   : > { %469 = vmatprep.subr.bf16.mxu0 %v537_v1 }
  0x1c   : > { %470 = vmatpush3.bf16.msra.mxu0 %v510_v6 }
  0x1d   : > { %471 = vmatprep.subr.bf16.mxu0 %v537_v1 }
  0x20   : > { %472 = vmatpush3.bf16.msra.mxu0 %v511_v7 }
  0x21   : > { %473 = vmatprep.subr.bf16.mxu0 %v537_v1 }
  0x24   : > { %474 = vmatpush3.bf16.msra.mxu0 %v512_v8 }
  0x27   : > { %476 = vmatmul.mubr.bf16.vlgmr.msra.gmra.mrb[0].mxu0 %v218_v9 }
  0xfa   : > { %v324_v11 = vpop.f32.mrb[0].mxu0 }
  0xfb   : > { %v325_v12 = vadd.f32 %v439_v10, %v324_v11  ;;  %v477_v13 = vpop.f32.mrb[1].mxu0 }
  0xfc   : > { %v327_v14 = vpop.f32.mrb[2].mxu0 }
  0xfd   : > { %330 = vst [vmem:[%s216_s18] sm:$0xff] %v325_v12  ;;  %v478_v15 = vpop.f32.mrb[3].mxu0 }
  0xfe PF: > { %s13_s14 = sadd.s32 1, %s535_s14   ;;  %s627_s12 = smov %s531_s13 }
  0xff   : > { %p10_p5 = scmp.ge.s32.totalorder %s13_s14, 4   ;;  %s628_s13 = smov %s630_s15 }
 0x101   :  { %12 = sbr.rel (!%p10_p5) target bundleno = 2 (0x2), region = 68 }

// kernel: _lambda_.50
= control target key start
LH: loop header
LB: loop body
LE: loop exit
PB: predicated region body
PF: predicated region fallthrough
CT: control target
= control target key end

     0   :  { %s957_s15 = smov 0   ;;  %s959_s16 = smov 0   ;;  %s1100_s0 = inlined_call_operand.vmem [shape: bf16[16,512], index: 0, kind: input, shape index: {}]   ;;  %s1101_s1 = inlined_call_operand.vmem [shape: bf16[512,128], index: 1, kind: input, shape index: {}]   ;;  %s1102_s2 = inlined_call_operand.vmem [shape: f32[1,128], index: 2, kind: input, shape index: {}]   ;;  %s1103_s3 = inlined_call_operand.vmem [shape: f32[16,128], index: 3, kind: input, shape index: {}]   ;;  %s1104_s4 = inlined_call_operand.vmem [shape: f32[16,128], index: 4, kind: output, shape index: {}]  }
   0x1   :  { %s961_s17 = smov 0  }
   0x2 LB: > { %s26_s18 = sadd.s32 1, %s926_s16  ;;  %p759_p0 = scmp.ge.s32.totalorder %s930_s17, 1  ;;  %s930_s17 = sphi %s961_s17, %s14_s17   ;;  %s926_s16 = sphi %s959_s16, %s1106_s16   ;;  %s922_s15 = sphi %s957_s15, %s1105_s15  }
   0x3   : > { %p28_p1 = scmp.ge.s32.totalorder %s26_s18, 2  ;;  %p207_p2 = scmp.lt.s32.totalorder %s930_s17, 3 }
   0x5   : > { %s1108_s18 = smov (%p28_p1, %s26_s18), 0  ;;  %p208_p3 = pnand %p759_p0, %p207_p2 }
   0x6   : > { %v872_v0 = vld [vmem:[%s1101_s1 + $0x40] sm:$0xff] (!%p208_p3)   ;;  %v876_v4 = vld [vmem:[%s1101_s1 + $0x48] sm:$0xff] (!%p208_p3)   ;;  %v880_v8 = vld [vmem:[%s1101_s1 + $0x50] sm:$0xff] (!%p208_p3)   ;;  %p249_p4 = scmp.lt.s32.totalorder (!%p208_p3), %s922_s15, 1 }
   0x7   : > { %211 = sbr.rel (%p208_p3) target bundleno = 264 (0x108), region = 36  ;;  %v873_v1 = vld [vmem:[%s1101_s1 + $0xc0] sm:$0xff] (!%p208_p3)   ;;  %804 = vmatprep.subr.bf16.mxu0 (!%p208_p3), %v872_v0  ;;  %v877_v5 = vld [vmem:[%s1101_s1 + $0xc8] sm:$0xff] (!%p208_p3)   ;;  %v881_v9 = vld [vmem:[%s1101_s1 + $0xd0] sm:$0xff] (!%p208_p3)  }
   0x8   : > { %v874_v2 = vld [vmem:[%s1101_s1] sm:$0xff] (!%p208_p3)   ;;  %826 = vmatprep.subr.bf16.mxu1 (!%p208_p3), %v873_v1  ;;  %v878_v6 = vld [vmem:[%s1101_s1 + $0x8] sm:$0xff] (!%p208_p3)   ;;  %v882_v10 = vld [vmem:[%s1101_s1 + $0x10] sm:$0xff] (!%p208_p3)  }
   0x9   : > { %v875_v3 = vld [vmem:[%s1101_s1 + $0x80] sm:$0xff] (!%p208_p3)   ;;  %805 = vmatpush3.bf16.msra.mxu0 (!%p208_p3), %v874_v2  ;;  %v879_v7 = vld [vmem:[%s1101_s1 + $0x88] sm:$0xff] (!%p208_p3)   ;;  %v883_v11 = vld [vmem:[%s1101_s1 + $0x90] sm:$0xff] (!%p208_p3)  }
   0xa   : > { %827 = vmatpush3.bf16.msra.mxu1 (!%p208_p3), %v875_v3  ;;  %806 = vmatprep.subr.bf16.mxu0 (!%p208_p3), %v876_v4  ;;  %v884_v12 = vld [vmem:[%s1101_s1 + $0x58] sm:$0xff] (!%p208_p3)   ;;  %v888_v16 = vld [vmem:[%s1101_s1 + $0x60] sm:$0xff] (!%p208_p3)   ;;  %v892_v20 = vld [vmem:[%s1101_s1 + $0x68] sm:$0xff] (!%p208_p3)  }
   0xb   : > { %828 = vmatprep.subr.bf16.mxu1 (!%p208_p3), %v877_v5  ;;  %v885_v13 = vld [vmem:[%s1101_s1 + $0xd8] sm:$0xff] (!%p208_p3)   ;;  %v889_v17 = vld [vmem:[%s1101_s1 + $0xe0] sm:$0xff] (!%p208_p3)   ;;  %v893_v21 = vld [vmem:[%s1101_s1 + $0xe8] sm:$0xff] (!%p208_p3)  }
   0xc   : > { %v886_v14 = vld [vmem:[%s1101_s1 + $0x18] sm:$0xff] (!%p208_p3)   ;;  %v890_v18 = vld [vmem:[%s1101_s1 + $0x20] sm:$0xff] (!%p208_p3)   ;;  %v894_v22 = vld [vmem:[%s1101_s1 + $0x28] sm:$0xff] (!%p208_p3)  }
   0xd   : > { %807 = vmatpush3.bf16.msra.mxu0 (!%p208_p3), %v878_v6  ;;  %v887_v15 = vld [vmem:[%s1101_s1 + $0x98] sm:$0xff] (!%p208_p3)   ;;  %v891_v19 = vld [vmem:[%s1101_s1 + $0xa0] sm:$0xff] (!%p208_p3)   ;;  %v895_v23 = vld [vmem:[%s1101_s1 + $0xa8] sm:$0xff] (!%p208_p3)  }
   0xe   : > { %829 = vmatpush3.bf16.msra.mxu1 %v879_v7  ;;  %808 = vmatprep.subr.bf16.mxu0 %v880_v8  ;;  %s1110_s15 = smov (!%p249_p4, %s922_s15), 1  ;;  %v896_v24 = vld [vmem:[%s1101_s1 + $0x70] sm:$0xff]   ;;  %v900_v28 = vld [vmem:[%s1101_s1 + $0x78] sm:$0xff]   ;;  %v764_v40 = vld [vmem:[%s1102_s2] ss:$0 sm:$0xff] }
   0xf   : > { %830 = vmatprep.subr.bf16.mxu1 %v881_v9  ;;  %v897_v25 = vld [vmem:[%s1101_s1 + $0xf0] sm:$0xff]   ;;  %s803_s29 = sshll.u32 %s1110_s15, 4  ;;  %v901_v29 = vld [vmem:[%s1101_s1 + $0xf8] sm:$0xff]   ;;  %s762_s21 = sshll.u32 %s1110_s15, 3 }
  0x10   : > { %v898_v26 = vld [vmem:[%s1101_s1 + $0x30] sm:$0xff]   ;;  %s253_s12 = scalar_lea.vmem %s1100_s0, %s803_s29  ;;  %v902_v30 = vld [vmem:[%s1101_s1 + $0x38] sm:$0xff]   ;;  %s267_s26 = scalar_lea.vmem %s1103_s3, %s762_s21 }
  0x11   : > { %809 = vmatpush3.bf16.msra.mxu0 %v882_v10  ;;  %v899_v27 = vld [vmem:[%s1101_s1 + $0xb0] sm:$0xff]   ;;  %v903_v31 = vld [vmem:[%s1101_s1 + $0xb8] sm:$0xff]   ;;  %v276_v32 = vld [vmem:[%s253_s12] sm:$0xff]  ;;  %s274_s28 = scalar_lea.vmem %s1104_s4, %s762_s21 }
  0x12   : > { %831 = vmatpush3.bf16.msra.mxu1 %v883_v11  ;;  %810 = vmatprep.subr.bf16.mxu0 %v884_v12  ;;  %v277_v33 = vld [vmem:[%s253_s12 + $0x8] sm:$0xff]  ;;  %v765_v34 = vcombine.low %v276_v32, %v276_v32  ;;  %v766_v35 = vcombine.high %v276_v32, %v276_v32  ;;  %v635_v50 = vld [vmem:[%s267_s26] sm:$0xff] }
  0x13   : > { %832 = vmatprep.subr.bf16.mxu1 %v885_v13  ;;  %v767_v36 = vcombine.low %v277_v33, %v277_v33  ;;  %v768_v37 = vcombine.high %v277_v33, %v277_v33 }
  0x14   : > { %587 = vmatprep.mubr.bf16.mxu0 %v766_v35 }
  0x15   : > { %811 = vmatpush3.bf16.msra.mxu0 %v886_v14  ;;  %627 = vmatprep.mubr.bf16.mxu1 %v768_v37 }
  0x16   : > { %833 = vmatpush3.bf16.msra.mxu1 %v887_v15  ;;  %812 = vmatprep.subr.bf16.mxu0 %v888_v16 }
  0x17   : > { %834 = vmatprep.subr.bf16.mxu1 %v889_v17 }
  0x19   : > { %813 = vmatpush3.bf16.msra.mxu0 %v890_v18 }
  0x1a   : > { %835 = vmatpush3.bf16.msra.mxu1 %v891_v19  ;;  %814 = vmatprep.subr.bf16.mxu0 %v892_v20 }
  0x1b   : > { %836 = vmatprep.subr.bf16.mxu1 %v893_v21 }
  0x1d   : > { %815 = vmatpush3.bf16.msra.mxu0 %v894_v22 }
  0x1e   : > { %837 = vmatpush3.bf16.msra.mxu1 %v895_v23  ;;  %816 = vmatprep.subr.bf16.mxu0 %v896_v24 }
  0x1f   : > { %838 = vmatprep.subr.bf16.mxu1 %v897_v25 }
  0x21   : > { %817 = vmatpush3.bf16.msra.mxu0 %v898_v26 }
  0x22   : > { %839 = vmatpush3.bf16.msra.mxu1 %v899_v27  ;;  %818 = vmatprep.subr.bf16.mxu0 %v900_v28 }
  0x23   : > { %840 = vmatprep.subr.bf16.mxu1 %v901_v29 }
  0x25   : > { %819 = vmatpush3.bf16.msra.mxu0 %v902_v30 }
  0x26   : > { %841 = vmatpush3.bf16.msra.mxu1 %v903_v31 }
  0x28   : > { %588 = vmatmul.mubr.bf16.vlgmr.msra.gmra.mrb[0].mxu0 %v765_v34 }
  0x29   : > { %628 = vmatmul.mubr.bf16.vlgmr.msra.gmra.mrb[0].mxu1 %v767_v36 }
  0xfb   : > { %v820_v38 = vpop.f32.mrb[0].mxu0 }
  0xfc   : > { %v842_v39 = vpop.f32.mrb[0].mxu1  ;;  %v821_v41 = vpop.f32.mrb[1].mxu0 }
  0xfd   : > { %v843_v42 = vpop.f32.mrb[1].mxu1  ;;  %v822_v43 = vadd.f32 %v821_v41, %v820_v38  ;;  %v823_v45 = vpop.f32.mrb[2].mxu0 }
  0xfe   : > { %v844_v44 = vadd.f32 %v843_v42, %v842_v39  ;;  %v845_v46 = vpop.f32.mrb[2].mxu1  ;;  %v824_v47 = vpop.f32.mrb[3].mxu0 }
  0xff   : > { %v846_v48 = vpop.f32.mrb[3].mxu1  ;;  %v590_v49 = vadd.f32 %v822_v43, %v764_v40 }
 0x101   : > { %v630_v51 = vadd.f32 %v844_v44, %v590_v49 }
 0x103   : > { %v636_v52 = vadd.f32 %v635_v50, %v630_v51 }
 0x105   : > { %v637_v53 = vmax.f32 %v636_v52, 0.0 }
 0x107   : > { %638 = vst [vmem:[%s274_s28] sm:$0xff] %v637_v53 }
 0x108 PF: > { %s14_s17 = sadd.s32 1, %s930_s17   ;;  %s1105_s15 = smov %s926_s16 }
 0x109   : > { %p11_p5 = scmp.ge.s32.totalorder %s14_s17, 4   ;;  %s1106_s16 = smov %s1108_s18 }
 0x10b   :  { %13 = sbr.rel (!%p11_p5) target bundleno = 2 (0x2), region = 75 }

// kernel: _lambda_.49
= control target key start
LH: loop header
LB: loop body
LE: loop exit
PB: predicated region body
PF: predicated region fallthrough
CT: control target
= control target key end

     0   :  { %s1059_s15 = smov 0   ;;  %s1061_s16 = smov 0   ;;  %s1169_s0 = inlined_call_operand.vmem [shape: bf16[16,2048], index: 0, kind: input, shape index: {}]   ;;  %s1170_s1 = inlined_call_operand.vmem [shape: bf16[2048,128], index: 1, kind: input, shape index: {}]   ;;  %s1171_s2 = inlined_call_operand.vmem [shape: f32[1,128], index: 2, kind: input, shape index: {}]   ;;  %s1172_s3 = inlined_call_operand.vmem [shape: f32[16,128], index: 3, kind: input, shape index: {}]   ;;  %s1173_s4 = inlined_call_operand.vmem [shape: f32[16,128], index: 4, kind: output, shape index: {}]  }
   0x1   :  { %s1063_s17 = smov 0   ;;  %s1065_s18 = smov 0  }
   0x2   :  { %s1067_s19 = smov 0  }
   0x3 LB: > { %s26_s20 = sadd.s32 1, %s1023_s17  ;;  %s33_s21 = sadd.s32 1, %s1027_s18  ;;  %s1031_s19 = sphi %s1067_s19, %s14_s19   ;;  %s1027_s18 = sphi %s1065_s18, %s1177_s18   ;;  %s1023_s17 = sphi %s1063_s17, %s1176_s17   ;;  %s1019_s16 = sphi %s1061_s16, %s1175_s16   ;;  %s1015_s15 = sphi %s1059_s15, %s1174_s15  }
   0x4   : > { %p27_p0 = scmp.ge.s32.totalorder %s26_s20, 4  ;;  %p823_p1 = scmp.ge.s32.totalorder %s1031_s19, 1 }
   0x5   : > { %p228_p2 = scmp.lt.s32.totalorder %s1031_s19, 9 }
   0x6   : > { %s1179_s20 = smov (%p27_p0, %s26_s20), 0  ;;  %s1181_s21 = smov (!%p27_p0, %s33_s21), %s1027_s18 }
   0x7   : > { %p229_p3 = pnand %p823_p1, %p228_p2  ;;  %p35_p4 = scmp.ge.s32.totalorder %s1181_s21, 2 }
   0x8   : > { %s824_s22 = sshll.u32 (!%p229_p3), %s1015_s15, 2  ;;  %p279_p5 = scmp.lt.s32.totalorder (!%p229_p3), %s1019_s16, 1 }
   0x9   : > { %s1183_s21 = smov (%p35_p4, %s1181_s21), 0  ;;  %232 = sbr.rel (%p229_p3) target bundleno = 297 (0x129), region = 36 }
   0xa   : > { %p281_p6 = scmp.lt.s32.totalorder (!%p229_p3), %s824_s22, 15  ;;  %s827_s23 = sshll.u32 (!%p229_p3), %s1015_s15, 6 }
   0xb   : > { %p289_p7 = scmp.lt.s32.totalorder (!%p229_p3), %s827_s23, 255  ;;  %p831_p8 = scmp.ne.s32.totalorder (!%p229_p3), %s1015_s15, 0 }
  0x10   : > { %s1185_s16 = smov (!%p279_p5, %s1019_s16), 1  ;;  %s1187_s22 = smov (!%p281_p6, %s824_s22), 15 }
  0x11   : > { %s825_s24 = sshll.u32 %s1185_s16, 4  ;;  %s829_s26 = sshll.u32 %s1185_s16, 3  ;;  %v1033_v0 = vmov (!%p831_p8), 0.0  }
  0x12   : > { %s284_s25 = sadd.s32 %s825_s24, %s1187_s22  ;;  %s1096_s30 = scalar_lea.vmem %s1172_s3, %s829_s26  ;;  %319 = vst [vmem:[#allocation2] sm:$0xff] (!%p831_p8), %v1033_v0 }
  0x13   : > { %s826_s27 = sshll.u32 %s284_s25, 2  ;;  %s1106_s10 = scalar_lea.vmem %s1173_s4, %s829_s26 }
  0x14   : > { %s1101_s7 = scalar_lea.vmem %s1169_s0, %s826_s27  ;;  %s1189_s23 = smov (!%p289_p7, %s827_s23), 255 }
  0x15   : > { %s828_s11 = sshll.u32 %s1189_s23, 2  ;;  %318 = sbr.rel (%p831_p8) target bundleno = 28 (0x1c), region = 40 }
  0x16   : > { %s1111_s14 = scalar_lea.vmem %s1170_s1, %s828_s11 }
  0x1c PF: > { %v957_v1 = vld [vmem:[%s1111_s14 + $0x40] sm:$0xff]   ;;  %v961_v5 = vld [vmem:[%s1111_s14 + $0x48] sm:$0xff]   ;;  %v965_v9 = vld [vmem:[%s1111_s14 + $0x50] sm:$0xff]   ;;  %p868_p9 = scmp.ne.s32.totalorder %s1015_s15, 3 }
  0x1d   : > { %v958_v2 = vld [vmem:[%s1111_s14 + $0xc0] sm:$0xff]   ;;  %872 = vmatprep.subr.bf16.mxu0 %v957_v1  ;;  %v962_v6 = vld [vmem:[%s1111_s14 + $0xc8] sm:$0xff]   ;;  %v966_v10 = vld [vmem:[%s1111_s14 + $0xd0] sm:$0xff]  }
  0x1e   : > { %v959_v3 = vld [vmem:[%s1111_s14] sm:$0xff]   ;;  %894 = vmatprep.subr.bf16.mxu1 %v958_v2  ;;  %v963_v7 = vld [vmem:[%s1111_s14 + $0x8] sm:$0xff]   ;;  %v967_v11 = vld [vmem:[%s1111_s14 + $0x10] sm:$0xff]  }
  0x1f   : > { %v960_v4 = vld [vmem:[%s1111_s14 + $0x80] sm:$0xff]   ;;  %873 = vmatpush3.bf16.msra.mxu0 %v959_v3  ;;  %v964_v8 = vld [vmem:[%s1111_s14 + $0x88] sm:$0xff]   ;;  %v968_v12 = vld [vmem:[%s1111_s14 + $0x90] sm:$0xff]  }
  0x20   : > { %895 = vmatpush3.bf16.msra.mxu1 %v960_v4  ;;  %874 = vmatprep.subr.bf16.mxu0 %v961_v5  ;;  %v969_v13 = vld [vmem:[%s1111_s14 + $0x58] sm:$0xff]   ;;  %v973_v17 = vld [vmem:[%s1111_s14 + $0x60] sm:$0xff]   ;;  %v977_v21 = vld [vmem:[%s1111_s14 + $0x68] sm:$0xff]  }
  0x21   : > { %896 = vmatprep.subr.bf16.mxu1 %v962_v6  ;;  %v970_v14 = vld [vmem:[%s1111_s14 + $0xd8] sm:$0xff]   ;;  %v974_v18 = vld [vmem:[%s1111_s14 + $0xe0] sm:$0xff]   ;;  %v978_v22 = vld [vmem:[%s1111_s14 + $0xe8] sm:$0xff]  }
  0x22   : > { %v971_v15 = vld [vmem:[%s1111_s14 + $0x18] sm:$0xff]   ;;  %v975_v19 = vld [vmem:[%s1111_s14 + $0x20] sm:$0xff]   ;;  %v979_v23 = vld [vmem:[%s1111_s14 + $0x28] sm:$0xff]  }
  0x23   : > { %875 = vmatpush3.bf16.msra.mxu0 %v963_v7  ;;  %v972_v16 = vld [vmem:[%s1111_s14 + $0x98] sm:$0xff]   ;;  %v976_v20 = vld [vmem:[%s1111_s14 + $0xa0] sm:$0xff]   ;;  %v980_v24 = vld [vmem:[%s1111_s14 + $0xa8] sm:$0xff]  }
  0x24   : > { %897 = vmatpush3.bf16.msra.mxu1 %v964_v8  ;;  %876 = vmatprep.subr.bf16.mxu0 %v965_v9  ;;  %v981_v25 = vld [vmem:[%s1111_s14 + $0x70] sm:$0xff]   ;;  %v985_v29 = vld [vmem:[%s1111_s14 + $0x78] sm:$0xff]   ;;  %v321_v33 = vld [vmem:[%s1101_s7] sm:$0xff] }
  0x25   : > { %898 = vmatprep.subr.bf16.mxu1 %v966_v10  ;;  %v982_v26 = vld [vmem:[%s1111_s14 + $0xf0] sm:$0xff]   ;;  %v986_v30 = vld [vmem:[%s1111_s14 + $0xf8] sm:$0xff]   ;;  %v322_v34 = vld [vmem:[%s1101_s7 + $0x8] sm:$0xff]  ;;  %v832_v35 = vcombine.low %v321_v33, %v321_v33  ;;  %v833_v36 = vcombine.high %v321_v33, %v321_v33 }
  0x26   : > { %v983_v27 = vld [vmem:[%s1111_s14 + $0x30] sm:$0xff]   ;;  %v987_v31 = vld [vmem:[%s1111_s14 + $0x38] sm:$0xff]   ;;  %v834_v37 = vcombine.low %v322_v34, %v322_v34  ;;  %v835_v38 = vcombine.high %v322_v34, %v322_v34  ;;  %v320_v47 = vld [vmem:[#allocation2] sm:$0xff] }
  0x27   : > { %877 = vmatpush3.bf16.msra.mxu0 %v967_v11  ;;  %v984_v28 = vld [vmem:[%s1111_s14 + $0xb0] sm:$0xff]   ;;  %v988_v32 = vld [vmem:[%s1111_s14 + $0xb8] sm:$0xff]   ;;  %625 = vmatprep.mubr.bf16.mxu0 %v833_v36  ;;  %v869_v53 = vld [vmem:[%s1171_s2] ss:$0 sm:$0xff] (!%p868_p9) }
  0x28   : > { %899 = vmatpush3.bf16.msra.mxu1 %v968_v12  ;;  %878 = vmatprep.subr.bf16.mxu0 %v969_v13  ;;  %v688_v54 = vld [vmem:[%s1096_s30] sm:$0xff] (!%p868_p9) }
  0x29   : > { %900 = vmatprep.subr.bf16.mxu1 %v970_v14  ;;  %665 = vmatprep.mubr.bf16.mxu1 %v835_v38 }
  0x2b   : > { %879 = vmatpush3.bf16.msra.mxu0 %v971_v15 }
  0x2c   : > { %901 = vmatpush3.bf16.msra.mxu1 %v972_v16  ;;  %880 = vmatprep.subr.bf16.mxu0 %v973_v17 }
  0x2d   : > { %902 = vmatprep.subr.bf16.mxu1 %v974_v18 }
  0x2f   : > { %881 = vmatpush3.bf16.msra.mxu0 %v975_v19 }
  0x30   : > { %903 = vmatpush3.bf16.msra.mxu1 %v976_v20  ;;  %882 = vmatprep.subr.bf16.mxu0 %v977_v21 }
  0x31   : > { %904 = vmatprep.subr.bf16.mxu1 %v978_v22 }
  0x33   : > { %883 = vmatpush3.bf16.msra.mxu0 %v979_v23 }
  0x34   : > { %905 = vmatpush3.bf16.msra.mxu1 %v980_v24  ;;  %884 = vmatprep.subr.bf16.mxu0 %v981_v25 }
  0x35   : > { %906 = vmatprep.subr.bf16.mxu1 %v982_v26 }
  0x37   : > { %885 = vmatpush3.bf16.msra.mxu0 %v983_v27 }
  0x38   : > { %907 = vmatpush3.bf16.msra.mxu1 %v984_v28  ;;  %886 = vmatprep.subr.bf16.mxu0 %v985_v29 }
  0x39   : > { %908 = vmatprep.subr.bf16.mxu1 %v986_v30 }
  0x3b   : > { %887 = vmatpush3.bf16.msra.mxu0 %v987_v31 }
  0x3c   : > { %909 = vmatpush3.bf16.msra.mxu1 %v988_v32 }
  0x3e   : > { %626 = vmatmul.mubr.bf16.vlgmr.msra.gmra.mrb[0].mxu0 %v832_v35 }
  0x3f   : > { %666 = vmatmul.mubr.bf16.vlgmr.msra.gmra.mrb[0].mxu1 %v834_v37 }
 0x111   : > { %v888_v39 = vpop.f32.mrb[0].mxu0 }
 0x112   : > { %v910_v40 = vpop.f32.mrb[0].mxu1  ;;  %v889_v41 = vpop.f32.mrb[1].mxu0 }
 0x113   : > { %v911_v42 = vpop.f32.mrb[1].mxu1  ;;  %v890_v43 = vadd.f32 %v889_v41, %v888_v39  ;;  %v891_v45 = vpop.f32.mrb[2].mxu0 }
 0x114   : > { %v912_v44 = vadd.f32 %v911_v42, %v910_v40  ;;  %v913_v46 = vpop.f32.mrb[2].mxu1  ;;  %v892_v48 = vpop.f32.mrb[3].mxu0  ;;  %678 = sbr.rel (%p868_p9) target bundleno = 297 (0x129), region = 44 }
 0x115   : > { %v914_v49 = vpop.f32.mrb[3].mxu1 }
 0x116   : > { %v668_v50 = vadd.f32 %v912_v44, %v890_v43 }
 0x118   : > { %v673_v51 = vadd.f32 %v668_v50, %v320_v47 }
 0x11a   : > { %674 = vst [vmem:[#allocation2] sm:$0xff] %v673_v51 }
 0x121   : > { %v679_v52 = vld [vmem:[#allocation2] sm:$0xff] }
 0x122   : > { %v687_v55 = vadd.f32 %v869_v53, %v679_v52 }
 0x124   : > { %v689_v56 = vadd.f32 %v688_v54, %v687_v55 }
 0x126   : > { %v690_v57 = vmax.f32 %v689_v56, 0.0 }
 0x128   : > { %691 = vst [vmem:[%s1106_s10] sm:$0xff] %v690_v57 }
 0x129 PF: > { %s14_s19 = sadd.s32 1, %s1031_s19   ;;  %s1174_s15 = smov %s1023_s17 }
 0x12a   : > { %p11_p10 = scmp.ge.s32.totalorder %s14_s19, 10   ;;  %s1175_s16 = smov %s1027_s18 }
 0x12b   : > { %s1176_s17 = smov %s1179_s20  ;;  %s1177_s18 = smov %s1183_s21 }
 0x12c   :  { %13 = sbr.rel (!%p11_p10) target bundleno = 3 (0x3), region = 83 }

// kernel: _lambda_.52
= control target key start
LH: loop header
LB: loop body
LE: loop exit
PB: predicated region body
PF: predicated region fallthrough
CT: control target
= control target key end

     0   :  { %s1059_s15 = smov 0   ;;  %s1061_s16 = smov 0   ;;  %s1178_s0 = inlined_call_operand.vmem [shape: bf16[16,1024], index: 0, kind: input, shape index: {}]   ;;  %s1179_s1 = inlined_call_operand.vmem [shape: bf16[1024,128], index: 1, kind: input, shape index: {}]   ;;  %s1180_s2 = inlined_call_operand.vmem [shape: f32[1,128], index: 2, kind: input, shape index: {}]   ;;  %s1181_s3 = inlined_call_operand.vmem [shape: f32[16,128], index: 3, kind: input, shape index: {}]   ;;  %s1182_s4 = inlined_call_operand.vmem [shape: f32[16,128], index: 4, kind: output, shape index: {}]  }
   0x1   :  { %s1063_s17 = smov 0   ;;  %s1065_s18 = smov 0  }
   0x2   :  { %s1067_s19 = smov 0  }
   0x3 LB: > { %s26_s20 = sadd.s32 1, %s1023_s17  ;;  %s33_s21 = sadd.s32 1, %s1027_s18  ;;  %s1031_s19 = sphi %s1067_s19, %s14_s19   ;;  %s1027_s18 = sphi %s1065_s18, %s1186_s18   ;;  %s1023_s17 = sphi %s1063_s17, %s1185_s17   ;;  %s1019_s16 = sphi %s1061_s16, %s1184_s16   ;;  %s1015_s15 = sphi %s1059_s15, %s1183_s15  }
   0x4   : > { %p27_p0 = scmp.ge.s32.totalorder %s26_s20, 2  ;;  %p823_p1 = scmp.ge.s32.totalorder %s1031_s19, 1 }
   0x5   : > { %p228_p2 = scmp.lt.s32.totalorder %s1031_s19, 5 }
   0x6   : > { %s1188_s20 = smov (%p27_p0, %s26_s20), 0  ;;  %s1190_s21 = smov (!%p27_p0, %s33_s21), %s1027_s18 }
   0x7   : > { %p229_p3 = pnand %p823_p1, %p228_p2  ;;  %p35_p4 = scmp.ge.s32.totalorder %s1190_s21, 2 }
   0x8   : > { %s824_s22 = sshll.u32 (!%p229_p3), %s1015_s15, 2  ;;  %p279_p5 = scmp.lt.s32.totalorder (!%p229_p3), %s1019_s16, 1 }
   0x9   : > { %s1192_s21 = smov (%p35_p4, %s1190_s21), 0  ;;  %232 = sbr.rel (%p229_p3) target bundleno = 297 (0x129), region = 36 }
   0xa   : > { %p281_p6 = scmp.lt.s32.totalorder (!%p229_p3), %s824_s22, 7  ;;  %s827_s23 = sshll.u32 (!%p229_p3), %s1015_s15, 6 }
   0xb   : > { %p289_p7 = scmp.lt.s32.totalorder (!%p229_p3), %s827_s23, 127  ;;  %p831_p8 = scmp.ne.s32.totalorder (!%p229_p3), %s1015_s15, 0 }
  0x10   : > { %s1194_s16 = smov (!%p279_p5, %s1019_s16), 1  ;;  %s1196_s22 = smov (!%p281_p6, %s824_s22), 7 }
  0x11   : > { %s1093_s24 = sshll.u32 %s1194_s16, 3  ;;  %s1198_s23 = smov (!%p289_p7, %s827_s23), 127  ;;  %v1033_v0 = vmov (!%p831_p8), 0.0  }
  0x12   : > { %s284_s25 = sadd.s32 %s1093_s24, %s1196_s22  ;;  %s306_s28 = scalar_lea.vmem %s1181_s3, %s1093_s24  ;;  %319 = vst [vmem:[#allocation2] sm:$0xff] (!%p831_p8), %v1033_v0 }
  0x13   : > { %s826_s29 = sshll.u32 %s284_s25, 2  ;;  %s313_s6 = scalar_lea.vmem %s1182_s4, %s1093_s24 }
  0x14   : > { %s1107_s9 = scalar_lea.vmem %s1178_s0, %s826_s29  ;;  %s828_s10 = sshll.u32 %s1198_s23, 2 }
  0x15   : > { %s1112_s13 = scalar_lea.vmem %s1179_s1, %s828_s10  ;;  %318 = sbr.rel (%p831_p8) target bundleno = 28 (0x1c), region = 40 }
  0x1c PF: > { %v957_v1 = vld [vmem:[%s1112_s13 + $0x40] sm:$0xff]   ;;  %v961_v5 = vld [vmem:[%s1112_s13 + $0x48] sm:$0xff]   ;;  %v965_v9 = vld [vmem:[%s1112_s13 + $0x50] sm:$0xff]   ;;  %p868_p9 = scmp.ne.s32.totalorder %s1015_s15, 1 }
  0x1d   : > { %v958_v2 = vld [vmem:[%s1112_s13 + $0xc0] sm:$0xff]   ;;  %872 = vmatprep.subr.bf16.mxu0 %v957_v1  ;;  %v962_v6 = vld [vmem:[%s1112_s13 + $0xc8] sm:$0xff]   ;;  %v966_v10 = vld [vmem:[%s1112_s13 + $0xd0] sm:$0xff]  }
  0x1e   : > { %v959_v3 = vld [vmem:[%s1112_s13] sm:$0xff]   ;;  %894 = vmatprep.subr.bf16.mxu1 %v958_v2  ;;  %v963_v7 = vld [vmem:[%s1112_s13 + $0x8] sm:$0xff]   ;;  %v967_v11 = vld [vmem:[%s1112_s13 + $0x10] sm:$0xff]  }
  0x1f   : > { %v960_v4 = vld [vmem:[%s1112_s13 + $0x80] sm:$0xff]   ;;  %873 = vmatpush3.bf16.msra.mxu0 %v959_v3  ;;  %v964_v8 = vld [vmem:[%s1112_s13 + $0x88] sm:$0xff]   ;;  %v968_v12 = vld [vmem:[%s1112_s13 + $0x90] sm:$0xff]  }
  0x20   : > { %895 = vmatpush3.bf16.msra.mxu1 %v960_v4  ;;  %874 = vmatprep.subr.bf16.mxu0 %v961_v5  ;;  %v969_v13 = vld [vmem:[%s1112_s13 + $0x58] sm:$0xff]   ;;  %v973_v17 = vld [vmem:[%s1112_s13 + $0x60] sm:$0xff]   ;;  %v977_v21 = vld [vmem:[%s1112_s13 + $0x68] sm:$0xff]  }
  0x21   : > { %896 = vmatprep.subr.bf16.mxu1 %v962_v6  ;;  %v970_v14 = vld [vmem:[%s1112_s13 + $0xd8] sm:$0xff]   ;;  %v974_v18 = vld [vmem:[%s1112_s13 + $0xe0] sm:$0xff]   ;;  %v978_v22 = vld [vmem:[%s1112_s13 + $0xe8] sm:$0xff]  }
  0x22   : > { %v971_v15 = vld [vmem:[%s1112_s13 + $0x18] sm:$0xff]   ;;  %v975_v19 = vld [vmem:[%s1112_s13 + $0x20] sm:$0xff]   ;;  %v979_v23 = vld [vmem:[%s1112_s13 + $0x28] sm:$0xff]  }
  0x23   : > { %875 = vmatpush3.bf16.msra.mxu0 %v963_v7  ;;  %v972_v16 = vld [vmem:[%s1112_s13 + $0x98] sm:$0xff]   ;;  %v976_v20 = vld [vmem:[%s1112_s13 + $0xa0] sm:$0xff]   ;;  %v980_v24 = vld [vmem:[%s1112_s13 + $0xa8] sm:$0xff]  }
  0x24   : > { %897 = vmatpush3.bf16.msra.mxu1 %v964_v8  ;;  %876 = vmatprep.subr.bf16.mxu0 %v965_v9  ;;  %v981_v25 = vld [vmem:[%s1112_s13 + $0x70] sm:$0xff]   ;;  %v985_v29 = vld [vmem:[%s1112_s13 + $0x78] sm:$0xff]   ;;  %v321_v33 = vld [vmem:[%s1107_s9] sm:$0xff] }
  0x25   : > { %898 = vmatprep.subr.bf16.mxu1 %v966_v10  ;;  %v982_v26 = vld [vmem:[%s1112_s13 + $0xf0] sm:$0xff]   ;;  %v986_v30 = vld [vmem:[%s1112_s13 + $0xf8] sm:$0xff]   ;;  %v322_v34 = vld [vmem:[%s1107_s9 + $0x8] sm:$0xff]  ;;  %v832_v35 = vcombine.low %v321_v33, %v321_v33  ;;  %v833_v36 = vcombine.high %v321_v33, %v321_v33 }
  0x26   : > { %v983_v27 = vld [vmem:[%s1112_s13 + $0x30] sm:$0xff]   ;;  %v987_v31 = vld [vmem:[%s1112_s13 + $0x38] sm:$0xff]   ;;  %v834_v37 = vcombine.low %v322_v34, %v322_v34  ;;  %v835_v38 = vcombine.high %v322_v34, %v322_v34  ;;  %v320_v47 = vld [vmem:[#allocation2] sm:$0xff] }
  0x27   : > { %877 = vmatpush3.bf16.msra.mxu0 %v967_v11  ;;  %v984_v28 = vld [vmem:[%s1112_s13 + $0xb0] sm:$0xff]   ;;  %v988_v32 = vld [vmem:[%s1112_s13 + $0xb8] sm:$0xff]   ;;  %625 = vmatprep.mubr.bf16.mxu0 %v833_v36  ;;  %v869_v53 = vld [vmem:[%s1180_s2] ss:$0 sm:$0xff] (!%p868_p9) }
  0x28   : > { %899 = vmatpush3.bf16.msra.mxu1 %v968_v12  ;;  %878 = vmatprep.subr.bf16.mxu0 %v969_v13  ;;  %v688_v54 = vld [vmem:[%s306_s28] sm:$0xff] (!%p868_p9) }
  0x29   : > { %900 = vmatprep.subr.bf16.mxu1 %v970_v14  ;;  %665 = vmatprep.mubr.bf16.mxu1 %v835_v38 }
  0x2b   : > { %879 = vmatpush3.bf16.msra.mxu0 %v971_v15 }
  0x2c   : > { %901 = vmatpush3.bf16.msra.mxu1 %v972_v16  ;;  %880 = vmatprep.subr.bf16.mxu0 %v973_v17 }
  0x2d   : > { %902 = vmatprep.subr.bf16.mxu1 %v974_v18 }
  0x2f   : > { %881 = vmatpush3.bf16.msra.mxu0 %v975_v19 }
  0x30   : > { %903 = vmatpush3.bf16.msra.mxu1 %v976_v20  ;;  %882 = vmatprep.subr.bf16.mxu0 %v977_v21 }
  0x31   : > { %904 = vmatprep.subr.bf16.mxu1 %v978_v22 }
  0x33   : > { %883 = vmatpush3.bf16.msra.mxu0 %v979_v23 }
  0x34   : > { %905 = vmatpush3.bf16.msra.mxu1 %v980_v24  ;;  %884 = vmatprep.subr.bf16.mxu0 %v981_v25 }
  0x35   : > { %906 = vmatprep.subr.bf16.mxu1 %v982_v26 }
  0x37   : > { %885 = vmatpush3.bf16.msra.mxu0 %v983_v27 }
  0x38   : > { %907 = vmatpush3.bf16.msra.mxu1 %v984_v28  ;;  %886 = vmatprep.subr.bf16.mxu0 %v985_v29 }
  0x39   : > { %908 = vmatprep.subr.bf16.mxu1 %v986_v30 }
  0x3b   : > { %887 = vmatpush3.bf16.msra.mxu0 %v987_v31 }
  0x3c   : > { %909 = vmatpush3.bf16.msra.mxu1 %v988_v32 }
  0x3e   : > { %626 = vmatmul.mubr.bf16.vlgmr.msra.gmra.mrb[0].mxu0 %v832_v35 }
  0x3f   : > { %666 = vmatmul.mubr.bf16.vlgmr.msra.gmra.mrb[0].mxu1 %v834_v37 }
 0x111   : > { %v888_v39 = vpop.f32.mrb[0].mxu0 }
 0x112   : > { %v910_v40 = vpop.f32.mrb[0].mxu1  ;;  %v889_v41 = vpop.f32.mrb[1].mxu0 }
 0x113   : > { %v911_v42 = vpop.f32.mrb[1].mxu1  ;;  %v890_v43 = vadd.f32 %v889_v41, %v888_v39  ;;  %v891_v45 = vpop.f32.mrb[2].mxu0 }
 0x114   : > { %v912_v44 = vadd.f32 %v911_v42, %v910_v40  ;;  %v913_v46 = vpop.f32.mrb[2].mxu1  ;;  %v892_v48 = vpop.f32.mrb[3].mxu0  ;;  %678 = sbr.rel (%p868_p9) target bundleno = 297 (0x129), region = 44 }
 0x115   : > { %v914_v49 = vpop.f32.mrb[3].mxu1 }
 0x116   : > { %v668_v50 = vadd.f32 %v912_v44, %v890_v43 }
 0x118   : > { %v673_v51 = vadd.f32 %v668_v50, %v320_v47 }
 0x11a   : > { %674 = vst [vmem:[#allocation2] sm:$0xff] %v673_v51 }
 0x121   : > { %v679_v52 = vld [vmem:[#allocation2] sm:$0xff] }
 0x122   : > { %v687_v55 = vadd.f32 %v869_v53, %v679_v52 }
 0x124   : > { %v689_v56 = vadd.f32 %v688_v54, %v687_v55 }
 0x126   : > { %v690_v57 = vmax.f32 %v689_v56, 0.0 }
 0x128   : > { %691 = vst [vmem:[%s313_s6] sm:$0xff] %v690_v57 }
 0x129 PF: > { %s14_s19 = sadd.s32 1, %s1031_s19   ;;  %s1183_s15 = smov %s1023_s17 }
 0x12a   : > { %p11_p10 = scmp.ge.s32.totalorder %s14_s19, 6   ;;  %s1184_s16 = smov %s1027_s18 }
 0x12b   : > { %s1185_s17 = smov %s1188_s20  ;;  %s1186_s18 = smov %s1192_s21 }
 0x12c   :  { %13 = sbr.rel (!%p11_p10) target bundleno = 3 (0x3), region = 83 }

// kernel: _lambda_.61
= control target key start
LH: loop header
LB: loop body
LE: loop exit
PB: predicated region body
PF: predicated region fallthrough
CT: control target
= control target key end

     0   :  { %s644_s12 = smov 0   ;;  %s646_s13 = smov 0   ;;  %s735_s0 = inlined_call_operand.vmem [shape: bf16[16,256], index: 0, kind: input, shape index: {}]   ;;  %s736_s1 = inlined_call_operand.vmem [shape: bf16[256,128], index: 1, kind: input, shape index: {}]   ;;  %s737_s2 = inlined_call_operand.vmem [shape: f32[1,128], index: 2, kind: input, shape index: {}]   ;;  %s738_s3 = inlined_call_operand.vmem [shape: f32[16,128], index: 3, kind: output, shape index: {}]  }
   0x1   :  { %s648_s14 = smov 0  }
   0x2 LB: > { %s25_s15 = sadd.s32 1, %s618_s13  ;;  %p510_p0 = scmp.ge.s32.totalorder %s622_s14, 1  ;;  %s622_s14 = sphi %s648_s14, %s13_s14   ;;  %s618_s13 = sphi %s646_s13, %s740_s13   ;;  %s614_s12 = sphi %s644_s12, %s739_s12  }
   0x3   : > { %p27_p1 = scmp.ge.s32.totalorder %s25_s15, 2  ;;  %p168_p2 = scmp.lt.s32.totalorder %s622_s14, 3 }
   0x5   : > { %s742_s15 = smov (%p27_p1, %s25_s15), 0  ;;  %p169_p3 = pnand %p510_p0, %p168_p2 }
   0x6   : > { %v582_v0 = vld [vmem:[%s736_s1 + $0x40] sm:$0xff] (!%p169_p3)   ;;  %v584_v2 = vld [vmem:[%s736_s1 + $0x48] sm:$0xff] (!%p169_p3)   ;;  %p201_p4 = scmp.lt.s32.totalorder (!%p169_p3), %s614_s12, 1  ;;  %v586_v4 = vld [vmem:[%s736_s1 + $0x50] sm:$0xff] (!%p169_p3)  }
   0x7   : > { %172 = sbr.rel (%p169_p3) target bundleno = 257 (0x101), region = 32  ;;  %v583_v1 = vld [vmem:[%s736_s1] sm:$0xff] (!%p169_p3)   ;;  %536 = vmatprep.subr.bf16.mxu0 (!%p169_p3), %v582_v0  ;;  %v585_v3 = vld [vmem:[%s736_s1 + $0x8] sm:$0xff] (!%p169_p3)   ;;  %v587_v5 = vld [vmem:[%s736_s1 + $0x10] sm:$0xff] (!%p169_p3)  }
   0x8   : > { %537 = vmatpush3.bf16.msra.mxu0 (!%p169_p3), %v583_v1  ;;  %v588_v6 = vld [vmem:[%s736_s1 + $0x58] sm:$0xff] (!%p169_p3)   ;;  %v590_v8 = vld [vmem:[%s736_s1 + $0x60] sm:$0xff] (!%p169_p3)   ;;  %v592_v10 = vld [vmem:[%s736_s1 + $0x68] sm:$0xff] (!%p169_p3)  }
   0x9   : > { %538 = vmatprep.subr.bf16.mxu0 (!%p169_p3), %v584_v2  ;;  %v589_v7 = vld [vmem:[%s736_s1 + $0x18] sm:$0xff] (!%p169_p3)   ;;  %v591_v9 = vld [vmem:[%s736_s1 + $0x20] sm:$0xff] (!%p169_p3)   ;;  %v593_v13 = vld [vmem:[%s736_s1 + $0x28] sm:$0xff] (!%p169_p3)  }
   0xa   : > { %v594_v14 = vld [vmem:[%s736_s1 + $0x70] sm:$0xff] (!%p169_p3)   ;;  %v596_v16 = vld [vmem:[%s736_s1 + $0x78] sm:$0xff] (!%p169_p3)   ;;  %v514_v20 = vld [vmem:[%s737_s2] ss:$0 sm:$0xff] (!%p169_p3) }
   0xb   : > { %v595_v15 = vld [vmem:[%s736_s1 + $0x30] sm:$0xff] (!%p169_p3)   ;;  %v597_v17 = vld [vmem:[%s736_s1 + $0x38] sm:$0xff] (!%p169_p3)  }
   0xc   : > { %539 = vmatpush3.bf16.msra.mxu0 (!%p169_p3), %v585_v3 }
   0xd   : > { %540 = vmatprep.subr.bf16.mxu0 (!%p169_p3), %v586_v4 }
   0xe   : > { %s744_s12 = smov (!%p201_p4, %s614_s12), 1 }
   0xf   : > { %s535_s30 = sshll.u32 %s744_s12, 3 }
  0x10   : > { %541 = vmatpush3.bf16.msra.mxu0 %v587_v5  ;;  %s205_s10 = scalar_lea.vmem %s735_s0, %s535_s30  ;;  %s219_s7 = scalar_lea.vmem %s738_s3, %s535_s30 }
  0x11   : > { %542 = vmatprep.subr.bf16.mxu0 %v588_v6  ;;  %v221_v11 = vld [vmem:[%s205_s10] sm:$0xff] }
  0x12   : > { %v516_v12 = vcombine.high %v221_v11, %v221_v11  ;;  %v515_v18 = vcombine.low %v221_v11, %v221_v11 }
  0x14   : > { %543 = vmatpush3.bf16.msra.mxu0 %v589_v7  ;;  %396 = vmatprep.mubr.bf16.mxu0 %v516_v12 }
  0x15   : > { %544 = vmatprep.subr.bf16.mxu0 %v590_v8 }
  0x18   : > { %545 = vmatpush3.bf16.msra.mxu0 %v591_v9 }
  0x19   : > { %546 = vmatprep.subr.bf16.mxu0 %v592_v10 }
  0x1c   : > { %547 = vmatpush3.bf16.msra.mxu0 %v593_v13 }
  0x1d   : > { %548 = vmatprep.subr.bf16.mxu0 %v594_v14 }
  0x20   : > { %549 = vmatpush3.bf16.msra.mxu0 %v595_v15 }
  0x21   : > { %550 = vmatprep.subr.bf16.mxu0 %v596_v16 }
  0x24   : > { %551 = vmatpush3.bf16.msra.mxu0 %v597_v17 }
  0x27   : > { %397 = vmatmul.mubr.bf16.vlgmr.msra.gmra.mrb[0].mxu0 %v515_v18 }
  0xfa   : > { %v552_v19 = vpop.f32.mrb[0].mxu0 }
  0xfb   : > { %v553_v21 = vpop.f32.mrb[1].mxu0 }
  0xfc   : > { %v554_v22 = vadd.f32 %v553_v21, %v552_v19  ;;  %v555_v23 = vpop.f32.mrb[2].mxu0 }
  0xfd   : > { %v556_v24 = vpop.f32.mrb[3].mxu0 }
  0xfe   : > { %v399_v25 = vadd.f32 %v554_v22, %v514_v20 }
 0x100   : > { %404 = vst [vmem:[%s219_s7] sm:$0xff] %v399_v25 }
 0x101 PF: > { %s13_s14 = sadd.s32 1, %s622_s14   ;;  %s739_s12 = smov %s618_s13 }
 0x102   : > { %p10_p5 = scmp.ge.s32.totalorder %s13_s14, 4   ;;  %s740_s13 = smov %s742_s15 }
 0x104   :  { %12 = sbr.rel (!%p10_p5) target bundleno = 2 (0x2), region = 68 }

// kernel: _lambda_.63
= control target key start
LH: loop header
LB: loop body
LE: loop exit
PB: predicated region body
PF: predicated region fallthrough
CT: control target
= control target key end

     0   :  { %s670_s12 = smov 0   ;;  %s672_s13 = smov 0   ;;  %s740_s0 = inlined_call_operand.vmem [shape: bf16[128,128], index: 0, kind: input, shape index: {}]   ;;  %s741_s1 = inlined_call_operand.vmem [shape: bf16[128,128], index: 1, kind: input, shape index: {}]   ;;  %s742_s2 = inlined_call_operand.vmem [shape: f32[1,128], index: 2, kind: input, shape index: {}]   ;;  %s743_s3 = inlined_call_operand.vmem [shape: f32[128,128], index: 3, kind: output, shape index: {}]  }
   0x1   :  { %s674_s14 = smov 0  }
   0x2 LB: > { %s25_s15 = sadd.s32 1, %s644_s13  ;;  %p518_p0 = scmp.ge.s32.totalorder %s648_s14, 1  ;;  %s648_s14 = sphi %s674_s14, %s13_s14   ;;  %s644_s13 = sphi %s672_s13, %s745_s13   ;;  %s640_s12 = sphi %s670_s12, %s744_s12  }
   0x3   : > { %p27_p1 = scmp.ge.s32.totalorder %s25_s15, 2  ;;  %p169_p2 = scmp.lt.s32.totalorder %s648_s14, 3 }
   0x5   : > { %s747_s15 = smov (%p27_p1, %s25_s15), 0  ;;  %p170_p3 = pnand %p518_p0, %p169_p2 }
   0x6   : > { %v614_v0 = vld [vmem:[%s741_s1] sm:$0xff] (!%p170_p3)   ;;  %s519_s18 = sshll.u32 (!%p170_p3), %s640_s12, 3  ;;  %v615_v1 = vld [vmem:[%s741_s1 + $0x8] sm:$0xff] (!%p170_p3)   ;;  %v616_v2 = vld [vmem:[%s741_s1 + $0x10] sm:$0xff] (!%p170_p3)  }
   0x7   : > { %173 = sbr.rel (%p170_p3) target bundleno = 259 (0x103), region = 32  ;;  %p204_p4 = scmp.lt.s32.totalorder (!%p170_p3), %s519_s18, 15  ;;  %550 = vmatprep.subr.bf16.mxu0 (!%p170_p3), %v614_v0  ;;  %574 = vmatprep.subr.bf16.mxu1 (!%p170_p3), %v614_v0  ;;  %v617_v3 = vld [vmem:[%s741_s1 + $0x18] sm:$0xff] (!%p170_p3)   ;;  %v618_v6 = vld [vmem:[%s741_s1 + $0x20] sm:$0xff] (!%p170_p3)   ;;  %v619_v7 = vld [vmem:[%s741_s1 + $0x28] sm:$0xff] (!%p170_p3)  }
   0x8   : > { %551 = vmatpush3.bf16.msra.mxu0 (!%p170_p3), %v614_v0  ;;  %582 = vmatpush3.bf16.msra.mxu1 (!%p170_p3), %v614_v0  ;;  %v620_v8 = vld [vmem:[%s741_s1 + $0x30] sm:$0xff] (!%p170_p3)   ;;  %v621_v9 = vld [vmem:[%s741_s1 + $0x38] sm:$0xff] (!%p170_p3)   ;;  %v523_v12 = vld [vmem:[%s742_s2] ss:$0 sm:$0xff] (!%p170_p3) }
   0x9   : > { %552 = vmatprep.subr.bf16.mxu0 (!%p170_p3), %v615_v1  ;;  %575 = vmatprep.subr.bf16.mxu1 (!%p170_p3), %v615_v1 }
   0xc   : > { %553 = vmatpush3.bf16.msra.mxu0 (!%p170_p3), %v615_v1  ;;  %583 = vmatpush3.bf16.msra.mxu1 (!%p170_p3), %v615_v1 }
   0xd   : > { %554 = vmatprep.subr.bf16.mxu0 (!%p170_p3), %v616_v2  ;;  %576 = vmatprep.subr.bf16.mxu1 (!%p170_p3), %v616_v2 }
   0xe   : > { %s749_s18 = smov (!%p204_p4, %s519_s18), 15 }
   0xf   : > { %s520_s23 = sshll.u32 %s749_s18, 2  ;;  %s522_s12 = sshll.u32 %s749_s18, 3 }
  0x10   : > { %s703_s26 = scalar_lea.vmem %s740_s0, %s520_s23  ;;  %555 = vmatpush3.bf16.msra.mxu0 %v616_v2  ;;  %584 = vmatpush3.bf16.msra.mxu1 %v616_v2  ;;  %s223_s19 = scalar_lea.vmem %s743_s3, %s522_s12 }
  0x11   : > { %v622_v4 = vld [vmem:[%s703_s26] sm:$0xff]   ;;  %v623_v5 = vld [vmem:[%s703_s26 + $0x10] sm:$0xff]   ;;  %556 = vmatprep.subr.bf16.mxu0 %v617_v3  ;;  %577 = vmatprep.subr.bf16.mxu1 %v617_v3  ;;  %v624_v10 = vld [vmem:[%s703_s26 + $0x8] sm:$0xff]  }
  0x12   : > { %566 = vmatprep.mubr.bf16.mxu0 %v622_v4  ;;  %570 = vmatprep.mubr.bf16.mxu1 %v623_v5  ;;  %v625_v11 = vld [vmem:[%s703_s26 + $0x18] sm:$0xff]  }
  0x14   : > { %557 = vmatpush3.bf16.msra.mxu0 %v617_v3  ;;  %585 = vmatpush3.bf16.msra.mxu1 %v617_v3 }
  0x15   : > { %558 = vmatprep.subr.bf16.mxu0 %v618_v6  ;;  %578 = vmatprep.subr.bf16.mxu1 %v618_v6 }
  0x18   : > { %559 = vmatpush3.bf16.msra.mxu0 %v618_v6  ;;  %586 = vmatpush3.bf16.msra.mxu1 %v618_v6 }
  0x19   : > { %560 = vmatprep.subr.bf16.mxu0 %v619_v7  ;;  %579 = vmatprep.subr.bf16.mxu1 %v619_v7 }
  0x1c   : > { %561 = vmatpush3.bf16.msra.mxu0 %v619_v7  ;;  %587 = vmatpush3.bf16.msra.mxu1 %v619_v7 }
  0x1d   : > { %562 = vmatprep.subr.bf16.mxu0 %v620_v8  ;;  %580 = vmatprep.subr.bf16.mxu1 %v620_v8 }
  0x20   : > { %563 = vmatpush3.bf16.msra.mxu0 %v620_v8  ;;  %588 = vmatpush3.bf16.msra.mxu1 %v620_v8 }
  0x21   : > { %564 = vmatprep.subr.bf16.mxu0 %v621_v9  ;;  %581 = vmatprep.subr.bf16.mxu1 %v621_v9 }
  0x24   : > { %565 = vmatpush3.bf16.msra.mxu0 %v621_v9  ;;  %589 = vmatpush3.bf16.msra.mxu1 %v621_v9 }
  0x27   : > { %567 = vmatmul.mubr.bf16.vlgmr.msra.gmra.mrb[0].mxu0 %v624_v10  ;;  %571 = vmatmul.mubr.bf16.vlgmr.msra.gmra.mrb[0].mxu1 %v625_v11 }
  0xfa   : > { %v568_v13 = vpop.f32.mrb[0].mxu0  ;;  %v572_v14 = vpop.f32.mrb[0].mxu1 }
  0xfb   : > { %v372_v15 = vadd.f32 %v568_v13, %v523_v12  ;;  %v388_v16 = vadd.f32 %v572_v14, %v523_v12  ;;  %v363_v17 = vpop.f32.mrb[1].mxu0  ;;  %v379_v18 = vpop.f32.mrb[1].mxu1 }
  0xfc   : > { %v364_v19 = vadd.f32 %v523_v12, %v363_v17  ;;  %v380_v20 = vadd.f32 %v523_v12, %v379_v18  ;;  %v569_v21 = vpop.f32.mrb[2].mxu0  ;;  %v573_v22 = vpop.f32.mrb[2].mxu1 }
  0xfd   : > { %v396_v23 = vmax.f32 %v372_v15, 0.0  ;;  %v400_v24 = vmax.f32 %v388_v16, 0.0  ;;  %v375_v25 = vadd.f32 %v569_v21, %v523_v12  ;;  %v391_v26 = vadd.f32 %v573_v22, %v523_v12  ;;  %v366_v27 = vpop.f32.mrb[3].mxu0  ;;  %v382_v28 = vpop.f32.mrb[3].mxu1 }
  0xfe   : > { %v394_v29 = vmax.f32 %v364_v19, 0.0  ;;  %v398_v30 = vmax.f32 %v380_v20, 0.0  ;;  %v367_v31 = vadd.f32 %v523_v12, %v366_v27  ;;  %v383_v32 = vadd.f32 %v523_v12, %v382_v28 }
  0xff   : > { %404 = vst [vmem:[%s223_s19 + $0x10] sm:$0xff] %v396_v23  ;;  %408 = vst [vmem:[%s223_s19 + $0x30] sm:$0xff] %v400_v24  ;;  %v397_v33 = vmax.f32 %v375_v25, 0.0  ;;  %v401_v34 = vmax.f32 %v391_v26, 0.0 }
 0x100   : > { %402 = vst [vmem:[%s223_s19] sm:$0xff] %v394_v29  ;;  %406 = vst [vmem:[%s223_s19 + $0x20] sm:$0xff] %v398_v30  ;;  %v395_v35 = vmax.f32 %v367_v31, 0.0  ;;  %v399_v36 = vmax.f32 %v383_v32, 0.0 }
 0x101   : > { %405 = vst [vmem:[%s223_s19 + $0x18] sm:$0xff] %v397_v33  ;;  %409 = vst [vmem:[%s223_s19 + $0x38] sm:$0xff] %v401_v34 }
 0x102   : > { %403 = vst [vmem:[%s223_s19 + $0x8] sm:$0xff] %v395_v35  ;;  %407 = vst [vmem:[%s223_s19 + $0x28] sm:$0xff] %v399_v36 }
 0x103 PF: > { %s13_s14 = sadd.s32 1, %s648_s14   ;;  %s744_s12 = smov %s644_s13 }
 0x104   : > { %p10_p5 = scmp.ge.s32.totalorder %s13_s14, 4   ;;  %s745_s13 = smov %s747_s15 }
 0x106   :  { %12 = sbr.rel (!%p10_p5) target bundleno = 2 (0x2), region = 68 }

// kernel: _lambda_.62
= control target key start
LH: loop header
LB: loop body
LE: loop exit
PB: predicated region body
PF: predicated region fallthrough
CT: control target
= control target key end

     0   :  { %s662_s12 = smov 0   ;;  %s664_s13 = smov 0   ;;  %s732_s0 = inlined_call_operand.vmem [shape: bf16[128,128], index: 0, kind: input, shape index: {}]   ;;  %s733_s1 = inlined_call_operand.vmem [shape: bf16[128,128], index: 1, kind: input, shape index: {}]   ;;  %s734_s2 = inlined_call_operand.vmem [shape: f32[1,128], index: 2, kind: input, shape index: {}]   ;;  %s735_s3 = inlined_call_operand.vmem [shape: f32[128,128], index: 3, kind: output, shape index: {}]  }
   0x1   :  { %s666_s14 = smov 0  }
   0x2 LB: > { %s25_s15 = sadd.s32 1, %s636_s13  ;;  %p510_p0 = scmp.ge.s32.totalorder %s640_s14, 1  ;;  %s640_s14 = sphi %s666_s14, %s13_s14   ;;  %s636_s13 = sphi %s664_s13, %s737_s13   ;;  %s632_s12 = sphi %s662_s12, %s736_s12  }
   0x3   : > { %p27_p1 = scmp.ge.s32.totalorder %s25_s15, 2  ;;  %p169_p2 = scmp.lt.s32.totalorder %s640_s14, 3 }
   0x5   : > { %s739_s15 = smov (%p27_p1, %s25_s15), 0  ;;  %p170_p3 = pnand %p510_p0, %p169_p2 }
   0x6   : > { %v606_v0 = vld [vmem:[%s733_s1] sm:$0xff] (!%p170_p3)   ;;  %s511_s18 = sshll.u32 (!%p170_p3), %s632_s12, 3  ;;  %v607_v1 = vld [vmem:[%s733_s1 + $0x8] sm:$0xff] (!%p170_p3)   ;;  %v608_v2 = vld [vmem:[%s733_s1 + $0x10] sm:$0xff] (!%p170_p3)  }
   0x7   : > { %173 = sbr.rel (%p170_p3) target bundleno = 257 (0x101), region = 32  ;;  %p204_p4 = scmp.lt.s32.totalorder (!%p170_p3), %s511_s18, 15  ;;  %542 = vmatprep.subr.bf16.mxu0 (!%p170_p3), %v606_v0  ;;  %566 = vmatprep.subr.bf16.mxu1 (!%p170_p3), %v606_v0  ;;  %v609_v3 = vld [vmem:[%s733_s1 + $0x18] sm:$0xff] (!%p170_p3)   ;;  %v610_v6 = vld [vmem:[%s733_s1 + $0x20] sm:$0xff] (!%p170_p3)   ;;  %v611_v7 = vld [vmem:[%s733_s1 + $0x28] sm:$0xff] (!%p170_p3)  }
   0x8   : > { %543 = vmatpush3.bf16.msra.mxu0 (!%p170_p3), %v606_v0  ;;  %574 = vmatpush3.bf16.msra.mxu1 (!%p170_p3), %v606_v0  ;;  %v612_v8 = vld [vmem:[%s733_s1 + $0x30] sm:$0xff] (!%p170_p3)   ;;  %v613_v9 = vld [vmem:[%s733_s1 + $0x38] sm:$0xff] (!%p170_p3)   ;;  %v515_v12 = vld [vmem:[%s734_s2] ss:$0 sm:$0xff] (!%p170_p3) }
   0x9   : > { %544 = vmatprep.subr.bf16.mxu0 (!%p170_p3), %v607_v1  ;;  %567 = vmatprep.subr.bf16.mxu1 (!%p170_p3), %v607_v1 }
   0xc   : > { %545 = vmatpush3.bf16.msra.mxu0 (!%p170_p3), %v607_v1  ;;  %575 = vmatpush3.bf16.msra.mxu1 (!%p170_p3), %v607_v1 }
   0xd   : > { %546 = vmatprep.subr.bf16.mxu0 (!%p170_p3), %v608_v2  ;;  %568 = vmatprep.subr.bf16.mxu1 (!%p170_p3), %v608_v2 }
   0xe   : > { %s741_s18 = smov (!%p204_p4, %s511_s18), 15 }
   0xf   : > { %s512_s23 = sshll.u32 %s741_s18, 2  ;;  %s514_s10 = sshll.u32 %s741_s18, 3 }
  0x10   : > { %s695_s26 = scalar_lea.vmem %s732_s0, %s512_s23  ;;  %547 = vmatpush3.bf16.msra.mxu0 %v608_v2  ;;  %576 = vmatpush3.bf16.msra.mxu1 %v608_v2  ;;  %s223_s19 = scalar_lea.vmem %s735_s3, %s514_s10 }
  0x11   : > { %v614_v4 = vld [vmem:[%s695_s26] sm:$0xff]   ;;  %v615_v5 = vld [vmem:[%s695_s26 + $0x10] sm:$0xff]   ;;  %548 = vmatprep.subr.bf16.mxu0 %v609_v3  ;;  %569 = vmatprep.subr.bf16.mxu1 %v609_v3  ;;  %v616_v10 = vld [vmem:[%s695_s26 + $0x8] sm:$0xff]  }
  0x12   : > { %558 = vmatprep.mubr.bf16.mxu0 %v614_v4  ;;  %562 = vmatprep.mubr.bf16.mxu1 %v615_v5  ;;  %v617_v11 = vld [vmem:[%s695_s26 + $0x18] sm:$0xff]  }
  0x14   : > { %549 = vmatpush3.bf16.msra.mxu0 %v609_v3  ;;  %577 = vmatpush3.bf16.msra.mxu1 %v609_v3 }
  0x15   : > { %550 = vmatprep.subr.bf16.mxu0 %v610_v6  ;;  %570 = vmatprep.subr.bf16.mxu1 %v610_v6 }
  0x18   : > { %551 = vmatpush3.bf16.msra.mxu0 %v610_v6  ;;  %578 = vmatpush3.bf16.msra.mxu1 %v610_v6 }
  0x19   : > { %552 = vmatprep.subr.bf16.mxu0 %v611_v7  ;;  %571 = vmatprep.subr.bf16.mxu1 %v611_v7 }
  0x1c   : > { %553 = vmatpush3.bf16.msra.mxu0 %v611_v7  ;;  %579 = vmatpush3.bf16.msra.mxu1 %v611_v7 }
  0x1d   : > { %554 = vmatprep.subr.bf16.mxu0 %v612_v8  ;;  %572 = vmatprep.subr.bf16.mxu1 %v612_v8 }
  0x20   : > { %555 = vmatpush3.bf16.msra.mxu0 %v612_v8  ;;  %580 = vmatpush3.bf16.msra.mxu1 %v612_v8 }
  0x21   : > { %556 = vmatprep.subr.bf16.mxu0 %v613_v9  ;;  %573 = vmatprep.subr.bf16.mxu1 %v613_v9 }
  0x24   : > { %557 = vmatpush3.bf16.msra.mxu0 %v613_v9  ;;  %581 = vmatpush3.bf16.msra.mxu1 %v613_v9 }
  0x27   : > { %559 = vmatmul.mubr.bf16.vlgmr.msra.gmra.mrb[0].mxu0 %v616_v10  ;;  %563 = vmatmul.mubr.bf16.vlgmr.msra.gmra.mrb[0].mxu1 %v617_v11 }
  0xfa   : > { %v560_v13 = vpop.f32.mrb[0].mxu0  ;;  %v564_v14 = vpop.f32.mrb[0].mxu1 }
  0xfb   : > { %v372_v15 = vadd.f32 %v560_v13, %v515_v12  ;;  %v388_v16 = vadd.f32 %v564_v14, %v515_v12  ;;  %v363_v17 = vpop.f32.mrb[1].mxu0  ;;  %v379_v18 = vpop.f32.mrb[1].mxu1 }
  0xfc   : > { %v364_v19 = vadd.f32 %v515_v12, %v363_v17  ;;  %v380_v20 = vadd.f32 %v515_v12, %v379_v18  ;;  %v561_v21 = vpop.f32.mrb[2].mxu0  ;;  %v565_v22 = vpop.f32.mrb[2].mxu1 }
  0xfd   : > { %396 = vst [vmem:[%s223_s19 + $0x10] sm:$0xff] %v372_v15  ;;  %400 = vst [vmem:[%s223_s19 + $0x30] sm:$0xff] %v388_v16  ;;  %v375_v23 = vadd.f32 %v561_v21, %v515_v12  ;;  %v391_v24 = vadd.f32 %v565_v22, %v515_v12  ;;  %v366_v25 = vpop.f32.mrb[3].mxu0  ;;  %v382_v26 = vpop.f32.mrb[3].mxu1 }
  0xfe   : > { %394 = vst [vmem:[%s223_s19] sm:$0xff] %v364_v19  ;;  %398 = vst [vmem:[%s223_s19 + $0x20] sm:$0xff] %v380_v20  ;;  %v367_v27 = vadd.f32 %v515_v12, %v366_v25  ;;  %v383_v28 = vadd.f32 %v515_v12, %v382_v26 }
  0xff   : > { %397 = vst [vmem:[%s223_s19 + $0x18] sm:$0xff] %v375_v23  ;;  %401 = vst [vmem:[%s223_s19 + $0x38] sm:$0xff] %v391_v24 }
 0x100   : > { %395 = vst [vmem:[%s223_s19 + $0x8] sm:$0xff] %v367_v27  ;;  %399 = vst [vmem:[%s223_s19 + $0x28] sm:$0xff] %v383_v28 }
 0x101 PF: > { %s13_s14 = sadd.s32 1, %s640_s14   ;;  %s736_s12 = smov %s636_s13 }
 0x102   : > { %p10_p5 = scmp.ge.s32.totalorder %s13_s14, 4   ;;  %s737_s13 = smov %s739_s15 }
 0x104   :  { %12 = sbr.rel (!%p10_p5) target bundleno = 2 (0x2), region = 68 }

// kernel: _lambda_.65
= control target key start
LH: loop header
LB: loop body
LE: loop exit
PB: predicated region body
PF: predicated region fallthrough
CT: control target
= control target key end

     0   :  { %s885_s15 = smov 0   ;;  %s887_s16 = smov 0   ;;  %s1007_s0 = inlined_call_operand.vmem [shape: bf16[128,256], index: 0, kind: input, shape index: {}]   ;;  %s1008_s1 = inlined_call_operand.vmem [shape: bf16[256,128], index: 1, kind: input, shape index: {}]   ;;  %s1009_s2 = inlined_call_operand.vmem [shape: f32[1,128], index: 2, kind: input, shape index: {}]   ;;  %s1010_s3 = inlined_call_operand.vmem [shape: f32[128,128], index: 3, kind: input, shape index: {}]   ;;  %s1011_s4 = inlined_call_operand.vmem [shape: f32[128,128], index: 4, kind: output, shape index: {}]  }
   0x1   :  { %s889_s17 = smov 0  }
   0x2 LB: > { %s26_s18 = sadd.s32 1, %s854_s16  ;;  %p692_p0 = scmp.ge.s32.totalorder %s858_s17, 1  ;;  %s858_s17 = sphi %s889_s17, %s14_s17   ;;  %s854_s16 = sphi %s887_s16, %s1013_s16   ;;  %s850_s15 = sphi %s885_s15, %s1012_s15  }
   0x3   : > { %p28_p1 = scmp.ge.s32.totalorder %s26_s18, 2  ;;  %p211_p2 = scmp.lt.s32.totalorder %s858_s17, 3 }
   0x5   : > { %s1015_s18 = smov (%p28_p1, %s26_s18), 0  ;;  %p212_p3 = pnand %p692_p0, %p211_p2 }
   0x6   : > { %v808_v0 = vld [vmem:[%s1008_s1 + $0x40] sm:$0xff] (!%p212_p3)   ;;  %s693_s21 = sshll.u32 (!%p212_p3), %s850_s15, 3  ;;  %v810_v2 = vld [vmem:[%s1008_s1 + $0x48] sm:$0xff] (!%p212_p3)   ;;  %v812_v4 = vld [vmem:[%s1008_s1 + $0x50] sm:$0xff] (!%p212_p3)  }
   0x7   : > { %215 = sbr.rel (%p212_p3) target bundleno = 272 (0x110), region = 36  ;;  %v809_v1 = vld [vmem:[%s1008_s1] sm:$0xff] (!%p212_p3)   ;;  %728 = vmatprep.subr.bf16.mxu0 (!%p212_p3), %v808_v0  ;;  %768 = vmatprep.subr.bf16.mxu1 (!%p212_p3), %v808_v0  ;;  %v811_v3 = vld [vmem:[%s1008_s1 + $0x8] sm:$0xff] (!%p212_p3)   ;;  %p257_p4 = scmp.lt.s32.totalorder (!%p212_p3), %s693_s21, 15  ;;  %v813_v5 = vld [vmem:[%s1008_s1 + $0x10] sm:$0xff] (!%p212_p3)  }
   0x8   : > { %729 = vmatpush3.bf16.msra.mxu0 (!%p212_p3), %v809_v1  ;;  %776 = vmatpush3.bf16.msra.mxu1 (!%p212_p3), %v809_v1  ;;  %v814_v6 = vld [vmem:[%s1008_s1 + $0x58] sm:$0xff] (!%p212_p3)   ;;  %v816_v8 = vld [vmem:[%s1008_s1 + $0x60] sm:$0xff] (!%p212_p3)   ;;  %v818_v10 = vld [vmem:[%s1008_s1 + $0x68] sm:$0xff] (!%p212_p3)  }
   0x9   : > { %730 = vmatprep.subr.bf16.mxu0 (!%p212_p3), %v810_v2  ;;  %769 = vmatprep.subr.bf16.mxu1 (!%p212_p3), %v810_v2  ;;  %v815_v7 = vld [vmem:[%s1008_s1 + $0x18] sm:$0xff] (!%p212_p3)   ;;  %v817_v9 = vld [vmem:[%s1008_s1 + $0x20] sm:$0xff] (!%p212_p3)   ;;  %v819_v13 = vld [vmem:[%s1008_s1 + $0x28] sm:$0xff] (!%p212_p3)  }
   0xa   : > { %v820_v14 = vld [vmem:[%s1008_s1 + $0x70] sm:$0xff] (!%p212_p3)   ;;  %v822_v16 = vld [vmem:[%s1008_s1 + $0x78] sm:$0xff] (!%p212_p3)   ;;  %v700_v26 = vld [vmem:[%s1009_s2] ss:$0 sm:$0xff] (!%p212_p3) }
   0xb   : > { %v821_v15 = vld [vmem:[%s1008_s1 + $0x30] sm:$0xff] (!%p212_p3)   ;;  %v823_v17 = vld [vmem:[%s1008_s1 + $0x38] sm:$0xff] (!%p212_p3)  }
   0xc   : > { %731 = vmatpush3.bf16.msra.mxu0 (!%p212_p3), %v811_v3  ;;  %777 = vmatpush3.bf16.msra.mxu1 (!%p212_p3), %v811_v3 }
   0xd   : > { %732 = vmatprep.subr.bf16.mxu0 (!%p212_p3), %v812_v4  ;;  %770 = vmatprep.subr.bf16.mxu1 (!%p212_p3), %v812_v4 }
   0xe   : > { %s1017_s21 = smov (!%p257_p4, %s693_s21), 15 }
   0xf   : > { %s927_s10 = sshll.u32 %s1017_s21, 3 }
  0x10   : > { %733 = vmatpush3.bf16.msra.mxu0 %v813_v5  ;;  %778 = vmatpush3.bf16.msra.mxu1 %v813_v5  ;;  %s936_s15 = scalar_lea.vmem %s1007_s0, %s927_s10  ;;  %s971_s9 = scalar_lea.vmem %s1010_s3, %s927_s10 }
  0x11   : > { %734 = vmatprep.subr.bf16.mxu0 %v814_v6  ;;  %771 = vmatprep.subr.bf16.mxu1 %v814_v6  ;;  %v826_v11 = vld [vmem:[%s936_s15 + $0x4] ss:$8 sps:$4 sm:$0xff]   ;;  %v824_v18 = vld [vmem:[%s936_s15] ss:$8 sps:$4 sm:$0xff]   ;;  %v830_v20 = vld [vmem:[%s936_s15 + $0x14] ss:$8 sps:$4 sm:$0xff]  }
  0x12   : > { %v829_v12 = vld [vmem:[%s936_s15 + $0x24] ss:$8 sps:$4 sm:$0xff]   ;;  %504 = vmatprep.mubr.bf16.mxu0 %v826_v11  ;;  %v827_v19 = vld [vmem:[%s936_s15 + $0x20] ss:$8 sps:$4 sm:$0xff]   ;;  %v832_v21 = vld [vmem:[%s936_s15 + $0x34] ss:$8 sps:$4 sm:$0xff]  }
  0x13   : > { %520 = vmatprep.mubr.bf16.mxu1 %v829_v12  ;;  %v834_v22 = vld [vmem:[%s936_s15 + $0x10] ss:$8 sps:$4 sm:$0xff]   ;;  %v537_v33 = vld [vmem:[%s971_s9] sm:$0xff]  ;;  %v538_v41 = vld [vmem:[%s971_s9 + $0x8] sm:$0xff] }
  0x14   : > { %735 = vmatpush3.bf16.msra.mxu0 %v815_v7  ;;  %779 = vmatpush3.bf16.msra.mxu1 %v815_v7  ;;  %v835_v23 = vld [vmem:[%s936_s15 + $0x30] ss:$8 sps:$4 sm:$0xff]   ;;  %v541_v34 = vld [vmem:[%s971_s9 + $0x20] sm:$0xff]  ;;  %v542_v42 = vld [vmem:[%s971_s9 + $0x28] sm:$0xff]  ;;  %s984_s15 = scalar_lea.vmem %s1011_s4, %s927_s10 }
  0x15   : > { %736 = vmatprep.subr.bf16.mxu0 %v816_v8  ;;  %772 = vmatprep.subr.bf16.mxu1 %v816_v8  ;;  %v539_v61 = vld [vmem:[%s971_s9 + $0x10] sm:$0xff]  ;;  %v540_v5 = vld [vmem:[%s971_s9 + $0x18] sm:$0xff] }
  0x16   : > { %v543_v62 = vld [vmem:[%s971_s9 + $0x30] sm:$0xff]  ;;  %v544_v6 = vld [vmem:[%s971_s9 + $0x38] sm:$0xff] }
  0x18   : > { %737 = vmatpush3.bf16.msra.mxu0 %v817_v9  ;;  %780 = vmatpush3.bf16.msra.mxu1 %v817_v9 }
  0x19   : > { %738 = vmatprep.subr.bf16.mxu0 %v818_v10  ;;  %773 = vmatprep.subr.bf16.mxu1 %v818_v10 }
  0x1c   : > { %739 = vmatpush3.bf16.msra.mxu0 %v819_v13  ;;  %781 = vmatpush3.bf16.msra.mxu1 %v819_v13 }
  0x1d   : > { %740 = vmatprep.subr.bf16.mxu0 %v820_v14  ;;  %774 = vmatprep.subr.bf16.mxu1 %v820_v14 }
  0x20   : > { %741 = vmatpush3.bf16.msra.mxu0 %v821_v15  ;;  %782 = vmatpush3.bf16.msra.mxu1 %v821_v15 }
  0x21   : > { %742 = vmatprep.subr.bf16.mxu0 %v822_v16  ;;  %775 = vmatprep.subr.bf16.mxu1 %v822_v16 }
  0x24   : > { %743 = vmatpush3.bf16.msra.mxu0 %v823_v17  ;;  %783 = vmatpush3.bf16.msra.mxu1 %v823_v17 }
  0x27   : > { %505 = vmatmul.mubr.bf16.vlgmr.msra.gmra.mrb[0].mxu0 %v824_v18  ;;  %521 = vmatmul.mubr.bf16.vlgmr.msra.gmra.mrb[0].mxu1 %v827_v19 }
  0x28   : > { %512 = vmatprep.mubr.bf16.mxu0 %v830_v20  ;;  %528 = vmatprep.mubr.bf16.mxu1 %v832_v21 }
  0x2f   : > { %513 = vmatmul.mubr.bf16.gmra.mrb[4].mxu0 %v834_v22  ;;  %529 = vmatmul.mubr.bf16.gmra.mrb[4].mxu1 %v835_v23 }
  0xfa   : > { %v744_v24 = vpop.f32.mrb[0].mxu0  ;;  %v756_v25 = vpop.f32.mrb[0].mxu1 }
  0xfb   : > { %v745_v27 = vpop.f32.mrb[1].mxu0  ;;  %v757_v28 = vpop.f32.mrb[1].mxu1 }
  0xfc   : > { %v746_v29 = vadd.f32 %v745_v27, %v744_v24  ;;  %v758_v30 = vadd.f32 %v757_v28, %v756_v25  ;;  %v747_v31 = vpop.f32.mrb[2].mxu0  ;;  %v759_v32 = vpop.f32.mrb[2].mxu1 }
  0xfd   : > { %v748_v35 = vpop.f32.mrb[3].mxu0  ;;  %v760_v36 = vpop.f32.mrb[3].mxu1 }
  0xfe   : > { %v507_v37 = vadd.f32 %v746_v29, %v700_v26  ;;  %v523_v38 = vadd.f32 %v758_v30, %v700_v26  ;;  %v749_v39 = vadd.f32 %v748_v35, %v747_v31  ;;  %v761_v40 = vadd.f32 %v760_v36, %v759_v32 }
 0x100   : > { %v545_v43 = vadd.f32 %v537_v33, %v507_v37  ;;  %v549_v44 = vadd.f32 %v541_v34, %v523_v38  ;;  %v510_v45 = vadd.f32 %v749_v39, %v700_v26  ;;  %v526_v46 = vadd.f32 %v761_v40, %v700_v26 }
 0x102   : > { %v553_v47 = vmax.f32 %v545_v43, 0.0  ;;  %v557_v48 = vmax.f32 %v549_v44, 0.0  ;;  %v546_v49 = vadd.f32 %v538_v41, %v510_v45  ;;  %v550_v50 = vadd.f32 %v542_v42, %v526_v46  ;;  %v750_v51 = vpop.f32.mrb[4].mxu0  ;;  %v762_v52 = vpop.f32.mrb[4].mxu1 }
 0x103   : > { %v751_v53 = vpop.f32.mrb[5].mxu0  ;;  %v763_v54 = vpop.f32.mrb[5].mxu1 }
 0x104   : > { %561 = vst [vmem:[%s984_s15] sm:$0xff] %v553_v47  ;;  %565 = vst [vmem:[%s984_s15 + $0x20] sm:$0xff] %v557_v48  ;;  %v554_v55 = vmax.f32 %v546_v49, 0.0  ;;  %v558_v56 = vmax.f32 %v550_v50, 0.0  ;;  %v752_v57 = vadd.f32 %v751_v53, %v750_v51  ;;  %v764_v58 = vadd.f32 %v763_v54, %v762_v52  ;;  %v753_v59 = vpop.f32.mrb[6].mxu0  ;;  %v765_v60 = vpop.f32.mrb[6].mxu1 }
 0x105   : > { %v754_v63 = vpop.f32.mrb[7].mxu0  ;;  %v766_v0 = vpop.f32.mrb[7].mxu1 }
 0x106   : > { %562 = vst [vmem:[%s984_s15 + $0x8] sm:$0xff] %v554_v55  ;;  %566 = vst [vmem:[%s984_s15 + $0x28] sm:$0xff] %v558_v56  ;;  %v515_v1 = vadd.f32 %v752_v57, %v700_v26  ;;  %v531_v2 = vadd.f32 %v764_v58, %v700_v26  ;;  %v755_v3 = vadd.f32 %v754_v63, %v753_v59 }
 0x107   : > { %v767_v4 = vadd.f32 %v766_v0, %v765_v60 }
 0x108   : > { %v547_v7 = vadd.f32 %v539_v61, %v515_v1  ;;  %v551_v8 = vadd.f32 %v543_v62, %v531_v2  ;;  %v518_v9 = vadd.f32 %v755_v3, %v700_v26 }
 0x109   : > { %v534_v10 = vadd.f32 %v767_v4, %v700_v26 }
 0x10a   : > { %v555_v11 = vmax.f32 %v547_v7, 0.0  ;;  %v559_v12 = vmax.f32 %v551_v8, 0.0  ;;  %v548_v13 = vadd.f32 %v540_v5, %v518_v9 }
 0x10b   : > { %v552_v14 = vadd.f32 %v544_v6, %v534_v10 }
 0x10c   : > { %563 = vst [vmem:[%s984_s15 + $0x10] sm:$0xff] %v555_v11  ;;  %567 = vst [vmem:[%s984_s15 + $0x30] sm:$0xff] %v559_v12  ;;  %v556_v15 = vmax.f32 %v548_v13, 0.0 }
 0x10d   : > { %v560_v16 = vmax.f32 %v552_v14, 0.0 }
 0x10e   : > { %564 = vst [vmem:[%s984_s15 + $0x18] sm:$0xff] %v556_v15 }
 0x10f   : > { %568 = vst [vmem:[%s984_s15 + $0x38] sm:$0xff] %v560_v16 }
 0x110 PF: > { %s14_s17 = sadd.s32 1, %s858_s17   ;;  %s1012_s15 = smov %s854_s16 }
 0x111   : > { %p11_p5 = scmp.ge.s32.totalorder %s14_s17, 4   ;;  %s1013_s16 = smov %s1015_s18 }
 0x113   :  { %13 = sbr.rel (!%p11_p5) target bundleno = 2 (0x2), region = 75 }

// kernel: _lambda_.64
= control target key start
LH: loop header
LB: loop body
LE: loop exit
PB: predicated region body
PF: predicated region fallthrough
CT: control target
= control target key end

     0   :  { %s1420_s15 = smov 0   ;;  %s1422_s16 = smov 0   ;;  %s1610_s0 = inlined_call_operand.vmem [shape: bf16[128,1024], index: 0, kind: input, shape index: {}]   ;;  %s1611_s1 = inlined_call_operand.vmem [shape: bf16[1024,128], index: 1, kind: input, shape index: {}]   ;;  %s1612_s2 = inlined_call_operand.vmem [shape: f32[1,128], index: 2, kind: input, shape index: {}]   ;;  %s1613_s3 = inlined_call_operand.vmem [shape: f32[128,128], index: 3, kind: input, shape index: {}]   ;;  %s1614_s4 = inlined_call_operand.vmem [shape: f32[128,128], index: 4, kind: output, shape index: {}]  }
   0x1   :  { %s1424_s17 = smov 0   ;;  %s1426_s18 = smov 0  }
   0x2   :  { %s1428_s19 = smov 0   ;;  %s1430_s20 = smov 0  }
   0x3   :  { %s1432_s21 = smov 0  }
   0x4 LB: > { %s26_s22 = sadd.s32 1, %s1384_s19  ;;  %s33_s23 = sadd.s32 1, %s1388_s20  ;;  %s1392_s21 = sphi %s1432_s21, %s14_s21   ;;  %s1388_s20 = sphi %s1430_s20, %s1620_s20   ;;  %s1384_s19 = sphi %s1428_s19, %s1619_s19   ;;  %s1380_s18 = sphi %s1426_s18, %s1618_s18   ;;  %s1376_s17 = sphi %s1424_s17, %s1617_s17   ;;  %s1372_s16 = sphi %s1422_s16, %s1616_s16   ;;  %s1368_s15 = sphi %s1420_s15, %s1615_s15  }
   0x5   : > { %p27_p0 = scmp.ge.s32.totalorder %s26_s22, 2  ;;  %p49_p1 = scmp.ne.s32.totalorder %s1372_s16, %s1368_s15 }
   0x6   : > { %p50_p2 = scmp.eq.s32.totalorder %s1392_s21, 0  ;;  %s42_s27 = sadd.s32 1, %s1372_s16 }
   0x7   : > { %s1622_s22 = smov (%p27_p0, %s26_s22), 0  ;;  %s1624_s23 = smov (!%p27_p0, %s33_s23), %s1388_s20 }
   0x8   : > { %p51_p3 = por %p50_p2, %p49_p1  ;;  %p35_p4 = scmp.ge.s32.totalorder %s1624_s23, 2 }
   0x9   : > { %s38_s24 = ssub.s32 %s1384_s19, %s1622_s22  ;;  %p1077_p6 = scmp.ge.s32.totalorder %s1392_s21, 4 }
   0xa   : > { %s1626_s23 = smov (%p35_p4, %s1624_s23), 0 }
   0xb   : > { %s37_s25 = ssub.s32 %s1388_s20, %s1626_s23  ;;  %191 = sbr.rel (%p1077_p6) target bundleno = 33 (0x21), region = 20 }
   0xc   : > { %s39_s26 = sor.u32 %s38_s24, %s37_s25 }
   0xd   : > { %p40_p5 = scmp.eq.s32.totalorder %s39_s26, 0 }
   0xf   : > { %s1471_s28 = scalar_select %p40_p5, %s1372_s16, %s42_s27  }
  0x12   : > { %194 = sbr.rel (!%p51_p3) target bundleno = 33 (0x21), region = 24  ;;  %s196_s29 = sand.u32 (%p51_p3), 1, %s1372_s16  }
  0x13   : > { %s1080_s30 = sshll.u32 (%p51_p3), %s1384_s19, 2  ;;  %s1078_s5 = sshll.u32 (%p51_p3), %s196_s29, 7 }
  0x14   : > { %s1144_s6 = sshll.u32 (%p51_p3), %s1388_s20, 6  ;;  %s198_s12 = scalar_lea.vmem (%p51_p3), [#allocation3], %s1078_s5 }
  0x15   : > { %s202_s7 = sadd.s32 (%p51_p3), %s1144_s6, %s1080_s30 }
  0x16   : > { %s1082_s8 = sshll.u32 (%p51_p3), %s202_s7, 2 }
  0x17   : > { %s1480_s11 = scalar_lea.vmem (%p51_p3), %s1610_s0, %s1082_s8 }
  0x18   : > { %v217_v0 = vld [vmem:[%s1480_s11] sm:$0xff] (%p51_p3)  ;;  %v219_v1 = vld [vmem:[%s1480_s11 + $0x8] sm:$0xff] (%p51_p3) }
  0x19   : > { %v221_v2 = vld [vmem:[%s1480_s11 + $0x20] sm:$0xff]  ;;  %218 = vst [vmem:[%s198_s12] sm:$0xff] %v217_v0  ;;  %220 = vst [vmem:[%s198_s12 + $0x8] sm:$0xff] %v219_v1  ;;  %v223_v3 = vld [vmem:[%s1480_s11 + $0x28] sm:$0xff] }
  0x1a   : > { %222 = vst [vmem:[%s198_s12 + $0x10] sm:$0xff] %v221_v2  ;;  %v225_v4 = vld [vmem:[%s1480_s11 + $0x40] sm:$0xff]  ;;  %v227_v5 = vld [vmem:[%s1480_s11 + $0x48] sm:$0xff]  ;;  %224 = vst [vmem:[%s198_s12 + $0x18] sm:$0xff] %v223_v3 }
  0x1b   : > { %226 = vst [vmem:[%s198_s12 + $0x20] sm:$0xff] %v225_v4  ;;  %228 = vst [vmem:[%s198_s12 + $0x28] sm:$0xff] %v227_v5  ;;  %v229_v6 = vld [vmem:[%s1480_s11 + $0x60] sm:$0xff]  ;;  %v231_v7 = vld [vmem:[%s1480_s11 + $0x68] sm:$0xff] }
  0x1c   : > { %v233_v8 = vld [vmem:[%s1480_s11 + $0x80] sm:$0xff]  ;;  %230 = vst [vmem:[%s198_s12 + $0x30] sm:$0xff] %v229_v6  ;;  %232 = vst [vmem:[%s198_s12 + $0x38] sm:$0xff] %v231_v7  ;;  %v235_v9 = vld [vmem:[%s1480_s11 + $0x88] sm:$0xff] }
  0x1d   : > { %234 = vst [vmem:[%s198_s12 + $0x40] sm:$0xff] %v233_v8  ;;  %v237_v10 = vld [vmem:[%s1480_s11 + $0xa0] sm:$0xff]  ;;  %v239_v11 = vld [vmem:[%s1480_s11 + $0xa8] sm:$0xff]  ;;  %236 = vst [vmem:[%s198_s12 + $0x48] sm:$0xff] %v235_v9 }
  0x1e   : > { %238 = vst [vmem:[%s198_s12 + $0x50] sm:$0xff] %v237_v10  ;;  %240 = vst [vmem:[%s198_s12 + $0x58] sm:$0xff] %v239_v11  ;;  %v241_v12 = vld [vmem:[%s1480_s11 + $0xc0] sm:$0xff]  ;;  %v243_v13 = vld [vmem:[%s1480_s11 + $0xc8] sm:$0xff] }
  0x1f   : > { %v245_v14 = vld [vmem:[%s1480_s11 + $0xe0] sm:$0xff]  ;;  %242 = vst [vmem:[%s198_s12 + $0x60] sm:$0xff] %v241_v12  ;;  %244 = vst [vmem:[%s198_s12 + $0x68] sm:$0xff] %v243_v13  ;;  %v247_v15 = vld [vmem:[%s1480_s11 + $0xe8] sm:$0xff] }
  0x20   : > { %246 = vst [vmem:[%s198_s12 + $0x70] sm:$0xff] %v245_v14  ;;  %248 = vst [vmem:[%s198_s12 + $0x78] sm:$0xff] %v247_v15 }
  0x21 PF: > { %p1083_p7 = scmp.ge.s32.totalorder %s1392_s21, 1  ;;  %p277_p8 = scmp.lt.s32.totalorder %s1392_s21, 5 }
  0x23   : > { %p278_p9 = pnand %p1083_p7, %p277_p8 }
  0x24   : > { %s284_s13 = sand.u32 (!%p278_p9), 1, %s1368_s15   ;;  %s1085_s14 = sshll.u32 (!%p278_p9), %s1376_s17, 6 }
  0x25   : > { %281 = sbr.rel (%p278_p9) target bundleno = 349 (0x15d), region = 55  ;;  %s1084_s24 = sshll.u32 (!%p278_p9), %s284_s13, 7 }
  0x26   : > { %p334_p10 = scmp.lt.s32.totalorder (!%p278_p9), %s1085_s14, 127  ;;  %s1087_s25 = sshll.u32 (!%p278_p9), %s1380_s18, 3 }
  0x27   : > { %p346_p11 = scmp.lt.s32.totalorder (!%p278_p9), %s1087_s25, 15  ;;  %s1518_s18 = scalar_lea.vmem (!%p278_p9), [#allocation3], %s1084_s24 }
  0x28   : > { %p1091_p12 = scmp.ne.s32.totalorder (!%p278_p9), %s1376_s17, 0 }
  0x2c   : > { %s1628_s14 = smov (!%p334_p10, %s1085_s14), 127  ;;  %s1630_s25 = smov (!%p346_p11, %s1087_s25), 15 }
  0x2d   : > { %s1086_s26 = sshll.u32 %s1628_s14, 2  ;;  %s1088_s5 = sshll.u32 %s1630_s25, 3  ;;  %v1394_v16 = vmov (!%p1091_p12), 0.0  }
  0x2e   : > { %s1506_s30 = scalar_lea.vmem %s1611_s1, %s1086_s26  ;;  %s1511_s8 = scalar_lea.vmem %s1613_s3, %s1088_s5  ;;  %368 = vst [vmem:[#allocation2] sm:$0xff] (!%p1091_p12), %v1394_v16  ;;  %369 = vst [vmem:[#allocation2 + $0x8] sm:$0xff] (!%p1091_p12), %v1394_v16 }
  0x2f   : > { %s1516_s10 = scalar_lea.vmem %s1614_s4, %s1088_s5  ;;  %367 = sbr.rel (%p1091_p12) target bundleno = 54 (0x36), region = 63  ;;  %370 = vst [vmem:[#allocation2 + $0x10] sm:$0xff] (!%p1091_p12), %v1394_v16  ;;  %371 = vst [vmem:[#allocation2 + $0x18] sm:$0xff] (!%p1091_p12), %v1394_v16 }
  0x30   : > { %372 = vst [vmem:[#allocation2 + $0x20] sm:$0xff] (!%p1091_p12), %v1394_v16  ;;  %373 = vst [vmem:[#allocation2 + $0x28] sm:$0xff] (!%p1091_p12), %v1394_v16 }
  0x31   : > { %374 = vst [vmem:[#allocation2 + $0x30] sm:$0xff] (!%p1091_p12), %v1394_v16  ;;  %375 = vst [vmem:[#allocation2 + $0x38] sm:$0xff] (!%p1091_p12), %v1394_v16 }
  0x36 PF: > { %v1282_v17 = vld [vmem:[%s1506_s30 + $0x40] sm:$0xff]   ;;  %v1286_v21 = vld [vmem:[%s1506_s30 + $0x48] sm:$0xff]   ;;  %v1290_v25 = vld [vmem:[%s1506_s30 + $0x50] sm:$0xff]   ;;  %p1140_p13 = scmp.ne.s32.totalorder %s1376_s17, 1 }
  0x37   : > { %v1283_v18 = vld [vmem:[%s1506_s30 + $0xc0] sm:$0xff]   ;;  %1145 = vmatprep.subr.bf16.mxu0 %v1282_v17  ;;  %v1287_v22 = vld [vmem:[%s1506_s30 + $0xc8] sm:$0xff]   ;;  %v1291_v26 = vld [vmem:[%s1506_s30 + $0xd0] sm:$0xff]  }
  0x38   : > { %v1284_v19 = vld [vmem:[%s1506_s30] sm:$0xff]   ;;  %1185 = vmatprep.subr.bf16.mxu1 %v1283_v18  ;;  %v1288_v23 = vld [vmem:[%s1506_s30 + $0x8] sm:$0xff]   ;;  %v1292_v27 = vld [vmem:[%s1506_s30 + $0x10] sm:$0xff]  }
  0x39   : > { %v1285_v20 = vld [vmem:[%s1506_s30 + $0x80] sm:$0xff]   ;;  %1146 = vmatpush3.bf16.msra.mxu0 %v1284_v19  ;;  %v1289_v24 = vld [vmem:[%s1506_s30 + $0x88] sm:$0xff]   ;;  %v1293_v28 = vld [vmem:[%s1506_s30 + $0x90] sm:$0xff]  }
  0x3a   : > { %1186 = vmatpush3.bf16.msra.mxu1 %v1285_v20  ;;  %1147 = vmatprep.subr.bf16.mxu0 %v1286_v21  ;;  %v1294_v29 = vld [vmem:[%s1506_s30 + $0x58] sm:$0xff]   ;;  %v1298_v33 = vld [vmem:[%s1506_s30 + $0x60] sm:$0xff]   ;;  %v1302_v37 = vld [vmem:[%s1506_s30 + $0x68] sm:$0xff]  }
  0x3b   : > { %1187 = vmatprep.subr.bf16.mxu1 %v1287_v22  ;;  %v1295_v30 = vld [vmem:[%s1506_s30 + $0xd8] sm:$0xff]   ;;  %v1299_v34 = vld [vmem:[%s1506_s30 + $0xe0] sm:$0xff]   ;;  %v1303_v38 = vld [vmem:[%s1506_s30 + $0xe8] sm:$0xff]  }
  0x3c   : > { %v1296_v31 = vld [vmem:[%s1506_s30 + $0x18] sm:$0xff]   ;;  %v1300_v35 = vld [vmem:[%s1506_s30 + $0x20] sm:$0xff]   ;;  %v1304_v39 = vld [vmem:[%s1506_s30 + $0x28] sm:$0xff]  }
  0x3d   : > { %1148 = vmatpush3.bf16.msra.mxu0 %v1288_v23  ;;  %v1297_v32 = vld [vmem:[%s1506_s30 + $0x98] sm:$0xff]   ;;  %v1301_v36 = vld [vmem:[%s1506_s30 + $0xa0] sm:$0xff]   ;;  %v1305_v40 = vld [vmem:[%s1506_s30 + $0xa8] sm:$0xff]  }
  0x3e   : > { %1188 = vmatpush3.bf16.msra.mxu1 %v1289_v24  ;;  %1149 = vmatprep.subr.bf16.mxu0 %v1290_v25  ;;  %v1306_v41 = vld [vmem:[%s1506_s30 + $0x70] sm:$0xff]   ;;  %v1310_v45 = vld [vmem:[%s1506_s30 + $0x78] sm:$0xff]   ;;  %v376_v10 = vld [vmem:[#allocation2] sm:$0xff] }
  0x3f   : > { %1189 = vmatprep.subr.bf16.mxu1 %v1291_v26  ;;  %v1307_v42 = vld [vmem:[%s1506_s30 + $0xf0] sm:$0xff]   ;;  %v1311_v46 = vld [vmem:[%s1506_s30 + $0xf8] sm:$0xff]   ;;  %v377_v15 = vld [vmem:[#allocation2 + $0x8] sm:$0xff] }
  0x40   : > { %v1308_v43 = vld [vmem:[%s1506_s30 + $0x30] sm:$0xff]   ;;  %v1312_v47 = vld [vmem:[%s1506_s30 + $0x38] sm:$0xff]  }
  0x41   : > { %1150 = vmatpush3.bf16.msra.mxu0 %v1292_v27  ;;  %v1309_v44 = vld [vmem:[%s1506_s30 + $0xb0] sm:$0xff]   ;;  %v1313_v48 = vld [vmem:[%s1506_s30 + $0xb8] sm:$0xff]  }
  0x42   : > { %1190 = vmatpush3.bf16.msra.mxu1 %v1293_v28  ;;  %1151 = vmatprep.subr.bf16.mxu0 %v1294_v29  ;;  %v1314_v49 = vld [vmem:[%s1518_s18] ss:$16 sps:$4 sm:$0xff]   ;;  %v1316_v50 = vld [vmem:[%s1518_s18 + $0x4] ss:$16 sps:$4 sm:$0xff]   ;;  %v1317_v51 = vld [vmem:[%s1518_s18 + $0x8] ss:$16 sps:$4 sm:$0xff]  }
  0x43   : > { %1191 = vmatprep.subr.bf16.mxu1 %v1295_v30  ;;  %v1319_v52 = vld [vmem:[%s1518_s18 + $0xc] ss:$16 sps:$4 sm:$0xff]   ;;  %768 = vmatprep.mubr.bf16.mxu0 %v1316_v50  ;;  %v1320_v53 = vld [vmem:[%s1518_s18 + $0x24] ss:$16 sps:$4 sm:$0xff]   ;;  %v1324_v55 = vld [vmem:[%s1518_s18 + $0x20] ss:$16 sps:$4 sm:$0xff]  }
  0x44   : > { %833 = vmatprep.mubr.bf16.mxu1 %v1319_v52  ;;  %v1322_v54 = vld [vmem:[%s1518_s18 + $0x2c] ss:$16 sps:$4 sm:$0xff]   ;;  %v1325_v56 = vld [vmem:[%s1518_s18 + $0x28] ss:$16 sps:$4 sm:$0xff]   ;;  %v1326_v57 = vld [vmem:[%s1518_s18 + $0x44] ss:$16 sps:$4 sm:$0xff]  }
  0x45   : > { %1152 = vmatpush3.bf16.msra.mxu0 %v1296_v31  ;;  %v1328_v58 = vld [vmem:[%s1518_s18 + $0x4c] ss:$16 sps:$4 sm:$0xff]   ;;  %v1330_v59 = vld [vmem:[%s1518_s18 + $0x40] ss:$16 sps:$4 sm:$0xff]   ;;  %v1331_v60 = vld [vmem:[%s1518_s18 + $0x48] ss:$16 sps:$4 sm:$0xff]  }
  0x46   : > { %1192 = vmatpush3.bf16.msra.mxu1 %v1297_v32  ;;  %1153 = vmatprep.subr.bf16.mxu0 %v1298_v33  ;;  %v1332_v61 = vld [vmem:[%s1518_s18 + $0x64] ss:$16 sps:$4 sm:$0xff]   ;;  %v1334_v62 = vld [vmem:[%s1518_s18 + $0x6c] ss:$16 sps:$4 sm:$0xff]   ;;  %v1336_v63 = vld [vmem:[%s1518_s18 + $0x60] ss:$16 sps:$4 sm:$0xff]  }
  0x47   : > { %1193 = vmatprep.subr.bf16.mxu1 %v1299_v34  ;;  %v1337_v0 = vld [vmem:[%s1518_s18 + $0x68] ss:$16 sps:$4 sm:$0xff]   ;;  %v378_v28 = vld [vmem:[#allocation2 + $0x10] sm:$0xff] }
  0x48   : > { %v379_v33 = vld [vmem:[#allocation2 + $0x18] sm:$0xff] }
  0x49   : > { %1154 = vmatpush3.bf16.msra.mxu0 %v1300_v35 }
  0x4a   : > { %1194 = vmatpush3.bf16.msra.mxu1 %v1301_v36  ;;  %1155 = vmatprep.subr.bf16.mxu0 %v1302_v37 }
  0x4b   : > { %1195 = vmatprep.subr.bf16.mxu1 %v1303_v38 }
  0x4d   : > { %1156 = vmatpush3.bf16.msra.mxu0 %v1304_v39 }
  0x4e   : > { %1196 = vmatpush3.bf16.msra.mxu1 %v1305_v40  ;;  %1157 = vmatprep.subr.bf16.mxu0 %v1306_v41 }
  0x4f   : > { %1197 = vmatprep.subr.bf16.mxu1 %v1307_v42 }
  0x51   : > { %1158 = vmatpush3.bf16.msra.mxu0 %v1308_v43 }
  0x52   : > { %1198 = vmatpush3.bf16.msra.mxu1 %v1309_v44  ;;  %1159 = vmatprep.subr.bf16.mxu0 %v1310_v45 }
  0x53   : > { %1199 = vmatprep.subr.bf16.mxu1 %v1311_v46  ;;  %v380_v46 = vld [vmem:[#allocation2 + $0x20] sm:$0xff] }
  0x55   : > { %1160 = vmatpush3.bf16.msra.mxu0 %v1312_v47 }
  0x56   : > { %1200 = vmatpush3.bf16.msra.mxu1 %v1313_v48 }
  0x58   : > { %769 = vmatmul.mubr.bf16.vlgmr.msra.gmra.mrb[0].mxu0 %v1314_v49 }
  0x59   : > { %834 = vmatmul.mubr.bf16.vlgmr.msra.gmra.mrb[0].mxu1 %v1317_v51  ;;  %776 = vmatprep.mubr.bf16.mxu0 %v1320_v53  ;;  %v381_v51 = vld [vmem:[#allocation2 + $0x28] sm:$0xff] }
  0x5a   : > { %841 = vmatprep.mubr.bf16.mxu1 %v1322_v54 }
  0x60   : > { %777 = vmatmul.mubr.bf16.gmra.mrb[4].mxu0 %v1324_v55 }
  0x61   : > { %842 = vmatmul.mubr.bf16.gmra.mrb[4].mxu1 %v1325_v56  ;;  %784 = vmatprep.mubr.bf16.mxu0 %v1326_v57 }
  0x62   : > { %849 = vmatprep.mubr.bf16.mxu1 %v1328_v58 }
  0x68   : > { %785 = vmatmul.mubr.bf16.gmra.mrb[8].mxu0 %v1330_v59 }
  0x69   : > { %850 = vmatmul.mubr.bf16.gmra.mrb[8].mxu1 %v1331_v60  ;;  %792 = vmatprep.mubr.bf16.mxu0 %v1332_v61 }
  0x6a   : > { %857 = vmatprep.mubr.bf16.mxu1 %v1334_v62 }
  0x70   : > { %793 = vmatmul.mubr.bf16.gmra.mrb[12].mxu0 %v1336_v63 }
  0x71   : > { %858 = vmatmul.mubr.bf16.gmra.mrb[12].mxu1 %v1337_v0  ;;  %v382_v0 = vld [vmem:[#allocation2 + $0x30] sm:$0xff] }
 0x12b   : > { %v1161_v1 = vpop.f32.mrb[0].mxu0 }
 0x12c   : > { %v1201_v2 = vpop.f32.mrb[0].mxu1  ;;  %v1162_v3 = vpop.f32.mrb[1].mxu0 }
 0x12d   : > { %v1163_v4 = vadd.f32 %v1162_v3, %v1161_v1  ;;  %v1202_v5 = vpop.f32.mrb[1].mxu1  ;;  %v1164_v6 = vpop.f32.mrb[2].mxu0 }
 0x12e   : > { %v1203_v7 = vadd.f32 %v1202_v5, %v1201_v2  ;;  %v1204_v8 = vpop.f32.mrb[2].mxu1  ;;  %v1165_v9 = vpop.f32.mrb[3].mxu0  ;;  %v383_v5 = vld [vmem:[#allocation2 + $0x38] sm:$0xff] }
 0x12f   : > { %v1166_v11 = vadd.f32 %v1165_v9, %v1164_v6  ;;  %v1205_v12 = vpop.f32.mrb[3].mxu1 }
 0x130   : > { %v836_v13 = vadd.f32 %v1203_v7, %v1163_v4  ;;  %v1206_v14 = vadd.f32 %v1205_v12, %v1204_v8 }
 0x132   : > { %v866_v16 = vadd.f32 %v836_v13, %v376_v10  ;;  %v839_v17 = vadd.f32 %v1206_v14, %v1166_v11  ;;  %v1141_v10 = vld [vmem:[%s1612_s2] ss:$0 sm:$0xff] (!%p1140_p13)  ;;  %v910_v14 = vld [vmem:[%s1511_s8 + $0x8] sm:$0xff] (!%p1140_p13) }
 0x133   : > { %v1167_v18 = vpop.f32.mrb[4].mxu0  ;;  %v909_v11 = vld [vmem:[%s1511_s8] sm:$0xff] (!%p1140_p13) }
 0x134   : > { %874 = vst [vmem:[#allocation2] sm:$0xff] %v866_v16  ;;  %v867_v19 = vadd.f32 %v839_v17, %v377_v15  ;;  %v1207_v20 = vpop.f32.mrb[4].mxu1  ;;  %v1168_v21 = vpop.f32.mrb[5].mxu0 }
 0x135   : > { %v1169_v22 = vadd.f32 %v1168_v21, %v1167_v18  ;;  %v1208_v23 = vpop.f32.mrb[5].mxu1  ;;  %v1170_v24 = vpop.f32.mrb[6].mxu0  ;;  %v911_v18 = vld [vmem:[%s1511_s8 + $0x10] sm:$0xff] (!%p1140_p13) }
 0x136   : > { %875 = vst [vmem:[#allocation2 + $0x8] sm:$0xff] %v867_v19  ;;  %v1209_v25 = vadd.f32 %v1208_v23, %v1207_v20  ;;  %v1210_v26 = vpop.f32.mrb[6].mxu1  ;;  %v1171_v27 = vpop.f32.mrb[7].mxu0  ;;  %v912_v20 = vld [vmem:[%s1511_s8 + $0x18] sm:$0xff] (!%p1140_p13) }
 0x137   : > { %v1172_v29 = vadd.f32 %v1171_v27, %v1170_v24  ;;  %v1211_v30 = vpop.f32.mrb[7].mxu1  ;;  %v913_v24 = vld [vmem:[%s1511_s8 + $0x20] sm:$0xff] (!%p1140_p13) }
 0x138   : > { %v844_v31 = vadd.f32 %v1209_v25, %v1169_v22  ;;  %v1212_v32 = vadd.f32 %v1211_v30, %v1210_v26  ;;  %v914_v30 = vld [vmem:[%s1511_s8 + $0x28] sm:$0xff] (!%p1140_p13) }
 0x13a   : > { %v868_v34 = vadd.f32 %v844_v31, %v378_v28  ;;  %v847_v35 = vadd.f32 %v1212_v32, %v1172_v29  ;;  %v915_v32 = vld [vmem:[%s1511_s8 + $0x30] sm:$0xff] (!%p1140_p13) }
 0x13b   : > { %v1173_v36 = vpop.f32.mrb[8].mxu0  ;;  %v886_v9 = vld [vmem:[#allocation2] sm:$0xff] (!%p1140_p13) }
 0x13c   : > { %876 = vst [vmem:[#allocation2 + $0x10] sm:$0xff] %v868_v34  ;;  %v869_v37 = vadd.f32 %v847_v35, %v379_v33  ;;  %v1213_v38 = vpop.f32.mrb[8].mxu1  ;;  %v1174_v39 = vpop.f32.mrb[9].mxu0  ;;  %v901_v12 = vadd.f32 (!%p1140_p13), %v1141_v10, %v886_v9 }
 0x13d   : > { %v1175_v40 = vadd.f32 %v1174_v39, %v1173_v36  ;;  %v1214_v41 = vpop.f32.mrb[9].mxu1  ;;  %v1176_v42 = vpop.f32.mrb[10].mxu0  ;;  %v887_v13 = vld [vmem:[#allocation2 + $0x8] sm:$0xff] (!%p1140_p13) }
 0x13e   : > { %877 = vst [vmem:[#allocation2 + $0x18] sm:$0xff] %v869_v37  ;;  %v1215_v43 = vadd.f32 %v1214_v41, %v1213_v38  ;;  %v1216_v44 = vpop.f32.mrb[10].mxu1  ;;  %v1177_v45 = vpop.f32.mrb[11].mxu0  ;;  %v902_v16 = vadd.f32 (!%p1140_p13), %v1141_v10, %v887_v13  ;;  %v917_v21 = vadd.f32 (!%p1140_p13), %v909_v11, %v901_v12  ;;  %v916_v41 = vld [vmem:[%s1511_s8 + $0x38] sm:$0xff] (!%p1140_p13) }
 0x13f   : > { %v1178_v47 = vadd.f32 %v1177_v45, %v1176_v42  ;;  %v1217_v48 = vpop.f32.mrb[11].mxu1 }
 0x140   : > { %v852_v49 = vadd.f32 %v1215_v43, %v1175_v40  ;;  %v1218_v50 = vadd.f32 %v1217_v48, %v1216_v44  ;;  %v918_v26 = vadd.f32 (!%p1140_p13), %v910_v14, %v902_v16  ;;  %v925_v33 = vmax.f32 (!%p1140_p13), %v917_v21, 0.0 }
 0x142   : > { %v870_v52 = vadd.f32 %v852_v49, %v380_v46  ;;  %v855_v53 = vadd.f32 %v1218_v50, %v1178_v47  ;;  %v926_v37 = vmax.f32 (!%p1140_p13), %v918_v26, 0.0  ;;  %933 = vst [vmem:[%s1516_s10] sm:$0xff] (!%p1140_p13), %v925_v33 }
 0x143   : > { %v1179_v54 = vpop.f32.mrb[12].mxu0  ;;  %v888_v15 = vld [vmem:[#allocation2 + $0x10] sm:$0xff] (!%p1140_p13) }
 0x144   : > { %878 = vst [vmem:[#allocation2 + $0x20] sm:$0xff] %v870_v52  ;;  %v871_v55 = vadd.f32 %v855_v53, %v381_v51  ;;  %v1219_v56 = vpop.f32.mrb[12].mxu1  ;;  %v1180_v57 = vpop.f32.mrb[13].mxu0  ;;  %v903_v17 = vadd.f32 (!%p1140_p13), %v1141_v10, %v888_v15  ;;  %934 = vst [vmem:[%s1516_s10 + $0x8] sm:$0xff] (!%p1140_p13), %v926_v37 }
 0x145   : > { %v1181_v58 = vadd.f32 %v1180_v57, %v1179_v54  ;;  %v1220_v59 = vpop.f32.mrb[13].mxu1  ;;  %v1182_v60 = vpop.f32.mrb[14].mxu0  ;;  %v889_v19 = vld [vmem:[#allocation2 + $0x18] sm:$0xff] (!%p1140_p13) }
 0x146   : > { %879 = vst [vmem:[#allocation2 + $0x28] sm:$0xff] %v871_v55  ;;  %v1221_v61 = vadd.f32 %v1220_v59, %v1219_v56  ;;  %v1222_v62 = vpop.f32.mrb[14].mxu1  ;;  %v1183_v63 = vpop.f32.mrb[15].mxu0  ;;  %v904_v22 = vadd.f32 (!%p1140_p13), %v1141_v10, %v889_v19  ;;  %v919_v27 = vadd.f32 (!%p1140_p13), %v911_v18, %v903_v17 }
 0x147   : > { %v1184_v1 = vadd.f32 %v1183_v63, %v1182_v60  ;;  %v1223_v2 = vpop.f32.mrb[15].mxu1 }
 0x148   : > { %v860_v3 = vadd.f32 %v1221_v61, %v1181_v58  ;;  %v1224_v4 = vadd.f32 %v1223_v2, %v1222_v62  ;;  %885 = sbr.rel (%p1140_p13) target bundleno = 349 (0x15d), region = 67  ;;  %v920_v34 = vadd.f32 (!%p1140_p13), %v912_v20, %v904_v22  ;;  %v927_v38 = vmax.f32 (!%p1140_p13), %v919_v27, 0.0 }
 0x14a   : > { %v872_v6 = vadd.f32 %v860_v3, %v382_v0  ;;  %v863_v7 = vadd.f32 %v1224_v4, %v1184_v1  ;;  %v928_v42 = vmax.f32 (!%p1140_p13), %v920_v34, 0.0  ;;  %935 = vst [vmem:[%s1516_s10 + $0x10] sm:$0xff] (!%p1140_p13), %v927_v38 }
 0x14b   : > { %v890_v23 = vld [vmem:[#allocation2 + $0x20] sm:$0xff] (!%p1140_p13) }
 0x14c   : > { %880 = vst [vmem:[#allocation2 + $0x30] sm:$0xff] %v872_v6  ;;  %v873_v8 = vadd.f32 %v863_v7, %v383_v5  ;;  %v905_v28 = vadd.f32 (!%p1140_p13), %v1141_v10, %v890_v23  ;;  %936 = vst [vmem:[%s1516_s10 + $0x18] sm:$0xff] (!%p1140_p13), %v928_v42 }
 0x14d   : > { %v891_v25 = vld [vmem:[#allocation2 + $0x28] sm:$0xff] (!%p1140_p13) }
 0x14e   : > { %881 = vst [vmem:[#allocation2 + $0x38] sm:$0xff] %v873_v8  ;;  %v906_v29 = vadd.f32 (!%p1140_p13), %v1141_v10, %v891_v25  ;;  %v921_v39 = vadd.f32 (!%p1140_p13), %v913_v24, %v905_v28 }
 0x150   : > { %v922_v40 = vadd.f32 %v914_v30, %v906_v29  ;;  %v929_v45 = vmax.f32 %v921_v39, 0.0 }
 0x152   : > { %v930_v46 = vmax.f32 %v922_v40, 0.0  ;;  %937 = vst [vmem:[%s1516_s10 + $0x20] sm:$0xff] %v929_v45 }
 0x153   : > { %v892_v31 = vld [vmem:[#allocation2 + $0x30] sm:$0xff] }
 0x154   : > { %v907_v35 = vadd.f32 %v1141_v10, %v892_v31  ;;  %938 = vst [vmem:[%s1516_s10 + $0x28] sm:$0xff] %v930_v46 }
 0x155   : > { %v893_v36 = vld [vmem:[#allocation2 + $0x38] sm:$0xff] }
 0x156   : > { %v923_v43 = vadd.f32 %v915_v32, %v907_v35  ;;  %v908_v44 = vadd.f32 %v1141_v10, %v893_v36 }
 0x158   : > { %v931_v47 = vmax.f32 %v923_v43, 0.0  ;;  %v924_v48 = vadd.f32 %v916_v41, %v908_v44 }
 0x15a   : > { %939 = vst [vmem:[%s1516_s10 + $0x30] sm:$0xff] %v931_v47  ;;  %v932_v49 = vmax.f32 %v924_v48, 0.0 }
 0x15c   : > { %940 = vst [vmem:[%s1516_s10 + $0x38] sm:$0xff] %v932_v49 }
 0x15d PF: > { %s14_s21 = sadd.s32 1, %s1392_s21   ;;  %s1615_s15 = smov %s1372_s16 }
 0x15e   : > { %p11_p0 = scmp.ge.s32.totalorder %s14_s21, 6   ;;  %s1616_s16 = smov %s1471_s28 }
 0x15f   : > { %s1617_s17 = smov %s1384_s19  ;;  %s1618_s18 = smov %s1388_s20 }
 0x160   : > { %s1619_s19 = smov %s1622_s22  ;;  %s1620_s20 = smov %s1626_s23 }
 0x161   :  { %13 = sbr.rel (!%p11_p0) target bundleno = 4 (0x4), region = 111 }

// kernel: _lambda_.67
= control target key start
LH: loop header
LB: loop body
LE: loop exit
PB: predicated region body
PF: predicated region fallthrough
CT: control target
= control target key end

     0   :  { %s1202_s15 = smov 0   ;;  %s1204_s16 = smov 0   ;;  %s1392_s0 = inlined_call_operand.vmem [shape: bf16[128,512], index: 0, kind: input, shape index: {}]   ;;  %s1393_s1 = inlined_call_operand.vmem [shape: bf16[512,128], index: 1, kind: input, shape index: {}]   ;;  %s1394_s2 = inlined_call_operand.vmem [shape: f32[1,128], index: 2, kind: input, shape index: {}]   ;;  %s1395_s3 = inlined_call_operand.vmem [shape: f32[128,128], index: 3, kind: input, shape index: {}]   ;;  %s1396_s4 = inlined_call_operand.vmem [shape: f32[128,128], index: 4, kind: output, shape index: {}]  }
   0x1   :  { %s1206_s17 = smov 0  }
   0x2 LB: > { %s26_s18 = sadd.s32 1, %s1171_s16  ;;  %p933_p0 = scmp.ge.s32.totalorder %s1175_s17, 1  ;;  %s1175_s17 = sphi %s1206_s17, %s14_s17   ;;  %s1171_s16 = sphi %s1204_s16, %s1398_s16   ;;  %s1167_s15 = sphi %s1202_s15, %s1397_s15  }
   0x3   : > { %p28_p1 = scmp.ge.s32.totalorder %s26_s18, 2  ;;  %p211_p2 = scmp.lt.s32.totalorder %s1175_s17, 3 }
   0x5   : > { %s1400_s18 = smov (%p28_p1, %s26_s18), 0  ;;  %p212_p3 = pnand %p933_p0, %p211_p2 }
   0x6   : > { %v1097_v0 = vld [vmem:[%s1393_s1 + $0x40] sm:$0xff] (!%p212_p3)   ;;  %v1101_v4 = vld [vmem:[%s1393_s1 + $0x48] sm:$0xff] (!%p212_p3)   ;;  %v1105_v8 = vld [vmem:[%s1393_s1 + $0x50] sm:$0xff] (!%p212_p3)   ;;  %s934_s29 = sshll.u32 (!%p212_p3), %s1167_s15, 3 }
   0x7   : > { %215 = sbr.rel (%p212_p3) target bundleno = 290 (0x122), region = 36  ;;  %v1098_v1 = vld [vmem:[%s1393_s1 + $0xc0] sm:$0xff] (!%p212_p3)   ;;  %993 = vmatprep.subr.bf16.mxu0 (!%p212_p3), %v1097_v0  ;;  %v1102_v5 = vld [vmem:[%s1393_s1 + $0xc8] sm:$0xff] (!%p212_p3)   ;;  %v1106_v9 = vld [vmem:[%s1393_s1 + $0xd0] sm:$0xff] (!%p212_p3)   ;;  %p257_p4 = scmp.lt.s32.totalorder (!%p212_p3), %s934_s29, 15 }
   0x8   : > { %v1099_v2 = vld [vmem:[%s1393_s1] sm:$0xff] (!%p212_p3)   ;;  %1033 = vmatprep.subr.bf16.mxu1 (!%p212_p3), %v1098_v1  ;;  %v1103_v6 = vld [vmem:[%s1393_s1 + $0x8] sm:$0xff] (!%p212_p3)   ;;  %v1107_v10 = vld [vmem:[%s1393_s1 + $0x10] sm:$0xff] (!%p212_p3)  }
   0x9   : > { %v1100_v3 = vld [vmem:[%s1393_s1 + $0x80] sm:$0xff] (!%p212_p3)   ;;  %994 = vmatpush3.bf16.msra.mxu0 (!%p212_p3), %v1099_v2  ;;  %v1104_v7 = vld [vmem:[%s1393_s1 + $0x88] sm:$0xff] (!%p212_p3)   ;;  %v1108_v11 = vld [vmem:[%s1393_s1 + $0x90] sm:$0xff] (!%p212_p3)  }
   0xa   : > { %1034 = vmatpush3.bf16.msra.mxu1 (!%p212_p3), %v1100_v3  ;;  %995 = vmatprep.subr.bf16.mxu0 (!%p212_p3), %v1101_v4  ;;  %v1109_v12 = vld [vmem:[%s1393_s1 + $0x58] sm:$0xff] (!%p212_p3)   ;;  %v1113_v16 = vld [vmem:[%s1393_s1 + $0x60] sm:$0xff] (!%p212_p3)   ;;  %v1117_v20 = vld [vmem:[%s1393_s1 + $0x68] sm:$0xff] (!%p212_p3)  }
   0xb   : > { %1035 = vmatprep.subr.bf16.mxu1 (!%p212_p3), %v1102_v5  ;;  %v1110_v13 = vld [vmem:[%s1393_s1 + $0xd8] sm:$0xff] (!%p212_p3)   ;;  %v1114_v17 = vld [vmem:[%s1393_s1 + $0xe0] sm:$0xff] (!%p212_p3)   ;;  %v1118_v21 = vld [vmem:[%s1393_s1 + $0xe8] sm:$0xff] (!%p212_p3)  }
   0xc   : > { %v1111_v14 = vld [vmem:[%s1393_s1 + $0x18] sm:$0xff] (!%p212_p3)   ;;  %v1115_v18 = vld [vmem:[%s1393_s1 + $0x20] sm:$0xff] (!%p212_p3)   ;;  %v1119_v22 = vld [vmem:[%s1393_s1 + $0x28] sm:$0xff] (!%p212_p3)  }
   0xd   : > { %996 = vmatpush3.bf16.msra.mxu0 (!%p212_p3), %v1103_v6  ;;  %v1112_v15 = vld [vmem:[%s1393_s1 + $0x98] sm:$0xff] (!%p212_p3)   ;;  %v1116_v19 = vld [vmem:[%s1393_s1 + $0xa0] sm:$0xff] (!%p212_p3)   ;;  %v1120_v23 = vld [vmem:[%s1393_s1 + $0xa8] sm:$0xff] (!%p212_p3)  }
   0xe   : > { %1036 = vmatpush3.bf16.msra.mxu1 %v1104_v7  ;;  %997 = vmatprep.subr.bf16.mxu0 %v1105_v8  ;;  %s1402_s29 = smov (!%p257_p4, %s934_s29), 15  ;;  %v1121_v24 = vld [vmem:[%s1393_s1 + $0x70] sm:$0xff]   ;;  %v1125_v28 = vld [vmem:[%s1393_s1 + $0x78] sm:$0xff]   ;;  %v1347_v50 = vld [vmem:[%s1394_s2] ss:$0 sm:$0xff] }
   0xf   : > { %1037 = vmatprep.subr.bf16.mxu1 %v1106_v9  ;;  %v1122_v25 = vld [vmem:[%s1393_s1 + $0xf0] sm:$0xff]   ;;  %s992_s30 = sshll.u32 %s1402_s29, 4  ;;  %v1126_v29 = vld [vmem:[%s1393_s1 + $0xf8] sm:$0xff]   ;;  %s938_s21 = sshll.u32 %s1402_s29, 3 }
  0x10   : > { %v1123_v26 = vld [vmem:[%s1393_s1 + $0x30] sm:$0xff]   ;;  %s1319_s12 = scalar_lea.vmem %s1392_s0, %s992_s30  ;;  %v1127_v30 = vld [vmem:[%s1393_s1 + $0x38] sm:$0xff]   ;;  %s1352_s26 = scalar_lea.vmem %s1395_s3, %s938_s21 }
  0x11   : > { %998 = vmatpush3.bf16.msra.mxu0 %v1107_v10  ;;  %v1124_v27 = vld [vmem:[%s1393_s1 + $0xb0] sm:$0xff]   ;;  %v1128_v31 = vld [vmem:[%s1393_s1 + $0xb8] sm:$0xff]   ;;  %v778_v61 = vld [vmem:[%s1352_s26] sm:$0xff]  ;;  %s1361_s28 = scalar_lea.vmem %s1396_s4, %s938_s21 }
  0x12   : > { %1038 = vmatpush3.bf16.msra.mxu1 %v1108_v11  ;;  %999 = vmatprep.subr.bf16.mxu0 %v1109_v12  ;;  %v1129_v32 = vld [vmem:[%s1319_s12] ss:$16 sps:$4 sm:$0xff]   ;;  %v1131_v33 = vld [vmem:[%s1319_s12 + $0x4] ss:$16 sps:$4 sm:$0xff]   ;;  %v1132_v34 = vld [vmem:[%s1319_s12 + $0x8] ss:$16 sps:$4 sm:$0xff]  }
  0x13   : > { %1039 = vmatprep.subr.bf16.mxu1 %v1110_v13  ;;  %v1134_v35 = vld [vmem:[%s1319_s12 + $0xc] ss:$16 sps:$4 sm:$0xff]   ;;  %680 = vmatprep.mubr.bf16.mxu0 %v1131_v33  ;;  %v1135_v36 = vld [vmem:[%s1319_s12 + $0x24] ss:$16 sps:$4 sm:$0xff]   ;;  %v1139_v38 = vld [vmem:[%s1319_s12 + $0x20] ss:$16 sps:$4 sm:$0xff]  }
  0x14   : > { %745 = vmatprep.mubr.bf16.mxu1 %v1134_v35  ;;  %v1137_v37 = vld [vmem:[%s1319_s12 + $0x2c] ss:$16 sps:$4 sm:$0xff]   ;;  %v1140_v39 = vld [vmem:[%s1319_s12 + $0x28] ss:$16 sps:$4 sm:$0xff]   ;;  %v1141_v40 = vld [vmem:[%s1319_s12 + $0x44] ss:$16 sps:$4 sm:$0xff]  }
  0x15   : > { %1000 = vmatpush3.bf16.msra.mxu0 %v1111_v14  ;;  %v1143_v41 = vld [vmem:[%s1319_s12 + $0x4c] ss:$16 sps:$4 sm:$0xff]   ;;  %v1145_v42 = vld [vmem:[%s1319_s12 + $0x40] ss:$16 sps:$4 sm:$0xff]   ;;  %v1146_v43 = vld [vmem:[%s1319_s12 + $0x48] ss:$16 sps:$4 sm:$0xff]  }
  0x16   : > { %1040 = vmatpush3.bf16.msra.mxu1 %v1112_v15  ;;  %1001 = vmatprep.subr.bf16.mxu0 %v1113_v16  ;;  %v1147_v44 = vld [vmem:[%s1319_s12 + $0x64] ss:$16 sps:$4 sm:$0xff]   ;;  %v1149_v45 = vld [vmem:[%s1319_s12 + $0x6c] ss:$16 sps:$4 sm:$0xff]   ;;  %v1151_v46 = vld [vmem:[%s1319_s12 + $0x60] ss:$16 sps:$4 sm:$0xff]  }
  0x17   : > { %1041 = vmatprep.subr.bf16.mxu1 %v1114_v17  ;;  %v1152_v47 = vld [vmem:[%s1319_s12 + $0x68] ss:$16 sps:$4 sm:$0xff]  }
  0x18   : > { %v779_v1 = vld [vmem:[%s1352_s26 + $0x8] sm:$0xff] }
  0x19   : > { %1002 = vmatpush3.bf16.msra.mxu0 %v1115_v18 }
  0x1a   : > { %1042 = vmatpush3.bf16.msra.mxu1 %v1116_v19  ;;  %1003 = vmatprep.subr.bf16.mxu0 %v1117_v20  ;;  %v780_v19 = vld [vmem:[%s1352_s26 + $0x10] sm:$0xff] }
  0x1b   : > { %1043 = vmatprep.subr.bf16.mxu1 %v1118_v21 }
  0x1d   : > { %1004 = vmatpush3.bf16.msra.mxu0 %v1119_v22 }
  0x1e   : > { %1044 = vmatpush3.bf16.msra.mxu1 %v1120_v23  ;;  %1005 = vmatprep.subr.bf16.mxu0 %v1121_v24  ;;  %v781_v23 = vld [vmem:[%s1352_s26 + $0x18] sm:$0xff] }
  0x1f   : > { %1045 = vmatprep.subr.bf16.mxu1 %v1122_v25 }
  0x21   : > { %1006 = vmatpush3.bf16.msra.mxu0 %v1123_v26 }
  0x22   : > { %1046 = vmatpush3.bf16.msra.mxu1 %v1124_v27  ;;  %1007 = vmatprep.subr.bf16.mxu0 %v1125_v28 }
  0x23   : > { %1047 = vmatprep.subr.bf16.mxu1 %v1126_v29 }
  0x25   : > { %1008 = vmatpush3.bf16.msra.mxu0 %v1127_v30 }
  0x26   : > { %1048 = vmatpush3.bf16.msra.mxu1 %v1128_v31 }
  0x28   : > { %681 = vmatmul.mubr.bf16.vlgmr.msra.gmra.mrb[0].mxu0 %v1129_v32 }
  0x29   : > { %746 = vmatmul.mubr.bf16.vlgmr.msra.gmra.mrb[0].mxu1 %v1132_v34  ;;  %688 = vmatprep.mubr.bf16.mxu0 %v1135_v36 }
  0x2a   : > { %753 = vmatprep.mubr.bf16.mxu1 %v1137_v37 }
  0x30   : > { %689 = vmatmul.mubr.bf16.gmra.mrb[4].mxu0 %v1139_v38 }
  0x31   : > { %754 = vmatmul.mubr.bf16.gmra.mrb[4].mxu1 %v1140_v39  ;;  %696 = vmatprep.mubr.bf16.mxu0 %v1141_v40 }
  0x32   : > { %761 = vmatprep.mubr.bf16.mxu1 %v1143_v41  ;;  %v782_v41 = vld [vmem:[%s1352_s26 + $0x20] sm:$0xff] }
  0x38   : > { %697 = vmatmul.mubr.bf16.gmra.mrb[8].mxu0 %v1145_v42 }
  0x39   : > { %762 = vmatmul.mubr.bf16.gmra.mrb[8].mxu1 %v1146_v43  ;;  %704 = vmatprep.mubr.bf16.mxu0 %v1147_v44 }
  0x3a   : > { %769 = vmatprep.mubr.bf16.mxu1 %v1149_v45  ;;  %v783_v45 = vld [vmem:[%s1352_s26 + $0x28] sm:$0xff] }
  0x40   : > { %705 = vmatmul.mubr.bf16.gmra.mrb[12].mxu0 %v1151_v46 }
  0x41   : > { %770 = vmatmul.mubr.bf16.gmra.mrb[12].mxu1 %v1152_v47 }
  0xfb   : > { %v1009_v48 = vpop.f32.mrb[0].mxu0 }
  0xfc   : > { %v1049_v49 = vpop.f32.mrb[0].mxu1  ;;  %v1010_v51 = vpop.f32.mrb[1].mxu0 }
  0xfd   : > { %v1011_v52 = vadd.f32 %v1010_v51, %v1009_v48  ;;  %v1050_v53 = vpop.f32.mrb[1].mxu1  ;;  %v1012_v54 = vpop.f32.mrb[2].mxu0 }
  0xfe   : > { %v1051_v55 = vadd.f32 %v1050_v53, %v1049_v49  ;;  %v1052_v56 = vpop.f32.mrb[2].mxu1  ;;  %v1013_v57 = vpop.f32.mrb[3].mxu0 }
  0xff   : > { %v683_v58 = vadd.f32 %v1011_v52, %v1347_v50  ;;  %v1014_v59 = vadd.f32 %v1013_v57, %v1012_v54  ;;  %v1053_v60 = vpop.f32.mrb[3].mxu1 }
 0x100   : > { %v1054_v62 = vadd.f32 %v1053_v60, %v1052_v56 }
 0x101   : > { %v748_v63 = vadd.f32 %v1051_v55, %v683_v58  ;;  %v686_v0 = vadd.f32 %v1014_v59, %v1347_v50 }
 0x103   : > { %v786_v2 = vadd.f32 %v778_v61, %v748_v63  ;;  %v751_v3 = vadd.f32 %v1054_v62, %v686_v0  ;;  %v1015_v4 = vpop.f32.mrb[4].mxu0  ;;  %v784_v0 = vld [vmem:[%s1352_s26 + $0x30] sm:$0xff] }
 0x104   : > { %v1055_v5 = vpop.f32.mrb[4].mxu1  ;;  %v1016_v6 = vpop.f32.mrb[5].mxu0 }
 0x105   : > { %v794_v7 = vmax.f32 %v786_v2, 0.0  ;;  %v787_v8 = vadd.f32 %v779_v1, %v751_v3  ;;  %v1017_v9 = vadd.f32 %v1016_v6, %v1015_v4  ;;  %v1056_v10 = vpop.f32.mrb[5].mxu1  ;;  %v1018_v11 = vpop.f32.mrb[6].mxu0  ;;  %v785_v4 = vld [vmem:[%s1352_s26 + $0x38] sm:$0xff] }
 0x106   : > { %v1057_v12 = vadd.f32 %v1056_v10, %v1055_v5  ;;  %v1058_v13 = vpop.f32.mrb[6].mxu1  ;;  %v1019_v14 = vpop.f32.mrb[7].mxu0 }
 0x107   : > { %802 = vst [vmem:[%s1361_s28] sm:$0xff] %v794_v7  ;;  %v795_v15 = vmax.f32 %v787_v8, 0.0  ;;  %v691_v16 = vadd.f32 %v1017_v9, %v1347_v50  ;;  %v1020_v17 = vadd.f32 %v1019_v14, %v1018_v11  ;;  %v1059_v18 = vpop.f32.mrb[7].mxu1 }
 0x108   : > { %v1060_v20 = vadd.f32 %v1059_v18, %v1058_v13 }
 0x109   : > { %803 = vst [vmem:[%s1361_s28 + $0x8] sm:$0xff] %v795_v15  ;;  %v756_v21 = vadd.f32 %v1057_v12, %v691_v16  ;;  %v694_v22 = vadd.f32 %v1020_v17, %v1347_v50 }
 0x10b   : > { %v788_v24 = vadd.f32 %v780_v19, %v756_v21  ;;  %v759_v25 = vadd.f32 %v1060_v20, %v694_v22  ;;  %v1021_v26 = vpop.f32.mrb[8].mxu0 }
 0x10c   : > { %v1061_v27 = vpop.f32.mrb[8].mxu1  ;;  %v1022_v28 = vpop.f32.mrb[9].mxu0 }
 0x10d   : > { %v796_v29 = vmax.f32 %v788_v24, 0.0  ;;  %v789_v30 = vadd.f32 %v781_v23, %v759_v25  ;;  %v1023_v31 = vadd.f32 %v1022_v28, %v1021_v26  ;;  %v1062_v32 = vpop.f32.mrb[9].mxu1  ;;  %v1024_v33 = vpop.f32.mrb[10].mxu0 }
 0x10e   : > { %v1063_v34 = vadd.f32 %v1062_v32, %v1061_v27  ;;  %v1064_v35 = vpop.f32.mrb[10].mxu1  ;;  %v1025_v36 = vpop.f32.mrb[11].mxu0 }
 0x10f   : > { %804 = vst [vmem:[%s1361_s28 + $0x10] sm:$0xff] %v796_v29  ;;  %v797_v37 = vmax.f32 %v789_v30, 0.0  ;;  %v699_v38 = vadd.f32 %v1023_v31, %v1347_v50  ;;  %v1026_v39 = vadd.f32 %v1025_v36, %v1024_v33  ;;  %v1065_v40 = vpop.f32.mrb[11].mxu1 }
 0x110   : > { %v1066_v42 = vadd.f32 %v1065_v40, %v1064_v35 }
 0x111   : > { %805 = vst [vmem:[%s1361_s28 + $0x18] sm:$0xff] %v797_v37  ;;  %v764_v43 = vadd.f32 %v1063_v34, %v699_v38  ;;  %v702_v44 = vadd.f32 %v1026_v39, %v1347_v50 }
 0x113   : > { %v790_v46 = vadd.f32 %v782_v41, %v764_v43  ;;  %v767_v47 = vadd.f32 %v1066_v42, %v702_v44  ;;  %v1027_v48 = vpop.f32.mrb[12].mxu0 }
 0x114   : > { %v1067_v49 = vpop.f32.mrb[12].mxu1  ;;  %v1028_v51 = vpop.f32.mrb[13].mxu0 }
 0x115   : > { %v798_v52 = vmax.f32 %v790_v46, 0.0  ;;  %v791_v53 = vadd.f32 %v783_v45, %v767_v47  ;;  %v1029_v54 = vadd.f32 %v1028_v51, %v1027_v48  ;;  %v1068_v55 = vpop.f32.mrb[13].mxu1  ;;  %v1030_v56 = vpop.f32.mrb[14].mxu0 }
 0x116   : > { %v1069_v57 = vadd.f32 %v1068_v55, %v1067_v49  ;;  %v1070_v58 = vpop.f32.mrb[14].mxu1  ;;  %v1031_v59 = vpop.f32.mrb[15].mxu0 }
 0x117   : > { %806 = vst [vmem:[%s1361_s28 + $0x20] sm:$0xff] %v798_v52  ;;  %v799_v60 = vmax.f32 %v791_v53, 0.0  ;;  %v707_v61 = vadd.f32 %v1029_v54, %v1347_v50  ;;  %v1032_v62 = vadd.f32 %v1031_v59, %v1030_v56  ;;  %v1071_v63 = vpop.f32.mrb[15].mxu1 }
 0x118   : > { %v1072_v1 = vadd.f32 %v1071_v63, %v1070_v58 }
 0x119   : > { %807 = vst [vmem:[%s1361_s28 + $0x28] sm:$0xff] %v799_v60  ;;  %v772_v2 = vadd.f32 %v1069_v57, %v707_v61  ;;  %v710_v3 = vadd.f32 %v1032_v62, %v1347_v50 }
 0x11b   : > { %v792_v5 = vadd.f32 %v784_v0, %v772_v2  ;;  %v775_v6 = vadd.f32 %v1072_v1, %v710_v3 }
 0x11d   : > { %v800_v7 = vmax.f32 %v792_v5, 0.0  ;;  %v793_v8 = vadd.f32 %v785_v4, %v775_v6 }
 0x11f   : > { %808 = vst [vmem:[%s1361_s28 + $0x30] sm:$0xff] %v800_v7  ;;  %v801_v9 = vmax.f32 %v793_v8, 0.0 }
 0x121   : > { %809 = vst [vmem:[%s1361_s28 + $0x38] sm:$0xff] %v801_v9 }
 0x122 PF: > { %s14_s17 = sadd.s32 1, %s1175_s17   ;;  %s1397_s15 = smov %s1171_s16 }
 0x123   : > { %p11_p5 = scmp.ge.s32.totalorder %s14_s17, 4   ;;  %s1398_s16 = smov %s1400_s18 }
 0x125   :  { %13 = sbr.rel (!%p11_p5) target bundleno = 2 (0x2), region = 75 }

// kernel: _lambda_.78
= control target key start
LH: loop header
LB: loop body
LE: loop exit
PB: predicated region body
PF: predicated region fallthrough
CT: control target
= control target key end

     0   :  { %s1370_s12 = smov 0   ;;  %s1372_s13 = smov 0   ;;  %s1600_s0 = inlined_call_operand.vmem [shape: bf16[1024,128], index: 0, kind: input, shape index: {}]   ;;  %s1601_s1 = inlined_call_operand.vmem [shape: bf16[128,128], index: 1, kind: input, shape index: {}]   ;;  %s1602_s2 = inlined_call_operand.vmem [shape: f32[1,128], index: 2, kind: input, shape index: {}]   ;;  %s1603_s3 = inlined_call_operand.vmem [shape: f32[1024,128], index: 3, kind: output, shape index: {}]  }
   0x1   :  { %s1374_s14 = smov 0  }
   0x2 LB: > { %s25_s15 = sadd.s32 1, %s1344_s13  ;;  %p1078_p0 = scmp.ge.s32.totalorder %s1348_s14, 1  ;;  %s1348_s14 = sphi %s1374_s14, %s13_s14   ;;  %s1344_s13 = sphi %s1372_s13, %s1605_s13   ;;  %s1340_s12 = sphi %s1370_s12, %s1604_s12  }
   0x3   : > { %p27_p1 = scmp.ge.s32.totalorder %s25_s15, 2  ;;  %p169_p2 = scmp.lt.s32.totalorder %s1348_s14, 3 }
   0x5   : > { %s1607_s15 = smov (%p27_p1, %s25_s15), 0  ;;  %p170_p3 = pnand %p1078_p0, %p169_p2 }
   0x6   : > { %v1286_v0 = vld [vmem:[%s1601_s1] sm:$0xff] (!%p170_p3)   ;;  %s1079_s18 = sshll.u32 (!%p170_p3), %s1340_s12, 6  ;;  %v1287_v1 = vld [vmem:[%s1601_s1 + $0x8] sm:$0xff] (!%p170_p3)   ;;  %v1288_v2 = vld [vmem:[%s1601_s1 + $0x10] sm:$0xff] (!%p170_p3)  }
   0x7   : > { %173 = sbr.rel (%p170_p3) target bundleno = 315 (0x13b), region = 32  ;;  %p204_p4 = scmp.lt.s32.totalorder (!%p170_p3), %s1079_s18, 127  ;;  %1166 = vmatprep.subr.bf16.mxu0 (!%p170_p3), %v1286_v0  ;;  %1246 = vmatprep.subr.bf16.mxu1 (!%p170_p3), %v1286_v0  ;;  %v1289_v3 = vld [vmem:[%s1601_s1 + $0x18] sm:$0xff] (!%p170_p3)   ;;  %v1290_v6 = vld [vmem:[%s1601_s1 + $0x20] sm:$0xff] (!%p170_p3)   ;;  %v1291_v7 = vld [vmem:[%s1601_s1 + $0x28] sm:$0xff] (!%p170_p3)  }
   0x8   : > { %1167 = vmatpush3.bf16.msra.mxu0 (!%p170_p3), %v1286_v0  ;;  %1254 = vmatpush3.bf16.msra.mxu1 (!%p170_p3), %v1286_v0  ;;  %v1292_v8 = vld [vmem:[%s1601_s1 + $0x30] sm:$0xff] (!%p170_p3)   ;;  %v1293_v9 = vld [vmem:[%s1601_s1 + $0x38] sm:$0xff] (!%p170_p3)   ;;  %v1455_v40 = vld [vmem:[%s1602_s2] ss:$0 sm:$0xff] (!%p170_p3) }
   0x9   : > { %1168 = vmatprep.subr.bf16.mxu0 (!%p170_p3), %v1287_v1  ;;  %1247 = vmatprep.subr.bf16.mxu1 (!%p170_p3), %v1287_v1 }
   0xc   : > { %1169 = vmatpush3.bf16.msra.mxu0 (!%p170_p3), %v1287_v1  ;;  %1255 = vmatpush3.bf16.msra.mxu1 (!%p170_p3), %v1287_v1 }
   0xd   : > { %1170 = vmatprep.subr.bf16.mxu0 (!%p170_p3), %v1288_v2  ;;  %1248 = vmatprep.subr.bf16.mxu1 (!%p170_p3), %v1288_v2 }
   0xe   : > { %s1609_s18 = smov (!%p204_p4, %s1079_s18), 127 }
   0xf   : > { %s1080_s23 = sshll.u32 %s1609_s18, 2  ;;  %s1082_s12 = sshll.u32 %s1609_s18, 3 }
  0x10   : > { %s1403_s26 = scalar_lea.vmem %s1600_s0, %s1080_s23  ;;  %1171 = vmatpush3.bf16.msra.mxu0 %v1288_v2  ;;  %1256 = vmatpush3.bf16.msra.mxu1 %v1288_v2  ;;  %s1463_s19 = scalar_lea.vmem %s1603_s3, %s1082_s12 }
  0x11   : > { %v1294_v4 = vld [vmem:[%s1403_s26] sm:$0xff]   ;;  %1172 = vmatprep.subr.bf16.mxu0 %v1289_v3  ;;  %1249 = vmatprep.subr.bf16.mxu1 %v1289_v3  ;;  %v1296_v10 = vld [vmem:[%s1403_s26 + $0x8] sm:$0xff]   ;;  %v1298_v12 = vld [vmem:[%s1403_s26 + $0x10] sm:$0xff]  }
  0x12   : > { %v1295_v5 = vld [vmem:[%s1403_s26 + $0x80] sm:$0xff]   ;;  %1182 = vmatprep.mubr.bf16.mxu0 %v1294_v4  ;;  %v1297_v11 = vld [vmem:[%s1403_s26 + $0x88] sm:$0xff]   ;;  %v1299_v13 = vld [vmem:[%s1403_s26 + $0x90] sm:$0xff]  }
  0x13   : > { %1214 = vmatprep.mubr.bf16.mxu1 %v1295_v5  ;;  %v1300_v14 = vld [vmem:[%s1403_s26 + $0x18] sm:$0xff]   ;;  %v1302_v16 = vld [vmem:[%s1403_s26 + $0x20] sm:$0xff]   ;;  %v1304_v18 = vld [vmem:[%s1403_s26 + $0x28] sm:$0xff]  }
  0x14   : > { %1173 = vmatpush3.bf16.msra.mxu0 %v1289_v3  ;;  %1257 = vmatpush3.bf16.msra.mxu1 %v1289_v3  ;;  %v1301_v15 = vld [vmem:[%s1403_s26 + $0x98] sm:$0xff]   ;;  %v1303_v17 = vld [vmem:[%s1403_s26 + $0xa0] sm:$0xff]   ;;  %v1305_v19 = vld [vmem:[%s1403_s26 + $0xa8] sm:$0xff]  }
  0x15   : > { %1174 = vmatprep.subr.bf16.mxu0 %v1290_v6  ;;  %1250 = vmatprep.subr.bf16.mxu1 %v1290_v6  ;;  %v1306_v20 = vld [vmem:[%s1403_s26 + $0x30] sm:$0xff]   ;;  %v1308_v22 = vld [vmem:[%s1403_s26 + $0x38] sm:$0xff]   ;;  %v1310_v24 = vld [vmem:[%s1403_s26 + $0x40] sm:$0xff]  }
  0x16   : > { %v1307_v21 = vld [vmem:[%s1403_s26 + $0xb0] sm:$0xff]   ;;  %v1309_v23 = vld [vmem:[%s1403_s26 + $0xb8] sm:$0xff]   ;;  %v1311_v25 = vld [vmem:[%s1403_s26 + $0xc0] sm:$0xff]  }
  0x17   : > { %v1312_v26 = vld [vmem:[%s1403_s26 + $0x48] sm:$0xff]   ;;  %v1314_v28 = vld [vmem:[%s1403_s26 + $0x50] sm:$0xff]   ;;  %v1316_v30 = vld [vmem:[%s1403_s26 + $0x58] sm:$0xff]  }
  0x18   : > { %1175 = vmatpush3.bf16.msra.mxu0 %v1290_v6  ;;  %1258 = vmatpush3.bf16.msra.mxu1 %v1290_v6  ;;  %v1313_v27 = vld [vmem:[%s1403_s26 + $0xc8] sm:$0xff]   ;;  %v1315_v29 = vld [vmem:[%s1403_s26 + $0xd0] sm:$0xff]   ;;  %v1317_v31 = vld [vmem:[%s1403_s26 + $0xd8] sm:$0xff]  }
  0x19   : > { %1176 = vmatprep.subr.bf16.mxu0 %v1291_v7  ;;  %1251 = vmatprep.subr.bf16.mxu1 %v1291_v7  ;;  %v1318_v32 = vld [vmem:[%s1403_s26 + $0x60] sm:$0xff]   ;;  %v1320_v34 = vld [vmem:[%s1403_s26 + $0x68] sm:$0xff]   ;;  %v1322_v36 = vld [vmem:[%s1403_s26 + $0x70] sm:$0xff]  }
  0x1a   : > { %v1319_v33 = vld [vmem:[%s1403_s26 + $0xe0] sm:$0xff]   ;;  %v1321_v35 = vld [vmem:[%s1403_s26 + $0xe8] sm:$0xff]   ;;  %v1323_v37 = vld [vmem:[%s1403_s26 + $0xf0] sm:$0xff]  }
  0x1b   : > { %v1324_v38 = vld [vmem:[%s1403_s26 + $0x78] sm:$0xff]  }
  0x1c   : > { %1177 = vmatpush3.bf16.msra.mxu0 %v1291_v7  ;;  %1259 = vmatpush3.bf16.msra.mxu1 %v1291_v7  ;;  %v1325_v39 = vld [vmem:[%s1403_s26 + $0xf8] sm:$0xff]  }
  0x1d   : > { %1178 = vmatprep.subr.bf16.mxu0 %v1292_v8  ;;  %1252 = vmatprep.subr.bf16.mxu1 %v1292_v8 }
  0x20   : > { %1179 = vmatpush3.bf16.msra.mxu0 %v1292_v8  ;;  %1260 = vmatpush3.bf16.msra.mxu1 %v1292_v8 }
  0x21   : > { %1180 = vmatprep.subr.bf16.mxu0 %v1293_v9  ;;  %1253 = vmatprep.subr.bf16.mxu1 %v1293_v9 }
  0x24   : > { %1181 = vmatpush3.bf16.msra.mxu0 %v1293_v9  ;;  %1261 = vmatpush3.bf16.msra.mxu1 %v1293_v9 }
  0x27   : > { %1183 = vmatmul.mubr.bf16.vlgmr.msra.gmra.mrb[0].mxu0 %v1296_v10  ;;  %1215 = vmatmul.mubr.bf16.vlgmr.msra.gmra.mrb[0].mxu1 %v1297_v11 }
  0x28   : > { %1186 = vmatprep.mubr.bf16.mxu0 %v1298_v12  ;;  %1218 = vmatprep.mubr.bf16.mxu1 %v1299_v13 }
  0x2f   : > { %1187 = vmatmul.mubr.bf16.gmra.mrb[4].mxu0 %v1300_v14  ;;  %1219 = vmatmul.mubr.bf16.gmra.mrb[4].mxu1 %v1301_v15 }
  0x30   : > { %1190 = vmatprep.mubr.bf16.mxu0 %v1302_v16  ;;  %1222 = vmatprep.mubr.bf16.mxu1 %v1303_v17 }
  0x37   : > { %1191 = vmatmul.mubr.bf16.gmra.mrb[8].mxu0 %v1304_v18  ;;  %1223 = vmatmul.mubr.bf16.gmra.mrb[8].mxu1 %v1305_v19 }
  0x38   : > { %1194 = vmatprep.mubr.bf16.mxu0 %v1306_v20  ;;  %1226 = vmatprep.mubr.bf16.mxu1 %v1307_v21 }
  0x3f   : > { %1195 = vmatmul.mubr.bf16.gmra.mrb[12].mxu0 %v1308_v22  ;;  %1227 = vmatmul.mubr.bf16.gmra.mrb[12].mxu1 %v1309_v23 }
  0x40   : > { %1198 = vmatprep.mubr.bf16.mxu0 %v1310_v24  ;;  %1230 = vmatprep.mubr.bf16.mxu1 %v1311_v25 }
  0x47   : > { %1199 = vmatmul.mubr.bf16.gmra.mrb[16].mxu0 %v1312_v26  ;;  %1231 = vmatmul.mubr.bf16.gmra.mrb[16].mxu1 %v1313_v27 }
  0x48   : > { %1202 = vmatprep.mubr.bf16.mxu0 %v1314_v28  ;;  %1234 = vmatprep.mubr.bf16.mxu1 %v1315_v29 }
  0x4f   : > { %1203 = vmatmul.mubr.bf16.gmra.mrb[20].mxu0 %v1316_v30  ;;  %1235 = vmatmul.mubr.bf16.gmra.mrb[20].mxu1 %v1317_v31 }
  0x50   : > { %1206 = vmatprep.mubr.bf16.mxu0 %v1318_v32  ;;  %1238 = vmatprep.mubr.bf16.mxu1 %v1319_v33 }
  0x57   : > { %1207 = vmatmul.mubr.bf16.gmra.mrb[24].mxu0 %v1320_v34  ;;  %1239 = vmatmul.mubr.bf16.gmra.mrb[24].mxu1 %v1321_v35 }
  0x58   : > { %1210 = vmatprep.mubr.bf16.mxu0 %v1322_v36  ;;  %1242 = vmatprep.mubr.bf16.mxu1 %v1323_v37 }
  0x5f   : > { %1211 = vmatmul.mubr.bf16.gmra.mrb[28].mxu0 %v1324_v38  ;;  %1243 = vmatmul.mubr.bf16.gmra.mrb[28].mxu1 %v1325_v39 }
  0xfa   : > { %v1184_v41 = vpop.f32.mrb[0].mxu0  ;;  %v1216_v42 = vpop.f32.mrb[0].mxu1 }
  0xfb   : > { %v596_v43 = vadd.f32 %v1184_v41, %v1455_v40  ;;  %v724_v44 = vadd.f32 %v1216_v42, %v1455_v40  ;;  %v587_v45 = vpop.f32.mrb[1].mxu0  ;;  %v715_v46 = vpop.f32.mrb[1].mxu1 }
  0xfc   : > { %v588_v47 = vadd.f32 %v1455_v40, %v587_v45  ;;  %v716_v48 = vadd.f32 %v1455_v40, %v715_v46  ;;  %v1185_v49 = vpop.f32.mrb[2].mxu0  ;;  %v1217_v50 = vpop.f32.mrb[2].mxu1 }
  0xfd   : > { %v844_v51 = vmax.f32 %v596_v43, 0.0  ;;  %v876_v52 = vmax.f32 %v724_v44, 0.0  ;;  %v599_v53 = vadd.f32 %v1185_v49, %v1455_v40  ;;  %v727_v54 = vadd.f32 %v1217_v50, %v1455_v40  ;;  %v590_v55 = vpop.f32.mrb[3].mxu0  ;;  %v718_v56 = vpop.f32.mrb[3].mxu1 }
  0xfe   : > { %v842_v57 = vmax.f32 %v588_v47, 0.0  ;;  %v874_v58 = vmax.f32 %v716_v48, 0.0  ;;  %v591_v59 = vadd.f32 %v1455_v40, %v590_v55  ;;  %v719_v60 = vadd.f32 %v1455_v40, %v718_v56 }
  0xff   : > { %908 = vst [vmem:[%s1463_s19 + $0x10] sm:$0xff] %v844_v51  ;;  %940 = vst [vmem:[%s1463_s19 + $0x110] sm:$0xff] %v876_v52  ;;  %v845_v61 = vmax.f32 %v599_v53, 0.0  ;;  %v877_v62 = vmax.f32 %v727_v54, 0.0 }
 0x100   : > { %906 = vst [vmem:[%s1463_s19] sm:$0xff] %v842_v57  ;;  %938 = vst [vmem:[%s1463_s19 + $0x100] sm:$0xff] %v874_v58  ;;  %v843_v63 = vmax.f32 %v591_v59, 0.0  ;;  %v875_v0 = vmax.f32 %v719_v60, 0.0 }
 0x101   : > { %909 = vst [vmem:[%s1463_s19 + $0x18] sm:$0xff] %v845_v61  ;;  %941 = vst [vmem:[%s1463_s19 + $0x118] sm:$0xff] %v877_v62 }
 0x102   : > { %907 = vst [vmem:[%s1463_s19 + $0x8] sm:$0xff] %v843_v63  ;;  %939 = vst [vmem:[%s1463_s19 + $0x108] sm:$0xff] %v875_v0  ;;  %v1188_v1 = vpop.f32.mrb[4].mxu0  ;;  %v1220_v2 = vpop.f32.mrb[4].mxu1 }
 0x103   : > { %v612_v3 = vadd.f32 %v1188_v1, %v1455_v40  ;;  %v740_v4 = vadd.f32 %v1220_v2, %v1455_v40  ;;  %v603_v5 = vpop.f32.mrb[5].mxu0  ;;  %v731_v6 = vpop.f32.mrb[5].mxu1 }
 0x104   : > { %v604_v7 = vadd.f32 %v1455_v40, %v603_v5  ;;  %v732_v8 = vadd.f32 %v1455_v40, %v731_v6  ;;  %v1189_v9 = vpop.f32.mrb[6].mxu0  ;;  %v1221_v10 = vpop.f32.mrb[6].mxu1 }
 0x105   : > { %v848_v11 = vmax.f32 %v612_v3, 0.0  ;;  %v880_v12 = vmax.f32 %v740_v4, 0.0  ;;  %v615_v13 = vadd.f32 %v1189_v9, %v1455_v40  ;;  %v743_v14 = vadd.f32 %v1221_v10, %v1455_v40  ;;  %v606_v15 = vpop.f32.mrb[7].mxu0  ;;  %v734_v16 = vpop.f32.mrb[7].mxu1 }
 0x106   : > { %v846_v17 = vmax.f32 %v604_v7, 0.0  ;;  %v878_v18 = vmax.f32 %v732_v8, 0.0  ;;  %v607_v19 = vadd.f32 %v1455_v40, %v606_v15  ;;  %v735_v20 = vadd.f32 %v1455_v40, %v734_v16 }
 0x107   : > { %912 = vst [vmem:[%s1463_s19 + $0x30] sm:$0xff] %v848_v11  ;;  %944 = vst [vmem:[%s1463_s19 + $0x130] sm:$0xff] %v880_v12  ;;  %v849_v21 = vmax.f32 %v615_v13, 0.0  ;;  %v881_v22 = vmax.f32 %v743_v14, 0.0 }
 0x108   : > { %910 = vst [vmem:[%s1463_s19 + $0x20] sm:$0xff] %v846_v17  ;;  %942 = vst [vmem:[%s1463_s19 + $0x120] sm:$0xff] %v878_v18  ;;  %v847_v23 = vmax.f32 %v607_v19, 0.0  ;;  %v879_v24 = vmax.f32 %v735_v20, 0.0 }
 0x109   : > { %913 = vst [vmem:[%s1463_s19 + $0x38] sm:$0xff] %v849_v21  ;;  %945 = vst [vmem:[%s1463_s19 + $0x138] sm:$0xff] %v881_v22 }
 0x10a   : > { %911 = vst [vmem:[%s1463_s19 + $0x28] sm:$0xff] %v847_v23  ;;  %943 = vst [vmem:[%s1463_s19 + $0x128] sm:$0xff] %v879_v24  ;;  %v1192_v25 = vpop.f32.mrb[8].mxu0  ;;  %v1224_v26 = vpop.f32.mrb[8].mxu1 }
 0x10b   : > { %v628_v27 = vadd.f32 %v1192_v25, %v1455_v40  ;;  %v756_v28 = vadd.f32 %v1224_v26, %v1455_v40  ;;  %v619_v29 = vpop.f32.mrb[9].mxu0  ;;  %v747_v30 = vpop.f32.mrb[9].mxu1 }
 0x10c   : > { %v620_v31 = vadd.f32 %v1455_v40, %v619_v29  ;;  %v748_v32 = vadd.f32 %v1455_v40, %v747_v30  ;;  %v1193_v33 = vpop.f32.mrb[10].mxu0  ;;  %v1225_v34 = vpop.f32.mrb[10].mxu1 }
 0x10d   : > { %v852_v35 = vmax.f32 %v628_v27, 0.0  ;;  %v884_v36 = vmax.f32 %v756_v28, 0.0  ;;  %v631_v37 = vadd.f32 %v1193_v33, %v1455_v40  ;;  %v759_v38 = vadd.f32 %v1225_v34, %v1455_v40  ;;  %v622_v39 = vpop.f32.mrb[11].mxu0  ;;  %v750_v41 = vpop.f32.mrb[11].mxu1 }
 0x10e   : > { %v850_v42 = vmax.f32 %v620_v31, 0.0  ;;  %v882_v43 = vmax.f32 %v748_v32, 0.0  ;;  %v623_v44 = vadd.f32 %v1455_v40, %v622_v39  ;;  %v751_v45 = vadd.f32 %v1455_v40, %v750_v41 }
 0x10f   : > { %916 = vst [vmem:[%s1463_s19 + $0x50] sm:$0xff] %v852_v35  ;;  %948 = vst [vmem:[%s1463_s19 + $0x150] sm:$0xff] %v884_v36  ;;  %v853_v46 = vmax.f32 %v631_v37, 0.0  ;;  %v885_v47 = vmax.f32 %v759_v38, 0.0 }
 0x110   : > { %914 = vst [vmem:[%s1463_s19 + $0x40] sm:$0xff] %v850_v42  ;;  %946 = vst [vmem:[%s1463_s19 + $0x140] sm:$0xff] %v882_v43  ;;  %v851_v48 = vmax.f32 %v623_v44, 0.0  ;;  %v883_v49 = vmax.f32 %v751_v45, 0.0 }
 0x111   : > { %917 = vst [vmem:[%s1463_s19 + $0x58] sm:$0xff] %v853_v46  ;;  %949 = vst [vmem:[%s1463_s19 + $0x158] sm:$0xff] %v885_v47 }
 0x112   : > { %915 = vst [vmem:[%s1463_s19 + $0x48] sm:$0xff] %v851_v48  ;;  %947 = vst [vmem:[%s1463_s19 + $0x148] sm:$0xff] %v883_v49  ;;  %v1196_v50 = vpop.f32.mrb[12].mxu0  ;;  %v1228_v51 = vpop.f32.mrb[12].mxu1 }
 0x113   : > { %v644_v52 = vadd.f32 %v1196_v50, %v1455_v40  ;;  %v772_v53 = vadd.f32 %v1228_v51, %v1455_v40  ;;  %v635_v54 = vpop.f32.mrb[13].mxu0  ;;  %v763_v55 = vpop.f32.mrb[13].mxu1 }
 0x114   : > { %v636_v56 = vadd.f32 %v1455_v40, %v635_v54  ;;  %v764_v57 = vadd.f32 %v1455_v40, %v763_v55  ;;  %v1197_v58 = vpop.f32.mrb[14].mxu0  ;;  %v1229_v59 = vpop.f32.mrb[14].mxu1 }
 0x115   : > { %v856_v60 = vmax.f32 %v644_v52, 0.0  ;;  %v888_v61 = vmax.f32 %v772_v53, 0.0  ;;  %v647_v62 = vadd.f32 %v1197_v58, %v1455_v40  ;;  %v775_v63 = vadd.f32 %v1229_v59, %v1455_v40  ;;  %v638_v0 = vpop.f32.mrb[15].mxu0  ;;  %v766_v1 = vpop.f32.mrb[15].mxu1 }
 0x116   : > { %v854_v2 = vmax.f32 %v636_v56, 0.0  ;;  %v886_v3 = vmax.f32 %v764_v57, 0.0  ;;  %v639_v4 = vadd.f32 %v1455_v40, %v638_v0  ;;  %v767_v5 = vadd.f32 %v1455_v40, %v766_v1 }
 0x117   : > { %920 = vst [vmem:[%s1463_s19 + $0x70] sm:$0xff] %v856_v60  ;;  %952 = vst [vmem:[%s1463_s19 + $0x170] sm:$0xff] %v888_v61  ;;  %v857_v6 = vmax.f32 %v647_v62, 0.0  ;;  %v889_v7 = vmax.f32 %v775_v63, 0.0 }
 0x118   : > { %918 = vst [vmem:[%s1463_s19 + $0x60] sm:$0xff] %v854_v2  ;;  %950 = vst [vmem:[%s1463_s19 + $0x160] sm:$0xff] %v886_v3  ;;  %v855_v8 = vmax.f32 %v639_v4, 0.0  ;;  %v887_v9 = vmax.f32 %v767_v5, 0.0 }
 0x119   : > { %921 = vst [vmem:[%s1463_s19 + $0x78] sm:$0xff] %v857_v6  ;;  %953 = vst [vmem:[%s1463_s19 + $0x178] sm:$0xff] %v889_v7 }
 0x11a   : > { %919 = vst [vmem:[%s1463_s19 + $0x68] sm:$0xff] %v855_v8  ;;  %951 = vst [vmem:[%s1463_s19 + $0x168] sm:$0xff] %v887_v9  ;;  %v1200_v10 = vpop.f32.mrb[16].mxu0  ;;  %v1232_v11 = vpop.f32.mrb[16].mxu1 }
 0x11b   : > { %v660_v12 = vadd.f32 %v1200_v10, %v1455_v40  ;;  %v788_v13 = vadd.f32 %v1232_v11, %v1455_v40  ;;  %v651_v14 = vpop.f32.mrb[17].mxu0  ;;  %v779_v15 = vpop.f32.mrb[17].mxu1 }
 0x11c   : > { %v652_v16 = vadd.f32 %v1455_v40, %v651_v14  ;;  %v780_v17 = vadd.f32 %v1455_v40, %v779_v15  ;;  %v1201_v18 = vpop.f32.mrb[18].mxu0  ;;  %v1233_v19 = vpop.f32.mrb[18].mxu1 }
 0x11d   : > { %v860_v20 = vmax.f32 %v660_v12, 0.0  ;;  %v892_v21 = vmax.f32 %v788_v13, 0.0  ;;  %v663_v22 = vadd.f32 %v1201_v18, %v1455_v40  ;;  %v791_v23 = vadd.f32 %v1233_v19, %v1455_v40  ;;  %v654_v24 = vpop.f32.mrb[19].mxu0  ;;  %v782_v25 = vpop.f32.mrb[19].mxu1 }
 0x11e   : > { %v858_v26 = vmax.f32 %v652_v16, 0.0  ;;  %v890_v27 = vmax.f32 %v780_v17, 0.0  ;;  %v655_v28 = vadd.f32 %v1455_v40, %v654_v24  ;;  %v783_v29 = vadd.f32 %v1455_v40, %v782_v25 }
 0x11f   : > { %924 = vst [vmem:[%s1463_s19 + $0x90] sm:$0xff] %v860_v20  ;;  %956 = vst [vmem:[%s1463_s19 + $0x190] sm:$0xff] %v892_v21  ;;  %v861_v30 = vmax.f32 %v663_v22, 0.0  ;;  %v893_v31 = vmax.f32 %v791_v23, 0.0 }
 0x120   : > { %922 = vst [vmem:[%s1463_s19 + $0x80] sm:$0xff] %v858_v26  ;;  %954 = vst [vmem:[%s1463_s19 + $0x180] sm:$0xff] %v890_v27  ;;  %v859_v32 = vmax.f32 %v655_v28, 0.0  ;;  %v891_v33 = vmax.f32 %v783_v29, 0.0 }
 0x121   : > { %925 = vst [vmem:[%s1463_s19 + $0x98] sm:$0xff] %v861_v30  ;;  %957 = vst [vmem:[%s1463_s19 + $0x198] sm:$0xff] %v893_v31 }
 0x122   : > { %923 = vst [vmem:[%s1463_s19 + $0x88] sm:$0xff] %v859_v32  ;;  %955 = vst [vmem:[%s1463_s19 + $0x188] sm:$0xff] %v891_v33  ;;  %v1204_v34 = vpop.f32.mrb[20].mxu0  ;;  %v1236_v35 = vpop.f32.mrb[20].mxu1 }
 0x123   : > { %v676_v36 = vadd.f32 %v1204_v34, %v1455_v40  ;;  %v804_v37 = vadd.f32 %v1236_v35, %v1455_v40  ;;  %v667_v38 = vpop.f32.mrb[21].mxu0  ;;  %v795_v39 = vpop.f32.mrb[21].mxu1 }
 0x124   : > { %v668_v41 = vadd.f32 %v1455_v40, %v667_v38  ;;  %v796_v42 = vadd.f32 %v1455_v40, %v795_v39  ;;  %v1205_v43 = vpop.f32.mrb[22].mxu0  ;;  %v1237_v44 = vpop.f32.mrb[22].mxu1 }
 0x125   : > { %v864_v45 = vmax.f32 %v676_v36, 0.0  ;;  %v896_v46 = vmax.f32 %v804_v37, 0.0  ;;  %v679_v47 = vadd.f32 %v1205_v43, %v1455_v40  ;;  %v807_v48 = vadd.f32 %v1237_v44, %v1455_v40  ;;  %v670_v49 = vpop.f32.mrb[23].mxu0  ;;  %v798_v50 = vpop.f32.mrb[23].mxu1 }
 0x126   : > { %v862_v51 = vmax.f32 %v668_v41, 0.0  ;;  %v894_v52 = vmax.f32 %v796_v42, 0.0  ;;  %v671_v53 = vadd.f32 %v1455_v40, %v670_v49  ;;  %v799_v54 = vadd.f32 %v1455_v40, %v798_v50 }
 0x127   : > { %928 = vst [vmem:[%s1463_s19 + $0xb0] sm:$0xff] %v864_v45  ;;  %960 = vst [vmem:[%s1463_s19 + $0x1b0] sm:$0xff] %v896_v46  ;;  %v865_v55 = vmax.f32 %v679_v47, 0.0  ;;  %v897_v56 = vmax.f32 %v807_v48, 0.0 }
 0x128   : > { %926 = vst [vmem:[%s1463_s19 + $0xa0] sm:$0xff] %v862_v51  ;;  %958 = vst [vmem:[%s1463_s19 + $0x1a0] sm:$0xff] %v894_v52  ;;  %v863_v57 = vmax.f32 %v671_v53, 0.0  ;;  %v895_v58 = vmax.f32 %v799_v54, 0.0 }
 0x129   : > { %929 = vst [vmem:[%s1463_s19 + $0xb8] sm:$0xff] %v865_v55  ;;  %961 = vst [vmem:[%s1463_s19 + $0x1b8] sm:$0xff] %v897_v56 }
 0x12a   : > { %927 = vst [vmem:[%s1463_s19 + $0xa8] sm:$0xff] %v863_v57  ;;  %959 = vst [vmem:[%s1463_s19 + $0x1a8] sm:$0xff] %v895_v58  ;;  %v1208_v59 = vpop.f32.mrb[24].mxu0  ;;  %v1240_v60 = vpop.f32.mrb[24].mxu1 }
 0x12b   : > { %v692_v61 = vadd.f32 %v1208_v59, %v1455_v40  ;;  %v820_v62 = vadd.f32 %v1240_v60, %v1455_v40  ;;  %v683_v63 = vpop.f32.mrb[25].mxu0  ;;  %v811_v0 = vpop.f32.mrb[25].mxu1 }
 0x12c   : > { %v684_v1 = vadd.f32 %v1455_v40, %v683_v63  ;;  %v812_v2 = vadd.f32 %v1455_v40, %v811_v0  ;;  %v1209_v3 = vpop.f32.mrb[26].mxu0  ;;  %v1241_v4 = vpop.f32.mrb[26].mxu1 }
 0x12d   : > { %v868_v5 = vmax.f32 %v692_v61, 0.0  ;;  %v900_v6 = vmax.f32 %v820_v62, 0.0  ;;  %v695_v7 = vadd.f32 %v1209_v3, %v1455_v40  ;;  %v823_v8 = vadd.f32 %v1241_v4, %v1455_v40  ;;  %v686_v9 = vpop.f32.mrb[27].mxu0  ;;  %v814_v10 = vpop.f32.mrb[27].mxu1 }
 0x12e   : > { %v866_v11 = vmax.f32 %v684_v1, 0.0  ;;  %v898_v12 = vmax.f32 %v812_v2, 0.0  ;;  %v687_v13 = vadd.f32 %v1455_v40, %v686_v9  ;;  %v815_v14 = vadd.f32 %v1455_v40, %v814_v10 }
 0x12f   : > { %932 = vst [vmem:[%s1463_s19 + $0xd0] sm:$0xff] %v868_v5  ;;  %964 = vst [vmem:[%s1463_s19 + $0x1d0] sm:$0xff] %v900_v6  ;;  %v869_v15 = vmax.f32 %v695_v7, 0.0  ;;  %v901_v16 = vmax.f32 %v823_v8, 0.0 }
 0x130   : > { %930 = vst [vmem:[%s1463_s19 + $0xc0] sm:$0xff] %v866_v11  ;;  %962 = vst [vmem:[%s1463_s19 + $0x1c0] sm:$0xff] %v898_v12  ;;  %v867_v17 = vmax.f32 %v687_v13, 0.0  ;;  %v899_v18 = vmax.f32 %v815_v14, 0.0 }
 0x131   : > { %933 = vst [vmem:[%s1463_s19 + $0xd8] sm:$0xff] %v869_v15  ;;  %965 = vst [vmem:[%s1463_s19 + $0x1d8] sm:$0xff] %v901_v16 }
 0x132   : > { %931 = vst [vmem:[%s1463_s19 + $0xc8] sm:$0xff] %v867_v17  ;;  %963 = vst [vmem:[%s1463_s19 + $0x1c8] sm:$0xff] %v899_v18  ;;  %v1212_v19 = vpop.f32.mrb[28].mxu0  ;;  %v1244_v20 = vpop.f32.mrb[28].mxu1 }
 0x133   : > { %v708_v21 = vadd.f32 %v1212_v19, %v1455_v40  ;;  %v836_v22 = vadd.f32 %v1244_v20, %v1455_v40  ;;  %v699_v23 = vpop.f32.mrb[29].mxu0  ;;  %v827_v24 = vpop.f32.mrb[29].mxu1 }
 0x134   : > { %v700_v25 = vadd.f32 %v1455_v40, %v699_v23  ;;  %v828_v26 = vadd.f32 %v1455_v40, %v827_v24  ;;  %v1213_v27 = vpop.f32.mrb[30].mxu0  ;;  %v1245_v28 = vpop.f32.mrb[30].mxu1 }
 0x135   : > { %v872_v29 = vmax.f32 %v708_v21, 0.0  ;;  %v904_v30 = vmax.f32 %v836_v22, 0.0  ;;  %v711_v31 = vadd.f32 %v1213_v27, %v1455_v40  ;;  %v839_v32 = vadd.f32 %v1245_v28, %v1455_v40  ;;  %v702_v33 = vpop.f32.mrb[31].mxu0  ;;  %v830_v34 = vpop.f32.mrb[31].mxu1 }
 0x136   : > { %v870_v35 = vmax.f32 %v700_v25, 0.0  ;;  %v902_v36 = vmax.f32 %v828_v26, 0.0  ;;  %v703_v37 = vadd.f32 %v1455_v40, %v702_v33  ;;  %v831_v38 = vadd.f32 %v1455_v40, %v830_v34 }
 0x137   : > { %936 = vst [vmem:[%s1463_s19 + $0xf0] sm:$0xff] %v872_v29  ;;  %968 = vst [vmem:[%s1463_s19 + $0x1f0] sm:$0xff] %v904_v30  ;;  %v873_v39 = vmax.f32 %v711_v31, 0.0  ;;  %v905_v41 = vmax.f32 %v839_v32, 0.0 }
 0x138   : > { %934 = vst [vmem:[%s1463_s19 + $0xe0] sm:$0xff] %v870_v35  ;;  %966 = vst [vmem:[%s1463_s19 + $0x1e0] sm:$0xff] %v902_v36  ;;  %v871_v42 = vmax.f32 %v703_v37, 0.0  ;;  %v903_v43 = vmax.f32 %v831_v38, 0.0 }
 0x139   : > { %937 = vst [vmem:[%s1463_s19 + $0xf8] sm:$0xff] %v873_v39  ;;  %969 = vst [vmem:[%s1463_s19 + $0x1f8] sm:$0xff] %v905_v41 }
 0x13a   : > { %935 = vst [vmem:[%s1463_s19 + $0xe8] sm:$0xff] %v871_v42  ;;  %967 = vst [vmem:[%s1463_s19 + $0x1e8] sm:$0xff] %v903_v43 }
 0x13b PF: > { %s13_s14 = sadd.s32 1, %s1348_s14   ;;  %s1604_s12 = smov %s1344_s13 }
 0x13c   : > { %p10_p5 = scmp.ge.s32.totalorder %s13_s14, 4   ;;  %s1605_s13 = smov %s1607_s15 }
 0x13e   :  { %12 = sbr.rel (!%p10_p5) target bundleno = 2 (0x2), region = 68 }

// kernel: _lambda_.77
= control target key start
LH: loop header
LB: loop body
LE: loop exit
PB: predicated region body
PF: predicated region fallthrough
CT: control target
= control target key end

     0   :  { %s1306_s12 = smov 0   ;;  %s1308_s13 = smov 0   ;;  %s1536_s0 = inlined_call_operand.vmem [shape: bf16[1024,128], index: 0, kind: input, shape index: {}]   ;;  %s1537_s1 = inlined_call_operand.vmem [shape: bf16[128,128], index: 1, kind: input, shape index: {}]   ;;  %s1538_s2 = inlined_call_operand.vmem [shape: f32[1,128], index: 2, kind: input, shape index: {}]   ;;  %s1539_s3 = inlined_call_operand.vmem [shape: f32[1024,128], index: 3, kind: output, shape index: {}]  }
   0x1   :  { %s1310_s14 = smov 0  }
   0x2 LB: > { %s25_s15 = sadd.s32 1, %s1280_s13  ;;  %p1014_p0 = scmp.ge.s32.totalorder %s1284_s14, 1  ;;  %s1284_s14 = sphi %s1310_s14, %s13_s14   ;;  %s1280_s13 = sphi %s1308_s13, %s1541_s13   ;;  %s1276_s12 = sphi %s1306_s12, %s1540_s12  }
   0x3   : > { %p27_p1 = scmp.ge.s32.totalorder %s25_s15, 2  ;;  %p169_p2 = scmp.lt.s32.totalorder %s1284_s14, 3 }
   0x5   : > { %s1543_s15 = smov (%p27_p1, %s25_s15), 0  ;;  %p170_p3 = pnand %p1014_p0, %p169_p2 }
   0x6   : > { %v1222_v0 = vld [vmem:[%s1537_s1] sm:$0xff] (!%p170_p3)   ;;  %s1015_s18 = sshll.u32 (!%p170_p3), %s1276_s12, 6  ;;  %v1223_v1 = vld [vmem:[%s1537_s1 + $0x8] sm:$0xff] (!%p170_p3)   ;;  %v1224_v2 = vld [vmem:[%s1537_s1 + $0x10] sm:$0xff] (!%p170_p3)  }
   0x7   : > { %173 = sbr.rel (%p170_p3) target bundleno = 313 (0x139), region = 32  ;;  %p204_p4 = scmp.lt.s32.totalorder (!%p170_p3), %s1015_s18, 127  ;;  %1102 = vmatprep.subr.bf16.mxu0 (!%p170_p3), %v1222_v0  ;;  %1182 = vmatprep.subr.bf16.mxu1 (!%p170_p3), %v1222_v0  ;;  %v1225_v3 = vld [vmem:[%s1537_s1 + $0x18] sm:$0xff] (!%p170_p3)   ;;  %v1226_v6 = vld [vmem:[%s1537_s1 + $0x20] sm:$0xff] (!%p170_p3)   ;;  %v1227_v7 = vld [vmem:[%s1537_s1 + $0x28] sm:$0xff] (!%p170_p3)  }
   0x8   : > { %1103 = vmatpush3.bf16.msra.mxu0 (!%p170_p3), %v1222_v0  ;;  %1190 = vmatpush3.bf16.msra.mxu1 (!%p170_p3), %v1222_v0  ;;  %v1228_v8 = vld [vmem:[%s1537_s1 + $0x30] sm:$0xff] (!%p170_p3)   ;;  %v1229_v9 = vld [vmem:[%s1537_s1 + $0x38] sm:$0xff] (!%p170_p3)   ;;  %v1392_v40 = vld [vmem:[%s1538_s2] ss:$0 sm:$0xff] (!%p170_p3) }
   0x9   : > { %1104 = vmatprep.subr.bf16.mxu0 (!%p170_p3), %v1223_v1  ;;  %1183 = vmatprep.subr.bf16.mxu1 (!%p170_p3), %v1223_v1 }
   0xc   : > { %1105 = vmatpush3.bf16.msra.mxu0 (!%p170_p3), %v1223_v1  ;;  %1191 = vmatpush3.bf16.msra.mxu1 (!%p170_p3), %v1223_v1 }
   0xd   : > { %1106 = vmatprep.subr.bf16.mxu0 (!%p170_p3), %v1224_v2  ;;  %1184 = vmatprep.subr.bf16.mxu1 (!%p170_p3), %v1224_v2 }
   0xe   : > { %s1545_s18 = smov (!%p204_p4, %s1015_s18), 127 }
   0xf   : > { %s1016_s23 = sshll.u32 %s1545_s18, 2  ;;  %s1018_s10 = sshll.u32 %s1545_s18, 3 }
  0x10   : > { %s1339_s26 = scalar_lea.vmem %s1536_s0, %s1016_s23  ;;  %1107 = vmatpush3.bf16.msra.mxu0 %v1224_v2  ;;  %1192 = vmatpush3.bf16.msra.mxu1 %v1224_v2  ;;  %s1397_s19 = scalar_lea.vmem %s1539_s3, %s1018_s10 }
  0x11   : > { %v1230_v4 = vld [vmem:[%s1339_s26] sm:$0xff]   ;;  %1108 = vmatprep.subr.bf16.mxu0 %v1225_v3  ;;  %1185 = vmatprep.subr.bf16.mxu1 %v1225_v3  ;;  %v1232_v10 = vld [vmem:[%s1339_s26 + $0x8] sm:$0xff]   ;;  %v1234_v12 = vld [vmem:[%s1339_s26 + $0x10] sm:$0xff]  }
  0x12   : > { %v1231_v5 = vld [vmem:[%s1339_s26 + $0x80] sm:$0xff]   ;;  %1118 = vmatprep.mubr.bf16.mxu0 %v1230_v4  ;;  %v1233_v11 = vld [vmem:[%s1339_s26 + $0x88] sm:$0xff]   ;;  %v1235_v13 = vld [vmem:[%s1339_s26 + $0x90] sm:$0xff]  }
  0x13   : > { %1150 = vmatprep.mubr.bf16.mxu1 %v1231_v5  ;;  %v1236_v14 = vld [vmem:[%s1339_s26 + $0x18] sm:$0xff]   ;;  %v1238_v16 = vld [vmem:[%s1339_s26 + $0x20] sm:$0xff]   ;;  %v1240_v18 = vld [vmem:[%s1339_s26 + $0x28] sm:$0xff]  }
  0x14   : > { %1109 = vmatpush3.bf16.msra.mxu0 %v1225_v3  ;;  %1193 = vmatpush3.bf16.msra.mxu1 %v1225_v3  ;;  %v1237_v15 = vld [vmem:[%s1339_s26 + $0x98] sm:$0xff]   ;;  %v1239_v17 = vld [vmem:[%s1339_s26 + $0xa0] sm:$0xff]   ;;  %v1241_v19 = vld [vmem:[%s1339_s26 + $0xa8] sm:$0xff]  }
  0x15   : > { %1110 = vmatprep.subr.bf16.mxu0 %v1226_v6  ;;  %1186 = vmatprep.subr.bf16.mxu1 %v1226_v6  ;;  %v1242_v20 = vld [vmem:[%s1339_s26 + $0x30] sm:$0xff]   ;;  %v1244_v22 = vld [vmem:[%s1339_s26 + $0x38] sm:$0xff]   ;;  %v1246_v24 = vld [vmem:[%s1339_s26 + $0x40] sm:$0xff]  }
  0x16   : > { %v1243_v21 = vld [vmem:[%s1339_s26 + $0xb0] sm:$0xff]   ;;  %v1245_v23 = vld [vmem:[%s1339_s26 + $0xb8] sm:$0xff]   ;;  %v1247_v25 = vld [vmem:[%s1339_s26 + $0xc0] sm:$0xff]  }
  0x17   : > { %v1248_v26 = vld [vmem:[%s1339_s26 + $0x48] sm:$0xff]   ;;  %v1250_v28 = vld [vmem:[%s1339_s26 + $0x50] sm:$0xff]   ;;  %v1252_v30 = vld [vmem:[%s1339_s26 + $0x58] sm:$0xff]  }
  0x18   : > { %1111 = vmatpush3.bf16.msra.mxu0 %v1226_v6  ;;  %1194 = vmatpush3.bf16.msra.mxu1 %v1226_v6  ;;  %v1249_v27 = vld [vmem:[%s1339_s26 + $0xc8] sm:$0xff]   ;;  %v1251_v29 = vld [vmem:[%s1339_s26 + $0xd0] sm:$0xff]   ;;  %v1253_v31 = vld [vmem:[%s1339_s26 + $0xd8] sm:$0xff]  }
  0x19   : > { %1112 = vmatprep.subr.bf16.mxu0 %v1227_v7  ;;  %1187 = vmatprep.subr.bf16.mxu1 %v1227_v7  ;;  %v1254_v32 = vld [vmem:[%s1339_s26 + $0x60] sm:$0xff]   ;;  %v1256_v34 = vld [vmem:[%s1339_s26 + $0x68] sm:$0xff]   ;;  %v1258_v36 = vld [vmem:[%s1339_s26 + $0x70] sm:$0xff]  }
  0x1a   : > { %v1255_v33 = vld [vmem:[%s1339_s26 + $0xe0] sm:$0xff]   ;;  %v1257_v35 = vld [vmem:[%s1339_s26 + $0xe8] sm:$0xff]   ;;  %v1259_v37 = vld [vmem:[%s1339_s26 + $0xf0] sm:$0xff]  }
  0x1b   : > { %v1260_v38 = vld [vmem:[%s1339_s26 + $0x78] sm:$0xff]  }
  0x1c   : > { %1113 = vmatpush3.bf16.msra.mxu0 %v1227_v7  ;;  %1195 = vmatpush3.bf16.msra.mxu1 %v1227_v7  ;;  %v1261_v39 = vld [vmem:[%s1339_s26 + $0xf8] sm:$0xff]  }
  0x1d   : > { %1114 = vmatprep.subr.bf16.mxu0 %v1228_v8  ;;  %1188 = vmatprep.subr.bf16.mxu1 %v1228_v8 }
  0x20   : > { %1115 = vmatpush3.bf16.msra.mxu0 %v1228_v8  ;;  %1196 = vmatpush3.bf16.msra.mxu1 %v1228_v8 }
  0x21   : > { %1116 = vmatprep.subr.bf16.mxu0 %v1229_v9  ;;  %1189 = vmatprep.subr.bf16.mxu1 %v1229_v9 }
  0x24   : > { %1117 = vmatpush3.bf16.msra.mxu0 %v1229_v9  ;;  %1197 = vmatpush3.bf16.msra.mxu1 %v1229_v9 }
  0x27   : > { %1119 = vmatmul.mubr.bf16.vlgmr.msra.gmra.mrb[0].mxu0 %v1232_v10  ;;  %1151 = vmatmul.mubr.bf16.vlgmr.msra.gmra.mrb[0].mxu1 %v1233_v11 }
  0x28   : > { %1122 = vmatprep.mubr.bf16.mxu0 %v1234_v12  ;;  %1154 = vmatprep.mubr.bf16.mxu1 %v1235_v13 }
  0x2f   : > { %1123 = vmatmul.mubr.bf16.gmra.mrb[4].mxu0 %v1236_v14  ;;  %1155 = vmatmul.mubr.bf16.gmra.mrb[4].mxu1 %v1237_v15 }
  0x30   : > { %1126 = vmatprep.mubr.bf16.mxu0 %v1238_v16  ;;  %1158 = vmatprep.mubr.bf16.mxu1 %v1239_v17 }
  0x37   : > { %1127 = vmatmul.mubr.bf16.gmra.mrb[8].mxu0 %v1240_v18  ;;  %1159 = vmatmul.mubr.bf16.gmra.mrb[8].mxu1 %v1241_v19 }
  0x38   : > { %1130 = vmatprep.mubr.bf16.mxu0 %v1242_v20  ;;  %1162 = vmatprep.mubr.bf16.mxu1 %v1243_v21 }
  0x3f   : > { %1131 = vmatmul.mubr.bf16.gmra.mrb[12].mxu0 %v1244_v22  ;;  %1163 = vmatmul.mubr.bf16.gmra.mrb[12].mxu1 %v1245_v23 }
  0x40   : > { %1134 = vmatprep.mubr.bf16.mxu0 %v1246_v24  ;;  %1166 = vmatprep.mubr.bf16.mxu1 %v1247_v25 }
  0x47   : > { %1135 = vmatmul.mubr.bf16.gmra.mrb[16].mxu0 %v1248_v26  ;;  %1167 = vmatmul.mubr.bf16.gmra.mrb[16].mxu1 %v1249_v27 }
  0x48   : > { %1138 = vmatprep.mubr.bf16.mxu0 %v1250_v28  ;;  %1170 = vmatprep.mubr.bf16.mxu1 %v1251_v29 }
  0x4f   : > { %1139 = vmatmul.mubr.bf16.gmra.mrb[20].mxu0 %v1252_v30  ;;  %1171 = vmatmul.mubr.bf16.gmra.mrb[20].mxu1 %v1253_v31 }
  0x50   : > { %1142 = vmatprep.mubr.bf16.mxu0 %v1254_v32  ;;  %1174 = vmatprep.mubr.bf16.mxu1 %v1255_v33 }
  0x57   : > { %1143 = vmatmul.mubr.bf16.gmra.mrb[24].mxu0 %v1256_v34  ;;  %1175 = vmatmul.mubr.bf16.gmra.mrb[24].mxu1 %v1257_v35 }
  0x58   : > { %1146 = vmatprep.mubr.bf16.mxu0 %v1258_v36  ;;  %1178 = vmatprep.mubr.bf16.mxu1 %v1259_v37 }
  0x5f   : > { %1147 = vmatmul.mubr.bf16.gmra.mrb[28].mxu0 %v1260_v38  ;;  %1179 = vmatmul.mubr.bf16.gmra.mrb[28].mxu1 %v1261_v39 }
  0xfa   : > { %v1120_v41 = vpop.f32.mrb[0].mxu0  ;;  %v1152_v42 = vpop.f32.mrb[0].mxu1 }
  0xfb   : > { %v596_v43 = vadd.f32 %v1120_v41, %v1392_v40  ;;  %v724_v44 = vadd.f32 %v1152_v42, %v1392_v40  ;;  %v587_v45 = vpop.f32.mrb[1].mxu0  ;;  %v715_v46 = vpop.f32.mrb[1].mxu1 }
  0xfc   : > { %v588_v47 = vadd.f32 %v1392_v40, %v587_v45  ;;  %v716_v48 = vadd.f32 %v1392_v40, %v715_v46  ;;  %v1121_v49 = vpop.f32.mrb[2].mxu0  ;;  %v1153_v50 = vpop.f32.mrb[2].mxu1 }
  0xfd   : > { %844 = vst [vmem:[%s1397_s19 + $0x10] sm:$0xff] %v596_v43  ;;  %876 = vst [vmem:[%s1397_s19 + $0x110] sm:$0xff] %v724_v44  ;;  %v599_v51 = vadd.f32 %v1121_v49, %v1392_v40  ;;  %v727_v52 = vadd.f32 %v1153_v50, %v1392_v40  ;;  %v590_v53 = vpop.f32.mrb[3].mxu0  ;;  %v718_v54 = vpop.f32.mrb[3].mxu1 }
  0xfe   : > { %842 = vst [vmem:[%s1397_s19] sm:$0xff] %v588_v47  ;;  %874 = vst [vmem:[%s1397_s19 + $0x100] sm:$0xff] %v716_v48  ;;  %v591_v55 = vadd.f32 %v1392_v40, %v590_v53  ;;  %v719_v56 = vadd.f32 %v1392_v40, %v718_v54 }
  0xff   : > { %845 = vst [vmem:[%s1397_s19 + $0x18] sm:$0xff] %v599_v51  ;;  %877 = vst [vmem:[%s1397_s19 + $0x118] sm:$0xff] %v727_v52 }
 0x100   : > { %843 = vst [vmem:[%s1397_s19 + $0x8] sm:$0xff] %v591_v55  ;;  %875 = vst [vmem:[%s1397_s19 + $0x108] sm:$0xff] %v719_v56 }
 0x102   : > { %v1124_v57 = vpop.f32.mrb[4].mxu0  ;;  %v1156_v58 = vpop.f32.mrb[4].mxu1 }
 0x103   : > { %v612_v59 = vadd.f32 %v1124_v57, %v1392_v40  ;;  %v740_v60 = vadd.f32 %v1156_v58, %v1392_v40  ;;  %v603_v61 = vpop.f32.mrb[5].mxu0  ;;  %v731_v62 = vpop.f32.mrb[5].mxu1 }
 0x104   : > { %v604_v63 = vadd.f32 %v1392_v40, %v603_v61  ;;  %v732_v0 = vadd.f32 %v1392_v40, %v731_v62  ;;  %v1125_v1 = vpop.f32.mrb[6].mxu0  ;;  %v1157_v2 = vpop.f32.mrb[6].mxu1 }
 0x105   : > { %848 = vst [vmem:[%s1397_s19 + $0x30] sm:$0xff] %v612_v59  ;;  %880 = vst [vmem:[%s1397_s19 + $0x130] sm:$0xff] %v740_v60  ;;  %v615_v3 = vadd.f32 %v1125_v1, %v1392_v40  ;;  %v743_v4 = vadd.f32 %v1157_v2, %v1392_v40  ;;  %v606_v5 = vpop.f32.mrb[7].mxu0  ;;  %v734_v6 = vpop.f32.mrb[7].mxu1 }
 0x106   : > { %846 = vst [vmem:[%s1397_s19 + $0x20] sm:$0xff] %v604_v63  ;;  %878 = vst [vmem:[%s1397_s19 + $0x120] sm:$0xff] %v732_v0  ;;  %v607_v7 = vadd.f32 %v1392_v40, %v606_v5  ;;  %v735_v8 = vadd.f32 %v1392_v40, %v734_v6 }
 0x107   : > { %849 = vst [vmem:[%s1397_s19 + $0x38] sm:$0xff] %v615_v3  ;;  %881 = vst [vmem:[%s1397_s19 + $0x138] sm:$0xff] %v743_v4 }
 0x108   : > { %847 = vst [vmem:[%s1397_s19 + $0x28] sm:$0xff] %v607_v7  ;;  %879 = vst [vmem:[%s1397_s19 + $0x128] sm:$0xff] %v735_v8 }
 0x10a   : > { %v1128_v9 = vpop.f32.mrb[8].mxu0  ;;  %v1160_v10 = vpop.f32.mrb[8].mxu1 }
 0x10b   : > { %v628_v11 = vadd.f32 %v1128_v9, %v1392_v40  ;;  %v756_v12 = vadd.f32 %v1160_v10, %v1392_v40  ;;  %v619_v13 = vpop.f32.mrb[9].mxu0  ;;  %v747_v14 = vpop.f32.mrb[9].mxu1 }
 0x10c   : > { %v620_v15 = vadd.f32 %v1392_v40, %v619_v13  ;;  %v748_v16 = vadd.f32 %v1392_v40, %v747_v14  ;;  %v1129_v17 = vpop.f32.mrb[10].mxu0  ;;  %v1161_v18 = vpop.f32.mrb[10].mxu1 }
 0x10d   : > { %852 = vst [vmem:[%s1397_s19 + $0x50] sm:$0xff] %v628_v11  ;;  %884 = vst [vmem:[%s1397_s19 + $0x150] sm:$0xff] %v756_v12  ;;  %v631_v19 = vadd.f32 %v1129_v17, %v1392_v40  ;;  %v759_v20 = vadd.f32 %v1161_v18, %v1392_v40  ;;  %v622_v21 = vpop.f32.mrb[11].mxu0  ;;  %v750_v22 = vpop.f32.mrb[11].mxu1 }
 0x10e   : > { %850 = vst [vmem:[%s1397_s19 + $0x40] sm:$0xff] %v620_v15  ;;  %882 = vst [vmem:[%s1397_s19 + $0x140] sm:$0xff] %v748_v16  ;;  %v623_v23 = vadd.f32 %v1392_v40, %v622_v21  ;;  %v751_v24 = vadd.f32 %v1392_v40, %v750_v22 }
 0x10f   : > { %853 = vst [vmem:[%s1397_s19 + $0x58] sm:$0xff] %v631_v19  ;;  %885 = vst [vmem:[%s1397_s19 + $0x158] sm:$0xff] %v759_v20 }
 0x110   : > { %851 = vst [vmem:[%s1397_s19 + $0x48] sm:$0xff] %v623_v23  ;;  %883 = vst [vmem:[%s1397_s19 + $0x148] sm:$0xff] %v751_v24 }
 0x112   : > { %v1132_v25 = vpop.f32.mrb[12].mxu0  ;;  %v1164_v26 = vpop.f32.mrb[12].mxu1 }
 0x113   : > { %v644_v27 = vadd.f32 %v1132_v25, %v1392_v40  ;;  %v772_v28 = vadd.f32 %v1164_v26, %v1392_v40  ;;  %v635_v29 = vpop.f32.mrb[13].mxu0  ;;  %v763_v30 = vpop.f32.mrb[13].mxu1 }
 0x114   : > { %v636_v31 = vadd.f32 %v1392_v40, %v635_v29  ;;  %v764_v32 = vadd.f32 %v1392_v40, %v763_v30  ;;  %v1133_v33 = vpop.f32.mrb[14].mxu0  ;;  %v1165_v34 = vpop.f32.mrb[14].mxu1 }
 0x115   : > { %856 = vst [vmem:[%s1397_s19 + $0x70] sm:$0xff] %v644_v27  ;;  %888 = vst [vmem:[%s1397_s19 + $0x170] sm:$0xff] %v772_v28  ;;  %v647_v35 = vadd.f32 %v1133_v33, %v1392_v40  ;;  %v775_v36 = vadd.f32 %v1165_v34, %v1392_v40  ;;  %v638_v37 = vpop.f32.mrb[15].mxu0  ;;  %v766_v38 = vpop.f32.mrb[15].mxu1 }
 0x116   : > { %854 = vst [vmem:[%s1397_s19 + $0x60] sm:$0xff] %v636_v31  ;;  %886 = vst [vmem:[%s1397_s19 + $0x160] sm:$0xff] %v764_v32  ;;  %v639_v39 = vadd.f32 %v1392_v40, %v638_v37  ;;  %v767_v41 = vadd.f32 %v1392_v40, %v766_v38 }
 0x117   : > { %857 = vst [vmem:[%s1397_s19 + $0x78] sm:$0xff] %v647_v35  ;;  %889 = vst [vmem:[%s1397_s19 + $0x178] sm:$0xff] %v775_v36 }
 0x118   : > { %855 = vst [vmem:[%s1397_s19 + $0x68] sm:$0xff] %v639_v39  ;;  %887 = vst [vmem:[%s1397_s19 + $0x168] sm:$0xff] %v767_v41 }
 0x11a   : > { %v1136_v42 = vpop.f32.mrb[16].mxu0  ;;  %v1168_v43 = vpop.f32.mrb[16].mxu1 }
 0x11b   : > { %v660_v44 = vadd.f32 %v1136_v42, %v1392_v40  ;;  %v788_v45 = vadd.f32 %v1168_v43, %v1392_v40  ;;  %v651_v46 = vpop.f32.mrb[17].mxu0  ;;  %v779_v47 = vpop.f32.mrb[17].mxu1 }
 0x11c   : > { %v652_v48 = vadd.f32 %v1392_v40, %v651_v46  ;;  %v780_v49 = vadd.f32 %v1392_v40, %v779_v47  ;;  %v1137_v50 = vpop.f32.mrb[18].mxu0  ;;  %v1169_v51 = vpop.f32.mrb[18].mxu1 }
 0x11d   : > { %860 = vst [vmem:[%s1397_s19 + $0x90] sm:$0xff] %v660_v44  ;;  %892 = vst [vmem:[%s1397_s19 + $0x190] sm:$0xff] %v788_v45  ;;  %v663_v52 = vadd.f32 %v1137_v50, %v1392_v40  ;;  %v791_v53 = vadd.f32 %v1169_v51, %v1392_v40  ;;  %v654_v54 = vpop.f32.mrb[19].mxu0  ;;  %v782_v55 = vpop.f32.mrb[19].mxu1 }
 0x11e   : > { %858 = vst [vmem:[%s1397_s19 + $0x80] sm:$0xff] %v652_v48  ;;  %890 = vst [vmem:[%s1397_s19 + $0x180] sm:$0xff] %v780_v49  ;;  %v655_v56 = vadd.f32 %v1392_v40, %v654_v54  ;;  %v783_v57 = vadd.f32 %v1392_v40, %v782_v55 }
 0x11f   : > { %861 = vst [vmem:[%s1397_s19 + $0x98] sm:$0xff] %v663_v52  ;;  %893 = vst [vmem:[%s1397_s19 + $0x198] sm:$0xff] %v791_v53 }
 0x120   : > { %859 = vst [vmem:[%s1397_s19 + $0x88] sm:$0xff] %v655_v56  ;;  %891 = vst [vmem:[%s1397_s19 + $0x188] sm:$0xff] %v783_v57 }
 0x122   : > { %v1140_v58 = vpop.f32.mrb[20].mxu0  ;;  %v1172_v59 = vpop.f32.mrb[20].mxu1 }
 0x123   : > { %v676_v60 = vadd.f32 %v1140_v58, %v1392_v40  ;;  %v804_v61 = vadd.f32 %v1172_v59, %v1392_v40  ;;  %v667_v62 = vpop.f32.mrb[21].mxu0  ;;  %v795_v63 = vpop.f32.mrb[21].mxu1 }
 0x124   : > { %v668_v0 = vadd.f32 %v1392_v40, %v667_v62  ;;  %v796_v1 = vadd.f32 %v1392_v40, %v795_v63  ;;  %v1141_v2 = vpop.f32.mrb[22].mxu0  ;;  %v1173_v3 = vpop.f32.mrb[22].mxu1 }
 0x125   : > { %864 = vst [vmem:[%s1397_s19 + $0xb0] sm:$0xff] %v676_v60  ;;  %896 = vst [vmem:[%s1397_s19 + $0x1b0] sm:$0xff] %v804_v61  ;;  %v679_v4 = vadd.f32 %v1141_v2, %v1392_v40  ;;  %v807_v5 = vadd.f32 %v1173_v3, %v1392_v40  ;;  %v670_v6 = vpop.f32.mrb[23].mxu0  ;;  %v798_v7 = vpop.f32.mrb[23].mxu1 }
 0x126   : > { %862 = vst [vmem:[%s1397_s19 + $0xa0] sm:$0xff] %v668_v0  ;;  %894 = vst [vmem:[%s1397_s19 + $0x1a0] sm:$0xff] %v796_v1  ;;  %v671_v8 = vadd.f32 %v1392_v40, %v670_v6  ;;  %v799_v9 = vadd.f32 %v1392_v40, %v798_v7 }
 0x127   : > { %865 = vst [vmem:[%s1397_s19 + $0xb8] sm:$0xff] %v679_v4  ;;  %897 = vst [vmem:[%s1397_s19 + $0x1b8] sm:$0xff] %v807_v5 }
 0x128   : > { %863 = vst [vmem:[%s1397_s19 + $0xa8] sm:$0xff] %v671_v8  ;;  %895 = vst [vmem:[%s1397_s19 + $0x1a8] sm:$0xff] %v799_v9 }
 0x12a   : > { %v1144_v10 = vpop.f32.mrb[24].mxu0  ;;  %v1176_v11 = vpop.f32.mrb[24].mxu1 }
 0x12b   : > { %v692_v12 = vadd.f32 %v1144_v10, %v1392_v40  ;;  %v820_v13 = vadd.f32 %v1176_v11, %v1392_v40  ;;  %v683_v14 = vpop.f32.mrb[25].mxu0  ;;  %v811_v15 = vpop.f32.mrb[25].mxu1 }
 0x12c   : > { %v684_v16 = vadd.f32 %v1392_v40, %v683_v14  ;;  %v812_v17 = vadd.f32 %v1392_v40, %v811_v15  ;;  %v1145_v18 = vpop.f32.mrb[26].mxu0  ;;  %v1177_v19 = vpop.f32.mrb[26].mxu1 }
 0x12d   : > { %868 = vst [vmem:[%s1397_s19 + $0xd0] sm:$0xff] %v692_v12  ;;  %900 = vst [vmem:[%s1397_s19 + $0x1d0] sm:$0xff] %v820_v13  ;;  %v695_v20 = vadd.f32 %v1145_v18, %v1392_v40  ;;  %v823_v21 = vadd.f32 %v1177_v19, %v1392_v40  ;;  %v686_v22 = vpop.f32.mrb[27].mxu0  ;;  %v814_v23 = vpop.f32.mrb[27].mxu1 }
 0x12e   : > { %866 = vst [vmem:[%s1397_s19 + $0xc0] sm:$0xff] %v684_v16  ;;  %898 = vst [vmem:[%s1397_s19 + $0x1c0] sm:$0xff] %v812_v17  ;;  %v687_v24 = vadd.f32 %v1392_v40, %v686_v22  ;;  %v815_v25 = vadd.f32 %v1392_v40, %v814_v23 }
 0x12f   : > { %869 = vst [vmem:[%s1397_s19 + $0xd8] sm:$0xff] %v695_v20  ;;  %901 = vst [vmem:[%s1397_s19 + $0x1d8] sm:$0xff] %v823_v21 }
 0x130   : > { %867 = vst [vmem:[%s1397_s19 + $0xc8] sm:$0xff] %v687_v24  ;;  %899 = vst [vmem:[%s1397_s19 + $0x1c8] sm:$0xff] %v815_v25 }
 0x132   : > { %v1148_v26 = vpop.f32.mrb[28].mxu0  ;;  %v1180_v27 = vpop.f32.mrb[28].mxu1 }
 0x133   : > { %v708_v28 = vadd.f32 %v1148_v26, %v1392_v40  ;;  %v836_v29 = vadd.f32 %v1180_v27, %v1392_v40  ;;  %v699_v30 = vpop.f32.mrb[29].mxu0  ;;  %v827_v31 = vpop.f32.mrb[29].mxu1 }
 0x134   : > { %v700_v32 = vadd.f32 %v1392_v40, %v699_v30  ;;  %v828_v33 = vadd.f32 %v1392_v40, %v827_v31  ;;  %v1149_v34 = vpop.f32.mrb[30].mxu0  ;;  %v1181_v35 = vpop.f32.mrb[30].mxu1 }
 0x135   : > { %872 = vst [vmem:[%s1397_s19 + $0xf0] sm:$0xff] %v708_v28  ;;  %904 = vst [vmem:[%s1397_s19 + $0x1f0] sm:$0xff] %v836_v29  ;;  %v711_v36 = vadd.f32 %v1149_v34, %v1392_v40  ;;  %v839_v37 = vadd.f32 %v1181_v35, %v1392_v40  ;;  %v702_v38 = vpop.f32.mrb[31].mxu0  ;;  %v830_v39 = vpop.f32.mrb[31].mxu1 }
 0x136   : > { %870 = vst [vmem:[%s1397_s19 + $0xe0] sm:$0xff] %v700_v32  ;;  %902 = vst [vmem:[%s1397_s19 + $0x1e0] sm:$0xff] %v828_v33  ;;  %v703_v41 = vadd.f32 %v1392_v40, %v702_v38  ;;  %v831_v42 = vadd.f32 %v1392_v40, %v830_v39 }
 0x137   : > { %873 = vst [vmem:[%s1397_s19 + $0xf8] sm:$0xff] %v711_v36  ;;  %905 = vst [vmem:[%s1397_s19 + $0x1f8] sm:$0xff] %v839_v37 }
 0x138   : > { %871 = vst [vmem:[%s1397_s19 + $0xe8] sm:$0xff] %v703_v41  ;;  %903 = vst [vmem:[%s1397_s19 + $0x1e8] sm:$0xff] %v831_v42 }
 0x139 PF: > { %s13_s14 = sadd.s32 1, %s1284_s14   ;;  %s1540_s12 = smov %s1280_s13 }
 0x13a   : > { %p10_p5 = scmp.ge.s32.totalorder %s13_s14, 4   ;;  %s1541_s13 = smov %s1543_s15 }
 0x13c   :  { %12 = sbr.rel (!%p10_p5) target bundleno = 2 (0x2), region = 68 }

// kernel: _lambda_.80
= control target key start
LH: loop header
LB: loop body
LE: loop exit
PB: predicated region body
PF: predicated region fallthrough
CT: control target
= control target key end

     0   :  { %s1580_s15 = smov 0   ;;  %s1582_s16 = smov 0   ;;  %s1879_s0 = inlined_call_operand.vmem [shape: bf16[1024,128], index: 0, kind: input, shape index: {}]   ;;  %s1880_s1 = inlined_call_operand.vmem [shape: bf16[128,128], index: 1, kind: input, shape index: {}]   ;;  %s1881_s2 = inlined_call_operand.vmem [shape: f32[1,128], index: 2, kind: input, shape index: {}]   ;;  %s1882_s3 = inlined_call_operand.vmem [shape: f32[1024,128], index: 3, kind: input, shape index: {}]   ;;  %s1883_s4 = inlined_call_operand.vmem [shape: f32[1024,128], index: 4, kind: output, shape index: {}]  }
   0x1   :  { %s1584_s17 = smov 0  }
   0x2 LB: > { %s26_s18 = sadd.s32 1, %s1549_s16  ;;  %p1281_p0 = scmp.ge.s32.totalorder %s1553_s17, 1  ;;  %s1553_s17 = sphi %s1584_s17, %s14_s17   ;;  %s1549_s16 = sphi %s1582_s16, %s1885_s16   ;;  %s1545_s15 = sphi %s1580_s15, %s1884_s15  }
   0x3   : > { %p28_p1 = scmp.ge.s32.totalorder %s26_s18, 2  ;;  %p210_p2 = scmp.lt.s32.totalorder %s1553_s17, 3 }
   0x5   : > { %s1887_s18 = smov (%p28_p1, %s26_s18), 0  ;;  %p211_p3 = pnand %p1281_p0, %p210_p2 }
   0x6   : > { %v1491_v0 = vld [vmem:[%s1880_s1] sm:$0xff] (!%p211_p3)   ;;  %s1282_s21 = sshll.u32 (!%p211_p3), %s1545_s15, 6  ;;  %v1492_v1 = vld [vmem:[%s1880_s1 + $0x8] sm:$0xff] (!%p211_p3)   ;;  %v1493_v2 = vld [vmem:[%s1880_s1 + $0x10] sm:$0xff] (!%p211_p3)  }
   0x7   : > { %214 = sbr.rel (%p211_p3) target bundleno = 317 (0x13d), region = 36  ;;  %p255_p4 = scmp.lt.s32.totalorder (!%p211_p3), %s1282_s21, 127  ;;  %1371 = vmatprep.subr.bf16.mxu0 (!%p211_p3), %v1491_v0  ;;  %1451 = vmatprep.subr.bf16.mxu1 (!%p211_p3), %v1491_v0  ;;  %v1494_v3 = vld [vmem:[%s1880_s1 + $0x18] sm:$0xff] (!%p211_p3)   ;;  %v1495_v6 = vld [vmem:[%s1880_s1 + $0x20] sm:$0xff] (!%p211_p3)   ;;  %v1496_v7 = vld [vmem:[%s1880_s1 + $0x28] sm:$0xff] (!%p211_p3)  }
   0x8   : > { %1372 = vmatpush3.bf16.msra.mxu0 (!%p211_p3), %v1491_v0  ;;  %1459 = vmatpush3.bf16.msra.mxu1 (!%p211_p3), %v1491_v0  ;;  %v1497_v8 = vld [vmem:[%s1880_s1 + $0x30] sm:$0xff] (!%p211_p3)   ;;  %v1498_v9 = vld [vmem:[%s1880_s1 + $0x38] sm:$0xff] (!%p211_p3)   ;;  %v1671_v40 = vld [vmem:[%s1881_s2] ss:$0 sm:$0xff] (!%p211_p3) }
   0x9   : > { %1373 = vmatprep.subr.bf16.mxu0 (!%p211_p3), %v1492_v1  ;;  %1452 = vmatprep.subr.bf16.mxu1 (!%p211_p3), %v1492_v1 }
   0xc   : > { %1374 = vmatpush3.bf16.msra.mxu0 (!%p211_p3), %v1492_v1  ;;  %1460 = vmatpush3.bf16.msra.mxu1 (!%p211_p3), %v1492_v1 }
   0xd   : > { %1375 = vmatprep.subr.bf16.mxu0 (!%p211_p3), %v1493_v2  ;;  %1453 = vmatprep.subr.bf16.mxu1 (!%p211_p3), %v1493_v2 }
   0xe   : > { %s1889_s21 = smov (!%p255_p4, %s1282_s21), 127 }
   0xf   : > { %s1283_s26 = sshll.u32 %s1889_s21, 2  ;;  %s1285_s14 = sshll.u32 %s1889_s21, 3 }
  0x10   : > { %s1613_s29 = scalar_lea.vmem %s1879_s0, %s1283_s26  ;;  %1376 = vmatpush3.bf16.msra.mxu0 %v1493_v2  ;;  %1461 = vmatpush3.bf16.msra.mxu1 %v1493_v2  ;;  %s1666_s20 = scalar_lea.vmem %s1882_s3, %s1285_s14 }
  0x11   : > { %v1499_v4 = vld [vmem:[%s1613_s29] sm:$0xff]   ;;  %1377 = vmatprep.subr.bf16.mxu0 %v1494_v3  ;;  %1454 = vmatprep.subr.bf16.mxu1 %v1494_v3  ;;  %v1501_v10 = vld [vmem:[%s1613_s29 + $0x8] sm:$0xff]   ;;  %v1503_v12 = vld [vmem:[%s1613_s29 + $0x10] sm:$0xff]   ;;  %s1690_s25 = scalar_lea.vmem %s1883_s4, %s1285_s14 }
  0x12   : > { %v1500_v5 = vld [vmem:[%s1613_s29 + $0x80] sm:$0xff]   ;;  %1387 = vmatprep.mubr.bf16.mxu0 %v1499_v4  ;;  %v1502_v11 = vld [vmem:[%s1613_s29 + $0x88] sm:$0xff]   ;;  %v1504_v13 = vld [vmem:[%s1613_s29 + $0x90] sm:$0xff]  }
  0x13   : > { %1419 = vmatprep.mubr.bf16.mxu1 %v1500_v5  ;;  %v1505_v14 = vld [vmem:[%s1613_s29 + $0x18] sm:$0xff]   ;;  %v1507_v16 = vld [vmem:[%s1613_s29 + $0x20] sm:$0xff]   ;;  %v1509_v18 = vld [vmem:[%s1613_s29 + $0x28] sm:$0xff]  }
  0x14   : > { %1378 = vmatpush3.bf16.msra.mxu0 %v1494_v3  ;;  %1462 = vmatpush3.bf16.msra.mxu1 %v1494_v3  ;;  %v1506_v15 = vld [vmem:[%s1613_s29 + $0x98] sm:$0xff]   ;;  %v1508_v17 = vld [vmem:[%s1613_s29 + $0xa0] sm:$0xff]   ;;  %v1510_v19 = vld [vmem:[%s1613_s29 + $0xa8] sm:$0xff]  }
  0x15   : > { %1379 = vmatprep.subr.bf16.mxu0 %v1495_v6  ;;  %1455 = vmatprep.subr.bf16.mxu1 %v1495_v6  ;;  %v1511_v20 = vld [vmem:[%s1613_s29 + $0x30] sm:$0xff]   ;;  %v1513_v22 = vld [vmem:[%s1613_s29 + $0x38] sm:$0xff]   ;;  %v1515_v24 = vld [vmem:[%s1613_s29 + $0x40] sm:$0xff]  }
  0x16   : > { %v1512_v21 = vld [vmem:[%s1613_s29 + $0xb0] sm:$0xff]   ;;  %v1514_v23 = vld [vmem:[%s1613_s29 + $0xb8] sm:$0xff]   ;;  %v1516_v25 = vld [vmem:[%s1613_s29 + $0xc0] sm:$0xff]  }
  0x17   : > { %v1517_v26 = vld [vmem:[%s1613_s29 + $0x48] sm:$0xff]   ;;  %v1519_v28 = vld [vmem:[%s1613_s29 + $0x50] sm:$0xff]   ;;  %v1521_v30 = vld [vmem:[%s1613_s29 + $0x58] sm:$0xff]  }
  0x18   : > { %1380 = vmatpush3.bf16.msra.mxu0 %v1495_v6  ;;  %1463 = vmatpush3.bf16.msra.mxu1 %v1495_v6  ;;  %v1518_v27 = vld [vmem:[%s1613_s29 + $0xc8] sm:$0xff]   ;;  %v1520_v29 = vld [vmem:[%s1613_s29 + $0xd0] sm:$0xff]   ;;  %v1522_v31 = vld [vmem:[%s1613_s29 + $0xd8] sm:$0xff]  }
  0x19   : > { %1381 = vmatprep.subr.bf16.mxu0 %v1496_v7  ;;  %1456 = vmatprep.subr.bf16.mxu1 %v1496_v7  ;;  %v1523_v32 = vld [vmem:[%s1613_s29 + $0x60] sm:$0xff]   ;;  %v1525_v34 = vld [vmem:[%s1613_s29 + $0x68] sm:$0xff]   ;;  %v1527_v36 = vld [vmem:[%s1613_s29 + $0x70] sm:$0xff]  }
  0x1a   : > { %v1524_v33 = vld [vmem:[%s1613_s29 + $0xe0] sm:$0xff]   ;;  %v1526_v35 = vld [vmem:[%s1613_s29 + $0xe8] sm:$0xff]   ;;  %v1528_v37 = vld [vmem:[%s1613_s29 + $0xf0] sm:$0xff]  }
  0x1b   : > { %v1529_v38 = vld [vmem:[%s1613_s29 + $0x78] sm:$0xff]   ;;  %v904_v42 = vld [vmem:[%s1666_s20 + $0x10] sm:$0xff]  ;;  %v902_v48 = vld [vmem:[%s1666_s20] sm:$0xff] }
  0x1c   : > { %1382 = vmatpush3.bf16.msra.mxu0 %v1496_v7  ;;  %1464 = vmatpush3.bf16.msra.mxu1 %v1496_v7  ;;  %v1530_v39 = vld [vmem:[%s1613_s29 + $0xf8] sm:$0xff]   ;;  %v936_v44 = vld [vmem:[%s1666_s20 + $0x110] sm:$0xff]  ;;  %v934_v50 = vld [vmem:[%s1666_s20 + $0x100] sm:$0xff] }
  0x1d   : > { %1383 = vmatprep.subr.bf16.mxu0 %v1497_v8  ;;  %1457 = vmatprep.subr.bf16.mxu1 %v1497_v8  ;;  %v905_v54 = vld [vmem:[%s1666_s20 + $0x18] sm:$0xff]  ;;  %v903_v62 = vld [vmem:[%s1666_s20 + $0x8] sm:$0xff] }
  0x1e   : > { %v937_v56 = vld [vmem:[%s1666_s20 + $0x118] sm:$0xff]  ;;  %v935_v0 = vld [vmem:[%s1666_s20 + $0x108] sm:$0xff] }
  0x20   : > { %1384 = vmatpush3.bf16.msra.mxu0 %v1497_v8  ;;  %1465 = vmatpush3.bf16.msra.mxu1 %v1497_v8 }
  0x21   : > { %1385 = vmatprep.subr.bf16.mxu0 %v1498_v9  ;;  %1458 = vmatprep.subr.bf16.mxu1 %v1498_v9 }
  0x24   : > { %1386 = vmatpush3.bf16.msra.mxu0 %v1498_v9  ;;  %1466 = vmatpush3.bf16.msra.mxu1 %v1498_v9 }
  0x27   : > { %1388 = vmatmul.mubr.bf16.vlgmr.msra.gmra.mrb[0].mxu0 %v1501_v10  ;;  %1420 = vmatmul.mubr.bf16.vlgmr.msra.gmra.mrb[0].mxu1 %v1502_v11 }
  0x28   : > { %1391 = vmatprep.mubr.bf16.mxu0 %v1503_v12  ;;  %1423 = vmatprep.mubr.bf16.mxu1 %v1504_v13 }
  0x2f   : > { %1392 = vmatmul.mubr.bf16.gmra.mrb[4].mxu0 %v1505_v14  ;;  %1424 = vmatmul.mubr.bf16.gmra.mrb[4].mxu1 %v1506_v15 }
  0x30   : > { %1395 = vmatprep.mubr.bf16.mxu0 %v1507_v16  ;;  %1427 = vmatprep.mubr.bf16.mxu1 %v1508_v17 }
  0x37   : > { %1396 = vmatmul.mubr.bf16.gmra.mrb[8].mxu0 %v1509_v18  ;;  %1428 = vmatmul.mubr.bf16.gmra.mrb[8].mxu1 %v1510_v19  ;;  %v908_v18 = vld [vmem:[%s1666_s20 + $0x30] sm:$0xff] }
  0x38   : > { %1399 = vmatprep.mubr.bf16.mxu0 %v1511_v20  ;;  %1431 = vmatprep.mubr.bf16.mxu1 %v1512_v21  ;;  %v940_v20 = vld [vmem:[%s1666_s20 + $0x130] sm:$0xff] }
  0x3f   : > { %1400 = vmatmul.mubr.bf16.gmra.mrb[12].mxu0 %v1513_v22  ;;  %1432 = vmatmul.mubr.bf16.gmra.mrb[12].mxu1 %v1514_v23 }
  0x40   : > { %1403 = vmatprep.mubr.bf16.mxu0 %v1515_v24  ;;  %1435 = vmatprep.mubr.bf16.mxu1 %v1516_v25  ;;  %v906_v24 = vld [vmem:[%s1666_s20 + $0x20] sm:$0xff] }
  0x47   : > { %1404 = vmatmul.mubr.bf16.gmra.mrb[16].mxu0 %v1517_v26  ;;  %1436 = vmatmul.mubr.bf16.gmra.mrb[16].mxu1 %v1518_v27  ;;  %v938_v26 = vld [vmem:[%s1666_s20 + $0x120] sm:$0xff] }
  0x48   : > { %1407 = vmatprep.mubr.bf16.mxu0 %v1519_v28  ;;  %1439 = vmatprep.mubr.bf16.mxu1 %v1520_v29 }
  0x4f   : > { %1408 = vmatmul.mubr.bf16.gmra.mrb[20].mxu0 %v1521_v30  ;;  %1440 = vmatmul.mubr.bf16.gmra.mrb[20].mxu1 %v1522_v31  ;;  %v909_v30 = vld [vmem:[%s1666_s20 + $0x38] sm:$0xff] }
  0x50   : > { %1411 = vmatprep.mubr.bf16.mxu0 %v1523_v32  ;;  %1443 = vmatprep.mubr.bf16.mxu1 %v1524_v33  ;;  %v941_v32 = vld [vmem:[%s1666_s20 + $0x138] sm:$0xff] }
  0x57   : > { %1412 = vmatmul.mubr.bf16.gmra.mrb[24].mxu0 %v1525_v34  ;;  %1444 = vmatmul.mubr.bf16.gmra.mrb[24].mxu1 %v1526_v35 }
  0x58   : > { %1415 = vmatprep.mubr.bf16.mxu0 %v1527_v36  ;;  %1447 = vmatprep.mubr.bf16.mxu1 %v1528_v37 }
  0x5f   : > { %1416 = vmatmul.mubr.bf16.gmra.mrb[28].mxu0 %v1529_v38  ;;  %1448 = vmatmul.mubr.bf16.gmra.mrb[28].mxu1 %v1530_v39  ;;  %v907_v38 = vld [vmem:[%s1666_s20 + $0x28] sm:$0xff] }
  0xfa   : > { %v1389_v41 = vpop.f32.mrb[0].mxu0  ;;  %v1421_v43 = vpop.f32.mrb[0].mxu1 }
  0xfb   : > { %v656_v45 = vadd.f32 %v1389_v41, %v1671_v40  ;;  %v784_v46 = vadd.f32 %v1421_v43, %v1671_v40  ;;  %v647_v47 = vpop.f32.mrb[1].mxu0  ;;  %v775_v49 = vpop.f32.mrb[1].mxu1  ;;  %v939_v41 = vld [vmem:[%s1666_s20 + $0x128] sm:$0xff] }
  0xfc   : > { %v648_v51 = vadd.f32 %v1671_v40, %v647_v47  ;;  %v776_v52 = vadd.f32 %v1671_v40, %v775_v49  ;;  %v1390_v53 = vpop.f32.mrb[2].mxu0  ;;  %v1422_v55 = vpop.f32.mrb[2].mxu1 }
  0xfd   : > { %v968_v57 = vadd.f32 %v904_v42, %v656_v45  ;;  %v1000_v58 = vadd.f32 %v936_v44, %v784_v46  ;;  %v659_v59 = vadd.f32 %v1390_v53, %v1671_v40  ;;  %v787_v60 = vadd.f32 %v1422_v55, %v1671_v40  ;;  %v650_v61 = vpop.f32.mrb[3].mxu0  ;;  %v778_v63 = vpop.f32.mrb[3].mxu1 }
  0xfe   : > { %v966_v1 = vadd.f32 %v902_v48, %v648_v51  ;;  %v998_v2 = vadd.f32 %v934_v50, %v776_v52  ;;  %v651_v3 = vadd.f32 %v1671_v40, %v650_v61  ;;  %v779_v4 = vadd.f32 %v1671_v40, %v778_v63  ;;  %v944_v61 = vld [vmem:[%s1666_s20 + $0x150] sm:$0xff] }
  0xff   : > { %v1032_v5 = vmax.f32 %v968_v57, 0.0  ;;  %v1064_v6 = vmax.f32 %v1000_v58, 0.0  ;;  %v969_v7 = vadd.f32 %v905_v54, %v659_v59  ;;  %v1001_v8 = vadd.f32 %v937_v56, %v787_v60  ;;  %v912_v59 = vld [vmem:[%s1666_s20 + $0x50] sm:$0xff] }
 0x100   : > { %v1030_v9 = vmax.f32 %v966_v1, 0.0  ;;  %v1062_v10 = vmax.f32 %v998_v2, 0.0  ;;  %v967_v11 = vadd.f32 %v903_v62, %v651_v3  ;;  %v999_v12 = vadd.f32 %v935_v0, %v779_v4  ;;  %v910_v1 = vld [vmem:[%s1666_s20 + $0x40] sm:$0xff] }
 0x101   : > { %1096 = vst [vmem:[%s1690_s25 + $0x10] sm:$0xff] %v1032_v5  ;;  %1128 = vst [vmem:[%s1690_s25 + $0x110] sm:$0xff] %v1064_v6  ;;  %v1033_v13 = vmax.f32 %v969_v7, 0.0  ;;  %v1065_v14 = vmax.f32 %v1001_v8, 0.0  ;;  %v942_v3 = vld [vmem:[%s1666_s20 + $0x140] sm:$0xff]  ;;  %v913_v7 = vld [vmem:[%s1666_s20 + $0x58] sm:$0xff] }
 0x102   : > { %1094 = vst [vmem:[%s1690_s25] sm:$0xff] %v1030_v9  ;;  %1126 = vst [vmem:[%s1690_s25 + $0x100] sm:$0xff] %v1062_v10  ;;  %v1031_v15 = vmax.f32 %v967_v11, 0.0  ;;  %v1063_v16 = vmax.f32 %v999_v12, 0.0  ;;  %v1393_v17 = vpop.f32.mrb[4].mxu0  ;;  %v1425_v19 = vpop.f32.mrb[4].mxu1  ;;  %v945_v9 = vld [vmem:[%s1666_s20 + $0x158] sm:$0xff] }
 0x103   : > { %1097 = vst [vmem:[%s1690_s25 + $0x18] sm:$0xff] %v1033_v13  ;;  %1129 = vst [vmem:[%s1690_s25 + $0x118] sm:$0xff] %v1065_v14  ;;  %v672_v21 = vadd.f32 %v1393_v17, %v1671_v40  ;;  %v800_v22 = vadd.f32 %v1425_v19, %v1671_v40  ;;  %v663_v23 = vpop.f32.mrb[5].mxu0  ;;  %v791_v25 = vpop.f32.mrb[5].mxu1  ;;  %v943_v17 = vld [vmem:[%s1666_s20 + $0x148] sm:$0xff] }
 0x104   : > { %1095 = vst [vmem:[%s1690_s25 + $0x8] sm:$0xff] %v1031_v15  ;;  %1127 = vst [vmem:[%s1690_s25 + $0x108] sm:$0xff] %v1063_v16  ;;  %v664_v27 = vadd.f32 %v1671_v40, %v663_v23  ;;  %v792_v28 = vadd.f32 %v1671_v40, %v791_v25  ;;  %v1394_v29 = vpop.f32.mrb[6].mxu0  ;;  %v1426_v31 = vpop.f32.mrb[6].mxu1  ;;  %v911_v15 = vld [vmem:[%s1666_s20 + $0x48] sm:$0xff] }
 0x105   : > { %v972_v33 = vadd.f32 %v908_v18, %v672_v21  ;;  %v1004_v34 = vadd.f32 %v940_v20, %v800_v22  ;;  %v675_v35 = vadd.f32 %v1394_v29, %v1671_v40  ;;  %v803_v36 = vadd.f32 %v1426_v31, %v1671_v40  ;;  %v666_v37 = vpop.f32.mrb[7].mxu0  ;;  %v794_v39 = vpop.f32.mrb[7].mxu1 }
 0x106   : > { %v970_v42 = vadd.f32 %v906_v24, %v664_v27  ;;  %v1002_v43 = vadd.f32 %v938_v26, %v792_v28  ;;  %v667_v44 = vadd.f32 %v1671_v40, %v666_v37  ;;  %v795_v45 = vadd.f32 %v1671_v40, %v794_v39  ;;  %v948_v37 = vld [vmem:[%s1666_s20 + $0x170] sm:$0xff] }
 0x107   : > { %v1036_v46 = vmax.f32 %v972_v33, 0.0  ;;  %v1068_v47 = vmax.f32 %v1004_v34, 0.0  ;;  %v973_v48 = vadd.f32 %v909_v30, %v675_v35  ;;  %v1005_v49 = vadd.f32 %v941_v32, %v803_v36  ;;  %v916_v35 = vld [vmem:[%s1666_s20 + $0x70] sm:$0xff] }
 0x108   : > { %v1034_v50 = vmax.f32 %v970_v42, 0.0  ;;  %v1066_v51 = vmax.f32 %v1002_v43, 0.0  ;;  %v971_v52 = vadd.f32 %v907_v38, %v667_v44  ;;  %v1003_v53 = vadd.f32 %v939_v41, %v795_v45  ;;  %v914_v42 = vld [vmem:[%s1666_s20 + $0x60] sm:$0xff] }
 0x109   : > { %1100 = vst [vmem:[%s1690_s25 + $0x30] sm:$0xff] %v1036_v46  ;;  %1132 = vst [vmem:[%s1690_s25 + $0x130] sm:$0xff] %v1068_v47  ;;  %v1037_v54 = vmax.f32 %v973_v48, 0.0  ;;  %v1069_v55 = vmax.f32 %v1005_v49, 0.0  ;;  %v946_v44 = vld [vmem:[%s1666_s20 + $0x160] sm:$0xff]  ;;  %v917_v48 = vld [vmem:[%s1666_s20 + $0x78] sm:$0xff] }
 0x10a   : > { %1098 = vst [vmem:[%s1690_s25 + $0x20] sm:$0xff] %v1034_v50  ;;  %1130 = vst [vmem:[%s1690_s25 + $0x120] sm:$0xff] %v1066_v51  ;;  %v1035_v56 = vmax.f32 %v971_v52, 0.0  ;;  %v1067_v57 = vmax.f32 %v1003_v53, 0.0  ;;  %v1397_v58 = vpop.f32.mrb[8].mxu0  ;;  %v1429_v60 = vpop.f32.mrb[8].mxu1 }
 0x10b   : > { %1101 = vst [vmem:[%s1690_s25 + $0x38] sm:$0xff] %v1037_v54  ;;  %1133 = vst [vmem:[%s1690_s25 + $0x138] sm:$0xff] %v1069_v55  ;;  %v688_v62 = vadd.f32 %v1397_v58, %v1671_v40  ;;  %v816_v63 = vadd.f32 %v1429_v60, %v1671_v40  ;;  %v679_v0 = vpop.f32.mrb[9].mxu0  ;;  %v807_v2 = vpop.f32.mrb[9].mxu1  ;;  %v949_v50 = vld [vmem:[%s1666_s20 + $0x178] sm:$0xff]  ;;  %v947_v58 = vld [vmem:[%s1666_s20 + $0x168] sm:$0xff] }
 0x10c   : > { %1099 = vst [vmem:[%s1690_s25 + $0x28] sm:$0xff] %v1035_v56  ;;  %1131 = vst [vmem:[%s1690_s25 + $0x128] sm:$0xff] %v1067_v57  ;;  %v680_v4 = vadd.f32 %v1671_v40, %v679_v0  ;;  %v808_v5 = vadd.f32 %v1671_v40, %v807_v2  ;;  %v1398_v6 = vpop.f32.mrb[10].mxu0  ;;  %v1430_v8 = vpop.f32.mrb[10].mxu1  ;;  %v915_v56 = vld [vmem:[%s1666_s20 + $0x68] sm:$0xff] }
 0x10d   : > { %v976_v10 = vadd.f32 %v912_v59, %v688_v62  ;;  %v1008_v11 = vadd.f32 %v944_v61, %v816_v63  ;;  %v691_v12 = vadd.f32 %v1398_v6, %v1671_v40  ;;  %v819_v13 = vadd.f32 %v1430_v8, %v1671_v40  ;;  %v682_v14 = vpop.f32.mrb[11].mxu0  ;;  %v810_v16 = vpop.f32.mrb[11].mxu1 }
 0x10e   : > { %v974_v18 = vadd.f32 %v910_v1, %v680_v4  ;;  %v1006_v19 = vadd.f32 %v942_v3, %v808_v5  ;;  %v683_v20 = vadd.f32 %v1671_v40, %v682_v14  ;;  %v811_v21 = vadd.f32 %v1671_v40, %v810_v16  ;;  %v952_v14 = vld [vmem:[%s1666_s20 + $0x190] sm:$0xff] }
 0x10f   : > { %v1040_v22 = vmax.f32 %v976_v10, 0.0  ;;  %v1072_v23 = vmax.f32 %v1008_v11, 0.0  ;;  %v977_v24 = vadd.f32 %v913_v7, %v691_v12  ;;  %v1009_v25 = vadd.f32 %v945_v9, %v819_v13  ;;  %v920_v12 = vld [vmem:[%s1666_s20 + $0x90] sm:$0xff] }
 0x110   : > { %v1038_v26 = vmax.f32 %v974_v18, 0.0  ;;  %v1070_v27 = vmax.f32 %v1006_v19, 0.0  ;;  %v975_v28 = vadd.f32 %v911_v15, %v683_v20  ;;  %v1007_v29 = vadd.f32 %v943_v17, %v811_v21  ;;  %v918_v18 = vld [vmem:[%s1666_s20 + $0x80] sm:$0xff] }
 0x111   : > { %1104 = vst [vmem:[%s1690_s25 + $0x50] sm:$0xff] %v1040_v22  ;;  %1136 = vst [vmem:[%s1690_s25 + $0x150] sm:$0xff] %v1072_v23  ;;  %v1041_v30 = vmax.f32 %v977_v24, 0.0  ;;  %v1073_v31 = vmax.f32 %v1009_v25, 0.0  ;;  %v950_v20 = vld [vmem:[%s1666_s20 + $0x180] sm:$0xff]  ;;  %v921_v24 = vld [vmem:[%s1666_s20 + $0x98] sm:$0xff] }
 0x112   : > { %1102 = vst [vmem:[%s1690_s25 + $0x40] sm:$0xff] %v1038_v26  ;;  %1134 = vst [vmem:[%s1690_s25 + $0x140] sm:$0xff] %v1070_v27  ;;  %v1039_v32 = vmax.f32 %v975_v28, 0.0  ;;  %v1071_v33 = vmax.f32 %v1007_v29, 0.0  ;;  %v1401_v34 = vpop.f32.mrb[12].mxu0  ;;  %v1433_v36 = vpop.f32.mrb[12].mxu1 }
 0x113   : > { %1105 = vst [vmem:[%s1690_s25 + $0x58] sm:$0xff] %v1041_v30  ;;  %1137 = vst [vmem:[%s1690_s25 + $0x158] sm:$0xff] %v1073_v31  ;;  %v704_v38 = vadd.f32 %v1401_v34, %v1671_v40  ;;  %v832_v39 = vadd.f32 %v1433_v36, %v1671_v40  ;;  %v695_v41 = vpop.f32.mrb[13].mxu0  ;;  %v823_v43 = vpop.f32.mrb[13].mxu1  ;;  %v953_v26 = vld [vmem:[%s1666_s20 + $0x198] sm:$0xff]  ;;  %v951_v34 = vld [vmem:[%s1666_s20 + $0x188] sm:$0xff] }
 0x114   : > { %1103 = vst [vmem:[%s1690_s25 + $0x48] sm:$0xff] %v1039_v32  ;;  %1135 = vst [vmem:[%s1690_s25 + $0x148] sm:$0xff] %v1071_v33  ;;  %v696_v45 = vadd.f32 %v1671_v40, %v695_v41  ;;  %v824_v46 = vadd.f32 %v1671_v40, %v823_v43  ;;  %v1402_v47 = vpop.f32.mrb[14].mxu0  ;;  %v1434_v49 = vpop.f32.mrb[14].mxu1  ;;  %v919_v32 = vld [vmem:[%s1666_s20 + $0x88] sm:$0xff] }
 0x115   : > { %v980_v51 = vadd.f32 %v916_v35, %v704_v38  ;;  %v1012_v52 = vadd.f32 %v948_v37, %v832_v39  ;;  %v707_v53 = vadd.f32 %v1402_v47, %v1671_v40  ;;  %v835_v54 = vadd.f32 %v1434_v49, %v1671_v40  ;;  %v698_v55 = vpop.f32.mrb[15].mxu0  ;;  %v826_v57 = vpop.f32.mrb[15].mxu1 }
 0x116   : > { %v978_v59 = vadd.f32 %v914_v42, %v696_v45  ;;  %v1010_v60 = vadd.f32 %v946_v44, %v824_v46  ;;  %v699_v61 = vadd.f32 %v1671_v40, %v698_v55  ;;  %v827_v62 = vadd.f32 %v1671_v40, %v826_v57  ;;  %v956_v55 = vld [vmem:[%s1666_s20 + $0x1b0] sm:$0xff] }
 0x117   : > { %v1044_v63 = vmax.f32 %v980_v51, 0.0  ;;  %v1076_v0 = vmax.f32 %v1012_v52, 0.0  ;;  %v981_v1 = vadd.f32 %v917_v48, %v707_v53  ;;  %v1013_v2 = vadd.f32 %v949_v50, %v835_v54  ;;  %v924_v53 = vld [vmem:[%s1666_s20 + $0xb0] sm:$0xff] }
 0x118   : > { %v1042_v3 = vmax.f32 %v978_v59, 0.0  ;;  %v1074_v4 = vmax.f32 %v1010_v60, 0.0  ;;  %v979_v5 = vadd.f32 %v915_v56, %v699_v61  ;;  %v1011_v6 = vadd.f32 %v947_v58, %v827_v62  ;;  %v922_v59 = vld [vmem:[%s1666_s20 + $0xa0] sm:$0xff] }
 0x119   : > { %1108 = vst [vmem:[%s1690_s25 + $0x70] sm:$0xff] %v1044_v63  ;;  %1140 = vst [vmem:[%s1690_s25 + $0x170] sm:$0xff] %v1076_v0  ;;  %v1045_v7 = vmax.f32 %v981_v1, 0.0  ;;  %v1077_v8 = vmax.f32 %v1013_v2, 0.0  ;;  %v954_v61 = vld [vmem:[%s1666_s20 + $0x1a0] sm:$0xff]  ;;  %v925_v1 = vld [vmem:[%s1666_s20 + $0xb8] sm:$0xff] }
 0x11a   : > { %1106 = vst [vmem:[%s1690_s25 + $0x60] sm:$0xff] %v1042_v3  ;;  %1138 = vst [vmem:[%s1690_s25 + $0x160] sm:$0xff] %v1074_v4  ;;  %v1043_v9 = vmax.f32 %v979_v5, 0.0  ;;  %v1075_v10 = vmax.f32 %v1011_v6, 0.0  ;;  %v1405_v11 = vpop.f32.mrb[16].mxu0  ;;  %v1437_v13 = vpop.f32.mrb[16].mxu1 }
 0x11b   : > { %1109 = vst [vmem:[%s1690_s25 + $0x78] sm:$0xff] %v1045_v7  ;;  %1141 = vst [vmem:[%s1690_s25 + $0x178] sm:$0xff] %v1077_v8  ;;  %v720_v15 = vadd.f32 %v1405_v11, %v1671_v40  ;;  %v848_v16 = vadd.f32 %v1437_v13, %v1671_v40  ;;  %v711_v17 = vpop.f32.mrb[17].mxu0  ;;  %v839_v19 = vpop.f32.mrb[17].mxu1  ;;  %v957_v3 = vld [vmem:[%s1666_s20 + $0x1b8] sm:$0xff]  ;;  %v955_v11 = vld [vmem:[%s1666_s20 + $0x1a8] sm:$0xff] }
 0x11c   : > { %1107 = vst [vmem:[%s1690_s25 + $0x68] sm:$0xff] %v1043_v9  ;;  %1139 = vst [vmem:[%s1690_s25 + $0x168] sm:$0xff] %v1075_v10  ;;  %v712_v21 = vadd.f32 %v1671_v40, %v711_v17  ;;  %v840_v22 = vadd.f32 %v1671_v40, %v839_v19  ;;  %v1406_v23 = vpop.f32.mrb[18].mxu0  ;;  %v1438_v25 = vpop.f32.mrb[18].mxu1  ;;  %v923_v9 = vld [vmem:[%s1666_s20 + $0xa8] sm:$0xff] }
 0x11d   : > { %v984_v27 = vadd.f32 %v920_v12, %v720_v15  ;;  %v1016_v28 = vadd.f32 %v952_v14, %v848_v16  ;;  %v723_v29 = vadd.f32 %v1406_v23, %v1671_v40  ;;  %v851_v30 = vadd.f32 %v1438_v25, %v1671_v40  ;;  %v714_v31 = vpop.f32.mrb[19].mxu0  ;;  %v842_v33 = vpop.f32.mrb[19].mxu1 }
 0x11e   : > { %v982_v35 = vadd.f32 %v918_v18, %v712_v21  ;;  %v1014_v36 = vadd.f32 %v950_v20, %v840_v22  ;;  %v715_v37 = vadd.f32 %v1671_v40, %v714_v31  ;;  %v843_v38 = vadd.f32 %v1671_v40, %v842_v33  ;;  %v960_v31 = vld [vmem:[%s1666_s20 + $0x1d0] sm:$0xff] }
 0x11f   : > { %v1048_v39 = vmax.f32 %v984_v27, 0.0  ;;  %v1080_v41 = vmax.f32 %v1016_v28, 0.0  ;;  %v985_v42 = vadd.f32 %v921_v24, %v723_v29  ;;  %v1017_v43 = vadd.f32 %v953_v26, %v851_v30  ;;  %v928_v29 = vld [vmem:[%s1666_s20 + $0xd0] sm:$0xff] }
 0x120   : > { %v1046_v44 = vmax.f32 %v982_v35, 0.0  ;;  %v1078_v45 = vmax.f32 %v1014_v36, 0.0  ;;  %v983_v46 = vadd.f32 %v919_v32, %v715_v37  ;;  %v1015_v47 = vadd.f32 %v951_v34, %v843_v38  ;;  %v926_v35 = vld [vmem:[%s1666_s20 + $0xc0] sm:$0xff] }
 0x121   : > { %1112 = vst [vmem:[%s1690_s25 + $0x90] sm:$0xff] %v1048_v39  ;;  %1144 = vst [vmem:[%s1690_s25 + $0x190] sm:$0xff] %v1080_v41  ;;  %v1049_v48 = vmax.f32 %v985_v42, 0.0  ;;  %v1081_v49 = vmax.f32 %v1017_v43, 0.0  ;;  %v958_v37 = vld [vmem:[%s1666_s20 + $0x1c0] sm:$0xff]  ;;  %v929_v42 = vld [vmem:[%s1666_s20 + $0xd8] sm:$0xff] }
 0x122   : > { %1110 = vst [vmem:[%s1690_s25 + $0x80] sm:$0xff] %v1046_v44  ;;  %1142 = vst [vmem:[%s1690_s25 + $0x180] sm:$0xff] %v1078_v45  ;;  %v1047_v50 = vmax.f32 %v983_v46, 0.0  ;;  %v1079_v51 = vmax.f32 %v1015_v47, 0.0  ;;  %v1409_v52 = vpop.f32.mrb[20].mxu0  ;;  %v1441_v54 = vpop.f32.mrb[20].mxu1 }
 0x123   : > { %1113 = vst [vmem:[%s1690_s25 + $0x98] sm:$0xff] %v1049_v48  ;;  %1145 = vst [vmem:[%s1690_s25 + $0x198] sm:$0xff] %v1081_v49  ;;  %v736_v56 = vadd.f32 %v1409_v52, %v1671_v40  ;;  %v864_v57 = vadd.f32 %v1441_v54, %v1671_v40  ;;  %v727_v58 = vpop.f32.mrb[21].mxu0  ;;  %v855_v60 = vpop.f32.mrb[21].mxu1  ;;  %v961_v44 = vld [vmem:[%s1666_s20 + $0x1d8] sm:$0xff]  ;;  %v959_v52 = vld [vmem:[%s1666_s20 + $0x1c8] sm:$0xff] }
 0x124   : > { %1111 = vst [vmem:[%s1690_s25 + $0x88] sm:$0xff] %v1047_v50  ;;  %1143 = vst [vmem:[%s1690_s25 + $0x188] sm:$0xff] %v1079_v51  ;;  %v728_v62 = vadd.f32 %v1671_v40, %v727_v58  ;;  %v856_v63 = vadd.f32 %v1671_v40, %v855_v60  ;;  %v1410_v0 = vpop.f32.mrb[22].mxu0  ;;  %v1442_v2 = vpop.f32.mrb[22].mxu1  ;;  %v927_v50 = vld [vmem:[%s1666_s20 + $0xc8] sm:$0xff] }
 0x125   : > { %v988_v4 = vadd.f32 %v924_v53, %v736_v56  ;;  %v1020_v5 = vadd.f32 %v956_v55, %v864_v57  ;;  %v739_v6 = vadd.f32 %v1410_v0, %v1671_v40  ;;  %v867_v7 = vadd.f32 %v1442_v2, %v1671_v40  ;;  %v730_v8 = vpop.f32.mrb[23].mxu0  ;;  %v858_v10 = vpop.f32.mrb[23].mxu1 }
 0x126   : > { %v986_v12 = vadd.f32 %v922_v59, %v728_v62  ;;  %v1018_v13 = vadd.f32 %v954_v61, %v856_v63  ;;  %v731_v14 = vadd.f32 %v1671_v40, %v730_v8  ;;  %v859_v15 = vadd.f32 %v1671_v40, %v858_v10  ;;  %v964_v8 = vld [vmem:[%s1666_s20 + $0x1f0] sm:$0xff] }
 0x127   : > { %v1052_v16 = vmax.f32 %v988_v4, 0.0  ;;  %v1084_v17 = vmax.f32 %v1020_v5, 0.0  ;;  %v989_v18 = vadd.f32 %v925_v1, %v739_v6  ;;  %v1021_v19 = vadd.f32 %v957_v3, %v867_v7  ;;  %v932_v6 = vld [vmem:[%s1666_s20 + $0xf0] sm:$0xff] }
 0x128   : > { %v1050_v20 = vmax.f32 %v986_v12, 0.0  ;;  %v1082_v21 = vmax.f32 %v1018_v13, 0.0  ;;  %v987_v22 = vadd.f32 %v923_v9, %v731_v14  ;;  %v1019_v23 = vadd.f32 %v955_v11, %v859_v15  ;;  %v930_v12 = vld [vmem:[%s1666_s20 + $0xe0] sm:$0xff] }
 0x129   : > { %1116 = vst [vmem:[%s1690_s25 + $0xb0] sm:$0xff] %v1052_v16  ;;  %1148 = vst [vmem:[%s1690_s25 + $0x1b0] sm:$0xff] %v1084_v17  ;;  %v1053_v24 = vmax.f32 %v989_v18, 0.0  ;;  %v1085_v25 = vmax.f32 %v1021_v19, 0.0  ;;  %v962_v14 = vld [vmem:[%s1666_s20 + $0x1e0] sm:$0xff]  ;;  %v933_v18 = vld [vmem:[%s1666_s20 + $0xf8] sm:$0xff] }
 0x12a   : > { %1114 = vst [vmem:[%s1690_s25 + $0xa0] sm:$0xff] %v1050_v20  ;;  %1146 = vst [vmem:[%s1690_s25 + $0x1a0] sm:$0xff] %v1082_v21  ;;  %v1051_v26 = vmax.f32 %v987_v22, 0.0  ;;  %v1083_v27 = vmax.f32 %v1019_v23, 0.0  ;;  %v1413_v28 = vpop.f32.mrb[24].mxu0  ;;  %v1445_v30 = vpop.f32.mrb[24].mxu1 }
 0x12b   : > { %1117 = vst [vmem:[%s1690_s25 + $0xb8] sm:$0xff] %v1053_v24  ;;  %1149 = vst [vmem:[%s1690_s25 + $0x1b8] sm:$0xff] %v1085_v25  ;;  %v752_v32 = vadd.f32 %v1413_v28, %v1671_v40  ;;  %v880_v33 = vadd.f32 %v1445_v30, %v1671_v40  ;;  %v743_v34 = vpop.f32.mrb[25].mxu0  ;;  %v871_v36 = vpop.f32.mrb[25].mxu1  ;;  %v965_v20 = vld [vmem:[%s1666_s20 + $0x1f8] sm:$0xff]  ;;  %v963_v28 = vld [vmem:[%s1666_s20 + $0x1e8] sm:$0xff] }
 0x12c   : > { %1115 = vst [vmem:[%s1690_s25 + $0xa8] sm:$0xff] %v1051_v26  ;;  %1147 = vst [vmem:[%s1690_s25 + $0x1a8] sm:$0xff] %v1083_v27  ;;  %v744_v38 = vadd.f32 %v1671_v40, %v743_v34  ;;  %v872_v39 = vadd.f32 %v1671_v40, %v871_v36  ;;  %v1414_v41 = vpop.f32.mrb[26].mxu0  ;;  %v1446_v43 = vpop.f32.mrb[26].mxu1  ;;  %v931_v26 = vld [vmem:[%s1666_s20 + $0xe8] sm:$0xff] }
 0x12d   : > { %v992_v45 = vadd.f32 %v928_v29, %v752_v32  ;;  %v1024_v46 = vadd.f32 %v960_v31, %v880_v33  ;;  %v755_v47 = vadd.f32 %v1414_v41, %v1671_v40  ;;  %v883_v48 = vadd.f32 %v1446_v43, %v1671_v40  ;;  %v746_v49 = vpop.f32.mrb[27].mxu0  ;;  %v874_v51 = vpop.f32.mrb[27].mxu1 }
 0x12e   : > { %v990_v53 = vadd.f32 %v926_v35, %v744_v38  ;;  %v1022_v54 = vadd.f32 %v958_v37, %v872_v39  ;;  %v747_v55 = vadd.f32 %v1671_v40, %v746_v49  ;;  %v875_v56 = vadd.f32 %v1671_v40, %v874_v51 }
 0x12f   : > { %v1056_v57 = vmax.f32 %v992_v45, 0.0  ;;  %v1088_v58 = vmax.f32 %v1024_v46, 0.0  ;;  %v993_v59 = vadd.f32 %v929_v42, %v755_v47  ;;  %v1025_v60 = vadd.f32 %v961_v44, %v883_v48 }
 0x130   : > { %v1054_v61 = vmax.f32 %v990_v53, 0.0  ;;  %v1086_v62 = vmax.f32 %v1022_v54, 0.0  ;;  %v991_v63 = vadd.f32 %v927_v50, %v747_v55  ;;  %v1023_v0 = vadd.f32 %v959_v52, %v875_v56 }
 0x131   : > { %1120 = vst [vmem:[%s1690_s25 + $0xd0] sm:$0xff] %v1056_v57  ;;  %1152 = vst [vmem:[%s1690_s25 + $0x1d0] sm:$0xff] %v1088_v58  ;;  %v1057_v1 = vmax.f32 %v993_v59, 0.0  ;;  %v1089_v2 = vmax.f32 %v1025_v60, 0.0 }
 0x132   : > { %1118 = vst [vmem:[%s1690_s25 + $0xc0] sm:$0xff] %v1054_v61  ;;  %1150 = vst [vmem:[%s1690_s25 + $0x1c0] sm:$0xff] %v1086_v62  ;;  %v1055_v3 = vmax.f32 %v991_v63, 0.0  ;;  %v1087_v4 = vmax.f32 %v1023_v0, 0.0  ;;  %v1417_v5 = vpop.f32.mrb[28].mxu0  ;;  %v1449_v7 = vpop.f32.mrb[28].mxu1 }
 0x133   : > { %1121 = vst [vmem:[%s1690_s25 + $0xd8] sm:$0xff] %v1057_v1  ;;  %1153 = vst [vmem:[%s1690_s25 + $0x1d8] sm:$0xff] %v1089_v2  ;;  %v768_v9 = vadd.f32 %v1417_v5, %v1671_v40  ;;  %v896_v10 = vadd.f32 %v1449_v7, %v1671_v40  ;;  %v759_v11 = vpop.f32.mrb[29].mxu0  ;;  %v887_v13 = vpop.f32.mrb[29].mxu1 }
 0x134   : > { %1119 = vst [vmem:[%s1690_s25 + $0xc8] sm:$0xff] %v1055_v3  ;;  %1151 = vst [vmem:[%s1690_s25 + $0x1c8] sm:$0xff] %v1087_v4  ;;  %v760_v15 = vadd.f32 %v1671_v40, %v759_v11  ;;  %v888_v16 = vadd.f32 %v1671_v40, %v887_v13  ;;  %v1418_v17 = vpop.f32.mrb[30].mxu0  ;;  %v1450_v19 = vpop.f32.mrb[30].mxu1 }
 0x135   : > { %v996_v21 = vadd.f32 %v932_v6, %v768_v9  ;;  %v1028_v22 = vadd.f32 %v964_v8, %v896_v10  ;;  %v771_v23 = vadd.f32 %v1418_v17, %v1671_v40  ;;  %v899_v24 = vadd.f32 %v1450_v19, %v1671_v40  ;;  %v762_v25 = vpop.f32.mrb[31].mxu0  ;;  %v890_v27 = vpop.f32.mrb[31].mxu1 }
 0x136   : > { %v994_v29 = vadd.f32 %v930_v12, %v760_v15  ;;  %v1026_v30 = vadd.f32 %v962_v14, %v888_v16  ;;  %v763_v31 = vadd.f32 %v1671_v40, %v762_v25  ;;  %v891_v32 = vadd.f32 %v1671_v40, %v890_v27 }
 0x137   : > { %v1060_v33 = vmax.f32 %v996_v21, 0.0  ;;  %v1092_v34 = vmax.f32 %v1028_v22, 0.0  ;;  %v997_v35 = vadd.f32 %v933_v18, %v771_v23  ;;  %v1029_v36 = vadd.f32 %v965_v20, %v899_v24 }
 0x138   : > { %v1058_v37 = vmax.f32 %v994_v29, 0.0  ;;  %v1090_v38 = vmax.f32 %v1026_v30, 0.0  ;;  %v995_v39 = vadd.f32 %v931_v26, %v763_v31  ;;  %v1027_v41 = vadd.f32 %v963_v28, %v891_v32 }
 0x139   : > { %1124 = vst [vmem:[%s1690_s25 + $0xf0] sm:$0xff] %v1060_v33  ;;  %1156 = vst [vmem:[%s1690_s25 + $0x1f0] sm:$0xff] %v1092_v34  ;;  %v1061_v42 = vmax.f32 %v997_v35, 0.0  ;;  %v1093_v43 = vmax.f32 %v1029_v36, 0.0 }
 0x13a   : > { %1122 = vst [vmem:[%s1690_s25 + $0xe0] sm:$0xff] %v1058_v37  ;;  %1154 = vst [vmem:[%s1690_s25 + $0x1e0] sm:$0xff] %v1090_v38  ;;  %v1059_v44 = vmax.f32 %v995_v39, 0.0  ;;  %v1091_v40 = vmax.f32 %v1027_v41, 0.0 }
 0x13b   : > { %1125 = vst [vmem:[%s1690_s25 + $0xf8] sm:$0xff] %v1061_v42  ;;  %1157 = vst [vmem:[%s1690_s25 + $0x1f8] sm:$0xff] %v1093_v43 }
 0x13c   : > { %1123 = vst [vmem:[%s1690_s25 + $0xe8] sm:$0xff] %v1059_v44  ;;  %1155 = vst [vmem:[%s1690_s25 + $0x1e8] sm:$0xff] %v1091_v40 }
 0x13d PF: > { %s14_s17 = sadd.s32 1, %s1553_s17   ;;  %s1884_s15 = smov %s1549_s16 }
 0x13e   : > { %p11_p5 = scmp.ge.s32.totalorder %s14_s17, 4   ;;  %s1885_s16 = smov %s1887_s18 }
 0x140   :  { %13 = sbr.rel (!%p11_p5) target bundleno = 2 (0x2), region = 75 }

// kernel: _lambda_.79
= control target key start
LH: loop header
LB: loop body
LE: loop exit
PB: predicated region body
PF: predicated region fallthrough
CT: control target
= control target key end

     0   :  { %s2749_s15 = smov 0   ;;  %s2751_s16 = smov 0   ;;  %s3256_s0 = inlined_call_operand.vmem [shape: bf16[1024,512], index: 0, kind: input, shape index: {}]   ;;  %s3257_s1 = inlined_call_operand.vmem [shape: bf16[512,128], index: 1, kind: input, shape index: {}]   ;;  %s3258_s2 = inlined_call_operand.vmem [shape: f32[1,128], index: 2, kind: input, shape index: {}]   ;;  %s3259_s3 = inlined_call_operand.vmem [shape: f32[1024,128], index: 3, kind: input, shape index: {}]   ;;  %s3260_s4 = inlined_call_operand.vmem [shape: f32[1024,128], index: 4, kind: output, shape index: {}]  }
   0x1   :  { %s2753_s17 = smov 0  }
   0x2 LB: > { %s26_s18 = sadd.s32 1, %s2717_s16  ;;  %p2277_p0 = scmp.ge.s32.totalorder %s2721_s17, 1  ;;  %s2721_s17 = sphi %s2753_s17, %s14_s17   ;;  %s2717_s16 = sphi %s2751_s16, %s3262_s16   ;;  %s2713_s15 = sphi %s2749_s15, %s3261_s15  }
   0x3   : > { %p28_p1 = scmp.ge.s32.totalorder %s26_s18, 2  ;;  %p211_p2 = scmp.lt.s32.totalorder %s2721_s17, 3 }
   0x5   : > { %s3264_s18 = smov (%p28_p1, %s26_s18), 0  ;;  %p212_p3 = pnand %p2277_p0, %p211_p2 }
   0x6   : > { %v2474_v0 = vld [vmem:[%s3257_s1] sm:$0xff] (!%p212_p3)   ;;  %v2723_v1 = vmov (!%p212_p3), 0   ;;  %v2476_v3 = vld [vmem:[%s3257_s1 + $0x8] sm:$0xff] (!%p212_p3)   ;;  %v2478_v5 = vld [vmem:[%s3257_s1 + $0x10] sm:$0xff] (!%p212_p3)   ;;  %s2278_s13 = sshll.u32 (!%p212_p3), %s2713_s15, 6 }
   0x7   : > { %215 = sbr.rel (%p212_p3) target bundleno = 542 (0x21e), region = 36  ;;  %1320 = vmatprep.subr.bf16.mxu0 (!%p212_p3), %v2723_v1  ;;  %1609 = vmatprep.subr.bf16.mxu1 (!%p212_p3), %v2723_v1  ;;  %v2475_v2 = vld [vmem:[%s3257_s1 + $0x80] sm:$0xff] (!%p212_p3)   ;;  %v2477_v4 = vld [vmem:[%s3257_s1 + $0x88] sm:$0xff] (!%p212_p3)   ;;  %v2479_v6 = vld [vmem:[%s3257_s1 + $0x90] sm:$0xff] (!%p212_p3)   ;;  %p257_p4 = scmp.lt.s32.totalorder (!%p212_p3), %s2278_s13, 127 }
   0x8   : > { %1321 = vmatpush1.bf16.msra.mxu0 (!%p212_p3), %v2474_v0  ;;  %1610 = vmatpush1.bf16.msra.mxu1 (!%p212_p3), %v2475_v2  ;;  %v2480_v7 = vld [vmem:[%s3257_s1 + $0x18] sm:$0xff] (!%p212_p3)   ;;  %v2482_v9 = vld [vmem:[%s3257_s1 + $0x20] sm:$0xff] (!%p212_p3)   ;;  %v2484_v11 = vld [vmem:[%s3257_s1 + $0x28] sm:$0xff] (!%p212_p3)  }
   0x9   : > { %1322 = vmatprep.subr.bf16.mxu0 (!%p212_p3), %v2723_v1  ;;  %1611 = vmatprep.subr.bf16.mxu1 (!%p212_p3), %v2723_v1  ;;  %v2481_v8 = vld [vmem:[%s3257_s1 + $0x98] sm:$0xff] (!%p212_p3)   ;;  %v2483_v10 = vld [vmem:[%s3257_s1 + $0xa0] sm:$0xff] (!%p212_p3)   ;;  %v2485_v12 = vld [vmem:[%s3257_s1 + $0xa8] sm:$0xff] (!%p212_p3)  }
   0xa   : > { %v2486_v13 = vld [vmem:[%s3257_s1 + $0x30] sm:$0xff] (!%p212_p3)   ;;  %v2488_v15 = vld [vmem:[%s3257_s1 + $0x38] sm:$0xff] (!%p212_p3)   ;;  %v2490_v17 = vld [vmem:[%s3257_s1 + $0x40] sm:$0xff] (!%p212_p3)  }
   0xb   : > { %v2487_v14 = vld [vmem:[%s3257_s1 + $0xb0] sm:$0xff] (!%p212_p3)   ;;  %v2489_v16 = vld [vmem:[%s3257_s1 + $0xb8] sm:$0xff] (!%p212_p3)   ;;  %v2491_v18 = vld [vmem:[%s3257_s1 + $0xc0] sm:$0xff] (!%p212_p3)  }
   0xc   : > { %1323 = vmatpush1.bf16.msra.mxu0 (!%p212_p3), %v2476_v3  ;;  %1612 = vmatpush1.bf16.msra.mxu1 (!%p212_p3), %v2477_v4  ;;  %v2492_v20 = vld [vmem:[%s3257_s1 + $0x48] sm:$0xff] (!%p212_p3)   ;;  %v2494_v23 = vld [vmem:[%s3257_s1 + $0x50] sm:$0xff] (!%p212_p3)   ;;  %v2496_v25 = vld [vmem:[%s3257_s1 + $0x58] sm:$0xff] (!%p212_p3)  }
   0xd   : > { %1324 = vmatprep.subr.bf16.mxu0 (!%p212_p3), %v2723_v1  ;;  %1613 = vmatprep.subr.bf16.mxu1 (!%p212_p3), %v2723_v1  ;;  %v2493_v22 = vld [vmem:[%s3257_s1 + $0xc8] sm:$0xff] (!%p212_p3)   ;;  %v2495_v24 = vld [vmem:[%s3257_s1 + $0xd0] sm:$0xff] (!%p212_p3)   ;;  %v2497_v26 = vld [vmem:[%s3257_s1 + $0xd8] sm:$0xff] (!%p212_p3)  }
   0xe   : > { %s3266_s13 = smov (!%p257_p4, %s2278_s13), 127  ;;  %v2498_v27 = vld [vmem:[%s3257_s1 + $0x60] sm:$0xff]   ;;  %v2500_v29 = vld [vmem:[%s3257_s1 + $0x68] sm:$0xff]   ;;  %v2502_v31 = vld [vmem:[%s3257_s1 + $0x70] sm:$0xff]  }
   0xf   : > { %s2448_s29 = sshll.u32 %s3266_s13, 4  ;;  %v2499_v28 = vld [vmem:[%s3257_s1 + $0xe0] sm:$0xff]   ;;  %v2501_v30 = vld [vmem:[%s3257_s1 + $0xe8] sm:$0xff]   ;;  %v2503_v32 = vld [vmem:[%s3257_s1 + $0xf0] sm:$0xff]   ;;  %s2282_s23 = sshll.u32 %s3266_s13, 3 }
  0x10   : > { %1325 = vmatpush1.bf16.msra.mxu0 %v2478_v5  ;;  %1614 = vmatpush1.bf16.msra.mxu1 %v2479_v6  ;;  %s2843_s8 = scalar_lea.vmem %s3256_s0, %s2448_s29  ;;  %v2504_v33 = vld [vmem:[%s3257_s1 + $0x78] sm:$0xff]   ;;  %s3025_s27 = scalar_lea.vmem %s3259_s3, %s2282_s23 }
  0x11   : > { %1326 = vmatprep.subr.bf16.mxu0 %v2723_v1  ;;  %1615 = vmatprep.subr.bf16.mxu1 %v2723_v1  ;;  %v2508_v19 = vld [vmem:[%s2843_s8 + $0x4] ss:$16 sps:$4 sm:$0xff]   ;;  %v2511_v21 = vld [vmem:[%s2843_s8 + $0xc] ss:$16 sps:$4 sm:$0xff]   ;;  %v2506_v35 = vld [vmem:[%s2843_s8] ss:$16 sps:$4 sm:$0xff]   ;;  %s3038_s29 = scalar_lea.vmem %s3260_s4, %s2282_s23 }
  0x12   : > { %1352 = vmatprep.mubr.bf16.mxu0 %v2508_v19  ;;  %1641 = vmatprep.mubr.bf16.mxu1 %v2511_v21  ;;  %v2505_v34 = vld [vmem:[%s3257_s1 + $0xf8] sm:$0xff]   ;;  %v2512_v37 = vld [vmem:[%s2843_s8 + $0x24] ss:$16 sps:$4 sm:$0xff]   ;;  %v2516_v39 = vld [vmem:[%s2843_s8 + $0x20] ss:$16 sps:$4 sm:$0xff]  }
  0x13   : > { %v2509_v36 = vld [vmem:[%s2843_s8 + $0x8] ss:$16 sps:$4 sm:$0xff]   ;;  %v2514_v38 = vld [vmem:[%s2843_s8 + $0x2c] ss:$16 sps:$4 sm:$0xff]   ;;  %v2518_v41 = vld [vmem:[%s2843_s8 + $0x44] ss:$16 sps:$4 sm:$0xff]  }
  0x14   : > { %1327 = vmatpush1.bf16.msra.mxu0 %v2480_v7  ;;  %1616 = vmatpush1.bf16.msra.mxu1 %v2481_v8  ;;  %v2517_v40 = vld [vmem:[%s2843_s8 + $0x28] ss:$16 sps:$4 sm:$0xff]   ;;  %v2520_v42 = vld [vmem:[%s2843_s8 + $0x4c] ss:$16 sps:$4 sm:$0xff]   ;;  %v2522_v43 = vld [vmem:[%s2843_s8 + $0x40] ss:$16 sps:$4 sm:$0xff]  }
  0x15   : > { %1328 = vmatprep.subr.bf16.mxu0 %v2723_v1  ;;  %1617 = vmatprep.subr.bf16.mxu1 %v2723_v1  ;;  %v2523_v44 = vld [vmem:[%s2843_s8 + $0x48] ss:$16 sps:$4 sm:$0xff]   ;;  %v2524_v45 = vld [vmem:[%s2843_s8 + $0x64] ss:$16 sps:$4 sm:$0xff]   ;;  %v2526_v46 = vld [vmem:[%s2843_s8 + $0x6c] ss:$16 sps:$4 sm:$0xff]  }
  0x16   : > { %v2528_v47 = vld [vmem:[%s2843_s8 + $0x60] ss:$16 sps:$4 sm:$0xff]   ;;  %v2529_v48 = vld [vmem:[%s2843_s8 + $0x68] ss:$16 sps:$4 sm:$0xff]   ;;  %v2530_v49 = vld [vmem:[%s2843_s8 + $0x84] ss:$16 sps:$4 sm:$0xff]  }
  0x17   : > { %v2532_v50 = vld [vmem:[%s2843_s8 + $0x8c] ss:$16 sps:$4 sm:$0xff]   ;;  %v2534_v51 = vld [vmem:[%s2843_s8 + $0x80] ss:$16 sps:$4 sm:$0xff]   ;;  %v2535_v52 = vld [vmem:[%s2843_s8 + $0x88] ss:$16 sps:$4 sm:$0xff]  }
  0x18   : > { %1329 = vmatpush1.bf16.msra.mxu0 %v2482_v9  ;;  %1618 = vmatpush1.bf16.msra.mxu1 %v2483_v10  ;;  %v2536_v53 = vld [vmem:[%s2843_s8 + $0xa4] ss:$16 sps:$4 sm:$0xff]   ;;  %v2538_v54 = vld [vmem:[%s2843_s8 + $0xac] ss:$16 sps:$4 sm:$0xff]   ;;  %v2540_v55 = vld [vmem:[%s2843_s8 + $0xa0] ss:$16 sps:$4 sm:$0xff]  }
  0x19   : > { %1330 = vmatprep.subr.bf16.mxu0 %v2723_v1  ;;  %1619 = vmatprep.subr.bf16.mxu1 %v2723_v1  ;;  %v2541_v56 = vld [vmem:[%s2843_s8 + $0xa8] ss:$16 sps:$4 sm:$0xff]   ;;  %v2542_v57 = vld [vmem:[%s2843_s8 + $0xc4] ss:$16 sps:$4 sm:$0xff]   ;;  %v2544_v58 = vld [vmem:[%s2843_s8 + $0xcc] ss:$16 sps:$4 sm:$0xff]  }
  0x1a   : > { %v2546_v59 = vld [vmem:[%s2843_s8 + $0xc0] ss:$16 sps:$4 sm:$0xff]   ;;  %v2547_v60 = vld [vmem:[%s2843_s8 + $0xc8] ss:$16 sps:$4 sm:$0xff]   ;;  %v2548_v61 = vld [vmem:[%s2843_s8 + $0xe4] ss:$16 sps:$4 sm:$0xff]  }
  0x1b   : > { %v2550_v62 = vld [vmem:[%s2843_s8 + $0xec] ss:$16 sps:$4 sm:$0xff]   ;;  %v2552_v63 = vld [vmem:[%s2843_s8 + $0xe0] ss:$16 sps:$4 sm:$0xff]   ;;  %v2553_v0 = vld [vmem:[%s2843_s8 + $0xe8] ss:$16 sps:$4 sm:$0xff]  }
  0x1c   : > { %1331 = vmatpush1.bf16.msra.mxu0 %v2484_v11  ;;  %1620 = vmatpush1.bf16.msra.mxu1 %v2485_v12  ;;  %v2556_v2 = vld [vmem:[%s2843_s8 + $0x10c] ss:$16 sps:$4 sm:$0xff]   ;;  %v2558_v3 = vld [vmem:[%s2843_s8 + $0x100] ss:$16 sps:$4 sm:$0xff]   ;;  %v2559_v4 = vld [vmem:[%s2843_s8 + $0x108] ss:$16 sps:$4 sm:$0xff]  }
  0x1d   : > { %1332 = vmatprep.subr.bf16.mxu0 %v2723_v1  ;;  %1621 = vmatprep.subr.bf16.mxu1 %v2723_v1  ;;  %v2560_v5 = vld [vmem:[%s2843_s8 + $0x124] ss:$16 sps:$4 sm:$0xff]   ;;  %v2562_v6 = vld [vmem:[%s2843_s8 + $0x12c] ss:$16 sps:$4 sm:$0xff]   ;;  %v2564_v7 = vld [vmem:[%s2843_s8 + $0x120] ss:$16 sps:$4 sm:$0xff]  }
  0x1e   : > { %v2565_v8 = vld [vmem:[%s2843_s8 + $0x128] ss:$16 sps:$4 sm:$0xff]   ;;  %v2566_v9 = vld [vmem:[%s2843_s8 + $0x144] ss:$16 sps:$4 sm:$0xff]   ;;  %v2568_v10 = vld [vmem:[%s2843_s8 + $0x14c] ss:$16 sps:$4 sm:$0xff]  }
  0x1f   : > { %v2570_v11 = vld [vmem:[%s2843_s8 + $0x140] ss:$16 sps:$4 sm:$0xff]   ;;  %v2571_v12 = vld [vmem:[%s2843_s8 + $0x148] ss:$16 sps:$4 sm:$0xff]   ;;  %v2584_v21 = vld [vmem:[%s2843_s8 + $0x1a4] ss:$16 sps:$4 sm:$0xff]  }
  0x20   : > { %1333 = vmatpush1.bf16.msra.mxu0 %v2486_v13  ;;  %1622 = vmatpush1.bf16.msra.mxu1 %v2487_v14  ;;  %v2572_v13 = vld [vmem:[%s2843_s8 + $0x164] ss:$16 sps:$4 sm:$0xff]   ;;  %v2574_v14 = vld [vmem:[%s2843_s8 + $0x16c] ss:$16 sps:$4 sm:$0xff]   ;;  %v2582_v19 = vld [vmem:[%s2843_s8 + $0x180] ss:$16 sps:$4 sm:$0xff]  }
  0x21   : > { %1334 = vmatprep.subr.bf16.mxu0 %v2723_v1  ;;  %1623 = vmatprep.subr.bf16.mxu1 %v2723_v1 }
  0x24   : > { %1335 = vmatpush1.bf16.msra.mxu0 %v2488_v15  ;;  %1624 = vmatpush1.bf16.msra.mxu1 %v2489_v16  ;;  %v2576_v15 = vld [vmem:[%s2843_s8 + $0x160] ss:$16 sps:$4 sm:$0xff]   ;;  %v2577_v16 = vld [vmem:[%s2843_s8 + $0x168] ss:$16 sps:$4 sm:$0xff]  }
  0x25   : > { %1336 = vmatprep.subr.bf16.mxu0 %v2723_v1  ;;  %1625 = vmatprep.subr.bf16.mxu1 %v2723_v1 }
  0x28   : > { %1337 = vmatpush1.bf16.msra.mxu0 %v2490_v17  ;;  %1626 = vmatpush1.bf16.msra.mxu1 %v2491_v18  ;;  %v2578_v17 = vld [vmem:[%s2843_s8 + $0x184] ss:$16 sps:$4 sm:$0xff]   ;;  %v2580_v18 = vld [vmem:[%s2843_s8 + $0x18c] ss:$16 sps:$4 sm:$0xff]  }
  0x29   : > { %1338 = vmatprep.subr.bf16.mxu0 %v2723_v1  ;;  %1627 = vmatprep.subr.bf16.mxu1 %v2723_v1 }
  0x2c   : > { %1339 = vmatpush1.bf16.msra.mxu0 %v2492_v20  ;;  %1628 = vmatpush1.bf16.msra.mxu1 %v2493_v22  ;;  %v2583_v20 = vld [vmem:[%s2843_s8 + $0x188] ss:$16 sps:$4 sm:$0xff]   ;;  %v2586_v22 = vld [vmem:[%s2843_s8 + $0x1ac] ss:$16 sps:$4 sm:$0xff]  }
  0x2d   : > { %1340 = vmatprep.subr.bf16.mxu0 %v2723_v1  ;;  %1629 = vmatprep.subr.bf16.mxu1 %v2723_v1 }
  0x30   : > { %1341 = vmatpush1.bf16.msra.mxu0 %v2494_v23  ;;  %1630 = vmatpush1.bf16.msra.mxu1 %v2495_v24  ;;  %v2588_v23 = vld [vmem:[%s2843_s8 + $0x1a0] ss:$16 sps:$4 sm:$0xff]   ;;  %v2589_v24 = vld [vmem:[%s2843_s8 + $0x1a8] ss:$16 sps:$4 sm:$0xff]  }
  0x31   : > { %1342 = vmatprep.subr.bf16.mxu0 %v2723_v1  ;;  %1631 = vmatprep.subr.bf16.mxu1 %v2723_v1 }
  0x34   : > { %1343 = vmatpush1.bf16.msra.mxu0 %v2496_v25  ;;  %1632 = vmatpush1.bf16.msra.mxu1 %v2497_v26  ;;  %v2590_v25 = vld [vmem:[%s2843_s8 + $0x1c4] ss:$16 sps:$4 sm:$0xff]   ;;  %v2592_v26 = vld [vmem:[%s2843_s8 + $0x1cc] ss:$16 sps:$4 sm:$0xff]  }
  0x35   : > { %1344 = vmatprep.subr.bf16.mxu0 %v2723_v1  ;;  %1633 = vmatprep.subr.bf16.mxu1 %v2723_v1 }
  0x38   : > { %1345 = vmatpush1.bf16.msra.mxu0 %v2498_v27  ;;  %1634 = vmatpush1.bf16.msra.mxu1 %v2499_v28  ;;  %v2594_v27 = vld [vmem:[%s2843_s8 + $0x1c0] ss:$16 sps:$4 sm:$0xff]   ;;  %v2595_v28 = vld [vmem:[%s2843_s8 + $0x1c8] ss:$16 sps:$4 sm:$0xff]  }
  0x39   : > { %1346 = vmatprep.subr.bf16.mxu0 %v2723_v1  ;;  %1635 = vmatprep.subr.bf16.mxu1 %v2723_v1 }
  0x3c   : > { %1347 = vmatpush1.bf16.msra.mxu0 %v2500_v29  ;;  %1636 = vmatpush1.bf16.msra.mxu1 %v2501_v30  ;;  %v2596_v29 = vld [vmem:[%s2843_s8 + $0x1e4] ss:$16 sps:$4 sm:$0xff]   ;;  %v2598_v30 = vld [vmem:[%s2843_s8 + $0x1ec] ss:$16 sps:$4 sm:$0xff]  }
  0x3d   : > { %1348 = vmatprep.subr.bf16.mxu0 %v2723_v1  ;;  %1637 = vmatprep.subr.bf16.mxu1 %v2723_v1 }
  0x40   : > { %1349 = vmatpush1.bf16.msra.mxu0 %v2502_v31  ;;  %1638 = vmatpush1.bf16.msra.mxu1 %v2503_v32  ;;  %v2600_v31 = vld [vmem:[%s2843_s8 + $0x1e0] ss:$16 sps:$4 sm:$0xff]   ;;  %v2601_v32 = vld [vmem:[%s2843_s8 + $0x1e8] ss:$16 sps:$4 sm:$0xff]  }
  0x41   : > { %1350 = vmatprep.subr.bf16.mxu0 %v2723_v1  ;;  %1639 = vmatprep.subr.bf16.mxu1 %v2723_v1  ;;  %v2554_v1 = vld [vmem:[%s2843_s8 + $0x104] ss:$16 sps:$4 sm:$0xff]  }
  0x44   : > { %1351 = vmatpush1.bf16.msra.mxu0 %v2504_v33  ;;  %1640 = vmatpush1.bf16.msra.mxu1 %v2505_v34  ;;  %v2602_v33 = vld [vmem:[%s2843_s8 + $0x204] ss:$16 sps:$4 sm:$0xff]   ;;  %v2604_v34 = vld [vmem:[%s2843_s8 + $0x20c] ss:$16 sps:$4 sm:$0xff]  }
  0x47   : > { %1353 = vmatmul.mubr.bf16.vlgmr.msra.gmra.mrb[0].mxu0 %v2506_v35  ;;  %1642 = vmatmul.mubr.bf16.vlgmr.msra.gmra.mrb[0].mxu1 %v2509_v36  ;;  %v2606_v35 = vld [vmem:[%s2843_s8 + $0x200] ss:$16 sps:$4 sm:$0xff]   ;;  %v2607_v36 = vld [vmem:[%s2843_s8 + $0x208] ss:$16 sps:$4 sm:$0xff]  }
  0x48   : > { %1360 = vmatprep.mubr.bf16.mxu0 %v2512_v37  ;;  %1649 = vmatprep.mubr.bf16.mxu1 %v2514_v38  ;;  %v2608_v37 = vld [vmem:[%s2843_s8 + $0x224] ss:$16 sps:$4 sm:$0xff]   ;;  %v2610_v38 = vld [vmem:[%s2843_s8 + $0x22c] ss:$16 sps:$4 sm:$0xff]  }
  0x4f   : > { %1361 = vmatmul.mubr.bf16.gmra.mrb[4].mxu0 %v2516_v39  ;;  %1650 = vmatmul.mubr.bf16.gmra.mrb[4].mxu1 %v2517_v40  ;;  %v2612_v39 = vld [vmem:[%s2843_s8 + $0x220] ss:$16 sps:$4 sm:$0xff]   ;;  %v2613_v40 = vld [vmem:[%s2843_s8 + $0x228] ss:$16 sps:$4 sm:$0xff]  }
  0x50   : > { %1368 = vmatprep.mubr.bf16.mxu0 %v2518_v41  ;;  %1657 = vmatprep.mubr.bf16.mxu1 %v2520_v42  ;;  %v2614_v41 = vld [vmem:[%s2843_s8 + $0x244] ss:$16 sps:$4 sm:$0xff]   ;;  %v2616_v42 = vld [vmem:[%s2843_s8 + $0x24c] ss:$16 sps:$4 sm:$0xff]  }
  0x57   : > { %1369 = vmatmul.mubr.bf16.gmra.mrb[8].mxu0 %v2522_v43  ;;  %1658 = vmatmul.mubr.bf16.gmra.mrb[8].mxu1 %v2523_v44  ;;  %v2618_v43 = vld [vmem:[%s2843_s8 + $0x240] ss:$16 sps:$4 sm:$0xff]   ;;  %v2619_v44 = vld [vmem:[%s2843_s8 + $0x248] ss:$16 sps:$4 sm:$0xff]  }
  0x58   : > { %1376 = vmatprep.mubr.bf16.mxu0 %v2524_v45  ;;  %1665 = vmatprep.mubr.bf16.mxu1 %v2526_v46  ;;  %v2620_v45 = vld [vmem:[%s2843_s8 + $0x264] ss:$16 sps:$4 sm:$0xff]   ;;  %v2622_v46 = vld [vmem:[%s2843_s8 + $0x26c] ss:$16 sps:$4 sm:$0xff]  }
  0x5f   : > { %1377 = vmatmul.mubr.bf16.gmra.mrb[12].mxu0 %v2528_v47  ;;  %1666 = vmatmul.mubr.bf16.gmra.mrb[12].mxu1 %v2529_v48  ;;  %v2624_v47 = vld [vmem:[%s2843_s8 + $0x260] ss:$16 sps:$4 sm:$0xff]   ;;  %v2625_v48 = vld [vmem:[%s2843_s8 + $0x268] ss:$16 sps:$4 sm:$0xff]  }
  0x60   : > { %1384 = vmatprep.mubr.bf16.mxu0 %v2530_v49  ;;  %1673 = vmatprep.mubr.bf16.mxu1 %v2532_v50  ;;  %v2626_v49 = vld [vmem:[%s2843_s8 + $0x284] ss:$16 sps:$4 sm:$0xff]   ;;  %v2628_v50 = vld [vmem:[%s2843_s8 + $0x28c] ss:$16 sps:$4 sm:$0xff]  }
  0x67   : > { %1385 = vmatmul.mubr.bf16.gmra.mrb[16].mxu0 %v2534_v51  ;;  %1674 = vmatmul.mubr.bf16.gmra.mrb[16].mxu1 %v2535_v52  ;;  %v2630_v51 = vld [vmem:[%s2843_s8 + $0x280] ss:$16 sps:$4 sm:$0xff]   ;;  %v2631_v52 = vld [vmem:[%s2843_s8 + $0x288] ss:$16 sps:$4 sm:$0xff]  }
  0x68   : > { %1392 = vmatprep.mubr.bf16.mxu0 %v2536_v53  ;;  %1681 = vmatprep.mubr.bf16.mxu1 %v2538_v54  ;;  %v2632_v53 = vld [vmem:[%s2843_s8 + $0x2a4] ss:$16 sps:$4 sm:$0xff]   ;;  %v2634_v54 = vld [vmem:[%s2843_s8 + $0x2ac] ss:$16 sps:$4 sm:$0xff]  }
  0x6f   : > { %1393 = vmatmul.mubr.bf16.gmra.mrb[20].mxu0 %v2540_v55  ;;  %1682 = vmatmul.mubr.bf16.gmra.mrb[20].mxu1 %v2541_v56  ;;  %v2636_v55 = vld [vmem:[%s2843_s8 + $0x2a0] ss:$16 sps:$4 sm:$0xff]   ;;  %v2637_v56 = vld [vmem:[%s2843_s8 + $0x2a8] ss:$16 sps:$4 sm:$0xff]  }
  0x70   : > { %1400 = vmatprep.mubr.bf16.mxu0 %v2542_v57  ;;  %1689 = vmatprep.mubr.bf16.mxu1 %v2544_v58  ;;  %v2638_v57 = vld [vmem:[%s2843_s8 + $0x2c4] ss:$16 sps:$4 sm:$0xff]   ;;  %v2640_v58 = vld [vmem:[%s2843_s8 + $0x2cc] ss:$16 sps:$4 sm:$0xff]  }
  0x77   : > { %1401 = vmatmul.mubr.bf16.gmra.mrb[24].mxu0 %v2546_v59  ;;  %1690 = vmatmul.mubr.bf16.gmra.mrb[24].mxu1 %v2547_v60  ;;  %v2642_v59 = vld [vmem:[%s2843_s8 + $0x2c0] ss:$16 sps:$4 sm:$0xff]   ;;  %v2643_v60 = vld [vmem:[%s2843_s8 + $0x2c8] ss:$16 sps:$4 sm:$0xff]  }
  0x78   : > { %1408 = vmatprep.mubr.bf16.mxu0 %v2548_v61  ;;  %1697 = vmatprep.mubr.bf16.mxu1 %v2550_v62  ;;  %v2644_v61 = vld [vmem:[%s2843_s8 + $0x2e4] ss:$16 sps:$4 sm:$0xff]   ;;  %v2646_v62 = vld [vmem:[%s2843_s8 + $0x2ec] ss:$16 sps:$4 sm:$0xff]  }
  0x7f   : > { %1409 = vmatmul.mubr.bf16.gmra.mrb[28].mxu0 %v2552_v63  ;;  %1698 = vmatmul.mubr.bf16.gmra.mrb[28].mxu1 %v2553_v0  ;;  %v2648_v63 = vld [vmem:[%s2843_s8 + $0x2e0] ss:$16 sps:$4 sm:$0xff]   ;;  %v2649_v0 = vld [vmem:[%s2843_s8 + $0x2e8] ss:$16 sps:$4 sm:$0xff]  }
  0x80   : > { %1416 = vmatprep.mubr.bf16.mxu0 %v2554_v1  ;;  %1705 = vmatprep.mubr.bf16.mxu1 %v2556_v2  ;;  %v2650_v1 = vld [vmem:[%s2843_s8 + $0x304] ss:$16 sps:$4 sm:$0xff]   ;;  %v2652_v2 = vld [vmem:[%s2843_s8 + $0x30c] ss:$16 sps:$4 sm:$0xff]  }
  0x87   : > { %1417 = vmatmul.mubr.bf16.gmra.mrb[32].mxu0 %v2558_v3  ;;  %1706 = vmatmul.mubr.bf16.gmra.mrb[32].mxu1 %v2559_v4  ;;  %v2654_v3 = vld [vmem:[%s2843_s8 + $0x300] ss:$16 sps:$4 sm:$0xff]   ;;  %v2655_v4 = vld [vmem:[%s2843_s8 + $0x308] ss:$16 sps:$4 sm:$0xff]  }
  0x88   : > { %1424 = vmatprep.mubr.bf16.mxu0 %v2560_v5  ;;  %1713 = vmatprep.mubr.bf16.mxu1 %v2562_v6  ;;  %v2656_v5 = vld [vmem:[%s2843_s8 + $0x324] ss:$16 sps:$4 sm:$0xff]   ;;  %v2658_v6 = vld [vmem:[%s2843_s8 + $0x32c] ss:$16 sps:$4 sm:$0xff]  }
  0x8f   : > { %1425 = vmatmul.mubr.bf16.gmra.mrb[36].mxu0 %v2564_v7  ;;  %1714 = vmatmul.mubr.bf16.gmra.mrb[36].mxu1 %v2565_v8  ;;  %v2660_v7 = vld [vmem:[%s2843_s8 + $0x320] ss:$16 sps:$4 sm:$0xff]   ;;  %v2661_v8 = vld [vmem:[%s2843_s8 + $0x328] ss:$16 sps:$4 sm:$0xff]  }
  0x90   : > { %1432 = vmatprep.mubr.bf16.mxu0 %v2566_v9  ;;  %1721 = vmatprep.mubr.bf16.mxu1 %v2568_v10  ;;  %v2662_v9 = vld [vmem:[%s2843_s8 + $0x344] ss:$16 sps:$4 sm:$0xff]   ;;  %v2664_v10 = vld [vmem:[%s2843_s8 + $0x34c] ss:$16 sps:$4 sm:$0xff]  }
  0x97   : > { %1433 = vmatmul.mubr.bf16.gmra.mrb[40].mxu0 %v2570_v11  ;;  %1722 = vmatmul.mubr.bf16.gmra.mrb[40].mxu1 %v2571_v12  ;;  %v2666_v11 = vld [vmem:[%s2843_s8 + $0x340] ss:$16 sps:$4 sm:$0xff]   ;;  %v2667_v12 = vld [vmem:[%s2843_s8 + $0x348] ss:$16 sps:$4 sm:$0xff]  }
  0x98   : > { %1440 = vmatprep.mubr.bf16.mxu0 %v2572_v13  ;;  %1729 = vmatprep.mubr.bf16.mxu1 %v2574_v14  ;;  %v2668_v13 = vld [vmem:[%s2843_s8 + $0x364] ss:$16 sps:$4 sm:$0xff]   ;;  %v2670_v14 = vld [vmem:[%s2843_s8 + $0x36c] ss:$16 sps:$4 sm:$0xff]  }
  0x9f   : > { %1441 = vmatmul.mubr.bf16.gmra.mrb[44].mxu0 %v2576_v15  ;;  %1730 = vmatmul.mubr.bf16.gmra.mrb[44].mxu1 %v2577_v16  ;;  %v3020_v15 = vld [vmem:[%s3258_s2] ss:$0 sm:$0xff] }
  0xa0   : > { %1448 = vmatprep.mubr.bf16.mxu0 %v2578_v17  ;;  %1737 = vmatprep.mubr.bf16.mxu1 %v2580_v18 }
  0xa7   : > { %1449 = vmatmul.mubr.bf16.gmra.mrb[48].mxu0 %v2582_v19  ;;  %1738 = vmatmul.mubr.bf16.gmra.mrb[48].mxu1 %v2583_v20  ;;  %v1898_v19 = vld [vmem:[%s3025_s27] sm:$0xff] }
  0xa8   : > { %1456 = vmatprep.mubr.bf16.mxu0 %v2584_v21  ;;  %1745 = vmatprep.mubr.bf16.mxu1 %v2586_v22  ;;  %v2672_v21 = vld [vmem:[%s2843_s8 + $0x360] ss:$16 sps:$4 sm:$0xff]  }
  0xaf   : > { %1457 = vmatmul.mubr.bf16.gmra.mrb[52].mxu0 %v2588_v23  ;;  %1746 = vmatmul.mubr.bf16.gmra.mrb[52].mxu1 %v2589_v24  ;;  %v2673_v24 = vld [vmem:[%s2843_s8 + $0x368] ss:$16 sps:$4 sm:$0xff]  }
  0xb0   : > { %1464 = vmatprep.mubr.bf16.mxu0 %v2590_v25  ;;  %1753 = vmatprep.mubr.bf16.mxu1 %v2592_v26  ;;  %v2674_v25 = vld [vmem:[%s2843_s8 + $0x384] ss:$16 sps:$4 sm:$0xff]  }
  0xb7   : > { %1465 = vmatmul.mubr.bf16.gmra.mrb[56].mxu0 %v2594_v27  ;;  %1754 = vmatmul.mubr.bf16.gmra.mrb[56].mxu1 %v2595_v28 }
  0xb8   : > { %1472 = vmatprep.mubr.bf16.mxu0 %v2596_v29  ;;  %1761 = vmatprep.mubr.bf16.mxu1 %v2598_v30  ;;  %v2676_v30 = vld [vmem:[%s2843_s8 + $0x38c] ss:$16 sps:$4 sm:$0xff]  }
  0xbf   : > { %1473 = vmatmul.mubr.bf16.gmra.mrb[60].mxu0 %v2600_v31  ;;  %1762 = vmatmul.mubr.bf16.gmra.mrb[60].mxu1 %v2601_v32  ;;  %v1899_v31 = vld [vmem:[%s3025_s27 + $0x8] sm:$0xff] }
  0xc0   : > { %1480 = vmatprep.mubr.bf16.mxu0 %v2602_v33  ;;  %1769 = vmatprep.mubr.bf16.mxu1 %v2604_v34 }
  0xc7   : > { %1481 = vmatmul.mubr.bf16.gmra.mrb[64].mxu0 %v2606_v35  ;;  %1770 = vmatmul.mubr.bf16.gmra.mrb[64].mxu1 %v2607_v36 }
  0xc8   : > { %1488 = vmatprep.mubr.bf16.mxu0 %v2608_v37  ;;  %1777 = vmatprep.mubr.bf16.mxu1 %v2610_v38 }
  0xcf   : > { %1489 = vmatmul.mubr.bf16.gmra.mrb[68].mxu0 %v2612_v39  ;;  %1778 = vmatmul.mubr.bf16.gmra.mrb[68].mxu1 %v2613_v40 }
  0xd0   : > { %1496 = vmatprep.mubr.bf16.mxu0 %v2614_v41  ;;  %1785 = vmatprep.mubr.bf16.mxu1 %v2616_v42  ;;  %v1900_v41 = vld [vmem:[%s3025_s27 + $0x10] sm:$0xff] }
  0xd7   : > { %1497 = vmatmul.mubr.bf16.gmra.mrb[72].mxu0 %v2618_v43  ;;  %1786 = vmatmul.mubr.bf16.gmra.mrb[72].mxu1 %v2619_v44  ;;  %v2678_v43 = vld [vmem:[%s2843_s8 + $0x380] ss:$16 sps:$4 sm:$0xff]  }
  0xd8   : > { %1504 = vmatprep.mubr.bf16.mxu0 %v2620_v45  ;;  %1793 = vmatprep.mubr.bf16.mxu1 %v2622_v46  ;;  %v2679_v46 = vld [vmem:[%s2843_s8 + $0x388] ss:$16 sps:$4 sm:$0xff]  }
  0xdf   : > { %1505 = vmatmul.mubr.bf16.gmra.mrb[76].mxu0 %v2624_v47  ;;  %1794 = vmatmul.mubr.bf16.gmra.mrb[76].mxu1 %v2625_v48  ;;  %v2680_v47 = vld [vmem:[%s2843_s8 + $0x3a4] ss:$16 sps:$4 sm:$0xff]  }
  0xe0   : > { %1512 = vmatprep.mubr.bf16.mxu0 %v2626_v49  ;;  %1801 = vmatprep.mubr.bf16.mxu1 %v2628_v50 }
  0xe7   : > { %1513 = vmatmul.mubr.bf16.gmra.mrb[80].mxu0 %v2630_v51  ;;  %1802 = vmatmul.mubr.bf16.gmra.mrb[80].mxu1 %v2631_v52  ;;  %v2682_v52 = vld [vmem:[%s2843_s8 + $0x3ac] ss:$16 sps:$4 sm:$0xff]  }
  0xe8   : > { %1520 = vmatprep.mubr.bf16.mxu0 %v2632_v53  ;;  %1809 = vmatprep.mubr.bf16.mxu1 %v2634_v54  ;;  %v1901_v53 = vld [vmem:[%s3025_s27 + $0x18] sm:$0xff] }
  0xef   : > { %1521 = vmatmul.mubr.bf16.gmra.mrb[84].mxu0 %v2636_v55  ;;  %1810 = vmatmul.mubr.bf16.gmra.mrb[84].mxu1 %v2637_v56 }
  0xf0   : > { %1528 = vmatprep.mubr.bf16.mxu0 %v2638_v57  ;;  %1817 = vmatprep.mubr.bf16.mxu1 %v2640_v58 }
  0xf7   : > { %1529 = vmatmul.mubr.bf16.gmra.mrb[88].mxu0 %v2642_v59  ;;  %1818 = vmatmul.mubr.bf16.gmra.mrb[88].mxu1 %v2643_v60 }
  0xf8   : > { %1536 = vmatprep.mubr.bf16.mxu0 %v2644_v61  ;;  %1825 = vmatprep.mubr.bf16.mxu1 %v2646_v62 }
  0xff   : > { %1537 = vmatmul.mubr.bf16.gmra.mrb[92].mxu0 %v2648_v63  ;;  %1826 = vmatmul.mubr.bf16.gmra.mrb[92].mxu1 %v2649_v0  ;;  %v1902_v63 = vld [vmem:[%s3025_s27 + $0x20] sm:$0xff] }
 0x100   : > { %1544 = vmatprep.mubr.bf16.mxu0 %v2650_v1  ;;  %1833 = vmatprep.mubr.bf16.mxu1 %v2652_v2  ;;  %v2684_v1 = vld [vmem:[%s2843_s8 + $0x3a0] ss:$16 sps:$4 sm:$0xff]  }
 0x107   : > { %1545 = vmatmul.mubr.bf16.gmra.mrb[96].mxu0 %v2654_v3  ;;  %1834 = vmatmul.mubr.bf16.gmra.mrb[96].mxu1 %v2655_v4  ;;  %v2685_v4 = vld [vmem:[%s2843_s8 + $0x3a8] ss:$16 sps:$4 sm:$0xff]  }
 0x108   : > { %1552 = vmatprep.mubr.bf16.mxu0 %v2656_v5  ;;  %1841 = vmatprep.mubr.bf16.mxu1 %v2658_v6  ;;  %v2686_v5 = vld [vmem:[%s2843_s8 + $0x3c4] ss:$16 sps:$4 sm:$0xff]  }
 0x10f   : > { %1553 = vmatmul.mubr.bf16.gmra.mrb[100].mxu0 %v2660_v7  ;;  %1842 = vmatmul.mubr.bf16.gmra.mrb[100].mxu1 %v2661_v8 }
 0x110   : > { %1560 = vmatprep.mubr.bf16.mxu0 %v2662_v9  ;;  %1849 = vmatprep.mubr.bf16.mxu1 %v2664_v10  ;;  %v2688_v10 = vld [vmem:[%s2843_s8 + $0x3cc] ss:$16 sps:$4 sm:$0xff]  }
 0x117   : > { %1561 = vmatmul.mubr.bf16.gmra.mrb[104].mxu0 %v2666_v11  ;;  %1850 = vmatmul.mubr.bf16.gmra.mrb[104].mxu1 %v2667_v12  ;;  %v1903_v11 = vld [vmem:[%s3025_s27 + $0x28] sm:$0xff] }
 0x118   : > { %1568 = vmatprep.mubr.bf16.mxu0 %v2668_v13  ;;  %1857 = vmatprep.mubr.bf16.mxu1 %v2670_v14 }
 0x11a   : > { %v1354_v16 = vpop.f32.mrb[0].mxu0  ;;  %v1643_v18 = vpop.f32.mrb[0].mxu1 }
 0x11b   : > { %v1355_v17 = vadd.f32 %v3020_v15, %v1354_v16  ;;  %v1356_v20 = vpop.f32.mrb[1].mxu0  ;;  %v1645_v22 = vpop.f32.mrb[1].mxu1 }
 0x11c   : > { %v1357_v23 = vpop.f32.mrb[2].mxu0  ;;  %v1646_v28 = vpop.f32.mrb[2].mxu1  ;;  %v1904_v22 = vld [vmem:[%s3025_s27 + $0x30] sm:$0xff] }
 0x11d   : > { %v1644_v26 = vadd.f32 %v1643_v18, %v1355_v17  ;;  %v1358_v27 = vadd.f32 %v3020_v15, %v1357_v23  ;;  %v1359_v29 = vpop.f32.mrb[3].mxu0  ;;  %v1648_v32 = vpop.f32.mrb[3].mxu1 }
 0x11f   : > { %v1962_v33 = vadd.f32 %v1898_v19, %v1644_v26  ;;  %v1647_v34 = vadd.f32 %v1646_v28, %v1358_v27  ;;  %1569 = vmatmul.mubr.bf16.gmra.mrb[108].mxu0 %v2672_v21  ;;  %1858 = vmatmul.mubr.bf16.gmra.mrb[108].mxu1 %v2673_v24  ;;  %v2690_v24 = vld [vmem:[%s2843_s8 + $0x3c0] ss:$16 sps:$4 sm:$0xff]   ;;  %v2691_v27 = vld [vmem:[%s2843_s8 + $0x3c8] ss:$16 sps:$4 sm:$0xff]   ;;  %v2692_v28 = vld [vmem:[%s2843_s8 + $0x3e4] ss:$16 sps:$4 sm:$0xff]  }
 0x120   : > { %1576 = vmatprep.mubr.bf16.mxu0 %v2674_v25  ;;  %1865 = vmatprep.mubr.bf16.mxu1 %v2676_v30 }
 0x121   : > { %v2026_v35 = vmax.f32 %v1962_v33, 0.0  ;;  %v1963_v36 = vadd.f32 %v1899_v31, %v1647_v34  ;;  %v2694_v33 = vld [vmem:[%s2843_s8 + $0x3ec] ss:$16 sps:$4 sm:$0xff]  }
 0x122   : > { %v1362_v37 = vpop.f32.mrb[4].mxu0  ;;  %v1651_v40 = vpop.f32.mrb[4].mxu1  ;;  %v1905_v34 = vld [vmem:[%s3025_s27 + $0x38] sm:$0xff] }
 0x123   : > { %2090 = vst [vmem:[%s3038_s29] sm:$0xff] %v2026_v35  ;;  %v2027_v38 = vmax.f32 %v1963_v36, 0.0  ;;  %v1363_v39 = vadd.f32 %v3020_v15, %v1362_v37  ;;  %v1364_v42 = vpop.f32.mrb[5].mxu0  ;;  %v1653_v44 = vpop.f32.mrb[5].mxu1 }
 0x124   : > { %v1365_v45 = vpop.f32.mrb[6].mxu0  ;;  %v1654_v50 = vpop.f32.mrb[6].mxu1 }
 0x125   : > { %2091 = vst [vmem:[%s3038_s29 + $0x8] sm:$0xff] %v2027_v38  ;;  %v1652_v48 = vadd.f32 %v1651_v40, %v1363_v39  ;;  %v1366_v49 = vadd.f32 %v3020_v15, %v1365_v45  ;;  %v1367_v51 = vpop.f32.mrb[7].mxu0  ;;  %v1656_v54 = vpop.f32.mrb[7].mxu1  ;;  %v2696_v45 = vld [vmem:[%s2843_s8 + $0x3e0] ss:$16 sps:$4 sm:$0xff]  }
 0x126   : > { %v1907_v54 = vld [vmem:[%s3025_s27 + $0x48] sm:$0xff] }
 0x127   : > { %v1964_v55 = vadd.f32 %v1900_v41, %v1652_v48  ;;  %v1655_v56 = vadd.f32 %v1654_v50, %v1366_v49  ;;  %1577 = vmatmul.mubr.bf16.gmra.mrb[112].mxu0 %v2678_v43  ;;  %1866 = vmatmul.mubr.bf16.gmra.mrb[112].mxu1 %v2679_v46  ;;  %v1906_v46 = vld [vmem:[%s3025_s27 + $0x40] sm:$0xff]  ;;  %v2697_v49 = vld [vmem:[%s2843_s8 + $0x3e8] ss:$16 sps:$4 sm:$0xff]  }
 0x128   : > { %1584 = vmatprep.mubr.bf16.mxu0 %v2680_v47  ;;  %1873 = vmatprep.mubr.bf16.mxu1 %v2682_v52 }
 0x129   : > { %v2028_v57 = vmax.f32 %v1964_v55, 0.0  ;;  %v1965_v58 = vadd.f32 %v1901_v53, %v1655_v56 }
 0x12a   : > { %v1370_v59 = vpop.f32.mrb[8].mxu0  ;;  %v1659_v62 = vpop.f32.mrb[8].mxu1 }
 0x12b   : > { %2092 = vst [vmem:[%s3038_s29 + $0x10] sm:$0xff] %v2028_v57  ;;  %v2029_v60 = vmax.f32 %v1965_v58, 0.0  ;;  %v1371_v61 = vadd.f32 %v3020_v15, %v1370_v59  ;;  %v1372_v0 = vpop.f32.mrb[9].mxu0  ;;  %v1661_v2 = vpop.f32.mrb[9].mxu1 }
 0x12c   : > { %v1373_v3 = vpop.f32.mrb[10].mxu0  ;;  %v1662_v8 = vpop.f32.mrb[10].mxu1 }
 0x12d   : > { %2093 = vst [vmem:[%s3038_s29 + $0x18] sm:$0xff] %v2029_v60  ;;  %v1660_v6 = vadd.f32 %v1659_v62, %v1371_v61  ;;  %v1374_v7 = vadd.f32 %v3020_v15, %v1373_v3  ;;  %v1375_v9 = vpop.f32.mrb[11].mxu0  ;;  %v1664_v12 = vpop.f32.mrb[11].mxu1 }
 0x12f   : > { %v1966_v13 = vadd.f32 %v1902_v63, %v1660_v6  ;;  %v1663_v14 = vadd.f32 %v1662_v8, %v1374_v7  ;;  %1585 = vmatmul.mubr.bf16.gmra.mrb[116].mxu0 %v2684_v1  ;;  %1874 = vmatmul.mubr.bf16.gmra.mrb[116].mxu1 %v2685_v4  ;;  %v1908_v1 = vld [vmem:[%s3025_s27 + $0x50] sm:$0xff]  ;;  %v1909_v8 = vld [vmem:[%s3025_s27 + $0x58] sm:$0xff] }
 0x130   : > { %1592 = vmatprep.mubr.bf16.mxu0 %v2686_v5  ;;  %1881 = vmatprep.mubr.bf16.mxu1 %v2688_v10 }
 0x131   : > { %v2030_v16 = vmax.f32 %v1966_v13, 0.0  ;;  %v1967_v17 = vadd.f32 %v1903_v11, %v1663_v14 }
 0x132   : > { %v1378_v18 = vpop.f32.mrb[12].mxu0  ;;  %v1667_v21 = vpop.f32.mrb[12].mxu1 }
 0x133   : > { %2094 = vst [vmem:[%s3038_s29 + $0x20] sm:$0xff] %v2030_v16  ;;  %v2031_v19 = vmax.f32 %v1967_v17, 0.0  ;;  %v1379_v20 = vadd.f32 %v3020_v15, %v1378_v18  ;;  %v1380_v23 = vpop.f32.mrb[13].mxu0  ;;  %v1669_v25 = vpop.f32.mrb[13].mxu1 }
 0x134   : > { %v1381_v26 = vpop.f32.mrb[14].mxu0  ;;  %v1670_v31 = vpop.f32.mrb[14].mxu1 }
 0x135   : > { %2095 = vst [vmem:[%s3038_s29 + $0x28] sm:$0xff] %v2031_v19  ;;  %v1668_v29 = vadd.f32 %v1667_v21, %v1379_v20  ;;  %v1382_v30 = vadd.f32 %v3020_v15, %v1381_v26  ;;  %v1383_v32 = vpop.f32.mrb[15].mxu0  ;;  %v1672_v35 = vpop.f32.mrb[15].mxu1  ;;  %v1910_v20 = vld [vmem:[%s3025_s27 + $0x60] sm:$0xff] }
 0x137   : > { %v1968_v36 = vadd.f32 %v1904_v22, %v1668_v29  ;;  %v1671_v37 = vadd.f32 %v1670_v31, %v1382_v30  ;;  %1593 = vmatmul.mubr.bf16.gmra.mrb[120].mxu0 %v2690_v24  ;;  %1882 = vmatmul.mubr.bf16.gmra.mrb[120].mxu1 %v2691_v27  ;;  %v1911_v27 = vld [vmem:[%s3025_s27 + $0x68] sm:$0xff] }
 0x138   : > { %1600 = vmatprep.mubr.bf16.mxu0 %v2692_v28  ;;  %1889 = vmatprep.mubr.bf16.mxu1 %v2694_v33 }
 0x139   : > { %v2032_v38 = vmax.f32 %v1968_v36, 0.0  ;;  %v1969_v39 = vadd.f32 %v1905_v34, %v1671_v37 }
 0x13a   : > { %v1386_v40 = vpop.f32.mrb[16].mxu0  ;;  %v1675_v43 = vpop.f32.mrb[16].mxu1 }
 0x13b   : > { %2096 = vst [vmem:[%s3038_s29 + $0x30] sm:$0xff] %v2032_v38  ;;  %v2033_v41 = vmax.f32 %v1969_v39, 0.0  ;;  %v1387_v42 = vadd.f32 %v3020_v15, %v1386_v40  ;;  %v1388_v44 = vpop.f32.mrb[17].mxu0  ;;  %v1677_v47 = vpop.f32.mrb[17].mxu1  ;;  %v1912_v38 = vld [vmem:[%s3025_s27 + $0x70] sm:$0xff] }
 0x13c   : > { %v1389_v48 = vpop.f32.mrb[18].mxu0  ;;  %v1678_v52 = vpop.f32.mrb[18].mxu1 }
 0x13d   : > { %2097 = vst [vmem:[%s3038_s29 + $0x38] sm:$0xff] %v2033_v41  ;;  %v1676_v50 = vadd.f32 %v1675_v43, %v1387_v42  ;;  %v1390_v51 = vadd.f32 %v3020_v15, %v1389_v48  ;;  %v1391_v53 = vpop.f32.mrb[19].mxu0  ;;  %v1680_v55 = vpop.f32.mrb[19].mxu1 }
 0x13f   : > { %v1970_v56 = vadd.f32 %v1906_v46, %v1676_v50  ;;  %v1679_v57 = vadd.f32 %v1678_v52, %v1390_v51  ;;  %1601 = vmatmul.mubr.bf16.gmra.mrb[124].mxu0 %v2696_v45  ;;  %1890 = vmatmul.mubr.bf16.gmra.mrb[124].mxu1 %v2697_v49  ;;  %v1913_v45 = vld [vmem:[%s3025_s27 + $0x78] sm:$0xff] }
 0x141   : > { %v2034_v58 = vmax.f32 %v1970_v56, 0.0  ;;  %v1971_v59 = vadd.f32 %v1907_v54, %v1679_v57  ;;  %v1914_v56 = vld [vmem:[%s3025_s27 + $0x80] sm:$0xff] }
 0x142   : > { %v1394_v60 = vpop.f32.mrb[20].mxu0  ;;  %v1683_v63 = vpop.f32.mrb[20].mxu1 }
 0x143   : > { %2098 = vst [vmem:[%s3038_s29 + $0x40] sm:$0xff] %v2034_v58  ;;  %v2035_v61 = vmax.f32 %v1971_v59, 0.0  ;;  %v1395_v62 = vadd.f32 %v3020_v15, %v1394_v60  ;;  %v1396_v0 = vpop.f32.mrb[21].mxu0  ;;  %v1685_v2 = vpop.f32.mrb[21].mxu1 }
 0x144   : > { %v1397_v3 = vpop.f32.mrb[22].mxu0  ;;  %v1686_v6 = vpop.f32.mrb[22].mxu1 }
 0x145   : > { %2099 = vst [vmem:[%s3038_s29 + $0x48] sm:$0xff] %v2035_v61  ;;  %v1684_v4 = vadd.f32 %v1683_v63, %v1395_v62  ;;  %v1398_v5 = vadd.f32 %v3020_v15, %v1397_v3  ;;  %v1399_v7 = vpop.f32.mrb[23].mxu0  ;;  %v1688_v9 = vpop.f32.mrb[23].mxu1  ;;  %v1915_v63 = vld [vmem:[%s3025_s27 + $0x88] sm:$0xff] }
 0x147   : > { %v1972_v10 = vadd.f32 %v1908_v1, %v1684_v4  ;;  %v1687_v11 = vadd.f32 %v1686_v6, %v1398_v5 }
 0x149   : > { %v2036_v12 = vmax.f32 %v1972_v10, 0.0  ;;  %v1973_v13 = vadd.f32 %v1909_v8, %v1687_v11  ;;  %v1916_v10 = vld [vmem:[%s3025_s27 + $0x90] sm:$0xff] }
 0x14a   : > { %v1402_v14 = vpop.f32.mrb[24].mxu0  ;;  %v1691_v18 = vpop.f32.mrb[24].mxu1 }
 0x14b   : > { %2100 = vst [vmem:[%s3038_s29 + $0x50] sm:$0xff] %v2036_v12  ;;  %v2037_v16 = vmax.f32 %v1973_v13, 0.0  ;;  %v1403_v17 = vadd.f32 %v3020_v15, %v1402_v14  ;;  %v1404_v19 = vpop.f32.mrb[25].mxu0  ;;  %v1693_v21 = vpop.f32.mrb[25].mxu1 }
 0x14c   : > { %v1405_v22 = vpop.f32.mrb[26].mxu0  ;;  %v1694_v25 = vpop.f32.mrb[26].mxu1 }
 0x14d   : > { %2101 = vst [vmem:[%s3038_s29 + $0x58] sm:$0xff] %v2037_v16  ;;  %v1692_v23 = vadd.f32 %v1691_v18, %v1403_v17  ;;  %v1406_v24 = vadd.f32 %v3020_v15, %v1405_v22  ;;  %v1407_v26 = vpop.f32.mrb[27].mxu0  ;;  %v1696_v28 = vpop.f32.mrb[27].mxu1  ;;  %v1917_v18 = vld [vmem:[%s3025_s27 + $0x98] sm:$0xff] }
 0x14f   : > { %v1974_v29 = vadd.f32 %v1910_v20, %v1692_v23  ;;  %v1695_v30 = vadd.f32 %v1694_v25, %v1406_v24 }
 0x151   : > { %v2038_v31 = vmax.f32 %v1974_v29, 0.0  ;;  %v1975_v32 = vadd.f32 %v1911_v27, %v1695_v30  ;;  %v1918_v29 = vld [vmem:[%s3025_s27 + $0xa0] sm:$0xff] }
 0x152   : > { %v1410_v33 = vpop.f32.mrb[28].mxu0  ;;  %v1699_v36 = vpop.f32.mrb[28].mxu1 }
 0x153   : > { %2102 = vst [vmem:[%s3038_s29 + $0x60] sm:$0xff] %v2038_v31  ;;  %v2039_v34 = vmax.f32 %v1975_v32, 0.0  ;;  %v1411_v35 = vadd.f32 %v3020_v15, %v1410_v33  ;;  %v1412_v37 = vpop.f32.mrb[29].mxu0  ;;  %v1701_v39 = vpop.f32.mrb[29].mxu1 }
 0x154   : > { %v1413_v40 = vpop.f32.mrb[30].mxu0  ;;  %v1702_v43 = vpop.f32.mrb[30].mxu1 }
 0x155   : > { %2103 = vst [vmem:[%s3038_s29 + $0x68] sm:$0xff] %v2039_v34  ;;  %v1700_v41 = vadd.f32 %v1699_v36, %v1411_v35  ;;  %v1414_v42 = vadd.f32 %v3020_v15, %v1413_v40  ;;  %v1415_v44 = vpop.f32.mrb[31].mxu0  ;;  %v1704_v46 = vpop.f32.mrb[31].mxu1  ;;  %v1919_v36 = vld [vmem:[%s3025_s27 + $0xa8] sm:$0xff] }
 0x157   : > { %v1976_v47 = vadd.f32 %v1912_v38, %v1700_v41  ;;  %v1703_v48 = vadd.f32 %v1702_v43, %v1414_v42 }
 0x159   : > { %v2040_v49 = vmax.f32 %v1976_v47, 0.0  ;;  %v1977_v50 = vadd.f32 %v1913_v45, %v1703_v48  ;;  %v1920_v47 = vld [vmem:[%s3025_s27 + $0xb0] sm:$0xff] }
 0x15a   : > { %v1418_v51 = vpop.f32.mrb[32].mxu0  ;;  %v1707_v54 = vpop.f32.mrb[32].mxu1 }
 0x15b   : > { %2104 = vst [vmem:[%s3038_s29 + $0x70] sm:$0xff] %v2040_v49  ;;  %v2041_v52 = vmax.f32 %v1977_v50, 0.0  ;;  %v1419_v53 = vadd.f32 %v3020_v15, %v1418_v51  ;;  %v1420_v55 = vpop.f32.mrb[33].mxu0  ;;  %v1709_v57 = vpop.f32.mrb[33].mxu1 }
 0x15c   : > { %v1421_v58 = vpop.f32.mrb[34].mxu0  ;;  %v1710_v61 = vpop.f32.mrb[34].mxu1 }
 0x15d   : > { %2105 = vst [vmem:[%s3038_s29 + $0x78] sm:$0xff] %v2041_v52  ;;  %v1708_v59 = vadd.f32 %v1707_v54, %v1419_v53  ;;  %v1422_v60 = vadd.f32 %v3020_v15, %v1421_v58  ;;  %v1423_v62 = vpop.f32.mrb[35].mxu0  ;;  %v1712_v0 = vpop.f32.mrb[35].mxu1  ;;  %v1921_v54 = vld [vmem:[%s3025_s27 + $0xb8] sm:$0xff] }
 0x15f   : > { %v1978_v1 = vadd.f32 %v1914_v56, %v1708_v59  ;;  %v1711_v2 = vadd.f32 %v1710_v61, %v1422_v60 }
 0x161   : > { %v2042_v3 = vmax.f32 %v1978_v1, 0.0  ;;  %v1979_v4 = vadd.f32 %v1915_v63, %v1711_v2  ;;  %v1922_v1 = vld [vmem:[%s3025_s27 + $0xc0] sm:$0xff] }
 0x162   : > { %v1426_v5 = vpop.f32.mrb[36].mxu0  ;;  %v1715_v8 = vpop.f32.mrb[36].mxu1 }
 0x163   : > { %2106 = vst [vmem:[%s3038_s29 + $0x80] sm:$0xff] %v2042_v3  ;;  %v2043_v6 = vmax.f32 %v1979_v4, 0.0  ;;  %v1427_v7 = vadd.f32 %v3020_v15, %v1426_v5  ;;  %v1428_v9 = vpop.f32.mrb[37].mxu0  ;;  %v1717_v11 = vpop.f32.mrb[37].mxu1 }
 0x164   : > { %v1429_v12 = vpop.f32.mrb[38].mxu0  ;;  %v1718_v16 = vpop.f32.mrb[38].mxu1 }
 0x165   : > { %2107 = vst [vmem:[%s3038_s29 + $0x88] sm:$0xff] %v2043_v6  ;;  %v1716_v13 = vadd.f32 %v1715_v8, %v1427_v7  ;;  %v1430_v14 = vadd.f32 %v3020_v15, %v1429_v12  ;;  %v1431_v17 = vpop.f32.mrb[39].mxu0  ;;  %v1720_v19 = vpop.f32.mrb[39].mxu1  ;;  %v1923_v8 = vld [vmem:[%s3025_s27 + $0xc8] sm:$0xff] }
 0x167   : > { %v1980_v20 = vadd.f32 %v1916_v10, %v1716_v13  ;;  %v1719_v21 = vadd.f32 %v1718_v16, %v1430_v14 }
 0x169   : > { %v2044_v22 = vmax.f32 %v1980_v20, 0.0  ;;  %v1981_v23 = vadd.f32 %v1917_v18, %v1719_v21  ;;  %v1924_v20 = vld [vmem:[%s3025_s27 + $0xd0] sm:$0xff] }
 0x16a   : > { %v1434_v24 = vpop.f32.mrb[40].mxu0  ;;  %v1723_v27 = vpop.f32.mrb[40].mxu1 }
 0x16b   : > { %2108 = vst [vmem:[%s3038_s29 + $0x90] sm:$0xff] %v2044_v22  ;;  %v2045_v25 = vmax.f32 %v1981_v23, 0.0  ;;  %v1435_v26 = vadd.f32 %v3020_v15, %v1434_v24  ;;  %v1436_v28 = vpop.f32.mrb[41].mxu0  ;;  %v1725_v30 = vpop.f32.mrb[41].mxu1 }
 0x16c   : > { %v1437_v31 = vpop.f32.mrb[42].mxu0  ;;  %v1726_v34 = vpop.f32.mrb[42].mxu1 }
 0x16d   : > { %2109 = vst [vmem:[%s3038_s29 + $0x98] sm:$0xff] %v2045_v25  ;;  %v1724_v32 = vadd.f32 %v1723_v27, %v1435_v26  ;;  %v1438_v33 = vadd.f32 %v3020_v15, %v1437_v31  ;;  %v1439_v35 = vpop.f32.mrb[43].mxu0  ;;  %v1728_v37 = vpop.f32.mrb[43].mxu1  ;;  %v1925_v27 = vld [vmem:[%s3025_s27 + $0xd8] sm:$0xff] }
 0x16f   : > { %v1982_v38 = vadd.f32 %v1918_v29, %v1724_v32  ;;  %v1727_v39 = vadd.f32 %v1726_v34, %v1438_v33 }
 0x171   : > { %v2046_v40 = vmax.f32 %v1982_v38, 0.0  ;;  %v1983_v41 = vadd.f32 %v1919_v36, %v1727_v39  ;;  %v1926_v38 = vld [vmem:[%s3025_s27 + $0xe0] sm:$0xff] }
 0x172   : > { %v1442_v42 = vpop.f32.mrb[44].mxu0  ;;  %v1731_v45 = vpop.f32.mrb[44].mxu1 }
 0x173   : > { %2110 = vst [vmem:[%s3038_s29 + $0xa0] sm:$0xff] %v2046_v40  ;;  %v2047_v43 = vmax.f32 %v1983_v41, 0.0  ;;  %v1443_v44 = vadd.f32 %v3020_v15, %v1442_v42  ;;  %v1444_v46 = vpop.f32.mrb[45].mxu0  ;;  %v1733_v48 = vpop.f32.mrb[45].mxu1 }
 0x174   : > { %v1445_v49 = vpop.f32.mrb[46].mxu0  ;;  %v1734_v52 = vpop.f32.mrb[46].mxu1 }
 0x175   : > { %2111 = vst [vmem:[%s3038_s29 + $0xa8] sm:$0xff] %v2047_v43  ;;  %v1732_v50 = vadd.f32 %v1731_v45, %v1443_v44  ;;  %v1446_v51 = vadd.f32 %v3020_v15, %v1445_v49  ;;  %v1447_v53 = vpop.f32.mrb[47].mxu0  ;;  %v1736_v55 = vpop.f32.mrb[47].mxu1  ;;  %v1927_v45 = vld [vmem:[%s3025_s27 + $0xe8] sm:$0xff] }
 0x177   : > { %v1984_v56 = vadd.f32 %v1920_v47, %v1732_v50  ;;  %v1735_v57 = vadd.f32 %v1734_v52, %v1446_v51 }
 0x179   : > { %v2048_v58 = vmax.f32 %v1984_v56, 0.0  ;;  %v1985_v59 = vadd.f32 %v1921_v54, %v1735_v57  ;;  %v1928_v56 = vld [vmem:[%s3025_s27 + $0xf0] sm:$0xff] }
 0x17a   : > { %v1450_v60 = vpop.f32.mrb[48].mxu0  ;;  %v1739_v63 = vpop.f32.mrb[48].mxu1 }
 0x17b   : > { %2112 = vst [vmem:[%s3038_s29 + $0xb0] sm:$0xff] %v2048_v58  ;;  %v2049_v61 = vmax.f32 %v1985_v59, 0.0  ;;  %v1451_v62 = vadd.f32 %v3020_v15, %v1450_v60  ;;  %v1452_v0 = vpop.f32.mrb[49].mxu0  ;;  %v1741_v2 = vpop.f32.mrb[49].mxu1 }
 0x17c   : > { %v1453_v3 = vpop.f32.mrb[50].mxu0  ;;  %v1742_v6 = vpop.f32.mrb[50].mxu1 }
 0x17d   : > { %2113 = vst [vmem:[%s3038_s29 + $0xb8] sm:$0xff] %v2049_v61  ;;  %v1740_v4 = vadd.f32 %v1739_v63, %v1451_v62  ;;  %v1454_v5 = vadd.f32 %v3020_v15, %v1453_v3  ;;  %v1455_v7 = vpop.f32.mrb[51].mxu0  ;;  %v1744_v9 = vpop.f32.mrb[51].mxu1  ;;  %v1929_v63 = vld [vmem:[%s3025_s27 + $0xf8] sm:$0xff] }
 0x17f   : > { %v1986_v10 = vadd.f32 %v1922_v1, %v1740_v4  ;;  %v1743_v11 = vadd.f32 %v1742_v6, %v1454_v5 }
 0x181   : > { %v2050_v12 = vmax.f32 %v1986_v10, 0.0  ;;  %v1987_v13 = vadd.f32 %v1923_v8, %v1743_v11  ;;  %v1930_v10 = vld [vmem:[%s3025_s27 + $0x100] sm:$0xff] }
 0x182   : > { %v1458_v14 = vpop.f32.mrb[52].mxu0  ;;  %v1747_v18 = vpop.f32.mrb[52].mxu1 }
 0x183   : > { %2114 = vst [vmem:[%s3038_s29 + $0xc0] sm:$0xff] %v2050_v12  ;;  %v2051_v16 = vmax.f32 %v1987_v13, 0.0  ;;  %v1459_v17 = vadd.f32 %v3020_v15, %v1458_v14  ;;  %v1460_v19 = vpop.f32.mrb[53].mxu0  ;;  %v1749_v21 = vpop.f32.mrb[53].mxu1 }
 0x184   : > { %v1461_v22 = vpop.f32.mrb[54].mxu0  ;;  %v1750_v25 = vpop.f32.mrb[54].mxu1 }
 0x185   : > { %2115 = vst [vmem:[%s3038_s29 + $0xc8] sm:$0xff] %v2051_v16  ;;  %v1748_v23 = vadd.f32 %v1747_v18, %v1459_v17  ;;  %v1462_v24 = vadd.f32 %v3020_v15, %v1461_v22  ;;  %v1463_v26 = vpop.f32.mrb[55].mxu0  ;;  %v1752_v28 = vpop.f32.mrb[55].mxu1  ;;  %v1931_v18 = vld [vmem:[%s3025_s27 + $0x108] sm:$0xff] }
 0x187   : > { %v1988_v29 = vadd.f32 %v1924_v20, %v1748_v23  ;;  %v1751_v30 = vadd.f32 %v1750_v25, %v1462_v24 }
 0x189   : > { %v2052_v31 = vmax.f32 %v1988_v29, 0.0  ;;  %v1989_v32 = vadd.f32 %v1925_v27, %v1751_v30  ;;  %v1932_v29 = vld [vmem:[%s3025_s27 + $0x110] sm:$0xff] }
 0x18a   : > { %v1466_v33 = vpop.f32.mrb[56].mxu0  ;;  %v1755_v36 = vpop.f32.mrb[56].mxu1 }
 0x18b   : > { %2116 = vst [vmem:[%s3038_s29 + $0xd0] sm:$0xff] %v2052_v31  ;;  %v2053_v34 = vmax.f32 %v1989_v32, 0.0  ;;  %v1467_v35 = vadd.f32 %v3020_v15, %v1466_v33  ;;  %v1468_v37 = vpop.f32.mrb[57].mxu0  ;;  %v1757_v39 = vpop.f32.mrb[57].mxu1 }
 0x18c   : > { %v1469_v40 = vpop.f32.mrb[58].mxu0  ;;  %v1758_v43 = vpop.f32.mrb[58].mxu1 }
 0x18d   : > { %2117 = vst [vmem:[%s3038_s29 + $0xd8] sm:$0xff] %v2053_v34  ;;  %v1756_v41 = vadd.f32 %v1755_v36, %v1467_v35  ;;  %v1470_v42 = vadd.f32 %v3020_v15, %v1469_v40  ;;  %v1471_v44 = vpop.f32.mrb[59].mxu0  ;;  %v1760_v46 = vpop.f32.mrb[59].mxu1  ;;  %v1933_v36 = vld [vmem:[%s3025_s27 + $0x118] sm:$0xff] }
 0x18f   : > { %v1990_v47 = vadd.f32 %v1926_v38, %v1756_v41  ;;  %v1759_v48 = vadd.f32 %v1758_v43, %v1470_v42 }
 0x191   : > { %v2054_v49 = vmax.f32 %v1990_v47, 0.0  ;;  %v1991_v50 = vadd.f32 %v1927_v45, %v1759_v48  ;;  %v1934_v47 = vld [vmem:[%s3025_s27 + $0x120] sm:$0xff] }
 0x192   : > { %v1474_v51 = vpop.f32.mrb[60].mxu0  ;;  %v1763_v54 = vpop.f32.mrb[60].mxu1 }
 0x193   : > { %2118 = vst [vmem:[%s3038_s29 + $0xe0] sm:$0xff] %v2054_v49  ;;  %v2055_v52 = vmax.f32 %v1991_v50, 0.0  ;;  %v1475_v53 = vadd.f32 %v3020_v15, %v1474_v51  ;;  %v1476_v55 = vpop.f32.mrb[61].mxu0  ;;  %v1765_v57 = vpop.f32.mrb[61].mxu1 }
 0x194   : > { %v1477_v58 = vpop.f32.mrb[62].mxu0  ;;  %v1766_v61 = vpop.f32.mrb[62].mxu1 }
 0x195   : > { %2119 = vst [vmem:[%s3038_s29 + $0xe8] sm:$0xff] %v2055_v52  ;;  %v1764_v59 = vadd.f32 %v1763_v54, %v1475_v53  ;;  %v1478_v60 = vadd.f32 %v3020_v15, %v1477_v58  ;;  %v1479_v62 = vpop.f32.mrb[63].mxu0  ;;  %v1768_v0 = vpop.f32.mrb[63].mxu1  ;;  %v1935_v54 = vld [vmem:[%s3025_s27 + $0x128] sm:$0xff] }
 0x197   : > { %v1992_v1 = vadd.f32 %v1928_v56, %v1764_v59  ;;  %v1767_v2 = vadd.f32 %v1766_v61, %v1478_v60 }
 0x199   : > { %v2056_v3 = vmax.f32 %v1992_v1, 0.0  ;;  %v1993_v4 = vadd.f32 %v1929_v63, %v1767_v2  ;;  %v1936_v1 = vld [vmem:[%s3025_s27 + $0x130] sm:$0xff] }
 0x19a   : > { %v1482_v5 = vpop.f32.mrb[64].mxu0  ;;  %v1771_v8 = vpop.f32.mrb[64].mxu1 }
 0x19b   : > { %2120 = vst [vmem:[%s3038_s29 + $0xf0] sm:$0xff] %v2056_v3  ;;  %v2057_v6 = vmax.f32 %v1993_v4, 0.0  ;;  %v1483_v7 = vadd.f32 %v3020_v15, %v1482_v5  ;;  %v1484_v9 = vpop.f32.mrb[65].mxu0  ;;  %v1773_v11 = vpop.f32.mrb[65].mxu1 }
 0x19c   : > { %v1485_v12 = vpop.f32.mrb[66].mxu0  ;;  %v1774_v16 = vpop.f32.mrb[66].mxu1 }
 0x19d   : > { %2121 = vst [vmem:[%s3038_s29 + $0xf8] sm:$0xff] %v2057_v6  ;;  %v1772_v13 = vadd.f32 %v1771_v8, %v1483_v7  ;;  %v1486_v14 = vadd.f32 %v3020_v15, %v1485_v12  ;;  %v1487_v17 = vpop.f32.mrb[67].mxu0  ;;  %v1776_v19 = vpop.f32.mrb[67].mxu1  ;;  %v1937_v8 = vld [vmem:[%s3025_s27 + $0x138] sm:$0xff] }
 0x19f   : > { %v1994_v20 = vadd.f32 %v1930_v10, %v1772_v13  ;;  %v1775_v21 = vadd.f32 %v1774_v16, %v1486_v14 }
 0x1a1   : > { %v2058_v22 = vmax.f32 %v1994_v20, 0.0  ;;  %v1995_v23 = vadd.f32 %v1931_v18, %v1775_v21  ;;  %v1938_v20 = vld [vmem:[%s3025_s27 + $0x140] sm:$0xff] }
 0x1a2   : > { %v1490_v24 = vpop.f32.mrb[68].mxu0  ;;  %v1779_v27 = vpop.f32.mrb[68].mxu1 }
 0x1a3   : > { %2122 = vst [vmem:[%s3038_s29 + $0x100] sm:$0xff] %v2058_v22  ;;  %v2059_v25 = vmax.f32 %v1995_v23, 0.0  ;;  %v1491_v26 = vadd.f32 %v3020_v15, %v1490_v24  ;;  %v1492_v28 = vpop.f32.mrb[69].mxu0  ;;  %v1781_v30 = vpop.f32.mrb[69].mxu1 }
 0x1a4   : > { %v1493_v31 = vpop.f32.mrb[70].mxu0  ;;  %v1782_v34 = vpop.f32.mrb[70].mxu1 }
 0x1a5   : > { %2123 = vst [vmem:[%s3038_s29 + $0x108] sm:$0xff] %v2059_v25  ;;  %v1780_v32 = vadd.f32 %v1779_v27, %v1491_v26  ;;  %v1494_v33 = vadd.f32 %v3020_v15, %v1493_v31  ;;  %v1495_v35 = vpop.f32.mrb[71].mxu0  ;;  %v1784_v37 = vpop.f32.mrb[71].mxu1  ;;  %v1939_v27 = vld [vmem:[%s3025_s27 + $0x148] sm:$0xff] }
 0x1a7   : > { %v1996_v38 = vadd.f32 %v1932_v29, %v1780_v32  ;;  %v1783_v39 = vadd.f32 %v1782_v34, %v1494_v33 }
 0x1a9   : > { %v2060_v40 = vmax.f32 %v1996_v38, 0.0  ;;  %v1997_v41 = vadd.f32 %v1933_v36, %v1783_v39  ;;  %v1940_v38 = vld [vmem:[%s3025_s27 + $0x150] sm:$0xff] }
 0x1aa   : > { %v1498_v42 = vpop.f32.mrb[72].mxu0  ;;  %v1787_v45 = vpop.f32.mrb[72].mxu1 }
 0x1ab   : > { %2124 = vst [vmem:[%s3038_s29 + $0x110] sm:$0xff] %v2060_v40  ;;  %v2061_v43 = vmax.f32 %v1997_v41, 0.0  ;;  %v1499_v44 = vadd.f32 %v3020_v15, %v1498_v42  ;;  %v1500_v46 = vpop.f32.mrb[73].mxu0  ;;  %v1789_v48 = vpop.f32.mrb[73].mxu1 }
 0x1ac   : > { %v1501_v49 = vpop.f32.mrb[74].mxu0  ;;  %v1790_v52 = vpop.f32.mrb[74].mxu1 }
 0x1ad   : > { %2125 = vst [vmem:[%s3038_s29 + $0x118] sm:$0xff] %v2061_v43  ;;  %v1788_v50 = vadd.f32 %v1787_v45, %v1499_v44  ;;  %v1502_v51 = vadd.f32 %v3020_v15, %v1501_v49  ;;  %v1503_v53 = vpop.f32.mrb[75].mxu0  ;;  %v1792_v55 = vpop.f32.mrb[75].mxu1  ;;  %v1941_v45 = vld [vmem:[%s3025_s27 + $0x158] sm:$0xff] }
 0x1af   : > { %v1998_v56 = vadd.f32 %v1934_v47, %v1788_v50  ;;  %v1791_v57 = vadd.f32 %v1790_v52, %v1502_v51 }
 0x1b1   : > { %v2062_v58 = vmax.f32 %v1998_v56, 0.0  ;;  %v1999_v59 = vadd.f32 %v1935_v54, %v1791_v57  ;;  %v1942_v56 = vld [vmem:[%s3025_s27 + $0x160] sm:$0xff] }
 0x1b2   : > { %v1506_v60 = vpop.f32.mrb[76].mxu0  ;;  %v1795_v63 = vpop.f32.mrb[76].mxu1 }
 0x1b3   : > { %2126 = vst [vmem:[%s3038_s29 + $0x120] sm:$0xff] %v2062_v58  ;;  %v2063_v61 = vmax.f32 %v1999_v59, 0.0  ;;  %v1507_v62 = vadd.f32 %v3020_v15, %v1506_v60  ;;  %v1508_v0 = vpop.f32.mrb[77].mxu0  ;;  %v1797_v2 = vpop.f32.mrb[77].mxu1 }
 0x1b4   : > { %v1509_v3 = vpop.f32.mrb[78].mxu0  ;;  %v1798_v6 = vpop.f32.mrb[78].mxu1 }
 0x1b5   : > { %2127 = vst [vmem:[%s3038_s29 + $0x128] sm:$0xff] %v2063_v61  ;;  %v1796_v4 = vadd.f32 %v1795_v63, %v1507_v62  ;;  %v1510_v5 = vadd.f32 %v3020_v15, %v1509_v3  ;;  %v1511_v7 = vpop.f32.mrb[79].mxu0  ;;  %v1800_v9 = vpop.f32.mrb[79].mxu1  ;;  %v1943_v63 = vld [vmem:[%s3025_s27 + $0x168] sm:$0xff] }
 0x1b7   : > { %v2000_v10 = vadd.f32 %v1936_v1, %v1796_v4  ;;  %v1799_v11 = vadd.f32 %v1798_v6, %v1510_v5 }
 0x1b9   : > { %v2064_v12 = vmax.f32 %v2000_v10, 0.0  ;;  %v2001_v13 = vadd.f32 %v1937_v8, %v1799_v11  ;;  %v1944_v10 = vld [vmem:[%s3025_s27 + $0x170] sm:$0xff] }
 0x1ba   : > { %v1514_v14 = vpop.f32.mrb[80].mxu0  ;;  %v1803_v18 = vpop.f32.mrb[80].mxu1 }
 0x1bb   : > { %2128 = vst [vmem:[%s3038_s29 + $0x130] sm:$0xff] %v2064_v12  ;;  %v2065_v16 = vmax.f32 %v2001_v13, 0.0  ;;  %v1515_v17 = vadd.f32 %v3020_v15, %v1514_v14  ;;  %v1516_v19 = vpop.f32.mrb[81].mxu0  ;;  %v1805_v21 = vpop.f32.mrb[81].mxu1 }
 0x1bc   : > { %v1517_v22 = vpop.f32.mrb[82].mxu0  ;;  %v1806_v25 = vpop.f32.mrb[82].mxu1 }
 0x1bd   : > { %2129 = vst [vmem:[%s3038_s29 + $0x138] sm:$0xff] %v2065_v16  ;;  %v1804_v23 = vadd.f32 %v1803_v18, %v1515_v17  ;;  %v1518_v24 = vadd.f32 %v3020_v15, %v1517_v22  ;;  %v1519_v26 = vpop.f32.mrb[83].mxu0  ;;  %v1808_v28 = vpop.f32.mrb[83].mxu1  ;;  %v1945_v18 = vld [vmem:[%s3025_s27 + $0x178] sm:$0xff] }
 0x1be   : > { %v3196_v26 = vld [vmem:[%s3258_s2] ss:$0 sm:$0xff] }
 0x1bf   : > { %v2002_v29 = vadd.f32 %v1938_v20, %v1804_v23  ;;  %v1807_v30 = vadd.f32 %v1806_v25, %v1518_v24 }
 0x1c1   : > { %v2066_v31 = vmax.f32 %v2002_v29, 0.0  ;;  %v2003_v32 = vadd.f32 %v1939_v27, %v1807_v30  ;;  %v1946_v29 = vld [vmem:[%s3025_s27 + $0x180] sm:$0xff] }
 0x1c2   : > { %v1522_v33 = vpop.f32.mrb[84].mxu0  ;;  %v1811_v36 = vpop.f32.mrb[84].mxu1 }
 0x1c3   : > { %2130 = vst [vmem:[%s3038_s29 + $0x140] sm:$0xff] %v2066_v31  ;;  %v2067_v34 = vmax.f32 %v2003_v32, 0.0  ;;  %v1523_v35 = vadd.f32 %v3020_v15, %v1522_v33  ;;  %v1524_v37 = vpop.f32.mrb[85].mxu0  ;;  %v1813_v39 = vpop.f32.mrb[85].mxu1 }
 0x1c4   : > { %v1525_v40 = vpop.f32.mrb[86].mxu0  ;;  %v1814_v43 = vpop.f32.mrb[86].mxu1 }
 0x1c5   : > { %2131 = vst [vmem:[%s3038_s29 + $0x148] sm:$0xff] %v2067_v34  ;;  %v1812_v41 = vadd.f32 %v1811_v36, %v1523_v35  ;;  %v1526_v42 = vadd.f32 %v3020_v15, %v1525_v40  ;;  %v1527_v44 = vpop.f32.mrb[87].mxu0  ;;  %v1816_v46 = vpop.f32.mrb[87].mxu1  ;;  %v1947_v36 = vld [vmem:[%s3025_s27 + $0x188] sm:$0xff] }
 0x1c7   : > { %v2004_v47 = vadd.f32 %v1940_v38, %v1812_v41  ;;  %v1815_v48 = vadd.f32 %v1814_v43, %v1526_v42 }
 0x1c9   : > { %v2068_v49 = vmax.f32 %v2004_v47, 0.0  ;;  %v2005_v50 = vadd.f32 %v1941_v45, %v1815_v48  ;;  %v1948_v47 = vld [vmem:[%s3025_s27 + $0x190] sm:$0xff] }
 0x1ca   : > { %v1530_v51 = vpop.f32.mrb[88].mxu0  ;;  %v1819_v54 = vpop.f32.mrb[88].mxu1 }
 0x1cb   : > { %2132 = vst [vmem:[%s3038_s29 + $0x150] sm:$0xff] %v2068_v49  ;;  %v2069_v52 = vmax.f32 %v2005_v50, 0.0  ;;  %v1531_v53 = vadd.f32 %v3020_v15, %v1530_v51  ;;  %v1532_v55 = vpop.f32.mrb[89].mxu0  ;;  %v1821_v57 = vpop.f32.mrb[89].mxu1 }
 0x1cc   : > { %v1533_v58 = vpop.f32.mrb[90].mxu0  ;;  %v1822_v61 = vpop.f32.mrb[90].mxu1 }
 0x1cd   : > { %2133 = vst [vmem:[%s3038_s29 + $0x158] sm:$0xff] %v2069_v52  ;;  %v1820_v59 = vadd.f32 %v1819_v54, %v1531_v53  ;;  %v1534_v60 = vadd.f32 %v3020_v15, %v1533_v58  ;;  %v1535_v62 = vpop.f32.mrb[91].mxu0  ;;  %v1824_v0 = vpop.f32.mrb[91].mxu1  ;;  %v1949_v54 = vld [vmem:[%s3025_s27 + $0x198] sm:$0xff] }
 0x1cf   : > { %v2006_v1 = vadd.f32 %v1942_v56, %v1820_v59  ;;  %v1823_v2 = vadd.f32 %v1822_v61, %v1534_v60 }
 0x1d1   : > { %v2070_v3 = vmax.f32 %v2006_v1, 0.0  ;;  %v2007_v4 = vadd.f32 %v1943_v63, %v1823_v2  ;;  %v1950_v1 = vld [vmem:[%s3025_s27 + $0x1a0] sm:$0xff] }
 0x1d2   : > { %v1538_v5 = vpop.f32.mrb[92].mxu0  ;;  %v1827_v8 = vpop.f32.mrb[92].mxu1 }
 0x1d3   : > { %2134 = vst [vmem:[%s3038_s29 + $0x160] sm:$0xff] %v2070_v3  ;;  %v2071_v6 = vmax.f32 %v2007_v4, 0.0  ;;  %v1539_v7 = vadd.f32 %v3020_v15, %v1538_v5  ;;  %v1540_v9 = vpop.f32.mrb[93].mxu0  ;;  %v1829_v11 = vpop.f32.mrb[93].mxu1 }
 0x1d4   : > { %v1541_v12 = vpop.f32.mrb[94].mxu0  ;;  %v1830_v16 = vpop.f32.mrb[94].mxu1 }
 0x1d5   : > { %2135 = vst [vmem:[%s3038_s29 + $0x168] sm:$0xff] %v2071_v6  ;;  %v1828_v13 = vadd.f32 %v1827_v8, %v1539_v7  ;;  %v1542_v14 = vadd.f32 %v3020_v15, %v1541_v12  ;;  %v1543_v17 = vpop.f32.mrb[95].mxu0  ;;  %v1832_v19 = vpop.f32.mrb[95].mxu1  ;;  %v1951_v8 = vld [vmem:[%s3025_s27 + $0x1a8] sm:$0xff] }
 0x1d7   : > { %v2008_v20 = vadd.f32 %v1944_v10, %v1828_v13  ;;  %v1831_v21 = vadd.f32 %v1830_v16, %v1542_v14 }
 0x1d9   : > { %v2072_v22 = vmax.f32 %v2008_v20, 0.0  ;;  %v2009_v23 = vadd.f32 %v1945_v18, %v1831_v21  ;;  %v1952_v20 = vld [vmem:[%s3025_s27 + $0x1b0] sm:$0xff] }
 0x1da   : > { %v1546_v24 = vpop.f32.mrb[96].mxu0  ;;  %v1835_v27 = vpop.f32.mrb[96].mxu1 }
 0x1db   : > { %2136 = vst [vmem:[%s3038_s29 + $0x170] sm:$0xff] %v2072_v22  ;;  %v2073_v25 = vmax.f32 %v2009_v23, 0.0  ;;  %v1547_v15 = vadd.f32 %v3196_v26, %v1546_v24  ;;  %v1548_v28 = vpop.f32.mrb[97].mxu0  ;;  %v1837_v30 = vpop.f32.mrb[97].mxu1 }
 0x1dc   : > { %v1549_v31 = vpop.f32.mrb[98].mxu0  ;;  %v1838_v34 = vpop.f32.mrb[98].mxu1 }
 0x1dd   : > { %2137 = vst [vmem:[%s3038_s29 + $0x178] sm:$0xff] %v2073_v25  ;;  %v1836_v32 = vadd.f32 %v1835_v27, %v1547_v15  ;;  %v1550_v33 = vadd.f32 %v3196_v26, %v1549_v31  ;;  %v1551_v35 = vpop.f32.mrb[99].mxu0  ;;  %v1840_v37 = vpop.f32.mrb[99].mxu1  ;;  %v1953_v27 = vld [vmem:[%s3025_s27 + $0x1b8] sm:$0xff] }
 0x1df   : > { %v2010_v38 = vadd.f32 %v1946_v29, %v1836_v32  ;;  %v1839_v39 = vadd.f32 %v1838_v34, %v1550_v33 }
 0x1e1   : > { %v2074_v40 = vmax.f32 %v2010_v38, 0.0  ;;  %v2011_v41 = vadd.f32 %v1947_v36, %v1839_v39  ;;  %v1954_v38 = vld [vmem:[%s3025_s27 + $0x1c0] sm:$0xff] }
 0x1e2   : > { %v1554_v42 = vpop.f32.mrb[100].mxu0  ;;  %v1843_v45 = vpop.f32.mrb[100].mxu1 }
 0x1e3   : > { %2138 = vst [vmem:[%s3038_s29 + $0x180] sm:$0xff] %v2074_v40  ;;  %v2075_v43 = vmax.f32 %v2011_v41, 0.0  ;;  %v1555_v44 = vadd.f32 %v3196_v26, %v1554_v42  ;;  %v1556_v46 = vpop.f32.mrb[101].mxu0  ;;  %v1845_v48 = vpop.f32.mrb[101].mxu1 }
 0x1e4   : > { %v1557_v49 = vpop.f32.mrb[102].mxu0  ;;  %v1846_v52 = vpop.f32.mrb[102].mxu1 }
 0x1e5   : > { %2139 = vst [vmem:[%s3038_s29 + $0x188] sm:$0xff] %v2075_v43  ;;  %v1844_v50 = vadd.f32 %v1843_v45, %v1555_v44  ;;  %v1558_v51 = vadd.f32 %v3196_v26, %v1557_v49  ;;  %v1559_v53 = vpop.f32.mrb[103].mxu0  ;;  %v1848_v55 = vpop.f32.mrb[103].mxu1  ;;  %v1955_v45 = vld [vmem:[%s3025_s27 + $0x1c8] sm:$0xff] }
 0x1e7   : > { %v2012_v56 = vadd.f32 %v1948_v47, %v1844_v50  ;;  %v1847_v57 = vadd.f32 %v1846_v52, %v1558_v51 }
 0x1e9   : > { %v2076_v58 = vmax.f32 %v2012_v56, 0.0  ;;  %v2013_v59 = vadd.f32 %v1949_v54, %v1847_v57  ;;  %v1956_v56 = vld [vmem:[%s3025_s27 + $0x1d0] sm:$0xff] }
 0x1ea   : > { %v1562_v60 = vpop.f32.mrb[104].mxu0  ;;  %v1851_v63 = vpop.f32.mrb[104].mxu1 }
 0x1eb   : > { %2140 = vst [vmem:[%s3038_s29 + $0x190] sm:$0xff] %v2076_v58  ;;  %v2077_v61 = vmax.f32 %v2013_v59, 0.0  ;;  %v1563_v62 = vadd.f32 %v3196_v26, %v1562_v60  ;;  %v1564_v0 = vpop.f32.mrb[105].mxu0  ;;  %v1853_v2 = vpop.f32.mrb[105].mxu1 }
 0x1ec   : > { %v1565_v3 = vpop.f32.mrb[106].mxu0  ;;  %v1854_v6 = vpop.f32.mrb[106].mxu1 }
 0x1ed   : > { %2141 = vst [vmem:[%s3038_s29 + $0x198] sm:$0xff] %v2077_v61  ;;  %v1852_v4 = vadd.f32 %v1851_v63, %v1563_v62  ;;  %v1566_v5 = vadd.f32 %v3196_v26, %v1565_v3  ;;  %v1567_v7 = vpop.f32.mrb[107].mxu0  ;;  %v1856_v9 = vpop.f32.mrb[107].mxu1  ;;  %v1957_v63 = vld [vmem:[%s3025_s27 + $0x1d8] sm:$0xff] }
 0x1ef   : > { %v2014_v10 = vadd.f32 %v1950_v1, %v1852_v4  ;;  %v1855_v11 = vadd.f32 %v1854_v6, %v1566_v5 }
 0x1f1   : > { %v2078_v12 = vmax.f32 %v2014_v10, 0.0  ;;  %v2015_v13 = vadd.f32 %v1951_v8, %v1855_v11  ;;  %v1958_v10 = vld [vmem:[%s3025_s27 + $0x1e0] sm:$0xff] }
 0x1f2   : > { %v1570_v14 = vpop.f32.mrb[108].mxu0  ;;  %v1859_v18 = vpop.f32.mrb[108].mxu1 }
 0x1f3   : > { %2142 = vst [vmem:[%s3038_s29 + $0x1a0] sm:$0xff] %v2078_v12  ;;  %v2079_v16 = vmax.f32 %v2015_v13, 0.0  ;;  %v1571_v17 = vadd.f32 %v3196_v26, %v1570_v14  ;;  %v1572_v19 = vpop.f32.mrb[109].mxu0  ;;  %v1861_v21 = vpop.f32.mrb[109].mxu1 }
 0x1f4   : > { %v1573_v22 = vpop.f32.mrb[110].mxu0  ;;  %v1862_v25 = vpop.f32.mrb[110].mxu1 }
 0x1f5   : > { %2143 = vst [vmem:[%s3038_s29 + $0x1a8] sm:$0xff] %v2079_v16  ;;  %v1860_v23 = vadd.f32 %v1859_v18, %v1571_v17  ;;  %v1574_v24 = vadd.f32 %v3196_v26, %v1573_v22  ;;  %v1575_v15 = vpop.f32.mrb[111].mxu0  ;;  %v1864_v28 = vpop.f32.mrb[111].mxu1  ;;  %v1959_v18 = vld [vmem:[%s3025_s27 + $0x1e8] sm:$0xff] }
 0x1f7   : > { %v2016_v29 = vadd.f32 %v1952_v20, %v1860_v23  ;;  %v1863_v30 = vadd.f32 %v1862_v25, %v1574_v24 }
 0x1f9   : > { %v2080_v31 = vmax.f32 %v2016_v29, 0.0  ;;  %v2017_v32 = vadd.f32 %v1953_v27, %v1863_v30  ;;  %v1960_v29 = vld [vmem:[%s3025_s27 + $0x1f0] sm:$0xff] }
 0x1fa   : > { %v1578_v33 = vpop.f32.mrb[112].mxu0  ;;  %v1867_v36 = vpop.f32.mrb[112].mxu1 }
 0x1fb   : > { %2144 = vst [vmem:[%s3038_s29 + $0x1b0] sm:$0xff] %v2080_v31  ;;  %v2081_v34 = vmax.f32 %v2017_v32, 0.0  ;;  %v1579_v35 = vadd.f32 %v3196_v26, %v1578_v33  ;;  %v1580_v37 = vpop.f32.mrb[113].mxu0  ;;  %v1869_v39 = vpop.f32.mrb[113].mxu1 }
 0x1fc   : > { %v1581_v40 = vpop.f32.mrb[114].mxu0  ;;  %v1870_v43 = vpop.f32.mrb[114].mxu1 }
 0x1fd   : > { %2145 = vst [vmem:[%s3038_s29 + $0x1b8] sm:$0xff] %v2081_v34  ;;  %v1868_v41 = vadd.f32 %v1867_v36, %v1579_v35  ;;  %v1582_v42 = vadd.f32 %v3196_v26, %v1581_v40  ;;  %v1583_v44 = vpop.f32.mrb[115].mxu0  ;;  %v1872_v46 = vpop.f32.mrb[115].mxu1  ;;  %v1961_v36 = vld [vmem:[%s3025_s27 + $0x1f8] sm:$0xff] }
 0x1ff   : > { %v2018_v47 = vadd.f32 %v1954_v38, %v1868_v41  ;;  %v1871_v48 = vadd.f32 %v1870_v43, %v1582_v42 }
 0x201   : > { %v2082_v49 = vmax.f32 %v2018_v47, 0.0  ;;  %v2019_v50 = vadd.f32 %v1955_v45, %v1871_v48 }
 0x202   : > { %v1586_v51 = vpop.f32.mrb[116].mxu0  ;;  %v1875_v54 = vpop.f32.mrb[116].mxu1 }
 0x203   : > { %2146 = vst [vmem:[%s3038_s29 + $0x1c0] sm:$0xff] %v2082_v49  ;;  %v2083_v52 = vmax.f32 %v2019_v50, 0.0  ;;  %v1587_v53 = vadd.f32 %v3196_v26, %v1586_v51  ;;  %v1588_v55 = vpop.f32.mrb[117].mxu0  ;;  %v1877_v57 = vpop.f32.mrb[117].mxu1 }
 0x204   : > { %v1589_v58 = vpop.f32.mrb[118].mxu0  ;;  %v1878_v61 = vpop.f32.mrb[118].mxu1 }
 0x205   : > { %2147 = vst [vmem:[%s3038_s29 + $0x1c8] sm:$0xff] %v2083_v52  ;;  %v1876_v59 = vadd.f32 %v1875_v54, %v1587_v53  ;;  %v1590_v60 = vadd.f32 %v3196_v26, %v1589_v58  ;;  %v1591_v62 = vpop.f32.mrb[119].mxu0  ;;  %v1880_v0 = vpop.f32.mrb[119].mxu1 }
 0x207   : > { %v2020_v1 = vadd.f32 %v1956_v56, %v1876_v59  ;;  %v1879_v2 = vadd.f32 %v1878_v61, %v1590_v60 }
 0x209   : > { %v2084_v3 = vmax.f32 %v2020_v1, 0.0  ;;  %v2021_v4 = vadd.f32 %v1957_v63, %v1879_v2 }
 0x20a   : > { %v1594_v5 = vpop.f32.mrb[120].mxu0  ;;  %v1883_v8 = vpop.f32.mrb[120].mxu1 }
 0x20b   : > { %2148 = vst [vmem:[%s3038_s29 + $0x1d0] sm:$0xff] %v2084_v3  ;;  %v2085_v6 = vmax.f32 %v2021_v4, 0.0  ;;  %v1595_v7 = vadd.f32 %v3196_v26, %v1594_v5  ;;  %v1596_v9 = vpop.f32.mrb[121].mxu0  ;;  %v1885_v11 = vpop.f32.mrb[121].mxu1 }
 0x20c   : > { %v1597_v12 = vpop.f32.mrb[122].mxu0  ;;  %v1886_v16 = vpop.f32.mrb[122].mxu1 }
 0x20d   : > { %2149 = vst [vmem:[%s3038_s29 + $0x1d8] sm:$0xff] %v2085_v6  ;;  %v1884_v13 = vadd.f32 %v1883_v8, %v1595_v7  ;;  %v1598_v14 = vadd.f32 %v3196_v26, %v1597_v12  ;;  %v1599_v17 = vpop.f32.mrb[123].mxu0  ;;  %v1888_v19 = vpop.f32.mrb[123].mxu1 }
 0x20f   : > { %v2022_v20 = vadd.f32 %v1958_v10, %v1884_v13  ;;  %v1887_v21 = vadd.f32 %v1886_v16, %v1598_v14 }
 0x211   : > { %v2086_v22 = vmax.f32 %v2022_v20, 0.0  ;;  %v2023_v23 = vadd.f32 %v1959_v18, %v1887_v21 }
 0x212   : > { %v1602_v24 = vpop.f32.mrb[124].mxu0  ;;  %v1891_v27 = vpop.f32.mrb[124].mxu1 }
 0x213   : > { %2150 = vst [vmem:[%s3038_s29 + $0x1e0] sm:$0xff] %v2086_v22  ;;  %v2087_v25 = vmax.f32 %v2023_v23, 0.0  ;;  %v1603_v15 = vadd.f32 %v3196_v26, %v1602_v24  ;;  %v1604_v28 = vpop.f32.mrb[125].mxu0  ;;  %v1893_v30 = vpop.f32.mrb[125].mxu1 }
 0x214   : > { %v1605_v31 = vpop.f32.mrb[126].mxu0  ;;  %v1894_v34 = vpop.f32.mrb[126].mxu1 }
 0x215   : > { %2151 = vst [vmem:[%s3038_s29 + $0x1e8] sm:$0xff] %v2087_v25  ;;  %v1892_v32 = vadd.f32 %v1891_v27, %v1603_v15  ;;  %v1606_v33 = vadd.f32 %v3196_v26, %v1605_v31  ;;  %v1607_v35 = vpop.f32.mrb[127].mxu0  ;;  %v1896_v37 = vpop.f32.mrb[127].mxu1 }
 0x217   : > { %v2024_v38 = vadd.f32 %v1960_v29, %v1892_v32  ;;  %v1895_v39 = vadd.f32 %v1894_v34, %v1606_v33 }
 0x219   : > { %v2088_v40 = vmax.f32 %v2024_v38, 0.0  ;;  %v2025_v41 = vadd.f32 %v1961_v36, %v1895_v39 }
 0x21b   : > { %2152 = vst [vmem:[%s3038_s29 + $0x1f0] sm:$0xff] %v2088_v40  ;;  %v2089_v42 = vmax.f32 %v2025_v41, 0.0 }
 0x21d   : > { %2153 = vst [vmem:[%s3038_s29 + $0x1f8] sm:$0xff] %v2089_v42 }
 0x21e PF: > { %s14_s17 = sadd.s32 1, %s2721_s17   ;;  %s3261_s15 = smov %s2717_s16 }
 0x21f   : > { %p11_p5 = scmp.ge.s32.totalorder %s14_s17, 4   ;;  %s3262_s16 = smov %s3264_s18 }
 0x221   :  { %13 = sbr.rel (!%p11_p5) target bundleno = 2 (0x2), region = 75 }

// kernel: _lambda_.82
= control target key start
LH: loop header
LB: loop body
LE: loop exit
PB: predicated region body
PF: predicated region fallthrough
CT: control target
= control target key end

     0   :  { %s1787_s15 = smov 0   ;;  %s1789_s16 = smov 0   ;;  %s2175_s0 = inlined_call_operand.vmem [shape: bf16[1024,256], index: 0, kind: input, shape index: {}]   ;;  %s2176_s1 = inlined_call_operand.vmem [shape: bf16[256,128], index: 1, kind: input, shape index: {}]   ;;  %s2177_s2 = inlined_call_operand.vmem [shape: f32[1,128], index: 2, kind: input, shape index: {}]   ;;  %s2178_s3 = inlined_call_operand.vmem [shape: f32[1024,128], index: 3, kind: input, shape index: {}]   ;;  %s2179_s4 = inlined_call_operand.vmem [shape: f32[1024,128], index: 4, kind: output, shape index: {}]  }
   0x1   :  { %s1791_s17 = smov 0  }
   0x2 LB: > { %s26_s18 = sadd.s32 1, %s1755_s16  ;;  %p1476_p0 = scmp.ge.s32.totalorder %s1759_s17, 1  ;;  %s1759_s17 = sphi %s1791_s17, %s14_s17   ;;  %s1755_s16 = sphi %s1789_s16, %s2181_s16   ;;  %s1751_s15 = sphi %s1787_s15, %s2180_s15  }
   0x3   : > { %p28_p1 = scmp.ge.s32.totalorder %s26_s18, 2  ;;  %p211_p2 = scmp.lt.s32.totalorder %s1759_s17, 3 }
   0x5   : > { %s2183_s18 = smov (%p28_p1, %s26_s18), 0  ;;  %p212_p3 = pnand %p1476_p0, %p211_p2 }
   0x6   : > { %v1625_v0 = vld [vmem:[%s2176_s1] sm:$0xff] (!%p212_p3)   ;;  %v1761_v1 = vmov (!%p212_p3), 0   ;;  %s1477_s21 = sshll.u32 (!%p212_p3), %s1751_s15, 6  ;;  %v1626_v2 = vld [vmem:[%s2176_s1 + $0x8] sm:$0xff] (!%p212_p3)   ;;  %v1627_v3 = vld [vmem:[%s2176_s1 + $0x10] sm:$0xff] (!%p212_p3)  }
   0x7   : > { %215 = sbr.rel (%p212_p3) target bundleno = 412 (0x19c), region = 36  ;;  %808 = vmatprep.subr.bf16.mxu0 (!%p212_p3), %v1761_v1  ;;  %1568 = vmatprep.subr.bf16.mxu1 (!%p212_p3), %v1761_v1  ;;  %p257_p4 = scmp.lt.s32.totalorder (!%p212_p3), %s1477_s21, 127  ;;  %v1628_v4 = vld [vmem:[%s2176_s1 + $0x18] sm:$0xff] (!%p212_p3)   ;;  %v1629_v5 = vld [vmem:[%s2176_s1 + $0x20] sm:$0xff] (!%p212_p3)   ;;  %v1630_v7 = vld [vmem:[%s2176_s1 + $0x28] sm:$0xff] (!%p212_p3)  }
   0x8   : > { %809 = vmatpush1.bf16.msra.mxu0 (!%p212_p3), %v1625_v0  ;;  %1584 = vmatpush1.bf16.msra.mxu1 (!%p212_p3), %v1625_v0  ;;  %v1631_v9 = vld [vmem:[%s2176_s1 + $0x30] sm:$0xff] (!%p212_p3)   ;;  %v1632_v10 = vld [vmem:[%s2176_s1 + $0x38] sm:$0xff] (!%p212_p3)   ;;  %v1633_v11 = vld [vmem:[%s2176_s1 + $0x40] sm:$0xff] (!%p212_p3)  }
   0x9   : > { %810 = vmatprep.subr.bf16.mxu0 (!%p212_p3), %v1761_v1  ;;  %1569 = vmatprep.subr.bf16.mxu1 (!%p212_p3), %v1761_v1  ;;  %v1634_v12 = vld [vmem:[%s2176_s1 + $0x48] sm:$0xff] (!%p212_p3)   ;;  %v1635_v13 = vld [vmem:[%s2176_s1 + $0x50] sm:$0xff] (!%p212_p3)   ;;  %v1636_v14 = vld [vmem:[%s2176_s1 + $0x58] sm:$0xff] (!%p212_p3)  }
   0xa   : > { %v1637_v15 = vld [vmem:[%s2176_s1 + $0x60] sm:$0xff] (!%p212_p3)   ;;  %v1638_v16 = vld [vmem:[%s2176_s1 + $0x68] sm:$0xff] (!%p212_p3)   ;;  %v1639_v17 = vld [vmem:[%s2176_s1 + $0x70] sm:$0xff] (!%p212_p3)  }
   0xb   : > { %v1640_v18 = vld [vmem:[%s2176_s1 + $0x78] sm:$0xff] (!%p212_p3)  }
   0xc   : > { %811 = vmatpush1.bf16.msra.mxu0 (!%p212_p3), %v1626_v2  ;;  %1585 = vmatpush1.bf16.msra.mxu1 (!%p212_p3), %v1626_v2 }
   0xd   : > { %812 = vmatprep.subr.bf16.mxu0 (!%p212_p3), %v1761_v1  ;;  %1570 = vmatprep.subr.bf16.mxu1 (!%p212_p3), %v1761_v1 }
   0xe   : > { %s2185_s21 = smov (!%p257_p4, %s1477_s21), 127 }
   0xf   : > { %s1825_s28 = sshll.u32 %s2185_s21, 3 }
  0x10   : > { %813 = vmatpush1.bf16.msra.mxu0 %v1627_v3  ;;  %1586 = vmatpush1.bf16.msra.mxu1 %v1627_v3  ;;  %s1834_s7 = scalar_lea.vmem %s2175_s0, %s1825_s28  ;;  %s1961_s11 = scalar_lea.vmem %s2178_s3, %s1825_s28 }
  0x11   : > { %814 = vmatprep.subr.bf16.mxu0 %v1761_v1  ;;  %1571 = vmatprep.subr.bf16.mxu1 %v1761_v1  ;;  %v1643_v6 = vld [vmem:[%s1834_s7 + $0x4] ss:$8 sps:$4 sm:$0xff]   ;;  %v1641_v19 = vld [vmem:[%s1834_s7] ss:$8 sps:$4 sm:$0xff]   ;;  %v1647_v21 = vld [vmem:[%s1834_s7 + $0x14] ss:$8 sps:$4 sm:$0xff]   ;;  %s1980_s15 = scalar_lea.vmem %s2179_s4, %s1825_s28 }
  0x12   : > { %v1646_v8 = vld [vmem:[%s1834_s7 + $0x104] ss:$8 sps:$4 sm:$0xff]   ;;  %840 = vmatprep.mubr.bf16.mxu0 %v1643_v6  ;;  %v1644_v20 = vld [vmem:[%s1834_s7 + $0x100] ss:$8 sps:$4 sm:$0xff]   ;;  %v1649_v22 = vld [vmem:[%s1834_s7 + $0x114] ss:$8 sps:$4 sm:$0xff]  }
  0x13   : > { %968 = vmatprep.mubr.bf16.mxu1 %v1646_v8  ;;  %v1651_v23 = vld [vmem:[%s1834_s7 + $0x10] ss:$8 sps:$4 sm:$0xff]   ;;  %v1653_v25 = vld [vmem:[%s1834_s7 + $0x24] ss:$8 sps:$4 sm:$0xff]   ;;  %v1657_v27 = vld [vmem:[%s1834_s7 + $0x20] ss:$8 sps:$4 sm:$0xff]  }
  0x14   : > { %815 = vmatpush1.bf16.msra.mxu0 %v1628_v4  ;;  %1587 = vmatpush1.bf16.msra.mxu1 %v1628_v4  ;;  %v1652_v24 = vld [vmem:[%s1834_s7 + $0x110] ss:$8 sps:$4 sm:$0xff]   ;;  %v1655_v26 = vld [vmem:[%s1834_s7 + $0x124] ss:$8 sps:$4 sm:$0xff]   ;;  %v1658_v28 = vld [vmem:[%s1834_s7 + $0x120] ss:$8 sps:$4 sm:$0xff]  }
  0x15   : > { %816 = vmatprep.subr.bf16.mxu0 %v1761_v1  ;;  %1572 = vmatprep.subr.bf16.mxu1 %v1761_v1  ;;  %v1659_v29 = vld [vmem:[%s1834_s7 + $0x34] ss:$8 sps:$4 sm:$0xff]   ;;  %v1663_v31 = vld [vmem:[%s1834_s7 + $0x30] ss:$8 sps:$4 sm:$0xff]   ;;  %v1665_v33 = vld [vmem:[%s1834_s7 + $0x44] ss:$8 sps:$4 sm:$0xff]  }
  0x16   : > { %v1661_v30 = vld [vmem:[%s1834_s7 + $0x134] ss:$8 sps:$4 sm:$0xff]   ;;  %v1664_v32 = vld [vmem:[%s1834_s7 + $0x130] ss:$8 sps:$4 sm:$0xff]   ;;  %v1667_v34 = vld [vmem:[%s1834_s7 + $0x144] ss:$8 sps:$4 sm:$0xff]  }
  0x17   : > { %v1669_v35 = vld [vmem:[%s1834_s7 + $0x40] ss:$8 sps:$4 sm:$0xff]   ;;  %v1671_v37 = vld [vmem:[%s1834_s7 + $0x54] ss:$8 sps:$4 sm:$0xff]   ;;  %v1675_v39 = vld [vmem:[%s1834_s7 + $0x50] ss:$8 sps:$4 sm:$0xff]  }
  0x18   : > { %817 = vmatpush1.bf16.msra.mxu0 %v1629_v5  ;;  %1588 = vmatpush1.bf16.msra.mxu1 %v1629_v5  ;;  %v1670_v36 = vld [vmem:[%s1834_s7 + $0x140] ss:$8 sps:$4 sm:$0xff]   ;;  %v1673_v38 = vld [vmem:[%s1834_s7 + $0x154] ss:$8 sps:$4 sm:$0xff]   ;;  %v1676_v40 = vld [vmem:[%s1834_s7 + $0x150] ss:$8 sps:$4 sm:$0xff]  }
  0x19   : > { %818 = vmatprep.subr.bf16.mxu0 %v1761_v1  ;;  %1573 = vmatprep.subr.bf16.mxu1 %v1761_v1  ;;  %v1677_v41 = vld [vmem:[%s1834_s7 + $0x64] ss:$8 sps:$4 sm:$0xff]   ;;  %v1681_v43 = vld [vmem:[%s1834_s7 + $0x60] ss:$8 sps:$4 sm:$0xff]   ;;  %v1683_v45 = vld [vmem:[%s1834_s7 + $0x74] ss:$8 sps:$4 sm:$0xff]  }
  0x1a   : > { %v1679_v42 = vld [vmem:[%s1834_s7 + $0x164] ss:$8 sps:$4 sm:$0xff]   ;;  %v1682_v44 = vld [vmem:[%s1834_s7 + $0x160] ss:$8 sps:$4 sm:$0xff]   ;;  %v1685_v46 = vld [vmem:[%s1834_s7 + $0x174] ss:$8 sps:$4 sm:$0xff]  }
  0x1b   : > { %v1687_v47 = vld [vmem:[%s1834_s7 + $0x70] ss:$8 sps:$4 sm:$0xff]   ;;  %v1689_v49 = vld [vmem:[%s1834_s7 + $0x84] ss:$8 sps:$4 sm:$0xff]   ;;  %v1693_v51 = vld [vmem:[%s1834_s7 + $0x80] ss:$8 sps:$4 sm:$0xff]  }
  0x1c   : > { %819 = vmatpush1.bf16.msra.mxu0 %v1630_v7  ;;  %1589 = vmatpush1.bf16.msra.mxu1 %v1630_v7  ;;  %v1688_v48 = vld [vmem:[%s1834_s7 + $0x170] ss:$8 sps:$4 sm:$0xff]   ;;  %v1691_v50 = vld [vmem:[%s1834_s7 + $0x184] ss:$8 sps:$4 sm:$0xff]   ;;  %v1694_v52 = vld [vmem:[%s1834_s7 + $0x180] ss:$8 sps:$4 sm:$0xff]  }
  0x1d   : > { %820 = vmatprep.subr.bf16.mxu0 %v1761_v1  ;;  %1574 = vmatprep.subr.bf16.mxu1 %v1761_v1  ;;  %v1695_v53 = vld [vmem:[%s1834_s7 + $0x94] ss:$8 sps:$4 sm:$0xff]   ;;  %v1699_v55 = vld [vmem:[%s1834_s7 + $0x90] ss:$8 sps:$4 sm:$0xff]   ;;  %v1701_v57 = vld [vmem:[%s1834_s7 + $0xa4] ss:$8 sps:$4 sm:$0xff]  }
  0x1e   : > { %v1697_v54 = vld [vmem:[%s1834_s7 + $0x194] ss:$8 sps:$4 sm:$0xff]   ;;  %v1700_v56 = vld [vmem:[%s1834_s7 + $0x190] ss:$8 sps:$4 sm:$0xff]   ;;  %v1703_v58 = vld [vmem:[%s1834_s7 + $0x1a4] ss:$8 sps:$4 sm:$0xff]  }
  0x1f   : > { %v1705_v59 = vld [vmem:[%s1834_s7 + $0xa0] ss:$8 sps:$4 sm:$0xff]   ;;  %v1707_v61 = vld [vmem:[%s1834_s7 + $0xb4] ss:$8 sps:$4 sm:$0xff]   ;;  %v1711_v63 = vld [vmem:[%s1834_s7 + $0xb0] ss:$8 sps:$4 sm:$0xff]  }
  0x20   : > { %821 = vmatpush1.bf16.msra.mxu0 %v1631_v9  ;;  %1590 = vmatpush1.bf16.msra.mxu1 %v1631_v9  ;;  %v1706_v60 = vld [vmem:[%s1834_s7 + $0x1a0] ss:$8 sps:$4 sm:$0xff]   ;;  %v1709_v62 = vld [vmem:[%s1834_s7 + $0x1b4] ss:$8 sps:$4 sm:$0xff]   ;;  %v1712_v0 = vld [vmem:[%s1834_s7 + $0x1b0] ss:$8 sps:$4 sm:$0xff]  }
  0x21   : > { %822 = vmatprep.subr.bf16.mxu0 %v1761_v1  ;;  %1575 = vmatprep.subr.bf16.mxu1 %v1761_v1  ;;  %v1715_v2 = vld [vmem:[%s1834_s7 + $0x1c4] ss:$8 sps:$4 sm:$0xff]   ;;  %v1717_v3 = vld [vmem:[%s1834_s7 + $0xc0] ss:$8 sps:$4 sm:$0xff]   ;;  %v1719_v5 = vld [vmem:[%s1834_s7 + $0xd4] ss:$8 sps:$4 sm:$0xff]  }
  0x22   : > { %v1718_v4 = vld [vmem:[%s1834_s7 + $0x1c0] ss:$8 sps:$4 sm:$0xff]   ;;  %v1721_v6 = vld [vmem:[%s1834_s7 + $0x1d4] ss:$8 sps:$4 sm:$0xff]   ;;  %v1723_v7 = vld [vmem:[%s1834_s7 + $0xd0] ss:$8 sps:$4 sm:$0xff]  }
  0x23   : > { %v1724_v8 = vld [vmem:[%s1834_s7 + $0x1d0] ss:$8 sps:$4 sm:$0xff]   ;;  %v1725_v9 = vld [vmem:[%s1834_s7 + $0xe4] ss:$8 sps:$4 sm:$0xff]  }
  0x24   : > { %823 = vmatpush1.bf16.msra.mxu0 %v1632_v10  ;;  %1591 = vmatpush1.bf16.msra.mxu1 %v1632_v10  ;;  %v1727_v10 = vld [vmem:[%s1834_s7 + $0x1e4] ss:$8 sps:$4 sm:$0xff]  }
  0x25   : > { %824 = vmatprep.subr.bf16.mxu0 %v1761_v1  ;;  %1576 = vmatprep.subr.bf16.mxu1 %v1761_v1 }
  0x28   : > { %825 = vmatpush1.bf16.msra.mxu0 %v1633_v11  ;;  %1592 = vmatpush1.bf16.msra.mxu1 %v1633_v11  ;;  %v1729_v11 = vld [vmem:[%s1834_s7 + $0xe0] ss:$8 sps:$4 sm:$0xff]  }
  0x29   : > { %826 = vmatprep.subr.bf16.mxu0 %v1761_v1  ;;  %1577 = vmatprep.subr.bf16.mxu1 %v1761_v1 }
  0x2c   : > { %827 = vmatpush1.bf16.msra.mxu0 %v1634_v12  ;;  %1593 = vmatpush1.bf16.msra.mxu1 %v1634_v12  ;;  %v1730_v12 = vld [vmem:[%s1834_s7 + $0x1e0] ss:$8 sps:$4 sm:$0xff]  }
  0x2d   : > { %828 = vmatprep.subr.bf16.mxu0 %v1761_v1  ;;  %1578 = vmatprep.subr.bf16.mxu1 %v1761_v1 }
  0x30   : > { %829 = vmatpush1.bf16.msra.mxu0 %v1635_v13  ;;  %1594 = vmatpush1.bf16.msra.mxu1 %v1635_v13  ;;  %v1731_v13 = vld [vmem:[%s1834_s7 + $0xf4] ss:$8 sps:$4 sm:$0xff]  }
  0x31   : > { %830 = vmatprep.subr.bf16.mxu0 %v1761_v1  ;;  %1579 = vmatprep.subr.bf16.mxu1 %v1761_v1 }
  0x34   : > { %831 = vmatpush1.bf16.msra.mxu0 %v1636_v14  ;;  %1595 = vmatpush1.bf16.msra.mxu1 %v1636_v14  ;;  %v1733_v14 = vld [vmem:[%s1834_s7 + $0x1f4] ss:$8 sps:$4 sm:$0xff]  }
  0x35   : > { %832 = vmatprep.subr.bf16.mxu0 %v1761_v1  ;;  %1580 = vmatprep.subr.bf16.mxu1 %v1761_v1 }
  0x38   : > { %833 = vmatpush1.bf16.msra.mxu0 %v1637_v15  ;;  %1596 = vmatpush1.bf16.msra.mxu1 %v1637_v15  ;;  %v1735_v15 = vld [vmem:[%s1834_s7 + $0xf0] ss:$8 sps:$4 sm:$0xff]  }
  0x39   : > { %834 = vmatprep.subr.bf16.mxu0 %v1761_v1  ;;  %1581 = vmatprep.subr.bf16.mxu1 %v1761_v1 }
  0x3c   : > { %835 = vmatpush1.bf16.msra.mxu0 %v1638_v16  ;;  %1597 = vmatpush1.bf16.msra.mxu1 %v1638_v16  ;;  %v1736_v16 = vld [vmem:[%s1834_s7 + $0x1f0] ss:$8 sps:$4 sm:$0xff]  }
  0x3d   : > { %836 = vmatprep.subr.bf16.mxu0 %v1761_v1  ;;  %1582 = vmatprep.subr.bf16.mxu1 %v1761_v1 }
  0x40   : > { %837 = vmatpush1.bf16.msra.mxu0 %v1639_v17  ;;  %1598 = vmatpush1.bf16.msra.mxu1 %v1639_v17  ;;  %v1966_v17 = vld [vmem:[%s2177_s2] ss:$0 sm:$0xff] }
  0x41   : > { %838 = vmatprep.subr.bf16.mxu0 %v1761_v1  ;;  %1583 = vmatprep.subr.bf16.mxu1 %v1761_v1  ;;  %v1713_v1 = vld [vmem:[%s1834_s7 + $0xc4] ss:$8 sps:$4 sm:$0xff]  }
  0x44   : > { %839 = vmatpush1.bf16.msra.mxu0 %v1640_v18  ;;  %1599 = vmatpush1.bf16.msra.mxu1 %v1640_v18 }
  0x47   : > { %841 = vmatmul.mubr.bf16.vlgmr.msra.gmra.mrb[0].mxu0 %v1641_v19  ;;  %969 = vmatmul.mubr.bf16.vlgmr.msra.gmra.mrb[0].mxu1 %v1644_v20  ;;  %v1097_v19 = vld [vmem:[%s1961_s11] sm:$0xff] }
  0x48   : > { %848 = vmatprep.mubr.bf16.mxu0 %v1647_v21  ;;  %976 = vmatprep.mubr.bf16.mxu1 %v1649_v22  ;;  %v1129_v21 = vld [vmem:[%s1961_s11 + $0x100] sm:$0xff] }
  0x4f   : > { %849 = vmatmul.mubr.bf16.gmra.mrb[4].mxu0 %v1651_v23  ;;  %977 = vmatmul.mubr.bf16.gmra.mrb[4].mxu1 %v1652_v24 }
  0x50   : > { %856 = vmatprep.mubr.bf16.mxu0 %v1653_v25  ;;  %984 = vmatprep.mubr.bf16.mxu1 %v1655_v26 }
  0x57   : > { %857 = vmatmul.mubr.bf16.gmra.mrb[8].mxu0 %v1657_v27  ;;  %985 = vmatmul.mubr.bf16.gmra.mrb[8].mxu1 %v1658_v28  ;;  %v1098_v27 = vld [vmem:[%s1961_s11 + $0x8] sm:$0xff] }
  0x58   : > { %864 = vmatprep.mubr.bf16.mxu0 %v1659_v29  ;;  %992 = vmatprep.mubr.bf16.mxu1 %v1661_v30  ;;  %v1130_v29 = vld [vmem:[%s1961_s11 + $0x108] sm:$0xff] }
  0x5f   : > { %865 = vmatmul.mubr.bf16.gmra.mrb[12].mxu0 %v1663_v31  ;;  %993 = vmatmul.mubr.bf16.gmra.mrb[12].mxu1 %v1664_v32 }
  0x60   : > { %872 = vmatprep.mubr.bf16.mxu0 %v1665_v33  ;;  %1000 = vmatprep.mubr.bf16.mxu1 %v1667_v34 }
  0x67   : > { %873 = vmatmul.mubr.bf16.gmra.mrb[16].mxu0 %v1669_v35  ;;  %1001 = vmatmul.mubr.bf16.gmra.mrb[16].mxu1 %v1670_v36 }
  0x68   : > { %880 = vmatprep.mubr.bf16.mxu0 %v1671_v37  ;;  %1008 = vmatprep.mubr.bf16.mxu1 %v1673_v38 }
  0x6f   : > { %881 = vmatmul.mubr.bf16.gmra.mrb[20].mxu0 %v1675_v39  ;;  %1009 = vmatmul.mubr.bf16.gmra.mrb[20].mxu1 %v1676_v40 }
  0x70   : > { %888 = vmatprep.mubr.bf16.mxu0 %v1677_v41  ;;  %1016 = vmatprep.mubr.bf16.mxu1 %v1679_v42 }
  0x77   : > { %889 = vmatmul.mubr.bf16.gmra.mrb[24].mxu0 %v1681_v43  ;;  %1017 = vmatmul.mubr.bf16.gmra.mrb[24].mxu1 %v1682_v44  ;;  %v1099_v43 = vld [vmem:[%s1961_s11 + $0x10] sm:$0xff] }
  0x78   : > { %896 = vmatprep.mubr.bf16.mxu0 %v1683_v45  ;;  %1024 = vmatprep.mubr.bf16.mxu1 %v1685_v46  ;;  %v1131_v45 = vld [vmem:[%s1961_s11 + $0x110] sm:$0xff] }
  0x7f   : > { %897 = vmatmul.mubr.bf16.gmra.mrb[28].mxu0 %v1687_v47  ;;  %1025 = vmatmul.mubr.bf16.gmra.mrb[28].mxu1 %v1688_v48 }
  0x80   : > { %904 = vmatprep.mubr.bf16.mxu0 %v1689_v49  ;;  %1032 = vmatprep.mubr.bf16.mxu1 %v1691_v50 }
  0x87   : > { %905 = vmatmul.mubr.bf16.gmra.mrb[32].mxu0 %v1693_v51  ;;  %1033 = vmatmul.mubr.bf16.gmra.mrb[32].mxu1 %v1694_v52  ;;  %v1100_v51 = vld [vmem:[%s1961_s11 + $0x18] sm:$0xff] }
  0x88   : > { %912 = vmatprep.mubr.bf16.mxu0 %v1695_v53  ;;  %1040 = vmatprep.mubr.bf16.mxu1 %v1697_v54  ;;  %v1132_v53 = vld [vmem:[%s1961_s11 + $0x118] sm:$0xff] }
  0x8f   : > { %913 = vmatmul.mubr.bf16.gmra.mrb[36].mxu0 %v1699_v55  ;;  %1041 = vmatmul.mubr.bf16.gmra.mrb[36].mxu1 %v1700_v56 }
  0x90   : > { %920 = vmatprep.mubr.bf16.mxu0 %v1701_v57  ;;  %1048 = vmatprep.mubr.bf16.mxu1 %v1703_v58 }
  0x97   : > { %921 = vmatmul.mubr.bf16.gmra.mrb[40].mxu0 %v1705_v59  ;;  %1049 = vmatmul.mubr.bf16.gmra.mrb[40].mxu1 %v1706_v60 }
  0x98   : > { %928 = vmatprep.mubr.bf16.mxu0 %v1707_v61  ;;  %1056 = vmatprep.mubr.bf16.mxu1 %v1709_v62 }
  0x9f   : > { %929 = vmatmul.mubr.bf16.gmra.mrb[44].mxu0 %v1711_v63  ;;  %1057 = vmatmul.mubr.bf16.gmra.mrb[44].mxu1 %v1712_v0 }
  0xa0   : > { %936 = vmatprep.mubr.bf16.mxu0 %v1713_v1  ;;  %1064 = vmatprep.mubr.bf16.mxu1 %v1715_v2 }
  0xa7   : > { %937 = vmatmul.mubr.bf16.gmra.mrb[48].mxu0 %v1717_v3  ;;  %1065 = vmatmul.mubr.bf16.gmra.mrb[48].mxu1 %v1718_v4  ;;  %v1101_v3 = vld [vmem:[%s1961_s11 + $0x20] sm:$0xff] }
  0xa8   : > { %944 = vmatprep.mubr.bf16.mxu0 %v1719_v5  ;;  %1072 = vmatprep.mubr.bf16.mxu1 %v1721_v6  ;;  %v1133_v5 = vld [vmem:[%s1961_s11 + $0x120] sm:$0xff] }
  0xaf   : > { %945 = vmatmul.mubr.bf16.gmra.mrb[52].mxu0 %v1723_v7  ;;  %1073 = vmatmul.mubr.bf16.gmra.mrb[52].mxu1 %v1724_v8 }
  0xb0   : > { %952 = vmatprep.mubr.bf16.mxu0 %v1725_v9  ;;  %1080 = vmatprep.mubr.bf16.mxu1 %v1727_v10 }
  0xb7   : > { %953 = vmatmul.mubr.bf16.gmra.mrb[56].mxu0 %v1729_v11  ;;  %1081 = vmatmul.mubr.bf16.gmra.mrb[56].mxu1 %v1730_v12  ;;  %v1102_v11 = vld [vmem:[%s1961_s11 + $0x28] sm:$0xff] }
  0xb8   : > { %960 = vmatprep.mubr.bf16.mxu0 %v1731_v13  ;;  %1088 = vmatprep.mubr.bf16.mxu1 %v1733_v14  ;;  %v1134_v13 = vld [vmem:[%s1961_s11 + $0x128] sm:$0xff] }
  0xbf   : > { %961 = vmatmul.mubr.bf16.gmra.mrb[60].mxu0 %v1735_v15  ;;  %1089 = vmatmul.mubr.bf16.gmra.mrb[60].mxu1 %v1736_v16 }
 0x11a   : > { %v842_v18 = vpop.f32.mrb[0].mxu0  ;;  %v970_v20 = vpop.f32.mrb[0].mxu1 }
 0x11b   : > { %v843_v22 = vadd.f32 %v1966_v17, %v842_v18  ;;  %v971_v23 = vadd.f32 %v1966_v17, %v970_v20  ;;  %v844_v24 = vpop.f32.mrb[1].mxu0  ;;  %v972_v25 = vpop.f32.mrb[1].mxu1 }
 0x11c   : > { %v845_v26 = vpop.f32.mrb[2].mxu0  ;;  %v973_v28 = vpop.f32.mrb[2].mxu1 }
 0x11d   : > { %v1161_v30 = vadd.f32 %v1097_v19, %v843_v22  ;;  %v1193_v31 = vadd.f32 %v1129_v21, %v971_v23  ;;  %v846_v32 = vadd.f32 %v1966_v17, %v845_v26  ;;  %v974_v33 = vadd.f32 %v1966_v17, %v973_v28  ;;  %v847_v34 = vpop.f32.mrb[3].mxu0  ;;  %v975_v35 = vpop.f32.mrb[3].mxu1  ;;  %v1103_v28 = vld [vmem:[%s1961_s11 + $0x30] sm:$0xff] }
 0x11f   : > { %v1225_v36 = vmax.f32 %v1161_v30, 0.0  ;;  %v1257_v37 = vmax.f32 %v1193_v31, 0.0  ;;  %v1162_v38 = vadd.f32 %v1098_v27, %v846_v32  ;;  %v1194_v39 = vadd.f32 %v1130_v29, %v974_v33  ;;  %v1135_v30 = vld [vmem:[%s1961_s11 + $0x130] sm:$0xff] }
 0x121   : > { %1289 = vst [vmem:[%s1980_s15] sm:$0xff] %v1225_v36  ;;  %1321 = vst [vmem:[%s1980_s15 + $0x100] sm:$0xff] %v1257_v37  ;;  %v1226_v40 = vmax.f32 %v1162_v38, 0.0  ;;  %v1258_v41 = vmax.f32 %v1194_v39, 0.0  ;;  %v1104_v36 = vld [vmem:[%s1961_s11 + $0x38] sm:$0xff] }
 0x122   : > { %v850_v42 = vpop.f32.mrb[4].mxu0  ;;  %v978_v44 = vpop.f32.mrb[4].mxu1  ;;  %v1136_v38 = vld [vmem:[%s1961_s11 + $0x138] sm:$0xff] }
 0x123   : > { %1290 = vst [vmem:[%s1980_s15 + $0x8] sm:$0xff] %v1226_v40  ;;  %1322 = vst [vmem:[%s1980_s15 + $0x108] sm:$0xff] %v1258_v41  ;;  %v851_v46 = vadd.f32 %v1966_v17, %v850_v42  ;;  %v979_v47 = vadd.f32 %v1966_v17, %v978_v44  ;;  %v852_v48 = vpop.f32.mrb[5].mxu0  ;;  %v980_v49 = vpop.f32.mrb[5].mxu1 }
 0x124   : > { %v853_v50 = vpop.f32.mrb[6].mxu0  ;;  %v981_v52 = vpop.f32.mrb[6].mxu1 }
 0x125   : > { %v1163_v54 = vadd.f32 %v1099_v43, %v851_v46  ;;  %v1195_v55 = vadd.f32 %v1131_v45, %v979_v47  ;;  %v854_v56 = vadd.f32 %v1966_v17, %v853_v50  ;;  %v982_v57 = vadd.f32 %v1966_v17, %v981_v52  ;;  %v855_v58 = vpop.f32.mrb[7].mxu0  ;;  %v983_v59 = vpop.f32.mrb[7].mxu1  ;;  %v1105_v52 = vld [vmem:[%s1961_s11 + $0x40] sm:$0xff] }
 0x127   : > { %v1227_v60 = vmax.f32 %v1163_v54, 0.0  ;;  %v1259_v61 = vmax.f32 %v1195_v55, 0.0  ;;  %v1164_v62 = vadd.f32 %v1100_v51, %v854_v56  ;;  %v1196_v63 = vadd.f32 %v1132_v53, %v982_v57  ;;  %v1137_v54 = vld [vmem:[%s1961_s11 + $0x140] sm:$0xff] }
 0x129   : > { %1291 = vst [vmem:[%s1980_s15 + $0x10] sm:$0xff] %v1227_v60  ;;  %1323 = vst [vmem:[%s1980_s15 + $0x110] sm:$0xff] %v1259_v61  ;;  %v1228_v0 = vmax.f32 %v1164_v62, 0.0  ;;  %v1260_v1 = vmax.f32 %v1196_v63, 0.0  ;;  %v1106_v60 = vld [vmem:[%s1961_s11 + $0x48] sm:$0xff] }
 0x12a   : > { %v858_v2 = vpop.f32.mrb[8].mxu0  ;;  %v986_v4 = vpop.f32.mrb[8].mxu1  ;;  %v1138_v62 = vld [vmem:[%s1961_s11 + $0x148] sm:$0xff] }
 0x12b   : > { %1292 = vst [vmem:[%s1980_s15 + $0x18] sm:$0xff] %v1228_v0  ;;  %1324 = vst [vmem:[%s1980_s15 + $0x118] sm:$0xff] %v1260_v1  ;;  %v859_v6 = vadd.f32 %v1966_v17, %v858_v2  ;;  %v987_v7 = vadd.f32 %v1966_v17, %v986_v4  ;;  %v860_v8 = vpop.f32.mrb[9].mxu0  ;;  %v988_v9 = vpop.f32.mrb[9].mxu1 }
 0x12c   : > { %v861_v10 = vpop.f32.mrb[10].mxu0  ;;  %v989_v12 = vpop.f32.mrb[10].mxu1 }
 0x12d   : > { %v1165_v14 = vadd.f32 %v1101_v3, %v859_v6  ;;  %v1197_v15 = vadd.f32 %v1133_v5, %v987_v7  ;;  %v862_v16 = vadd.f32 %v1966_v17, %v861_v10  ;;  %v990_v18 = vadd.f32 %v1966_v17, %v989_v12  ;;  %v863_v19 = vpop.f32.mrb[11].mxu0  ;;  %v991_v20 = vpop.f32.mrb[11].mxu1  ;;  %v1107_v12 = vld [vmem:[%s1961_s11 + $0x50] sm:$0xff] }
 0x12f   : > { %v1229_v21 = vmax.f32 %v1165_v14, 0.0  ;;  %v1261_v22 = vmax.f32 %v1197_v15, 0.0  ;;  %v1166_v23 = vadd.f32 %v1102_v11, %v862_v16  ;;  %v1198_v24 = vadd.f32 %v1134_v13, %v990_v18  ;;  %v1139_v14 = vld [vmem:[%s1961_s11 + $0x150] sm:$0xff] }
 0x131   : > { %1293 = vst [vmem:[%s1980_s15 + $0x20] sm:$0xff] %v1229_v21  ;;  %1325 = vst [vmem:[%s1980_s15 + $0x120] sm:$0xff] %v1261_v22  ;;  %v1230_v25 = vmax.f32 %v1166_v23, 0.0  ;;  %v1262_v26 = vmax.f32 %v1198_v24, 0.0  ;;  %v1108_v21 = vld [vmem:[%s1961_s11 + $0x58] sm:$0xff] }
 0x132   : > { %v866_v27 = vpop.f32.mrb[12].mxu0  ;;  %v994_v29 = vpop.f32.mrb[12].mxu1  ;;  %v1140_v23 = vld [vmem:[%s1961_s11 + $0x158] sm:$0xff] }
 0x133   : > { %1294 = vst [vmem:[%s1980_s15 + $0x28] sm:$0xff] %v1230_v25  ;;  %1326 = vst [vmem:[%s1980_s15 + $0x128] sm:$0xff] %v1262_v26  ;;  %v867_v31 = vadd.f32 %v1966_v17, %v866_v27  ;;  %v995_v32 = vadd.f32 %v1966_v17, %v994_v29  ;;  %v868_v33 = vpop.f32.mrb[13].mxu0  ;;  %v996_v34 = vpop.f32.mrb[13].mxu1 }
 0x134   : > { %v869_v35 = vpop.f32.mrb[14].mxu0  ;;  %v997_v37 = vpop.f32.mrb[14].mxu1 }
 0x135   : > { %v1167_v39 = vadd.f32 %v1103_v28, %v867_v31  ;;  %v1199_v40 = vadd.f32 %v1135_v30, %v995_v32  ;;  %v870_v41 = vadd.f32 %v1966_v17, %v869_v35  ;;  %v998_v42 = vadd.f32 %v1966_v17, %v997_v37  ;;  %v871_v43 = vpop.f32.mrb[15].mxu0  ;;  %v999_v44 = vpop.f32.mrb[15].mxu1  ;;  %v1109_v37 = vld [vmem:[%s1961_s11 + $0x60] sm:$0xff] }
 0x137   : > { %v1231_v45 = vmax.f32 %v1167_v39, 0.0  ;;  %v1263_v46 = vmax.f32 %v1199_v40, 0.0  ;;  %v1168_v47 = vadd.f32 %v1104_v36, %v870_v41  ;;  %v1200_v48 = vadd.f32 %v1136_v38, %v998_v42  ;;  %v1141_v39 = vld [vmem:[%s1961_s11 + $0x160] sm:$0xff] }
 0x139   : > { %1295 = vst [vmem:[%s1980_s15 + $0x30] sm:$0xff] %v1231_v45  ;;  %1327 = vst [vmem:[%s1980_s15 + $0x130] sm:$0xff] %v1263_v46  ;;  %v1232_v49 = vmax.f32 %v1168_v47, 0.0  ;;  %v1264_v50 = vmax.f32 %v1200_v48, 0.0  ;;  %v1110_v45 = vld [vmem:[%s1961_s11 + $0x68] sm:$0xff] }
 0x13a   : > { %v874_v51 = vpop.f32.mrb[16].mxu0  ;;  %v1002_v53 = vpop.f32.mrb[16].mxu1  ;;  %v1142_v47 = vld [vmem:[%s1961_s11 + $0x168] sm:$0xff] }
 0x13b   : > { %1296 = vst [vmem:[%s1980_s15 + $0x38] sm:$0xff] %v1232_v49  ;;  %1328 = vst [vmem:[%s1980_s15 + $0x138] sm:$0xff] %v1264_v50  ;;  %v875_v55 = vadd.f32 %v1966_v17, %v874_v51  ;;  %v1003_v56 = vadd.f32 %v1966_v17, %v1002_v53  ;;  %v876_v57 = vpop.f32.mrb[17].mxu0  ;;  %v1004_v58 = vpop.f32.mrb[17].mxu1 }
 0x13c   : > { %v877_v59 = vpop.f32.mrb[18].mxu0  ;;  %v1005_v61 = vpop.f32.mrb[18].mxu1 }
 0x13d   : > { %v1169_v63 = vadd.f32 %v1105_v52, %v875_v55  ;;  %v1201_v0 = vadd.f32 %v1137_v54, %v1003_v56  ;;  %v878_v1 = vadd.f32 %v1966_v17, %v877_v59  ;;  %v1006_v2 = vadd.f32 %v1966_v17, %v1005_v61  ;;  %v879_v3 = vpop.f32.mrb[19].mxu0  ;;  %v1007_v4 = vpop.f32.mrb[19].mxu1  ;;  %v1111_v61 = vld [vmem:[%s1961_s11 + $0x70] sm:$0xff] }
 0x13f   : > { %v1233_v5 = vmax.f32 %v1169_v63, 0.0  ;;  %v1265_v6 = vmax.f32 %v1201_v0, 0.0  ;;  %v1170_v7 = vadd.f32 %v1106_v60, %v878_v1  ;;  %v1202_v8 = vadd.f32 %v1138_v62, %v1006_v2  ;;  %v1143_v63 = vld [vmem:[%s1961_s11 + $0x170] sm:$0xff] }
 0x141   : > { %1297 = vst [vmem:[%s1980_s15 + $0x40] sm:$0xff] %v1233_v5  ;;  %1329 = vst [vmem:[%s1980_s15 + $0x140] sm:$0xff] %v1265_v6  ;;  %v1234_v9 = vmax.f32 %v1170_v7, 0.0  ;;  %v1266_v10 = vmax.f32 %v1202_v8, 0.0  ;;  %v1112_v5 = vld [vmem:[%s1961_s11 + $0x78] sm:$0xff] }
 0x142   : > { %v882_v11 = vpop.f32.mrb[20].mxu0  ;;  %v1010_v13 = vpop.f32.mrb[20].mxu1  ;;  %v1144_v7 = vld [vmem:[%s1961_s11 + $0x178] sm:$0xff] }
 0x143   : > { %1298 = vst [vmem:[%s1980_s15 + $0x48] sm:$0xff] %v1234_v9  ;;  %1330 = vst [vmem:[%s1980_s15 + $0x148] sm:$0xff] %v1266_v10  ;;  %v883_v15 = vadd.f32 %v1966_v17, %v882_v11  ;;  %v1011_v16 = vadd.f32 %v1966_v17, %v1010_v13  ;;  %v884_v18 = vpop.f32.mrb[21].mxu0  ;;  %v1012_v19 = vpop.f32.mrb[21].mxu1 }
 0x144   : > { %v885_v20 = vpop.f32.mrb[22].mxu0  ;;  %v1013_v22 = vpop.f32.mrb[22].mxu1 }
 0x145   : > { %v1171_v24 = vadd.f32 %v1107_v12, %v883_v15  ;;  %v1203_v25 = vadd.f32 %v1139_v14, %v1011_v16  ;;  %v886_v26 = vadd.f32 %v1966_v17, %v885_v20  ;;  %v1014_v27 = vadd.f32 %v1966_v17, %v1013_v22  ;;  %v887_v28 = vpop.f32.mrb[23].mxu0  ;;  %v1015_v29 = vpop.f32.mrb[23].mxu1  ;;  %v1113_v22 = vld [vmem:[%s1961_s11 + $0x80] sm:$0xff] }
 0x147   : > { %v1235_v30 = vmax.f32 %v1171_v24, 0.0  ;;  %v1267_v31 = vmax.f32 %v1203_v25, 0.0  ;;  %v1172_v32 = vadd.f32 %v1108_v21, %v886_v26  ;;  %v1204_v33 = vadd.f32 %v1140_v23, %v1014_v27  ;;  %v1145_v24 = vld [vmem:[%s1961_s11 + $0x180] sm:$0xff] }
 0x149   : > { %1299 = vst [vmem:[%s1980_s15 + $0x50] sm:$0xff] %v1235_v30  ;;  %1331 = vst [vmem:[%s1980_s15 + $0x150] sm:$0xff] %v1267_v31  ;;  %v1236_v34 = vmax.f32 %v1172_v32, 0.0  ;;  %v1268_v35 = vmax.f32 %v1204_v33, 0.0  ;;  %v1114_v30 = vld [vmem:[%s1961_s11 + $0x88] sm:$0xff] }
 0x14a   : > { %v890_v36 = vpop.f32.mrb[24].mxu0  ;;  %v1018_v38 = vpop.f32.mrb[24].mxu1  ;;  %v1146_v32 = vld [vmem:[%s1961_s11 + $0x188] sm:$0xff] }
 0x14b   : > { %1300 = vst [vmem:[%s1980_s15 + $0x58] sm:$0xff] %v1236_v34  ;;  %1332 = vst [vmem:[%s1980_s15 + $0x158] sm:$0xff] %v1268_v35  ;;  %v891_v40 = vadd.f32 %v1966_v17, %v890_v36  ;;  %v1019_v41 = vadd.f32 %v1966_v17, %v1018_v38  ;;  %v892_v42 = vpop.f32.mrb[25].mxu0  ;;  %v1020_v43 = vpop.f32.mrb[25].mxu1 }
 0x14c   : > { %v893_v44 = vpop.f32.mrb[26].mxu0  ;;  %v1021_v46 = vpop.f32.mrb[26].mxu1 }
 0x14d   : > { %v1173_v48 = vadd.f32 %v1109_v37, %v891_v40  ;;  %v1205_v49 = vadd.f32 %v1141_v39, %v1019_v41  ;;  %v894_v50 = vadd.f32 %v1966_v17, %v893_v44  ;;  %v1022_v51 = vadd.f32 %v1966_v17, %v1021_v46  ;;  %v895_v52 = vpop.f32.mrb[27].mxu0  ;;  %v1023_v53 = vpop.f32.mrb[27].mxu1  ;;  %v1115_v46 = vld [vmem:[%s1961_s11 + $0x90] sm:$0xff] }
 0x14f   : > { %v1237_v54 = vmax.f32 %v1173_v48, 0.0  ;;  %v1269_v55 = vmax.f32 %v1205_v49, 0.0  ;;  %v1174_v56 = vadd.f32 %v1110_v45, %v894_v50  ;;  %v1206_v57 = vadd.f32 %v1142_v47, %v1022_v51  ;;  %v1147_v48 = vld [vmem:[%s1961_s11 + $0x190] sm:$0xff] }
 0x151   : > { %1301 = vst [vmem:[%s1980_s15 + $0x60] sm:$0xff] %v1237_v54  ;;  %1333 = vst [vmem:[%s1980_s15 + $0x160] sm:$0xff] %v1269_v55  ;;  %v1238_v58 = vmax.f32 %v1174_v56, 0.0  ;;  %v1270_v59 = vmax.f32 %v1206_v57, 0.0  ;;  %v1116_v54 = vld [vmem:[%s1961_s11 + $0x98] sm:$0xff] }
 0x152   : > { %v898_v60 = vpop.f32.mrb[28].mxu0  ;;  %v1026_v62 = vpop.f32.mrb[28].mxu1  ;;  %v1148_v56 = vld [vmem:[%s1961_s11 + $0x198] sm:$0xff] }
 0x153   : > { %1302 = vst [vmem:[%s1980_s15 + $0x68] sm:$0xff] %v1238_v58  ;;  %1334 = vst [vmem:[%s1980_s15 + $0x168] sm:$0xff] %v1270_v59  ;;  %v899_v0 = vadd.f32 %v1966_v17, %v898_v60  ;;  %v1027_v1 = vadd.f32 %v1966_v17, %v1026_v62  ;;  %v900_v2 = vpop.f32.mrb[29].mxu0  ;;  %v1028_v3 = vpop.f32.mrb[29].mxu1 }
 0x154   : > { %v901_v4 = vpop.f32.mrb[30].mxu0  ;;  %v1029_v6 = vpop.f32.mrb[30].mxu1 }
 0x155   : > { %v1175_v8 = vadd.f32 %v1111_v61, %v899_v0  ;;  %v1207_v9 = vadd.f32 %v1143_v63, %v1027_v1  ;;  %v902_v10 = vadd.f32 %v1966_v17, %v901_v4  ;;  %v1030_v11 = vadd.f32 %v1966_v17, %v1029_v6  ;;  %v903_v12 = vpop.f32.mrb[31].mxu0  ;;  %v1031_v13 = vpop.f32.mrb[31].mxu1  ;;  %v1117_v6 = vld [vmem:[%s1961_s11 + $0xa0] sm:$0xff] }
 0x157   : > { %v1239_v14 = vmax.f32 %v1175_v8, 0.0  ;;  %v1271_v15 = vmax.f32 %v1207_v9, 0.0  ;;  %v1176_v16 = vadd.f32 %v1112_v5, %v902_v10  ;;  %v1208_v18 = vadd.f32 %v1144_v7, %v1030_v11  ;;  %v1149_v8 = vld [vmem:[%s1961_s11 + $0x1a0] sm:$0xff] }
 0x159   : > { %1303 = vst [vmem:[%s1980_s15 + $0x70] sm:$0xff] %v1239_v14  ;;  %1335 = vst [vmem:[%s1980_s15 + $0x170] sm:$0xff] %v1271_v15  ;;  %v1240_v19 = vmax.f32 %v1176_v16, 0.0  ;;  %v1272_v20 = vmax.f32 %v1208_v18, 0.0  ;;  %v1118_v14 = vld [vmem:[%s1961_s11 + $0xa8] sm:$0xff] }
 0x15a   : > { %v906_v21 = vpop.f32.mrb[32].mxu0  ;;  %v1034_v23 = vpop.f32.mrb[32].mxu1  ;;  %v1150_v16 = vld [vmem:[%s1961_s11 + $0x1a8] sm:$0xff] }
 0x15b   : > { %1304 = vst [vmem:[%s1980_s15 + $0x78] sm:$0xff] %v1240_v19  ;;  %1336 = vst [vmem:[%s1980_s15 + $0x178] sm:$0xff] %v1272_v20  ;;  %v907_v25 = vadd.f32 %v1966_v17, %v906_v21  ;;  %v1035_v26 = vadd.f32 %v1966_v17, %v1034_v23  ;;  %v908_v27 = vpop.f32.mrb[33].mxu0  ;;  %v1036_v28 = vpop.f32.mrb[33].mxu1 }
 0x15c   : > { %v909_v29 = vpop.f32.mrb[34].mxu0  ;;  %v1037_v31 = vpop.f32.mrb[34].mxu1 }
 0x15d   : > { %v1177_v33 = vadd.f32 %v1113_v22, %v907_v25  ;;  %v1209_v34 = vadd.f32 %v1145_v24, %v1035_v26  ;;  %v910_v35 = vadd.f32 %v1966_v17, %v909_v29  ;;  %v1038_v36 = vadd.f32 %v1966_v17, %v1037_v31  ;;  %v911_v37 = vpop.f32.mrb[35].mxu0  ;;  %v1039_v38 = vpop.f32.mrb[35].mxu1  ;;  %v1119_v31 = vld [vmem:[%s1961_s11 + $0xb0] sm:$0xff] }
 0x15f   : > { %v1241_v39 = vmax.f32 %v1177_v33, 0.0  ;;  %v1273_v40 = vmax.f32 %v1209_v34, 0.0  ;;  %v1178_v41 = vadd.f32 %v1114_v30, %v910_v35  ;;  %v1210_v42 = vadd.f32 %v1146_v32, %v1038_v36  ;;  %v1151_v33 = vld [vmem:[%s1961_s11 + $0x1b0] sm:$0xff] }
 0x161   : > { %1305 = vst [vmem:[%s1980_s15 + $0x80] sm:$0xff] %v1241_v39  ;;  %1337 = vst [vmem:[%s1980_s15 + $0x180] sm:$0xff] %v1273_v40  ;;  %v1242_v43 = vmax.f32 %v1178_v41, 0.0  ;;  %v1274_v44 = vmax.f32 %v1210_v42, 0.0  ;;  %v1120_v39 = vld [vmem:[%s1961_s11 + $0xb8] sm:$0xff] }
 0x162   : > { %v914_v45 = vpop.f32.mrb[36].mxu0  ;;  %v1042_v47 = vpop.f32.mrb[36].mxu1  ;;  %v1152_v41 = vld [vmem:[%s1961_s11 + $0x1b8] sm:$0xff] }
 0x163   : > { %1306 = vst [vmem:[%s1980_s15 + $0x88] sm:$0xff] %v1242_v43  ;;  %1338 = vst [vmem:[%s1980_s15 + $0x188] sm:$0xff] %v1274_v44  ;;  %v915_v49 = vadd.f32 %v1966_v17, %v914_v45  ;;  %v1043_v50 = vadd.f32 %v1966_v17, %v1042_v47  ;;  %v916_v51 = vpop.f32.mrb[37].mxu0  ;;  %v1044_v52 = vpop.f32.mrb[37].mxu1 }
 0x164   : > { %v917_v53 = vpop.f32.mrb[38].mxu0  ;;  %v1045_v55 = vpop.f32.mrb[38].mxu1 }
 0x165   : > { %v1179_v57 = vadd.f32 %v1115_v46, %v915_v49  ;;  %v1211_v58 = vadd.f32 %v1147_v48, %v1043_v50  ;;  %v918_v59 = vadd.f32 %v1966_v17, %v917_v53  ;;  %v1046_v60 = vadd.f32 %v1966_v17, %v1045_v55  ;;  %v919_v61 = vpop.f32.mrb[39].mxu0  ;;  %v1047_v62 = vpop.f32.mrb[39].mxu1  ;;  %v1121_v55 = vld [vmem:[%s1961_s11 + $0xc0] sm:$0xff] }
 0x167   : > { %v1243_v63 = vmax.f32 %v1179_v57, 0.0  ;;  %v1275_v0 = vmax.f32 %v1211_v58, 0.0  ;;  %v1180_v1 = vadd.f32 %v1116_v54, %v918_v59  ;;  %v1212_v2 = vadd.f32 %v1148_v56, %v1046_v60  ;;  %v1153_v57 = vld [vmem:[%s1961_s11 + $0x1c0] sm:$0xff] }
 0x169   : > { %1307 = vst [vmem:[%s1980_s15 + $0x90] sm:$0xff] %v1243_v63  ;;  %1339 = vst [vmem:[%s1980_s15 + $0x190] sm:$0xff] %v1275_v0  ;;  %v1244_v3 = vmax.f32 %v1180_v1, 0.0  ;;  %v1276_v4 = vmax.f32 %v1212_v2, 0.0  ;;  %v1122_v63 = vld [vmem:[%s1961_s11 + $0xc8] sm:$0xff] }
 0x16a   : > { %v922_v5 = vpop.f32.mrb[40].mxu0  ;;  %v1050_v7 = vpop.f32.mrb[40].mxu1  ;;  %v1154_v1 = vld [vmem:[%s1961_s11 + $0x1c8] sm:$0xff] }
 0x16b   : > { %1308 = vst [vmem:[%s1980_s15 + $0x98] sm:$0xff] %v1244_v3  ;;  %1340 = vst [vmem:[%s1980_s15 + $0x198] sm:$0xff] %v1276_v4  ;;  %v923_v9 = vadd.f32 %v1966_v17, %v922_v5  ;;  %v1051_v10 = vadd.f32 %v1966_v17, %v1050_v7  ;;  %v924_v11 = vpop.f32.mrb[41].mxu0  ;;  %v1052_v12 = vpop.f32.mrb[41].mxu1 }
 0x16c   : > { %v925_v13 = vpop.f32.mrb[42].mxu0  ;;  %v1053_v15 = vpop.f32.mrb[42].mxu1 }
 0x16d   : > { %v1181_v18 = vadd.f32 %v1117_v6, %v923_v9  ;;  %v1213_v19 = vadd.f32 %v1149_v8, %v1051_v10  ;;  %v926_v20 = vadd.f32 %v1966_v17, %v925_v13  ;;  %v1054_v21 = vadd.f32 %v1966_v17, %v1053_v15  ;;  %v927_v22 = vpop.f32.mrb[43].mxu0  ;;  %v1055_v23 = vpop.f32.mrb[43].mxu1  ;;  %v1123_v15 = vld [vmem:[%s1961_s11 + $0xd0] sm:$0xff] }
 0x16f   : > { %v1245_v24 = vmax.f32 %v1181_v18, 0.0  ;;  %v1277_v25 = vmax.f32 %v1213_v19, 0.0  ;;  %v1182_v26 = vadd.f32 %v1118_v14, %v926_v20  ;;  %v1214_v27 = vadd.f32 %v1150_v16, %v1054_v21  ;;  %v1155_v18 = vld [vmem:[%s1961_s11 + $0x1d0] sm:$0xff] }
 0x171   : > { %1309 = vst [vmem:[%s1980_s15 + $0xa0] sm:$0xff] %v1245_v24  ;;  %1341 = vst [vmem:[%s1980_s15 + $0x1a0] sm:$0xff] %v1277_v25  ;;  %v1246_v28 = vmax.f32 %v1182_v26, 0.0  ;;  %v1278_v29 = vmax.f32 %v1214_v27, 0.0  ;;  %v1124_v24 = vld [vmem:[%s1961_s11 + $0xd8] sm:$0xff] }
 0x172   : > { %v930_v30 = vpop.f32.mrb[44].mxu0  ;;  %v1058_v32 = vpop.f32.mrb[44].mxu1  ;;  %v1156_v26 = vld [vmem:[%s1961_s11 + $0x1d8] sm:$0xff] }
 0x173   : > { %1310 = vst [vmem:[%s1980_s15 + $0xa8] sm:$0xff] %v1246_v28  ;;  %1342 = vst [vmem:[%s1980_s15 + $0x1a8] sm:$0xff] %v1278_v29  ;;  %v931_v34 = vadd.f32 %v1966_v17, %v930_v30  ;;  %v1059_v35 = vadd.f32 %v1966_v17, %v1058_v32  ;;  %v932_v36 = vpop.f32.mrb[45].mxu0  ;;  %v1060_v37 = vpop.f32.mrb[45].mxu1 }
 0x174   : > { %v933_v38 = vpop.f32.mrb[46].mxu0  ;;  %v1061_v40 = vpop.f32.mrb[46].mxu1 }
 0x175   : > { %v1183_v42 = vadd.f32 %v1119_v31, %v931_v34  ;;  %v1215_v43 = vadd.f32 %v1151_v33, %v1059_v35  ;;  %v934_v44 = vadd.f32 %v1966_v17, %v933_v38  ;;  %v1062_v45 = vadd.f32 %v1966_v17, %v1061_v40  ;;  %v935_v46 = vpop.f32.mrb[47].mxu0  ;;  %v1063_v47 = vpop.f32.mrb[47].mxu1  ;;  %v1125_v40 = vld [vmem:[%s1961_s11 + $0xe0] sm:$0xff] }
 0x177   : > { %v1247_v48 = vmax.f32 %v1183_v42, 0.0  ;;  %v1279_v49 = vmax.f32 %v1215_v43, 0.0  ;;  %v1184_v50 = vadd.f32 %v1120_v39, %v934_v44  ;;  %v1216_v51 = vadd.f32 %v1152_v41, %v1062_v45  ;;  %v1157_v42 = vld [vmem:[%s1961_s11 + $0x1e0] sm:$0xff] }
 0x179   : > { %1311 = vst [vmem:[%s1980_s15 + $0xb0] sm:$0xff] %v1247_v48  ;;  %1343 = vst [vmem:[%s1980_s15 + $0x1b0] sm:$0xff] %v1279_v49  ;;  %v1248_v52 = vmax.f32 %v1184_v50, 0.0  ;;  %v1280_v53 = vmax.f32 %v1216_v51, 0.0  ;;  %v1126_v48 = vld [vmem:[%s1961_s11 + $0xe8] sm:$0xff] }
 0x17a   : > { %v938_v54 = vpop.f32.mrb[48].mxu0  ;;  %v1066_v56 = vpop.f32.mrb[48].mxu1  ;;  %v1158_v50 = vld [vmem:[%s1961_s11 + $0x1e8] sm:$0xff] }
 0x17b   : > { %1312 = vst [vmem:[%s1980_s15 + $0xb8] sm:$0xff] %v1248_v52  ;;  %1344 = vst [vmem:[%s1980_s15 + $0x1b8] sm:$0xff] %v1280_v53  ;;  %v939_v58 = vadd.f32 %v1966_v17, %v938_v54  ;;  %v1067_v59 = vadd.f32 %v1966_v17, %v1066_v56  ;;  %v940_v60 = vpop.f32.mrb[49].mxu0  ;;  %v1068_v61 = vpop.f32.mrb[49].mxu1 }
 0x17c   : > { %v941_v62 = vpop.f32.mrb[50].mxu0  ;;  %v1069_v0 = vpop.f32.mrb[50].mxu1 }
 0x17d   : > { %v1185_v2 = vadd.f32 %v1121_v55, %v939_v58  ;;  %v1217_v3 = vadd.f32 %v1153_v57, %v1067_v59  ;;  %v942_v4 = vadd.f32 %v1966_v17, %v941_v62  ;;  %v1070_v5 = vadd.f32 %v1966_v17, %v1069_v0  ;;  %v943_v6 = vpop.f32.mrb[51].mxu0  ;;  %v1071_v7 = vpop.f32.mrb[51].mxu1  ;;  %v1127_v0 = vld [vmem:[%s1961_s11 + $0xf0] sm:$0xff] }
 0x17f   : > { %v1249_v8 = vmax.f32 %v1185_v2, 0.0  ;;  %v1281_v9 = vmax.f32 %v1217_v3, 0.0  ;;  %v1186_v10 = vadd.f32 %v1122_v63, %v942_v4  ;;  %v1218_v11 = vadd.f32 %v1154_v1, %v1070_v5  ;;  %v1159_v2 = vld [vmem:[%s1961_s11 + $0x1f0] sm:$0xff] }
 0x181   : > { %1313 = vst [vmem:[%s1980_s15 + $0xc0] sm:$0xff] %v1249_v8  ;;  %1345 = vst [vmem:[%s1980_s15 + $0x1c0] sm:$0xff] %v1281_v9  ;;  %v1250_v12 = vmax.f32 %v1186_v10, 0.0  ;;  %v1282_v13 = vmax.f32 %v1218_v11, 0.0  ;;  %v1128_v8 = vld [vmem:[%s1961_s11 + $0xf8] sm:$0xff] }
 0x182   : > { %v946_v14 = vpop.f32.mrb[52].mxu0  ;;  %v1074_v16 = vpop.f32.mrb[52].mxu1  ;;  %v1160_v10 = vld [vmem:[%s1961_s11 + $0x1f8] sm:$0xff] }
 0x183   : > { %1314 = vst [vmem:[%s1980_s15 + $0xc8] sm:$0xff] %v1250_v12  ;;  %1346 = vst [vmem:[%s1980_s15 + $0x1c8] sm:$0xff] %v1282_v13  ;;  %v947_v19 = vadd.f32 %v1966_v17, %v946_v14  ;;  %v1075_v20 = vadd.f32 %v1966_v17, %v1074_v16  ;;  %v948_v21 = vpop.f32.mrb[53].mxu0  ;;  %v1076_v22 = vpop.f32.mrb[53].mxu1 }
 0x184   : > { %v949_v23 = vpop.f32.mrb[54].mxu0  ;;  %v1077_v25 = vpop.f32.mrb[54].mxu1 }
 0x185   : > { %v1187_v27 = vadd.f32 %v1123_v15, %v947_v19  ;;  %v1219_v28 = vadd.f32 %v1155_v18, %v1075_v20  ;;  %v950_v29 = vadd.f32 %v1966_v17, %v949_v23  ;;  %v1078_v30 = vadd.f32 %v1966_v17, %v1077_v25  ;;  %v951_v31 = vpop.f32.mrb[55].mxu0  ;;  %v1079_v32 = vpop.f32.mrb[55].mxu1 }
 0x187   : > { %v1251_v33 = vmax.f32 %v1187_v27, 0.0  ;;  %v1283_v34 = vmax.f32 %v1219_v28, 0.0  ;;  %v1188_v35 = vadd.f32 %v1124_v24, %v950_v29  ;;  %v1220_v36 = vadd.f32 %v1156_v26, %v1078_v30 }
 0x189   : > { %1315 = vst [vmem:[%s1980_s15 + $0xd0] sm:$0xff] %v1251_v33  ;;  %1347 = vst [vmem:[%s1980_s15 + $0x1d0] sm:$0xff] %v1283_v34  ;;  %v1252_v37 = vmax.f32 %v1188_v35, 0.0  ;;  %v1284_v38 = vmax.f32 %v1220_v36, 0.0 }
 0x18a   : > { %v954_v39 = vpop.f32.mrb[56].mxu0  ;;  %v1082_v41 = vpop.f32.mrb[56].mxu1 }
 0x18b   : > { %1316 = vst [vmem:[%s1980_s15 + $0xd8] sm:$0xff] %v1252_v37  ;;  %1348 = vst [vmem:[%s1980_s15 + $0x1d8] sm:$0xff] %v1284_v38  ;;  %v955_v43 = vadd.f32 %v1966_v17, %v954_v39  ;;  %v1083_v44 = vadd.f32 %v1966_v17, %v1082_v41  ;;  %v956_v45 = vpop.f32.mrb[57].mxu0  ;;  %v1084_v46 = vpop.f32.mrb[57].mxu1 }
 0x18c   : > { %v957_v47 = vpop.f32.mrb[58].mxu0  ;;  %v1085_v49 = vpop.f32.mrb[58].mxu1 }
 0x18d   : > { %v1189_v51 = vadd.f32 %v1125_v40, %v955_v43  ;;  %v1221_v52 = vadd.f32 %v1157_v42, %v1083_v44  ;;  %v958_v53 = vadd.f32 %v1966_v17, %v957_v47  ;;  %v1086_v54 = vadd.f32 %v1966_v17, %v1085_v49  ;;  %v959_v55 = vpop.f32.mrb[59].mxu0  ;;  %v1087_v56 = vpop.f32.mrb[59].mxu1 }
 0x18f   : > { %v1253_v57 = vmax.f32 %v1189_v51, 0.0  ;;  %v1285_v58 = vmax.f32 %v1221_v52, 0.0  ;;  %v1190_v59 = vadd.f32 %v1126_v48, %v958_v53  ;;  %v1222_v60 = vadd.f32 %v1158_v50, %v1086_v54 }
 0x191   : > { %1317 = vst [vmem:[%s1980_s15 + $0xe0] sm:$0xff] %v1253_v57  ;;  %1349 = vst [vmem:[%s1980_s15 + $0x1e0] sm:$0xff] %v1285_v58  ;;  %v1254_v61 = vmax.f32 %v1190_v59, 0.0  ;;  %v1286_v62 = vmax.f32 %v1222_v60, 0.0 }
 0x192   : > { %v962_v63 = vpop.f32.mrb[60].mxu0  ;;  %v1090_v1 = vpop.f32.mrb[60].mxu1 }
 0x193   : > { %1318 = vst [vmem:[%s1980_s15 + $0xe8] sm:$0xff] %v1254_v61  ;;  %1350 = vst [vmem:[%s1980_s15 + $0x1e8] sm:$0xff] %v1286_v62  ;;  %v963_v3 = vadd.f32 %v1966_v17, %v962_v63  ;;  %v1091_v4 = vadd.f32 %v1966_v17, %v1090_v1  ;;  %v964_v5 = vpop.f32.mrb[61].mxu0  ;;  %v1092_v6 = vpop.f32.mrb[61].mxu1 }
 0x194   : > { %v965_v7 = vpop.f32.mrb[62].mxu0  ;;  %v1093_v9 = vpop.f32.mrb[62].mxu1 }
 0x195   : > { %v1191_v11 = vadd.f32 %v1127_v0, %v963_v3  ;;  %v1223_v12 = vadd.f32 %v1159_v2, %v1091_v4  ;;  %v966_v13 = vadd.f32 %v1966_v17, %v965_v7  ;;  %v1094_v14 = vadd.f32 %v1966_v17, %v1093_v9  ;;  %v967_v15 = vpop.f32.mrb[63].mxu0  ;;  %v1095_v16 = vpop.f32.mrb[63].mxu1 }
 0x197   : > { %v1255_v18 = vmax.f32 %v1191_v11, 0.0  ;;  %v1287_v19 = vmax.f32 %v1223_v12, 0.0  ;;  %v1192_v20 = vadd.f32 %v1128_v8, %v966_v13  ;;  %v1224_v21 = vadd.f32 %v1160_v10, %v1094_v14 }
 0x199   : > { %1319 = vst [vmem:[%s1980_s15 + $0xf0] sm:$0xff] %v1255_v18  ;;  %1351 = vst [vmem:[%s1980_s15 + $0x1f0] sm:$0xff] %v1287_v19  ;;  %v1256_v22 = vmax.f32 %v1192_v20, 0.0  ;;  %v1288_v23 = vmax.f32 %v1224_v21, 0.0 }
 0x19b   : > { %1320 = vst [vmem:[%s1980_s15 + $0xf8] sm:$0xff] %v1256_v22  ;;  %1352 = vst [vmem:[%s1980_s15 + $0x1f8] sm:$0xff] %v1288_v23 }
 0x19c PF: > { %s14_s17 = sadd.s32 1, %s1759_s17   ;;  %s2180_s15 = smov %s1755_s16 }
 0x19d   : > { %p11_p5 = scmp.ge.s32.totalorder %s14_s17, 4   ;;  %s2181_s16 = smov %s2183_s18 }
 0x19f   :  { %13 = sbr.rel (!%p11_p5) target bundleno = 2 (0x2), region = 75 }

</bundles_post_ra>
